<compile_context>
chip_gen: v6e
topology: v6e:2x2x1
jax: 0.10.0
libtpu: 0.0.40
codegen_flags: <defaults>
</compile_context>

<pallas_src>
import math
import functools

import jax
import jax.numpy as jnp
from jax.experimental import pallas as pl
from jax.experimental.pallas import tpu as pltpu

HOP, N_FFT, WIN = 160, 512, 400
BN_EPS = 1e-5
LN_EPS = 1e-5
LEAKY_SLOPE = 0.01
DIM_FF = 2048                       # nn.TransformerEncoderLayer default

F_BINS = N_FFT // 2 + 1             # 257
SIN_OFF = ((F_BINS + 127) // 128) * 128   # 384  (lane-aligned start of the sin section)
NPAD = 2 * SIN_OFF                  # 768  (lane-dense fused RI width)
VMEM_LIMIT = 48 * 1024 * 1024       # explicit scoped-VMEM budget (v7x-safe)


def _pick_tile(dim, max_tile, align):
    """Largest tile <= max_tile that divides `dim` and is `align`-aligned.

    Guarantees the tile never silently grows with the axis (v7x VMEM safety);
    only if no aligned divisor exists do we fall back to the full extent
    (which is always a legal block shape)."""
    if dim <= max_tile:
        return dim
    t = (max_tile // align) * align
    while t >= align:
        if dim % t == 0:
            return t
        t -= align
    return dim


# -----------------------------------------------------------------------------
# Pallas kernels
# -----------------------------------------------------------------------------
def fused_matmul(x, w, b=None, res=None, act="none", ln=None, x2=None,
                 mm_dtype=jnp.float32, out_dtype=jnp.float32,
                 tm_max=256, tk_max=512, tn_max=None):
    """out = [LayerNorm_{g,b}]( act((x [* x2]) @ w [+ b]) [+ res] )

    Grid (M, N, K): M/N parallel, K accumulated into a VMEM f32 scratch with
    pl.when init/finalize.  N tiling (tn_max) is only used for calls without a
    LayerNorm epilogue (LN needs the full row) — it gives megacore parts a
    parallel axis even when M is a single block.  `x2`, if given, multiplies x
    elementwise before the dot (fuses mask*spec into the ISTFT matmul)."""
    M, K = x.shape
    K2, N = w.shape
    assert K == K2
    has_bias, has_res = b is not None, res is not None
    has_ln, has_x2 = ln is not None, x2 is not None

    tm = _pick_tile(M, tm_max, 8)
    tk = _pick_tile(K, tk_max, 128)
    tn = N if (tn_max is None or has_ln) else _pick_tile(N, tn_max, 128)
    nk = K // tk

    def kernel(*refs):
        pos = 0
        x_ref = refs[pos]; pos += 1
        x2_ref = None
        if has_x2:
            x2_ref = refs[pos]; pos += 1
        w_ref = refs[pos]; pos += 1
        b_ref = r_ref = g_ref = be_ref = None
        if has_bias:
            b_ref = refs[pos]; pos += 1
        if has_res:
            r_ref = refs[pos]; pos += 1
        if has_ln:
            g_ref, be_ref = refs[pos], refs[pos + 1]; pos += 2
        o_ref, acc_ref = refs[pos], refs[pos + 1]

        kk = pl.program_id(2)

        @pl.when(kk == 0)
        def _():
            acc_ref[...] = jnp.zeros_like(acc_ref)

        xv = x_ref[...]
        if has_x2:
            xv = xv * x2_ref[...]
        acc_ref[...] += jnp.dot(xv, w_ref[...], preferred_element_type=jnp.float32)

        @pl.when(kk == nk - 1)
        def _():
            y = acc_ref[...]
            if has_bias:
                y = y + b_ref[...]
            if act == "relu":
                y = jnp.maximum(y, 0.0)
            if has_res:
                y = y + r_ref[...]
            if has_ln:
                mu = jnp.mean(y, axis=-1, keepdims=True)
                yc = y - mu
                var = jnp.mean(yc * yc, axis=-1, keepdims=True)
                y = yc * jax.lax.rsqrt(var + LN_EPS) * g_ref[...] + be_ref[...]
            o_ref[...] = y.astype(o_ref.dtype)

    in_specs = [pl.BlockSpec((tm, tk), lambda m, n, k: (m, k))]
    args = [x.astype(mm_dtype)]
    if has_x2:
        in_specs.append(pl.BlockSpec((tm, tk), lambda m, n, k: (m, k)))
        args.append(x2.astype(mm_dtype))
    # TODO(synk): pl.Buffered(3) on this weight spec would hide DMA latency on
    # v5e for the K-accumulated calls; omitted pending pipeline_mode support.
    in_specs.append(pl.BlockSpec((tk, tn), lambda m, n, k: (k, n)))
    args.append(w.astype(mm_dtype))
    if has_bias:
        in_specs.append(pl.BlockSpec((1, tn), lambda m, n, k: (0, n)))
        args.append(b.reshape(1, N).astype(jnp.float32))
    if has_res:
        in_specs.append(pl.BlockSpec((tm, tn), lambda m, n, k: (m, n)))
        args.append(res.astype(jnp.float32))
    if has_ln:
        g, be = ln
        in_specs += [pl.BlockSpec((1, tn), lambda m, n, k: (0, n)),
                     pl.BlockSpec((1, tn), lambda m, n, k: (0, n))]
        args += [g.reshape(1, N).astype(jnp.float32),
                 be.reshape(1, N).astype(jnp.float32)]

    return pl.pallas_call(
        kernel,
        out_shape=jax.ShapeDtypeStruct((M, N), out_dtype),
        grid=(M // tm, N // tn, nk),
        in_specs=in_specs,
        out_specs=pl.BlockSpec((tm, tn), lambda m, n, k: (m, n)),
        scratch_shapes=[pltpu.VMEM((tm, tn), jnp.float32)],
        compiler_params=pltpu.CompilerParams(
            dimension_semantics=("parallel", "parallel", "arbitrary"),
            vmem_limit_bytes=VMEM_LIMIT),
    )(*args)


def conv_matmul_t(w2, patches_t, b, scale, shift, act, res_t=None, tm_max=2048):
    """Channel-transposed conv matmul with fused bias + BN(eval) + act (+ res).

    out[Cout, M] = act((w2 @ patches_t + b) * scale + shift) [+ res_t]
    bf16 MXU with f32 accumulation; the epilogue stays f32.  The output lane
    axis is the flattened (B, H, Wout) position axis, so stores are lane-dense
    even though Cout is small.  Grid is parallel over M blocks."""
    Cout, K = w2.shape
    K2, M = patches_t.shape
    assert K == K2
    tm = _pick_tile(M, tm_max, 128)
    has_res = res_t is not None

    def kernel(*refs):
        if has_res:
            w_ref, p_ref, b_ref, s_ref, h_ref, r_ref, o_ref = refs
        else:
            w_ref, p_ref, b_ref, s_ref, h_ref, o_ref = refs
        y = jnp.dot(w_ref[...], p_ref[...], preferred_element_type=jnp.float32)
        y = (y + b_ref[...]) * s_ref[...] + h_ref[...]
        if act == "leaky_relu":
            y = jnp.where(y >= 0.0, y, LEAKY_SLOPE * y)
        elif act == "tanh":
            y = jnp.tanh(y)
        if has_res:
            y = y + r_ref[...]          # residual added after activation (as in the reference)
        o_ref[...] = y

    in_specs = [pl.BlockSpec((Cout, K), lambda m: (0, 0)),
                pl.BlockSpec((K, tm), lambda m: (0, m)),
                pl.BlockSpec((Cout, 1), lambda m: (0, 0)),
                pl.BlockSpec((Cout, 1), lambda m: (0, 0)),
                pl.BlockSpec((Cout, 1), lambda m: (0, 0))]
    args = [w2.astype(jnp.bfloat16), patches_t.astype(jnp.bfloat16),
            b.reshape(Cout, 1).astype(jnp.float32),
            scale.reshape(Cout, 1).astype(jnp.float32),
            shift.reshape(Cout, 1).astype(jnp.float32)]
    if has_res:
        in_specs.append(pl.BlockSpec((Cout, tm), lambda m: (0, m)))
        args.append(res_t.astype(jnp.float32))

    return pl.pallas_call(
        kernel,
        out_shape=jax.ShapeDtypeStruct((Cout, M), jnp.float32),
        grid=(M // tm,),
        in_specs=in_specs,
        out_specs=pl.BlockSpec((Cout, tm), lambda m: (0, m)),
        compiler_params=pltpu.CompilerParams(
            dimension_semantics=("parallel",),
            vmem_limit_bytes=VMEM_LIMIT),
    )(*args)


def attention(q, k, v, out_dtype=jnp.bfloat16):
    """softmax(q k^T / sqrt(hd)) v, gridded over (batch*head) blocks.

    bf16 QK^T / PV dots with f32 accumulation; softmax statistics in f32 and
    an exact normalization (the kernel is not EUP-bound at these sizes)."""
    BH, S, HD = q.shape
    sm_scale = 1.0 / math.sqrt(HD)
    bh_tile = 1
    for t in range(max(1, BH // 2), 0, -1):   # >=2 grid steps so megacore can shard
        if BH % t == 0:
            bh_tile = t
            break

    def kernel(q_ref, k_ref, v_ref, o_ref):
        s = jax.lax.dot_general(
            q_ref[...], k_ref[...], (((2,), (2,)), ((0,), (0,))),
            preferred_element_type=jnp.float32) * sm_scale
        m = jnp.max(s, axis=-1, keepdims=True)
        e = jnp.exp(s - m)
        p = (e / jnp.sum(e, axis=-1, keepdims=True)).astype(v_ref.dtype)
        o = jax.lax.dot_general(
            p, v_ref[...], (((2,), (1,)), ((0,), (0,))),
            preferred_element_type=jnp.float32)
        o_ref[...] = o.astype(o_ref.dtype)

    spec = pl.BlockSpec((bh_tile, S, HD), lambda i: (i, 0, 0))
    return pl.pallas_call(
        kernel,
        out_shape=jax.ShapeDtypeStruct((BH, S, HD), out_dtype),
        grid=(BH // bh_tile,),
        in_specs=[spec, spec, spec],
        out_specs=spec,
        compiler_params=pltpu.CompilerParams(dimension_semantics=("parallel",)),
    )(q, k, v)


# -----------------------------------------------------------------------------
# Conv / ConvTranspose via channel-transposed im2col + Pallas conv matmul
# -----------------------------------------------------------------------------
# TODO(synk): fold the im2col gather into the conv kernel (shifted-view taps on
# a VMEM-resident padded input) to remove the duplicated patches tensor in HBM.
def _im2col_t(xp, Hout, Wout, KH, KW, stride_w):
    """Patches in (K = Cin*KH*KW, M = B*Hout*Wout) layout (matches w.reshape)."""
    B, Cin = xp.shape[0], xp.shape[1]
    cols = []
    for kh in range(KH):
        for kw in range(KW):
            cols.append(xp[:, :, kh:kh + Hout, kw:kw + stride_w * Wout:stride_w])
    patches = jnp.stack(cols, axis=2)            # (B, Cin, KH*KW, Hout, Wout)
    patches = patches.transpose(1, 2, 0, 3, 4)   # (Cin, KH*KW, B, Hout, Wout)
    return patches.reshape(Cin * KH * KW, B * Hout * Wout)


def conv2d_bn_act(x, w, b, bn_scale, bn_shift, act):
    """Conv2d(k=(3,4), stride=(1,2), pad=(1,1)) + BN(eval) + act."""
    B, Cin, H, W = x.shape
    Cout, _, KH, KW = w.shape
    Hout, Wout = H, W // 2
    xp = jnp.pad(x, ((0, 0), (0, 0), (1, 1), (1, 1)))
    patches_t = _im2col_t(xp, Hout, Wout, KH, KW, 2)
    w2 = w.reshape(Cout, Cin * KH * KW)
    y = conv_matmul_t(w2, patches_t, b, bn_scale, bn_shift, act)
    return y.reshape(Cout, B, Hout, Wout).transpose(1, 0, 2, 3)


def deconv2d_bn_act(x, w, b, bn_scale, bn_shift, act, res=None):
    """ConvTranspose2d(k=(3,4), stride=(1,2), pad=(1,1)) + BN(eval) + act (+ res).

    Polyphase decomposition: even output columns use kw in {1,3}, odd columns
    use kw in {0,2}, each phase is a stride-1 (3,2) conv — half the taps / K
    of the zero-dilated formulation and no dilated intermediate in HBM."""
    B, Cin, H, Win = x.shape
    _, Cout, KH, KW = w.shape                              # KH=3, KW=4
    xp = jnp.pad(x, ((0, 0), (0, 0), (1, 1), (1, 1)))      # (B,Cin,H+2,Win+2)
    Wf = jnp.flip(w.transpose(1, 0, 2, 3), axis=2)         # (Cout,Cin,KH,KW), kh-flipped
    # even phase: y[2j] = x[j]*W[..,1] + x[j-1]*W[..,3]  -> taps (dw=0 -> kw=3, dw=1 -> kw=1)
    # odd  phase: y[2j+1] = x[j+1]*W[..,0] + x[j]*W[..,2] -> taps (dw=0 -> kw=2, dw=1 -> kw=0)
    w_even = jnp.stack([Wf[..., 3], Wf[..., 1]], axis=-1).reshape(Cout, Cin * KH * 2)
    w_odd = jnp.stack([Wf[..., 2], Wf[..., 0]], axis=-1).reshape(Cout, Cin * KH * 2)
    p_even = _im2col_t(xp, H, Win, KH, 2, 1)
    p_odd = _im2col_t(xp[:, :, :, 1:], H, Win, KH, 2, 1)

    res_even = res_odd = None
    if res is not None:
        r_t = res.transpose(1, 0, 2, 3)                    # (Cout, B, H, Wout)
        res_even = r_t[..., 0::2].reshape(Cout, -1)
        res_odd = r_t[..., 1::2].reshape(Cout, -1)

    y_even = conv_matmul_t(w_even, p_even, b, bn_scale, bn_shift, act, res_even)
    y_odd = conv_matmul_t(w_odd, p_odd, b, bn_scale, bn_shift, act, res_odd)
    y = jnp.stack([y_even.reshape(Cout, B, H, Win),
                   y_odd.reshape(Cout, B, H, Win)], axis=-1)
    return y.reshape(Cout, B, H, 2 * Win).transpose(1, 0, 2, 3)


# -----------------------------------------------------------------------------
# STFT / ISTFT bases (window folded into the DFT matrices, lane-aligned layout)
# -----------------------------------------------------------------------------
def _hann_window_padded():
    n = jnp.arange(WIN, dtype=jnp.float32)
    w = 0.5 - 0.5 * jnp.cos(2.0 * jnp.pi * n / WIN)   # periodic Hann (torch default)
    lpad = (N_FFT - WIN) // 2
    return jnp.pad(w, (lpad, N_FFT - WIN - lpad))


def _stft_basis():
    w = _hann_window_padded()
    n = jnp.arange(N_FFT, dtype=jnp.float32)[:, None]
    f = jnp.arange(F_BINS, dtype=jnp.float32)[None, :]
    ang = 2.0 * jnp.pi * n * f / N_FFT
    cos_b = w[:, None] * jnp.cos(ang)                 # (n_fft, F)
    sin_b = -w[:, None] * jnp.sin(ang)
    return cos_b, sin_b


def _istft_basis():
    w = _hann_window_padded()
    f = jnp.arange(F_BINS, dtype=jnp.float32)[:, None]
    n = jnp.arange(N_FFT, dtype=jnp.float32)[None, :]
    ang = 2.0 * jnp.pi * f * n / N_FFT
    c = jnp.where((f == 0) | (f == N_FFT // 2), 1.0, 2.0)
    cos_b = (c * jnp.cos(ang) / N_FFT) * w[None, :]   # (F, n_fft), window folded in
    sin_b = (-c * jnp.sin(ang) / N_FFT) * w[None, :]
    return cos_b, sin_b, w


# -----------------------------------------------------------------------------
# Parameters (deterministic synthetic init; PyTorch default BN/LN init)
# -----------------------------------------------------------------------------
def _bn_affine(C):
    gamma, beta = jnp.ones((C,), jnp.float32), jnp.zeros((C,), jnp.float32)
    rm, rv = jnp.zeros((C,), jnp.float32), jnp.ones((C,), jnp.float32)
    scale = gamma / jnp.sqrt(rv + BN_EPS)
    shift = beta - rm * scale
    return scale, shift


def make_params(key, T):
    D = 16 * T
    nh = T // 2                        # mirrors nhead=101 when T=202 (head_dim=32)
    assert D % nh == 0
    keys = iter(jax.random.split(key, 32))

    def rnd(shape, s=0.1):
        return (s * jax.random.normal(next(keys), shape)).astype(jnp.float32)

    p = {"nhead": nh}

    # Lane-aligned fused STFT basis: [cos | 0-pad | sin | 0-pad] -> (512, 768)
    cos_b, sin_b = _stft_basis()
    pad_c = SIN_OFF - F_BINS
    pad_s = NPAD - SIN_OFF - F_BINS
    p["stft_basis"] = jnp.concatenate(
        [cos_b, jnp.zeros((N_FFT, pad_c), jnp.float32),
         sin_b, jnp.zeros((N_FFT, pad_s), jnp.float32)], axis=1)

    # ISTFT basis with matching K layout: [icos ; 0 ; isin ; 0] -> (768, 512)
    icos, isin, win_pad = _istft_basis()
    p["istft_basis"] = jnp.concatenate(
        [icos, jnp.zeros((pad_c, N_FFT), jnp.float32),
         isin, jnp.zeros((pad_s, N_FFT), jnp.float32)], axis=0)
    p["win_pad"] = win_pad

    # encoder convs: Conv2d(2->16), then 16->16 x3 (f32 weights, bf16 cast in wrapper)
    p["conv1_w"], p["conv1_b"] = rnd((16, 2, 3, 4)), rnd((16,), 0.05)
    p["bn1_s"], p["bn1_h"] = _bn_affine(16)
    for i in (2, 3, 4):
        p[f"conv{i}_w"], p[f"conv{i}_b"] = rnd((16, 16, 3, 4)), rnd((16,), 0.05)
        p[f"bn{i}_s"], p[f"bn{i}_h"] = _bn_affine(16)

    # decoder transposed convs: 16->16 x3, then 16->2
    for i in (2, 3, 4):
        p[f"deconv{i}_w"], p[f"deconv{i}_b"] = rnd((16, 16, 3, 4)), rnd((16,), 0.05)
        p[f"bnd{i}_s"], p[f"bnd{i}_h"] = _bn_affine(16)
    p["deconv5_w"], p["deconv5_b"] = rnd((16, 2, 3, 4)), rnd((2,), 0.05)
    p["bnd5_s"], p["bnd5_h"] = _bn_affine(2)

    # transformer encoder layer — weights pre-cast to bf16 (MXU dtype), biases
    # and LN params stay f32 (epilogue dtype)
    p["in_proj_w_t"] = rnd((D, 3 * D), 0.05).astype(jnp.bfloat16)
    p["in_proj_b"] = rnd((3 * D,), 0.02)
    p["out_proj_w_t"] = rnd((D, D), 0.05).astype(jnp.bfloat16)
    p["out_proj_b"] = rnd((D,), 0.02)
    p["lin1_w_t"] = rnd((D, DIM_FF), 0.05).astype(jnp.bfloat16)
    p["lin1_b"] = rnd((DIM_FF,), 0.02)
    p["lin2_w_t"] = rnd((DIM_FF, D), 0.05).astype(jnp.bfloat16)
    p["lin2_b"] = rnd((D,), 0.02)
    p["ln1_g"], p["ln1_b"] = jnp.ones((D,), jnp.float32), jnp.zeros((D,), jnp.float32)
    p["ln2_g"], p["ln2_b"] = jnp.ones((D,), jnp.float32), jnp.zeros((D,), jnp.float32)
    return p


# -----------------------------------------------------------------------------
# Forward pass
# -----------------------------------------------------------------------------
def enhancement_forward(params, audio):
    B, L = audio.shape
    F = F_BINS

    # ---- STFT: reflect-pad + framing in JAX; single fused windowed-DFT matmul ----
    xp_audio = jnp.pad(audio, ((0, 0), (N_FFT // 2, N_FFT // 2)), mode="reflect")
    T = 1 + (xp_audio.shape[1] - N_FFT) // HOP
    idx = jnp.arange(T)[:, None] * HOP + jnp.arange(N_FFT)[None, :]
    frames = xp_audio[:, idx].reshape(B * T, N_FFT)
    spec_ri = fused_matmul(frames, params["stft_basis"])         # (B*T, 768) f32
    Xr = spec_ri[:, :F].reshape(B, T, F).transpose(0, 2, 1)
    Xi = spec_ri[:, SIN_OFF:SIN_OFF + F].reshape(B, T, F).transpose(0, 2, 1)
    x_input_spec = jnp.stack([Xr, Xi], axis=1)                   # (B, 2, F, T)

    x = x_input_spec.transpose(0, 1, 3, 2)[..., :-1]             # (B, 2, T, F-1)

    # ---- encoder ----
    c1 = conv2d_bn_act(x,  params["conv1_w"], params["conv1_b"], params["bn1_s"], params["bn1_h"], "leaky_relu")
    c2 = conv2d_bn_act(c1, params["conv2_w"], params["conv2_b"], params["bn2_s"], params["bn2_h"], "leaky_relu")
    c3 = conv2d_bn_act(c2, params["conv3_w"], params["conv3_b"], params["bn3_s"], params["bn3_h"], "leaky_relu")
    c4 = conv2d_bn_act(c3, params["conv4_w"], params["conv4_b"], params["bn4_s"], params["bn4_h"], "leaky_relu")

    # ---- transformer encoder layer (bf16 MXU + bf16 intermediates, f32 epilogue) ----
    Bc, C, H, W = c4.shape
    D, S = C * H, W
    nh = params["nhead"]
    hd = D // nh
    x_seq = c4.reshape(Bc, D, W).transpose(0, 2, 1).reshape(Bc * S, D)   # (B*S, D) f32
    qkv = fused_matmul(x_seq, params["in_proj_w_t"], b=params["in_proj_b"],
                       mm_dtype=jnp.bfloat16, out_dtype=jnp.bfloat16, tn_max=128)
    q, k, v = qkv[:, :D], qkv[:, D:2 * D], qkv[:, 2 * D:]

    # TODO(synk): fuse the head split/merge into the attention kernel via
    # lane-offset index_maps on the packed qkv (hd=32 blocks break the 128-lane
    # block rule, so the reshape/transpose glue stays in XLA for now).
    def split_heads(t):
        return t.reshape(Bc, S, nh, hd).transpose(0, 2, 1, 3).reshape(Bc * nh, S, hd)

    a = attention(split_heads(q), split_heads(k), split_heads(v))        # bf16
    a = a.reshape(Bc, nh, S, hd).transpose(0, 2, 1, 3).reshape(Bc * S, D)
    # out_proj + residual-add + LayerNorm fused in the matmul epilogue
    h1 = fused_matmul(a, params["out_proj_w_t"], b=params["out_proj_b"],
                      res=x_seq, ln=(params["ln1_g"], params["ln1_b"]),
                      mm_dtype=jnp.bfloat16, out_dtype=jnp.bfloat16)
    ff = fused_matmul(h1, params["lin1_w_t"], b=params["lin1_b"], act="relu",
                      mm_dtype=jnp.bfloat16, out_dtype=jnp.bfloat16, tn_max=1024)
    # lin2 + residual-add + LayerNorm fused in the matmul epilogue
    h2 = fused_matmul(ff, params["lin2_w_t"], b=params["lin2_b"],
                      res=h1, ln=(params["ln2_g"], params["ln2_b"]),
                      mm_dtype=jnp.bfloat16, out_dtype=jnp.float32)
    x_trans = h2.reshape(Bc, S, D).transpose(0, 2, 1).reshape(Bc, C, H, W)

    # ---- decoder (polyphase transposed convs) ----
    d2 = deconv2d_bn_act(x_trans, params["deconv2_w"], params["deconv2_b"], params["bnd2_s"], params["bnd2_h"], "leaky_relu")
    d3 = deconv2d_bn_act(d2, params["deconv3_w"], params["deconv3_b"], params["bnd3_s"], params["bnd3_h"], "leaky_relu", res=c2)
    d4 = deconv2d_bn_act(d3, params["deconv4_w"], params["deconv4_b"], params["bnd4_s"], params["bnd4_h"], "leaky_relu", res=c1)
    d5 = deconv2d_bn_act(d4, params["deconv5_w"], params["deconv5_b"], params["bnd5_s"], params["bnd5_h"], "tanh")

    d5 = d5.transpose(0, 1, 3, 2)                                # (B, 2, F-1, T)
    mask = jnp.pad(d5, ((0, 0), (0, 0), (0, 1), (0, 0)))         # (B, 2, F, T)
    enhanced_spec = mask * x_input_spec                          # needed as a model output
    mask_spec = jax.lax.complex(mask[:, 0], mask[:, 1])
    enhanced_cmplx_spec = jax.lax.complex(enhanced_spec[:, 0], enhanced_spec[:, 1])

    # ---- ISTFT: mask*spec fused as the matmul prologue; fold-based overlap-add ----
    m_t = mask.transpose(0, 3, 1, 2)                             # (B, T, 2, F)
    mask_ri = jnp.concatenate(
        [jnp.pad(m_t[:, :, 0].reshape(B * T, F), ((0, 0), (0, SIN_OFF - F))),
         jnp.pad(m_t[:, :, 1].reshape(B * T, F), ((0, 0), (0, NPAD - SIN_OFF - F)))],
        axis=1)                                                  # (B*T, 768)
    frames_t = fused_matmul(spec_ri, params["istft_basis"],
                            x2=mask_ri).reshape(B, T, N_FFT)

    Lp = N_FFT + (T - 1) * HOP
    n_chunks = -(-N_FFT // HOP)                                  # 4 hop-chunks per frame
    pad_fft = n_chunks * HOP
    fr = jnp.pad(frames_t, ((0, 0), (0, 0), (0, pad_fft - N_FFT)))
    fr = fr.reshape(B, T, n_chunks, HOP)
    win_sq = params["win_pad"] ** 2
    wsq = jnp.pad(win_sq, (0, pad_fft - N_FFT)).reshape(n_chunks, HOP)
    seg = jnp.zeros((B, T + n_chunks - 1, HOP), jnp.float32)
    env_seg = jnp.zeros((T + n_chunks - 1, HOP), jnp.float32)
    for s in range(n_chunks):          # 4 shifted adds, independent of T
        seg = seg.at[:, s:s + T].add(fr[:, :, s])
        env_seg = env_seg.at[s:s + T].add(jnp.broadcast_to(wsq[s], (T, HOP)))
    ola = seg.reshape(B, -1)[:, :Lp]
    env = env_seg.reshape(-1)[:Lp]
    ola = ola[:, N_FFT // 2: Lp - N_FFT // 2]
    env = env[N_FFT // 2: Lp - N_FFT // 2]
    enhanced_audio = ola / env

    return enhanced_audio, enhanced_cmplx_spec, mask_spec


# -----------------------------------------------------------------------------
if __name__ == "__main__":
    key = jax.random.PRNGKey(0)
    k_audio, k_params = jax.random.split(key)

    T = 8                              # scaled-down frame count (202 in full model)
    B = 2
    L = (T - 1) * HOP                  # 1120 samples -> 8 centered STFT frames
    audio = jax.random.normal(k_audio, (B, L), dtype=jnp.float32)
    params = make_params(k_params, T)

    fwd = jax.jit(functools.partial(enhancement_forward, params))
    enhanced_audio, enhanced_spec, mask_spec = fwd(audio)
    jax.block_until_ready((enhanced_audio, enhanced_spec, mask_spec))

    assert enhanced_audio.shape == (B, L) and enhanced_audio.dtype == jnp.float32
    assert enhanced_spec.shape == (B, N_FFT // 2 + 1, T) and enhanced_spec.dtype == jnp.complex64
    assert mask_spec.shape == (B, N_FFT // 2 + 1, T) and mask_spec.dtype == jnp.complex64
    print("KERNEL_OK")
</pallas_src>

<mosaic_0001>
module attributes {stable_mosaic.version = 11 : i64} {
  func.func @kernel(%arg0: i32, %arg1: i32, %arg2: i32, %arg3: memref<16x512xf32, #tpu.memory_space<vmem>>, %arg4: memref<512x768xf32, #tpu.memory_space<vmem>>, %arg5: memref<16x768xf32, #tpu.memory_space<vmem>>, %arg6: memref<16x768xf32, #tpu.memory_space<vmem>>) attributes {dimension_semantics = [#tpu.dimension_semantics<parallel>, #tpu.dimension_semantics<parallel>, #tpu.dimension_semantics<arbitrary>], iteration_bounds = array<i64: 1, 1, 1>, scalar_prefetch = 0 : i64, scratch_operands = 1 : i64, tpu.core_type = #tpu.core_type<tc>, window_params = [{transform_indices = @transform_0, window_bounds = array<i64: 16, 512>}, {transform_indices = @transform_1, window_bounds = array<i64: 512, 768>}, {transform_indices = @transform_2, window_bounds = array<i64: 16, 768>}]} {
    %c0_i32 = arith.constant 0 : i32
    %0 = arith.cmpi eq, %arg2, %c0_i32 : i32
    %1 = arith.extui %0 : i1 to i32
    %c0_i32_0 = arith.constant 0 : i32
    %2 = arith.cmpi ne, %1, %c0_i32_0 : i32
    scf.if %2 {
      %cst_10 = arith.constant 0.000000e+00 : f32
      %12 = vector.broadcast %cst_10 : f32 to vector<16x768xf32>
      %c0_11 = arith.constant 0 : index
      %c0_12 = arith.constant 0 : index
      %13 = vector.load %arg6[%c0_11, %c0_12] : memref<16x768xf32, #tpu.memory_space<vmem>>, vector<16x768xf32>
      tpu.vector_store %arg6[%c0_11, %c0_12], %12 {strides = array<i32>} : memref<16x768xf32, #tpu.memory_space<vmem>>, vector<16x768xf32>,
    } else {
    }
    %c0 = arith.constant 0 : index
    %c0_1 = arith.constant 0 : index
    %3 = vector.load %arg3[%c0, %c0_1] : memref<16x512xf32, #tpu.memory_space<vmem>>, vector<16x512xf32>
    %c0_2 = arith.constant 0 : index
    %c0_3 = arith.constant 0 : index
    %4 = vector.load %arg6[%c0_2, %c0_3] : memref<16x768xf32, #tpu.memory_space<vmem>>, vector<16x768xf32>
    %c0_4 = arith.constant 0 : index
    %c0_5 = arith.constant 0 : index
    %5 = vector.load %arg4[%c0_4, %c0_5] : memref<512x768xf32, #tpu.memory_space<vmem>>, vector<512x768xf32>
    %cst = arith.constant dense<0.000000e+00> : vector<16x768xf32>
    %6 = tpu.matmul %3, %5, %cst {dimension_numbers = #tpu.dot_dimension_numbers<[1], [0], [0], [1], [0, 0, 1, 1], [], []>} : vector<16x512xf32>, vector<512x768xf32>, vector<16x768xf32> -> vector<16x768xf32>
    %7 = arith.addf %4, %6 : vector<16x768xf32>
    %c0_6 = arith.constant 0 : index
    %c0_7 = arith.constant 0 : index
    %8 = vector.load %arg6[%c0_6, %c0_7] : memref<16x768xf32, #tpu.memory_space<vmem>>, vector<16x768xf32>
    tpu.vector_store %arg6[%c0_6, %c0_7], %7 {strides = array<i32>} : memref<16x768xf32, #tpu.memory_space<vmem>>, vector<16x768xf32>,
    %c0_i32_8 = arith.constant 0 : i32
    %9 = arith.cmpi eq, %arg2, %c0_i32_8 : i32
    %10 = arith.extui %9 : i1 to i32
    %c0_i32_9 = arith.constant 0 : i32
    %11 = arith.cmpi ne, %10, %c0_i32_9 : i32
    scf.if %11 {
      %c0_10 = arith.constant 0 : index
      %c0_11 = arith.constant 0 : index
      %12 = vector.load %arg6[%c0_10, %c0_11] : memref<16x768xf32, #tpu.memory_space<vmem>>, vector<16x768xf32>
      %c0_12 = arith.constant 0 : index
      %c0_13 = arith.constant 0 : index
      %13 = vector.load %arg5[%c0_12, %c0_13] : memref<16x768xf32, #tpu.memory_space<vmem>>, vector<16x768xf32>
      tpu.vector_store %arg5[%c0_12, %c0_13], %12 {strides = array<i32>} : memref<16x768xf32, #tpu.memory_space<vmem>>, vector<16x768xf32>,
    } else {
    }
    return
  }
  func.func @transform_0(%arg0: i32, %arg1: i32, %arg2: i32) -> (i32, i32) {
    %c0_i32 = arith.constant 0 : i32
    return %arg0, %arg2 : i32, i32
  }
  func.func @transform_1(%arg0: i32, %arg1: i32, %arg2: i32) -> (i32, i32) {
    %c0_i32 = arith.constant 0 : i32
    return %arg2, %arg1 : i32, i32
  }
  func.func @transform_2(%arg0: i32, %arg1: i32, %arg2: i32) -> (i32, i32) {
    %c0_i32 = arith.constant 0 : i32
    return %arg0, %arg1 : i32, i32
  }
}

module attributes {stable_mosaic.version = 11 : i64} {
  func.func @kernel(%arg0: i32, %arg1: memref<16x24xbf16, #tpu.memory_space<vmem>>, %arg2: memref<24x2048xbf16, #tpu.memory_space<vmem>>, %arg3: memref<16x1xf32, #tpu.memory_space<vmem>>, %arg4: memref<16x1xf32, #tpu.memory_space<vmem>>, %arg5: memref<16x1xf32, #tpu.memory_space<vmem>>, %arg6: memref<16x2048xf32, #tpu.memory_space<vmem>>) attributes {dimension_semantics = [#tpu.dimension_semantics<parallel>], iteration_bounds = array<i64: 1>, scalar_prefetch = 0 : i64, scratch_operands = 0 : i64, tpu.core_type = #tpu.core_type<tc>, window_params = [{pipeline_mode = #tpu.pipeline_mode<synchronous>, transform_indices = @transform_0, window_bounds = array<i64: 16, 24>}, {transform_indices = @transform_1, window_bounds = array<i64: 24, 2048>}, {pipeline_mode = #tpu.pipeline_mode<synchronous>, transform_indices = @transform_2, window_bounds = array<i64: 16, 1>}, {pipeline_mode = #tpu.pipeline_mode<synchronous>, transform_indices = @transform_3, window_bounds = array<i64: 16, 1>}, {pipeline_mode = #tpu.pipeline_mode<synchronous>, transform_indices = @transform_4, window_bounds = array<i64: 16, 1>}, {transform_indices = @transform_5, window_bounds = array<i64: 16, 2048>}]} {
    %c0 = arith.constant 0 : index
    %c0_0 = arith.constant 0 : index
    %0 = vector.load %arg1[%c0, %c0_0] : memref<16x24xbf16, #tpu.memory_space<vmem>>, vector<16x24xbf16>
    %c0_1 = arith.constant 0 : index
    %c0_2 = arith.constant 0 : index
    %1 = vector.load %arg2[%c0_1, %c0_2] : memref<24x2048xbf16, #tpu.memory_space<vmem>>, vector<24x2048xbf16>
    %cst = arith.constant dense<0.000000e+00> : vector<16x2048xf32>
    %2 = tpu.matmul %0, %1, %cst {dimension_numbers = #tpu.dot_dimension_numbers<[1], [0], [0], [1], [0, 0, 1, 1], [], []>} : vector<16x24xbf16>, vector<24x2048xbf16>, vector<16x2048xf32> -> vector<16x2048xf32>
    %c0_3 = arith.constant 0 : index
    %c0_4 = arith.constant 0 : index
    %3 = vector.load %arg3[%c0_3, %c0_4] : memref<16x1xf32, #tpu.memory_space<vmem>>, vector<16x1xf32>
    %4 = vector.broadcast %3 : vector<16x1xf32> to vector<16x2048xf32>
    %5 = arith.addf %2, %4 : vector<16x2048xf32>
    %c0_5 = arith.constant 0 : index
    %c0_6 = arith.constant 0 : index
    %6 = vector.load %arg4[%c0_5, %c0_6] : memref<16x1xf32, #tpu.memory_space<vmem>>, vector<16x1xf32>
    %7 = vector.broadcast %6 : vector<16x1xf32> to vector<16x2048xf32>
    %8 = arith.mulf %5, %7 : vector<16x2048xf32>
    %c0_7 = arith.constant 0 : index
    %c0_8 = arith.constant 0 : index
    %9 = vector.load %arg5[%c0_7, %c0_8] : memref<16x1xf32, #tpu.memory_space<vmem>>, vector<16x1xf32>
    %10 = vector.broadcast %9 : vector<16x1xf32> to vector<16x2048xf32>
    %11 = arith.addf %8, %10 : vector<16x2048xf32>
    %cst_9 = arith.constant 0.000000e+00 : f32
    %12 = vector.broadcast %cst_9 : f32 to vector<16x2048xf32>
    %13 = arith.cmpf oge, %11, %12 : vector<16x2048xf32>
    %cst_10 = arith.constant 0.00999999977 : f32
    %14 = vector.broadcast %cst_10 : f32 to vector<16x2048xf32>
    %15 = arith.mulf %14, %11 : vector<16x2048xf32>
    %16 = arith.select %13, %11, %15 : vector<16x2048xi1>, vector<16x2048xf32>
    %c0_11 = arith.constant 0 : index
    %c0_12 = arith.constant 0 : index
    %17 = vector.load %arg6[%c0_11, %c0_12] : memref<16x2048xf32, #tpu.memory_space<vmem>>, vector<16x2048xf32>
    tpu.vector_store %arg6[%c0_11, %c0_12], %16 {strides = array<i32>} : memref<16x2048xf32, #tpu.memory_space<vmem>>, vector<16x2048xf32>,
    return
  }
  func.func @transform_0(%arg0: i32) -> (i32, i32) {
    %c0_i32 = arith.constant 0 : i32
    %c0_i32_0 = arith.constant 0 : i32
    %c0_i32_1 = arith.constant 0 : i32
    return %c0_i32, %c0_i32_0 : i32, i32
  }
  func.func @transform_1(%arg0: i32) -> (i32, i32) {
    %c0_i32 = arith.constant 0 : i32
    %c0_i32_0 = arith.constant 0 : i32
    return %c0_i32, %arg0 : i32, i32
  }
  func.func @transform_2(%arg0: i32) -> (i32, i32) {
    %c0_i32 = arith.constant 0 : i32
    %c0_i32_0 = arith.constant 0 : i32
    %c0_i32_1 = arith.constant 0 : i32
    return %c0_i32, %c0_i32_0 : i32, i32
  }
  func.func @transform_3(%arg0: i32) -> (i32, i32) {
    %c0_i32 = arith.constant 0 : i32
    %c0_i32_0 = arith.constant 0 : i32
    %c0_i32_1 = arith.constant 0 : i32
    return %c0_i32, %c0_i32_0 : i32, i32
  }
  func.func @transform_4(%arg0: i32) -> (i32, i32) {
    %c0_i32 = arith.constant 0 : i32
    %c0_i32_0 = arith.constant 0 : i32
    %c0_i32_1 = arith.constant 0 : i32
    return %c0_i32, %c0_i32_0 : i32, i32
  }
  func.func @transform_5(%arg0: i32) -> (i32, i32) {
    %c0_i32 = arith.constant 0 : i32
    %c0_i32_0 = arith.constant 0 : i32
    return %c0_i32, %arg0 : i32, i32
  }
}

module attributes {stable_mosaic.version = 11 : i64} {
  func.func @kernel(%arg0: i32, %arg1: memref<16x192xbf16, #tpu.memory_space<vmem>>, %arg2: memref<192x1024xbf16, #tpu.memory_space<vmem>>, %arg3: memref<16x1xf32, #tpu.memory_space<vmem>>, %arg4: memref<16x1xf32, #tpu.memory_space<vmem>>, %arg5: memref<16x1xf32, #tpu.memory_space<vmem>>, %arg6: memref<16x1024xf32, #tpu.memory_space<vmem>>) attributes {dimension_semantics = [#tpu.dimension_semantics<parallel>], iteration_bounds = array<i64: 1>, scalar_prefetch = 0 : i64, scratch_operands = 0 : i64, tpu.core_type = #tpu.core_type<tc>, window_params = [{pipeline_mode = #tpu.pipeline_mode<synchronous>, transform_indices = @transform_0, window_bounds = array<i64: 16, 192>}, {transform_indices = @transform_1, window_bounds = array<i64: 192, 1024>}, {pipeline_mode = #tpu.pipeline_mode<synchronous>, transform_indices = @transform_2, window_bounds = array<i64: 16, 1>}, {pipeline_mode = #tpu.pipeline_mode<synchronous>, transform_indices = @transform_3, window_bounds = array<i64: 16, 1>}, {pipeline_mode = #tpu.pipeline_mode<synchronous>, transform_indices = @transform_4, window_bounds = array<i64: 16, 1>}, {transform_indices = @transform_5, window_bounds = array<i64: 16, 1024>}]} {
    %c0 = arith.constant 0 : index
    %c0_0 = arith.constant 0 : index
    %0 = vector.load %arg1[%c0, %c0_0] : memref<16x192xbf16, #tpu.memory_space<vmem>>, vector<16x192xbf16>
    %c0_1 = arith.constant 0 : index
    %c0_2 = arith.constant 0 : index
    %1 = vector.load %arg2[%c0_1, %c0_2] : memref<192x1024xbf16, #tpu.memory_space<vmem>>, vector<192x1024xbf16>
    %cst = arith.constant dense<0.000000e+00> : vector<16x1024xf32>
    %2 = tpu.matmul %0, %1, %cst {dimension_numbers = #tpu.dot_dimension_numbers<[1], [0], [0], [1], [0, 0, 1, 1], [], []>} : vector<16x192xbf16>, vector<192x1024xbf16>, vector<16x1024xf32> -> vector<16x1024xf32>
    %c0_3 = arith.constant 0 : index
    %c0_4 = arith.constant 0 : index
    %3 = vector.load %arg3[%c0_3, %c0_4] : memref<16x1xf32, #tpu.memory_space<vmem>>, vector<16x1xf32>
    %4 = vector.broadcast %3 : vector<16x1xf32> to vector<16x1024xf32>
    %5 = arith.addf %2, %4 : vector<16x1024xf32>
    %c0_5 = arith.constant 0 : index
    %c0_6 = arith.constant 0 : index
    %6 = vector.load %arg4[%c0_5, %c0_6] : memref<16x1xf32, #tpu.memory_space<vmem>>, vector<16x1xf32>
    %7 = vector.broadcast %6 : vector<16x1xf32> to vector<16x1024xf32>
    %8 = arith.mulf %5, %7 : vector<16x1024xf32>
    %c0_7 = arith.constant 0 : index
    %c0_8 = arith.constant 0 : index
    %9 = vector.load %arg5[%c0_7, %c0_8] : memref<16x1xf32, #tpu.memory_space<vmem>>, vector<16x1xf32>
    %10 = vector.broadcast %9 : vector<16x1xf32> to vector<16x1024xf32>
    %11 = arith.addf %8, %10 : vector<16x1024xf32>
    %cst_9 = arith.constant 0.000000e+00 : f32
    %12 = vector.broadcast %cst_9 : f32 to vector<16x1024xf32>
    %13 = arith.cmpf oge, %11, %12 : vector<16x1024xf32>
    %cst_10 = arith.constant 0.00999999977 : f32
    %14 = vector.broadcast %cst_10 : f32 to vector<16x1024xf32>
    %15 = arith.mulf %14, %11 : vector<16x1024xf32>
    %16 = arith.select %13, %11, %15 : vector<16x1024xi1>, vector<16x1024xf32>
    %c0_11 = arith.constant 0 : index
    %c0_12 = arith.constant 0 : index
    %17 = vector.load %arg6[%c0_11, %c0_12] : memref<16x1024xf32, #tpu.memory_space<vmem>>, vector<16x1024xf32>
    tpu.vector_store %arg6[%c0_11, %c0_12], %16 {strides = array<i32>} : memref<16x1024xf32, #tpu.memory_space<vmem>>, vector<16x1024xf32>,
    return
  }
  func.func @transform_0(%arg0: i32) -> (i32, i32) {
    %c0_i32 = arith.constant 0 : i32
    %c0_i32_0 = arith.constant 0 : i32
    %c0_i32_1 = arith.constant 0 : i32
    return %c0_i32, %c0_i32_0 : i32, i32
  }
  func.func @transform_1(%arg0: i32) -> (i32, i32) {
    %c0_i32 = arith.constant 0 : i32
    %c0_i32_0 = arith.constant 0 : i32
    return %c0_i32, %arg0 : i32, i32
  }
  func.func @transform_2(%arg0: i32) -> (i32, i32) {
    %c0_i32 = arith.constant 0 : i32
    %c0_i32_0 = arith.constant 0 : i32
    %c0_i32_1 = arith.constant 0 : i32
    return %c0_i32, %c0_i32_0 : i32, i32
  }
  func.func @transform_3(%arg0: i32) -> (i32, i32) {
    %c0_i32 = arith.constant 0 : i32
    %c0_i32_0 = arith.constant 0 : i32
    %c0_i32_1 = arith.constant 0 : i32
    return %c0_i32, %c0_i32_0 : i32, i32
  }
  func.func @transform_4(%arg0: i32) -> (i32, i32) {
    %c0_i32 = arith.constant 0 : i32
    %c0_i32_0 = arith.constant 0 : i32
    %c0_i32_1 = arith.constant 0 : i32
    return %c0_i32, %c0_i32_0 : i32, i32
  }
  func.func @transform_5(%arg0: i32) -> (i32, i32) {
    %c0_i32 = arith.constant 0 : i32
    %c0_i32_0 = arith.constant 0 : i32
    return %c0_i32, %arg0 : i32, i32
  }
}

module attributes {stable_mosaic.version = 11 : i64} {
  func.func @kernel(%arg0: i32, %arg1: memref<16x192xbf16, #tpu.memory_space<vmem>>, %arg2: memref<192x512xbf16, #tpu.memory_space<vmem>>, %arg3: memref<16x1xf32, #tpu.memory_space<vmem>>, %arg4: memref<16x1xf32, #tpu.memory_space<vmem>>, %arg5: memref<16x1xf32, #tpu.memory_space<vmem>>, %arg6: memref<16x512xf32, #tpu.memory_space<vmem>>) attributes {dimension_semantics = [#tpu.dimension_semantics<parallel>], iteration_bounds = array<i64: 1>, scalar_prefetch = 0 : i64, scratch_operands = 0 : i64, tpu.core_type = #tpu.core_type<tc>, window_params = [{pipeline_mode = #tpu.pipeline_mode<synchronous>, transform_indices = @transform_0, window_bounds = array<i64: 16, 192>}, {transform_indices = @transform_1, window_bounds = array<i64: 192, 512>}, {pipeline_mode = #tpu.pipeline_mode<synchronous>, transform_indices = @transform_2, window_bounds = array<i64: 16, 1>}, {pipeline_mode = #tpu.pipeline_mode<synchronous>, transform_indices = @transform_3, window_bounds = array<i64: 16, 1>}, {pipeline_mode = #tpu.pipeline_mode<synchronous>, transform_indices = @transform_4, window_bounds = array<i64: 16, 1>}, {transform_indices = @transform_5, window_bounds = array<i64: 16, 512>}]} {
    %c0 = arith.constant 0 : index
    %c0_0 = arith.constant 0 : index
    %0 = vector.load %arg1[%c0, %c0_0] : memref<16x192xbf16, #tpu.memory_space<vmem>>, vector<16x192xbf16>
    %c0_1 = arith.constant 0 : index
    %c0_2 = arith.constant 0 : index
    %1 = vector.load %arg2[%c0_1, %c0_2] : memref<192x512xbf16, #tpu.memory_space<vmem>>, vector<192x512xbf16>
    %cst = arith.constant dense<0.000000e+00> : vector<16x512xf32>
    %2 = tpu.matmul %0, %1, %cst {dimension_numbers = #tpu.dot_dimension_numbers<[1], [0], [0], [1], [0, 0, 1, 1], [], []>} : vector<16x192xbf16>, vector<192x512xbf16>, vector<16x512xf32> -> vector<16x512xf32>
    %c0_3 = arith.constant 0 : index
    %c0_4 = arith.constant 0 : index
    %3 = vector.load %arg3[%c0_3, %c0_4] : memref<16x1xf32, #tpu.memory_space<vmem>>, vector<16x1xf32>
    %4 = vector.broadcast %3 : vector<16x1xf32> to vector<16x512xf32>
    %5 = arith.addf %2, %4 : vector<16x512xf32>
    %c0_5 = arith.constant 0 : index
    %c0_6 = arith.constant 0 : index
    %6 = vector.load %arg4[%c0_5, %c0_6] : memref<16x1xf32, #tpu.memory_space<vmem>>, vector<16x1xf32>
    %7 = vector.broadcast %6 : vector<16x1xf32> to vector<16x512xf32>
    %8 = arith.mulf %5, %7 : vector<16x512xf32>
    %c0_7 = arith.constant 0 : index
    %c0_8 = arith.constant 0 : index
    %9 = vector.load %arg5[%c0_7, %c0_8] : memref<16x1xf32, #tpu.memory_space<vmem>>, vector<16x1xf32>
    %10 = vector.broadcast %9 : vector<16x1xf32> to vector<16x512xf32>
    %11 = arith.addf %8, %10 : vector<16x512xf32>
    %cst_9 = arith.constant 0.000000e+00 : f32
    %12 = vector.broadcast %cst_9 : f32 to vector<16x512xf32>
    %13 = arith.cmpf oge, %11, %12 : vector<16x512xf32>
    %cst_10 = arith.constant 0.00999999977 : f32
    %14 = vector.broadcast %cst_10 : f32 to vector<16x512xf32>
    %15 = arith.mulf %14, %11 : vector<16x512xf32>
    %16 = arith.select %13, %11, %15 : vector<16x512xi1>, vector<16x512xf32>
    %c0_11 = arith.constant 0 : index
    %c0_12 = arith.constant 0 : index
    %17 = vector.load %arg6[%c0_11, %c0_12] : memref<16x512xf32, #tpu.memory_space<vmem>>, vector<16x512xf32>
    tpu.vector_store %arg6[%c0_11, %c0_12], %16 {strides = array<i32>} : memref<16x512xf32, #tpu.memory_space<vmem>>, vector<16x512xf32>,
    return
  }
  func.func @transform_0(%arg0: i32) -> (i32, i32) {
    %c0_i32 = arith.constant 0 : i32
    %c0_i32_0 = arith.constant 0 : i32
    %c0_i32_1 = arith.constant 0 : i32
    return %c0_i32, %c0_i32_0 : i32, i32
  }
  func.func @transform_1(%arg0: i32) -> (i32, i32) {
    %c0_i32 = arith.constant 0 : i32
    %c0_i32_0 = arith.constant 0 : i32
    return %c0_i32, %arg0 : i32, i32
  }
  func.func @transform_2(%arg0: i32) -> (i32, i32) {
    %c0_i32 = arith.constant 0 : i32
    %c0_i32_0 = arith.constant 0 : i32
    %c0_i32_1 = arith.constant 0 : i32
    return %c0_i32, %c0_i32_0 : i32, i32
  }
  func.func @transform_3(%arg0: i32) -> (i32, i32) {
    %c0_i32 = arith.constant 0 : i32
    %c0_i32_0 = arith.constant 0 : i32
    %c0_i32_1 = arith.constant 0 : i32
    return %c0_i32, %c0_i32_0 : i32, i32
  }
  func.func @transform_4(%arg0: i32) -> (i32, i32) {
    %c0_i32 = arith.constant 0 : i32
    %c0_i32_0 = arith.constant 0 : i32
    %c0_i32_1 = arith.constant 0 : i32
    return %c0_i32, %c0_i32_0 : i32, i32
  }
  func.func @transform_5(%arg0: i32) -> (i32, i32) {
    %c0_i32 = arith.constant 0 : i32
    %c0_i32_0 = arith.constant 0 : i32
    return %c0_i32, %arg0 : i32, i32
  }
}

module attributes {stable_mosaic.version = 11 : i64} {
  func.func @kernel(%arg0: i32, %arg1: memref<16x192xbf16, #tpu.memory_space<vmem>>, %arg2: memref<192x256xbf16, #tpu.memory_space<vmem>>, %arg3: memref<16x1xf32, #tpu.memory_space<vmem>>, %arg4: memref<16x1xf32, #tpu.memory_space<vmem>>, %arg5: memref<16x1xf32, #tpu.memory_space<vmem>>, %arg6: memref<16x256xf32, #tpu.memory_space<vmem>>) attributes {dimension_semantics = [#tpu.dimension_semantics<parallel>], iteration_bounds = array<i64: 1>, scalar_prefetch = 0 : i64, scratch_operands = 0 : i64, tpu.core_type = #tpu.core_type<tc>, window_params = [{pipeline_mode = #tpu.pipeline_mode<synchronous>, transform_indices = @transform_0, window_bounds = array<i64: 16, 192>}, {transform_indices = @transform_1, window_bounds = array<i64: 192, 256>}, {pipeline_mode = #tpu.pipeline_mode<synchronous>, transform_indices = @transform_2, window_bounds = array<i64: 16, 1>}, {pipeline_mode = #tpu.pipeline_mode<synchronous>, transform_indices = @transform_3, window_bounds = array<i64: 16, 1>}, {pipeline_mode = #tpu.pipeline_mode<synchronous>, transform_indices = @transform_4, window_bounds = array<i64: 16, 1>}, {transform_indices = @transform_5, window_bounds = array<i64: 16, 256>}]} {
    %c0 = arith.constant 0 : index
    %c0_0 = arith.constant 0 : index
    %0 = vector.load %arg1[%c0, %c0_0] : memref<16x192xbf16, #tpu.memory_space<vmem>>, vector<16x192xbf16>
    %c0_1 = arith.constant 0 : index
    %c0_2 = arith.constant 0 : index
    %1 = vector.load %arg2[%c0_1, %c0_2] : memref<192x256xbf16, #tpu.memory_space<vmem>>, vector<192x256xbf16>
    %cst = arith.constant dense<0.000000e+00> : vector<16x256xf32>
    %2 = tpu.matmul %0, %1, %cst {dimension_numbers = #tpu.dot_dimension_numbers<[1], [0], [0], [1], [0, 0, 1, 1], [], []>} : vector<16x192xbf16>, vector<192x256xbf16>, vector<16x256xf32> -> vector<16x256xf32>
    %c0_3 = arith.constant 0 : index
    %c0_4 = arith.constant 0 : index
    %3 = vector.load %arg3[%c0_3, %c0_4] : memref<16x1xf32, #tpu.memory_space<vmem>>, vector<16x1xf32>
    %4 = vector.broadcast %3 : vector<16x1xf32> to vector<16x256xf32>
    %5 = arith.addf %2, %4 : vector<16x256xf32>
    %c0_5 = arith.constant 0 : index
    %c0_6 = arith.constant 0 : index
    %6 = vector.load %arg4[%c0_5, %c0_6] : memref<16x1xf32, #tpu.memory_space<vmem>>, vector<16x1xf32>
    %7 = vector.broadcast %6 : vector<16x1xf32> to vector<16x256xf32>
    %8 = arith.mulf %5, %7 : vector<16x256xf32>
    %c0_7 = arith.constant 0 : index
    %c0_8 = arith.constant 0 : index
    %9 = vector.load %arg5[%c0_7, %c0_8] : memref<16x1xf32, #tpu.memory_space<vmem>>, vector<16x1xf32>
    %10 = vector.broadcast %9 : vector<16x1xf32> to vector<16x256xf32>
    %11 = arith.addf %8, %10 : vector<16x256xf32>
    %cst_9 = arith.constant 0.000000e+00 : f32
    %12 = vector.broadcast %cst_9 : f32 to vector<16x256xf32>
    %13 = arith.cmpf oge, %11, %12 : vector<16x256xf32>
    %cst_10 = arith.constant 0.00999999977 : f32
    %14 = vector.broadcast %cst_10 : f32 to vector<16x256xf32>
    %15 = arith.mulf %14, %11 : vector<16x256xf32>
    %16 = arith.select %13, %11, %15 : vector<16x256xi1>, vector<16x256xf32>
    %c0_11 = arith.constant 0 : index
    %c0_12 = arith.constant 0 : index
    %17 = vector.load %arg6[%c0_11, %c0_12] : memref<16x256xf32, #tpu.memory_space<vmem>>, vector<16x256xf32>
    tpu.vector_store %arg6[%c0_11, %c0_12], %16 {strides = array<i32>} : memref<16x256xf32, #tpu.memory_space<vmem>>, vector<16x256xf32>,
    return
  }
  func.func @transform_0(%arg0: i32) -> (i32, i32) {
    %c0_i32 = arith.constant 0 : i32
    %c0_i32_0 = arith.constant 0 : i32
    %c0_i32_1 = arith.constant 0 : i32
    return %c0_i32, %c0_i32_0 : i32, i32
  }
  func.func @transform_1(%arg0: i32) -> (i32, i32) {
    %c0_i32 = arith.constant 0 : i32
    %c0_i32_0 = arith.constant 0 : i32
    return %c0_i32, %arg0 : i32, i32
  }
  func.func @transform_2(%arg0: i32) -> (i32, i32) {
    %c0_i32 = arith.constant 0 : i32
    %c0_i32_0 = arith.constant 0 : i32
    %c0_i32_1 = arith.constant 0 : i32
    return %c0_i32, %c0_i32_0 : i32, i32
  }
  func.func @transform_3(%arg0: i32) -> (i32, i32) {
    %c0_i32 = arith.constant 0 : i32
    %c0_i32_0 = arith.constant 0 : i32
    %c0_i32_1 = arith.constant 0 : i32
    return %c0_i32, %c0_i32_0 : i32, i32
  }
  func.func @transform_4(%arg0: i32) -> (i32, i32) {
    %c0_i32 = arith.constant 0 : i32
    %c0_i32_0 = arith.constant 0 : i32
    %c0_i32_1 = arith.constant 0 : i32
    return %c0_i32, %c0_i32_0 : i32, i32
  }
  func.func @transform_5(%arg0: i32) -> (i32, i32) {
    %c0_i32 = arith.constant 0 : i32
    %c0_i32_0 = arith.constant 0 : i32
    return %c0_i32, %arg0 : i32, i32
  }
}

module attributes {stable_mosaic.version = 11 : i64} {
  func.func @kernel(%arg0: i32, %arg1: i32, %arg2: i32, %arg3: memref<32x128xbf16, #tpu.memory_space<vmem>>, %arg4: memref<128x128xbf16, #tpu.memory_space<vmem>>, %arg5: memref<1x128xf32, #tpu.memory_space<vmem>>, %arg6: memref<32x128xbf16, #tpu.memory_space<vmem>>, %arg7: memref<32x128xf32, #tpu.memory_space<vmem>>) attributes {dimension_semantics = [#tpu.dimension_semantics<parallel>, #tpu.dimension_semantics<parallel>, #tpu.dimension_semantics<arbitrary>], iteration_bounds = array<i64: 1, 3, 1>, scalar_prefetch = 0 : i64, scratch_operands = 1 : i64, tpu.core_type = #tpu.core_type<tc>, window_params = [{transform_indices = @transform_0, window_bounds = array<i64: 32, 128>}, {transform_indices = @transform_1, window_bounds = array<i64: 128, 128>}, {transform_indices = @transform_2, window_bounds = array<i64: 1, 128>}, {transform_indices = @transform_3, window_bounds = array<i64: 32, 128>}]} {
    %c0_i32 = arith.constant 0 : i32
    %0 = arith.cmpi eq, %arg2, %c0_i32 : i32
    %1 = arith.extui %0 : i1 to i32
    %c0_i32_0 = arith.constant 0 : i32
    %2 = arith.cmpi ne, %1, %c0_i32_0 : i32
    scf.if %2 {
      %cst_10 = arith.constant 0.000000e+00 : f32
      %12 = vector.broadcast %cst_10 : f32 to vector<32x128xf32>
      %c0_11 = arith.constant 0 : index
      %c0_12 = arith.constant 0 : index
      %13 = vector.load %arg7[%c0_11, %c0_12] : memref<32x128xf32, #tpu.memory_space<vmem>>, vector<32x128xf32>
      tpu.vector_store %arg7[%c0_11, %c0_12], %12 {strides = array<i32>} : memref<32x128xf32, #tpu.memory_space<vmem>>, vector<32x128xf32>,
    } else {
    }
    %c0 = arith.constant 0 : index
    %c0_1 = arith.constant 0 : index
    %3 = vector.load %arg3[%c0, %c0_1] : memref<32x128xbf16, #tpu.memory_space<vmem>>, vector<32x128xbf16>
    %c0_2 = arith.constant 0 : index
    %c0_3 = arith.constant 0 : index
    %4 = vector.load %arg7[%c0_2, %c0_3] : memref<32x128xf32, #tpu.memory_space<vmem>>, vector<32x128xf32>
    %c0_4 = arith.constant 0 : index
    %c0_5 = arith.constant 0 : index
    %5 = vector.load %arg4[%c0_4, %c0_5] : memref<128x128xbf16, #tpu.memory_space<vmem>>, vector<128x128xbf16>
    %cst = arith.constant dense<0.000000e+00> : vector<32x128xf32>
    %6 = tpu.matmul %3, %5, %cst {dimension_numbers = #tpu.dot_dimension_numbers<[1], [0], [0], [1], [0, 0, 1, 1], [], []>} : vector<32x128xbf16>, vector<128x128xbf16>, vector<32x128xf32> -> vector<32x128xf32>
    %7 = arith.addf %4, %6 : vector<32x128xf32>
    %c0_6 = arith.constant 0 : index
    %c0_7 = arith.constant 0 : index
    %8 = vector.load %arg7[%c0_6, %c0_7] : memref<32x128xf32, #tpu.memory_space<vmem>>, vector<32x128xf32>
    tpu.vector_store %arg7[%c0_6, %c0_7], %7 {strides = array<i32>} : memref<32x128xf32, #tpu.memory_space<vmem>>, vector<32x128xf32>,
    %c0_i32_8 = arith.constant 0 : i32
    %9 = arith.cmpi eq, %arg2, %c0_i32_8 : i32
    %10 = arith.extui %9 : i1 to i32
    %c0_i32_9 = arith.constant 0 : i32
    %11 = arith.cmpi ne, %10, %c0_i32_9 : i32
    scf.if %11 {
      %c0_10 = arith.constant 0 : index
      %c0_11 = arith.constant 0 : index
      %12 = vector.load %arg7[%c0_10, %c0_11] : memref<32x128xf32, #tpu.memory_space<vmem>>, vector<32x128xf32>
      %c0_12 = arith.constant 0 : index
      %c0_13 = arith.constant 0 : index
      %13 = vector.load %arg5[%c0_12, %c0_13] : memref<1x128xf32, #tpu.memory_space<vmem>>, vector<1x128xf32>
      %14 = vector.broadcast %13 : vector<1x128xf32> to vector<32x128xf32>
      %15 = arith.addf %12, %14 : vector<32x128xf32>
      %16 = arith.truncf %15 : vector<32x128xf32> to vector<32x128xbf16>
      %c0_14 = arith.constant 0 : index
      %c0_15 = arith.constant 0 : index
      %17 = vector.load %arg6[%c0_14, %c0_15] : memref<32x128xbf16, #tpu.memory_space<vmem>>, vector<32x128xbf16>
      tpu.vector_store %arg6[%c0_14, %c0_15], %16 {strides = array<i32>} : memref<32x128xbf16, #tpu.memory_space<vmem>>, vector<32x128xbf16>,
    } else {
    }
    return
  }
  func.func @transform_0(%arg0: i32, %arg1: i32, %arg2: i32) -> (i32, i32) {
    %c0_i32 = arith.constant 0 : i32
    return %arg0, %arg2 : i32, i32
  }
  func.func @transform_1(%arg0: i32, %arg1: i32, %arg2: i32) -> (i32, i32) {
    %c0_i32 = arith.constant 0 : i32
    return %arg2, %arg1 : i32, i32
  }
  func.func @transform_2(%arg0: i32, %arg1: i32, %arg2: i32) -> (i32, i32) {
    %c0_i32 = arith.constant 0 : i32
    %c0_i32_0 = arith.constant 0 : i32
    return %c0_i32, %arg1 : i32, i32
  }
  func.func @transform_3(%arg0: i32, %arg1: i32, %arg2: i32) -> (i32, i32) {
    %c0_i32 = arith.constant 0 : i32
    return %arg0, %arg1 : i32, i32
  }
}

module attributes {stable_mosaic.version = 11 : i64} {
  func.func @kernel(%arg0: i32, %arg1: memref<4x16x32xbf16, #tpu.memory_space<vmem>>, %arg2: memref<4x16x32xbf16, #tpu.memory_space<vmem>>, %arg3: memref<4x16x32xbf16, #tpu.memory_space<vmem>>, %arg4: memref<4x16x32xbf16, #tpu.memory_space<vmem>>) attributes {dimension_semantics = [#tpu.dimension_semantics<parallel>], iteration_bounds = array<i64: 2>, scalar_prefetch = 0 : i64, scratch_operands = 0 : i64, tpu.core_type = #tpu.core_type<tc>, window_params = [{transform_indices = @transform_0, window_bounds = array<i64: 4, 16, 32>}, {transform_indices = @transform_1, window_bounds = array<i64: 4, 16, 32>}, {transform_indices = @transform_2, window_bounds = array<i64: 4, 16, 32>}, {transform_indices = @transform_3, window_bounds = array<i64: 4, 16, 32>}]} {
    %c0 = arith.constant 0 : index
    %c0_0 = arith.constant 0 : index
    %c0_1 = arith.constant 0 : index
    %0 = vector.load %arg1[%c0, %c0_0, %c0_1] : memref<4x16x32xbf16, #tpu.memory_space<vmem>>, vector<4x16x32xbf16>
    %c0_2 = arith.constant 0 : index
    %c0_3 = arith.constant 0 : index
    %c0_4 = arith.constant 0 : index
    %1 = vector.load %arg2[%c0_2, %c0_3, %c0_4] : memref<4x16x32xbf16, #tpu.memory_space<vmem>>, vector<4x16x32xbf16>
    %cst = arith.constant dense<0.000000e+00> : vector<4x16x16xf32>
    %2 = tpu.matmul %0, %1, %cst {dimension_numbers = #tpu.dot_dimension_numbers<[2], [2], [1], [1], [0, 0, 0, 1, 1, 1], [0], [0]>} : vector<4x16x32xbf16>, vector<4x16x32xbf16>, vector<4x16x16xf32> -> vector<4x16x16xf32>
    %cst_5 = arith.constant 0.176776692 : f32
    %3 = vector.broadcast %cst_5 : f32 to vector<4x16x16xf32>
    %4 = arith.mulf %2, %3 : vector<4x16x16xf32>
    %cst_6 = arith.constant dense<0xFF800000> : vector<4x16xf32>
    %5 = vector.multi_reduction <maximumf>, %4, %cst_6 [2] : vector<4x16x16xf32> to vector<4x16xf32>
    %6 = vector.shape_cast %5 : vector<4x16xf32> to vector<4x16x1xf32>
    %7 = vector.broadcast %6 : vector<4x16x1xf32> to vector<4x16x16xf32>
    %8 = arith.subf %4, %7 : vector<4x16x16xf32>
    %9 = math.exp %8 : vector<4x16x16xf32>
    %cst_7 = arith.constant dense<0.000000e+00> : vector<4x16xf32>
    %10 = vector.multi_reduction <add>, %9, %cst_7 [2] : vector<4x16x16xf32> to vector<4x16xf32>
    %11 = vector.shape_cast %10 : vector<4x16xf32> to vector<4x16x1xf32>
    %12 = vector.broadcast %11 : vector<4x16x1xf32> to vector<4x16x16xf32>
    %13 = arith.divf %9, %12 : vector<4x16x16xf32>
    %14 = arith.truncf %13 : vector<4x16x16xf32> to vector<4x16x16xbf16>
    %c0_8 = arith.constant 0 : index
    %c0_9 = arith.constant 0 : index
    %c0_10 = arith.constant 0 : index
    %15 = vector.load %arg3[%c0_8, %c0_9, %c0_10] : memref<4x16x32xbf16, #tpu.memory_space<vmem>>, vector<4x16x32xbf16>
    %cst_11 = arith.constant dense<0.000000e+00> : vector<4x16x32xf32>
    %16 = tpu.matmul %14, %15, %cst_11 {dimension_numbers = #tpu.dot_dimension_numbers<[2], [1], [1], [2], [0, 0, 0, 1, 1, 2], [0], [0]>} : vector<4x16x16xbf16>, vector<4x16x32xbf16>, vector<4x16x32xf32> -> vector<4x16x32xf32>
    %17 = arith.truncf %16 : vector<4x16x32xf32> to vector<4x16x32xbf16>
    %c0_12 = arith.constant 0 : index
    %c0_13 = arith.constant 0 : index
    %c0_14 = arith.constant 0 : index
    %18 = vector.load %arg4[%c0_12, %c0_13, %c0_14] : memref<4x16x32xbf16, #tpu.memory_space<vmem>>, vector<4x16x32xbf16>
    tpu.vector_store %arg4[%c0_12, %c0_13, %c0_14], %17 {strides = array<i32>} : memref<4x16x32xbf16, #tpu.memory_space<vmem>>, vector<4x16x32xbf16>,
    return
  }
  func.func @transform_0(%arg0: i32) -> (i32, i32, i32) {
    %c0_i32 = arith.constant 0 : i32
    %c0_i32_0 = arith.constant 0 : i32
    %c0_i32_1 = arith.constant 0 : i32
    return %arg0, %c0_i32, %c0_i32_0 : i32, i32, i32
  }
  func.func @transform_1(%arg0: i32) -> (i32, i32, i32) {
    %c0_i32 = arith.constant 0 : i32
    %c0_i32_0 = arith.constant 0 : i32
    %c0_i32_1 = arith.constant 0 : i32
    return %arg0, %c0_i32, %c0_i32_0 : i32, i32, i32
  }
  func.func @transform_2(%arg0: i32) -> (i32, i32, i32) {
    %c0_i32 = arith.constant 0 : i32
    %c0_i32_0 = arith.constant 0 : i32
    %c0_i32_1 = arith.constant 0 : i32
    return %arg0, %c0_i32, %c0_i32_0 : i32, i32, i32
  }
  func.func @transform_3(%arg0: i32) -> (i32, i32, i32) {
    %c0_i32 = arith.constant 0 : i32
    %c0_i32_0 = arith.constant 0 : i32
    %c0_i32_1 = arith.constant 0 : i32
    return %arg0, %c0_i32, %c0_i32_0 : i32, i32, i32
  }
}

module attributes {stable_mosaic.version = 11 : i64} {
  func.func @kernel(%arg0: i32, %arg1: i32, %arg2: i32, %arg3: memref<32x128xbf16, #tpu.memory_space<vmem>>, %arg4: memref<128x128xbf16, #tpu.memory_space<vmem>>, %arg5: memref<1x128xf32, #tpu.memory_space<vmem>>, %arg6: memref<32x128xf32, #tpu.memory_space<vmem>>, %arg7: memref<1x128xf32, #tpu.memory_space<vmem>>, %arg8: memref<1x128xf32, #tpu.memory_space<vmem>>, %arg9: memref<32x128xbf16, #tpu.memory_space<vmem>>, %arg10: memref<32x128xf32, #tpu.memory_space<vmem>>) attributes {dimension_semantics = [#tpu.dimension_semantics<parallel>, #tpu.dimension_semantics<parallel>, #tpu.dimension_semantics<arbitrary>], iteration_bounds = array<i64: 1, 1, 1>, scalar_prefetch = 0 : i64, scratch_operands = 1 : i64, tpu.core_type = #tpu.core_type<tc>, window_params = [{transform_indices = @transform_0, window_bounds = array<i64: 32, 128>}, {transform_indices = @transform_1, window_bounds = array<i64: 128, 128>}, {transform_indices = @transform_2, window_bounds = array<i64: 1, 128>}, {transform_indices = @transform_3, window_bounds = array<i64: 32, 128>}, {transform_indices = @transform_4, window_bounds = array<i64: 1, 128>}, {transform_indices = @transform_5, window_bounds = array<i64: 1, 128>}, {transform_indices = @transform_6, window_bounds = array<i64: 32, 128>}]} {
    %c0_i32 = arith.constant 0 : i32
    %0 = arith.cmpi eq, %arg2, %c0_i32 : i32
    %1 = arith.extui %0 : i1 to i32
    %c0_i32_0 = arith.constant 0 : i32
    %2 = arith.cmpi ne, %1, %c0_i32_0 : i32
    scf.if %2 {
      %cst_10 = arith.constant 0.000000e+00 : f32
      %12 = vector.broadcast %cst_10 : f32 to vector<32x128xf32>
      %c0_11 = arith.constant 0 : index
      %c0_12 = arith.constant 0 : index
      %13 = vector.load %arg10[%c0_11, %c0_12] : memref<32x128xf32, #tpu.memory_space<vmem>>, vector<32x128xf32>
      tpu.vector_store %arg10[%c0_11, %c0_12], %12 {strides = array<i32>} : memref<32x128xf32, #tpu.memory_space<vmem>>, vector<32x128xf32>,
    } else {
    }
    %c0 = arith.constant 0 : index
    %c0_1 = arith.constant 0 : index
    %3 = vector.load %arg3[%c0, %c0_1] : memref<32x128xbf16, #tpu.memory_space<vmem>>, vector<32x128xbf16>
    %c0_2 = arith.constant 0 : index
    %c0_3 = arith.constant 0 : index
    %4 = vector.load %arg10[%c0_2, %c0_3] : memref<32x128xf32, #tpu.memory_space<vmem>>, vector<32x128xf32>
    %c0_4 = arith.constant 0 : index
    %c0_5 = arith.constant 0 : index
    %5 = vector.load %arg4[%c0_4, %c0_5] : memref<128x128xbf16, #tpu.memory_space<vmem>>, vector<128x128xbf16>
    %cst = arith.constant dense<0.000000e+00> : vector<32x128xf32>
    %6 = tpu.matmul %3, %5, %cst {dimension_numbers = #tpu.dot_dimension_numbers<[1], [0], [0], [1], [0, 0, 1, 1], [], []>} : vector<32x128xbf16>, vector<128x128xbf16>, vector<32x128xf32> -> vector<32x128xf32>
    %7 = arith.addf %4, %6 : vector<32x128xf32>
    %c0_6 = arith.constant 0 : index
    %c0_7 = arith.constant 0 : index
    %8 = vector.load %arg10[%c0_6, %c0_7] : memref<32x128xf32, #tpu.memory_space<vmem>>, vector<32x128xf32>
    tpu.vector_store %arg10[%c0_6, %c0_7], %7 {strides = array<i32>} : memref<32x128xf32, #tpu.memory_space<vmem>>, vector<32x128xf32>,
    %c0_i32_8 = arith.constant 0 : i32
    %9 = arith.cmpi eq, %arg2, %c0_i32_8 : i32
    %10 = arith.extui %9 : i1 to i32
    %c0_i32_9 = arith.constant 0 : i32
    %11 = arith.cmpi ne, %10, %c0_i32_9 : i32
    scf.if %11 {
      %c0_10 = arith.constant 0 : index
      %c0_11 = arith.constant 0 : index
      %12 = vector.load %arg10[%c0_10, %c0_11] : memref<32x128xf32, #tpu.memory_space<vmem>>, vector<32x128xf32>
      %c0_12 = arith.constant 0 : index
      %c0_13 = arith.constant 0 : index
      %13 = vector.load %arg5[%c0_12, %c0_13] : memref<1x128xf32, #tpu.memory_space<vmem>>, vector<1x128xf32>
      %14 = vector.broadcast %13 : vector<1x128xf32> to vector<32x128xf32>
      %15 = arith.addf %12, %14 : vector<32x128xf32>
      %c0_14 = arith.constant 0 : index
      %c0_15 = arith.constant 0 : index
      %16 = vector.load %arg6[%c0_14, %c0_15] : memref<32x128xf32, #tpu.memory_space<vmem>>, vector<32x128xf32>
      %17 = arith.addf %15, %16 : vector<32x128xf32>
      %cst_16 = arith.constant dense<0.000000e+00> : vector<32xf32>
      %18 = vector.multi_reduction <add>, %17, %cst_16 [1] : vector<32x128xf32> to vector<32xf32>
      %19 = vector.shape_cast %18 : vector<32xf32> to vector<32x1xf32>
      %cst_17 = arith.constant 1.280000e+02 : f32
      %20 = vector.broadcast %cst_17 : f32 to vector<32x1xf32>
      %21 = arith.divf %19, %20 : vector<32x1xf32>
      %22 = vector.broadcast %21 : vector<32x1xf32> to vector<32x128xf32>
      %23 = arith.subf %17, %22 : vector<32x128xf32>
      %24 = arith.mulf %23, %23 : vector<32x128xf32>
      %cst_18 = arith.constant dense<0.000000e+00> : vector<32xf32>
      %25 = vector.multi_reduction <add>, %24, %cst_18 [1] : vector<32x128xf32> to vector<32xf32>
      %26 = vector.shape_cast %25 : vector<32xf32> to vector<32x1xf32>
      %cst_19 = arith.constant 1.280000e+02 : f32
      %27 = vector.broadcast %cst_19 : f32 to vector<32x1xf32>
      %28 = arith.divf %26, %27 : vector<32x1xf32>
      %cst_20 = arith.constant 9.99999974E-6 : f32
      %29 = vector.broadcast %cst_20 : f32 to vector<32x1xf32>
      %30 = arith.addf %28, %29 : vector<32x1xf32>
      %31 = math.rsqrt %30 : vector<32x1xf32>
      %32 = vector.broadcast %31 : vector<32x1xf32> to vector<32x128xf32>
      %33 = arith.mulf %23, %32 : vector<32x128xf32>
      %c0_21 = arith.constant 0 : index
      %c0_22 = arith.constant 0 : index
      %34 = vector.load %arg7[%c0_21, %c0_22] : memref<1x128xf32, #tpu.memory_space<vmem>>, vector<1x128xf32>
      %35 = vector.broadcast %34 : vector<1x128xf32> to vector<32x128xf32>
      %36 = arith.mulf %33, %35 : vector<32x128xf32>
      %c0_23 = arith.constant 0 : index
      %c0_24 = arith.constant 0 : index
      %37 = vector.load %arg8[%c0_23, %c0_24] : memref<1x128xf32, #tpu.memory_space<vmem>>, vector<1x128xf32>
      %38 = vector.broadcast %37 : vector<1x128xf32> to vector<32x128xf32>
      %39 = arith.addf %36, %38 : vector<32x128xf32>
      %40 = arith.truncf %39 : vector<32x128xf32> to vector<32x128xbf16>
      %c0_25 = arith.constant 0 : index
      %c0_26 = arith.constant 0 : index
      %41 = vector.load %arg9[%c0_25, %c0_26] : memref<32x128xbf16, #tpu.memory_space<vmem>>, vector<32x128xbf16>
      tpu.vector_store %arg9[%c0_25, %c0_26], %40 {strides = array<i32>} : memref<32x128xbf16, #tpu.memory_space<vmem>>, vector<32x128xbf16>,
    } else {
    }
    return
  }
  func.func @transform_0(%arg0: i32, %arg1: i32, %arg2: i32) -> (i32, i32) {
    %c0_i32 = arith.constant 0 : i32
    return %arg0, %arg2 : i32, i32
  }
  func.func @transform_1(%arg0: i32, %arg1: i32, %arg2: i32) -> (i32, i32) {
    %c0_i32 = arith.constant 0 : i32
    return %arg2, %arg1 : i32, i32
  }
  func.func @transform_2(%arg0: i32, %arg1: i32, %arg2: i32) -> (i32, i32) {
    %c0_i32 = arith.constant 0 : i32
    %c0_i32_0 = arith.constant 0 : i32
    return %c0_i32, %arg1 : i32, i32
  }
  func.func @transform_3(%arg0: i32, %arg1: i32, %arg2: i32) -> (i32, i32) {
    %c0_i32 = arith.constant 0 : i32
    return %arg0, %arg1 : i32, i32
  }
  func.func @transform_4(%arg0: i32, %arg1: i32, %arg2: i32) -> (i32, i32) {
    %c0_i32 = arith.constant 0 : i32
    %c0_i32_0 = arith.constant 0 : i32
    return %c0_i32, %arg1 : i32, i32
  }
  func.func @transform_5(%arg0: i32, %arg1: i32, %arg2: i32) -> (i32, i32) {
    %c0_i32 = arith.constant 0 : i32
    %c0_i32_0 = arith.constant 0 : i32
    return %c0_i32, %arg1 : i32, i32
  }
  func.func @transform_6(%arg0: i32, %arg1: i32, %arg2: i32) -> (i32, i32) {
    %c0_i32 = arith.constant 0 : i32
    return %arg0, %arg1 : i32, i32
  }
}

module attributes {stable_mosaic.version = 11 : i64} {
  func.func @kernel(%arg0: i32, %arg1: i32, %arg2: i32, %arg3: memref<32x128xbf16, #tpu.memory_space<vmem>>, %arg4: memref<128x1024xbf16, #tpu.memory_space<vmem>>, %arg5: memref<1x1024xf32, #tpu.memory_space<vmem>>, %arg6: memref<32x1024xbf16, #tpu.memory_space<vmem>>, %arg7: memref<32x1024xf32, #tpu.memory_space<vmem>>) attributes {dimension_semantics = [#tpu.dimension_semantics<parallel>, #tpu.dimension_semantics<parallel>, #tpu.dimension_semantics<arbitrary>], iteration_bounds = array<i64: 1, 2, 1>, scalar_prefetch = 0 : i64, scratch_operands = 1 : i64, tpu.core_type = #tpu.core_type<tc>, window_params = [{transform_indices = @transform_0, window_bounds = array<i64: 32, 128>}, {transform_indices = @transform_1, window_bounds = array<i64: 128, 1024>}, {transform_indices = @transform_2, window_bounds = array<i64: 1, 1024>}, {transform_indices = @transform_3, window_bounds = array<i64: 32, 1024>}]} {
    %c0_i32 = arith.constant 0 : i32
    %0 = arith.cmpi eq, %arg2, %c0_i32 : i32
    %1 = arith.extui %0 : i1 to i32
    %c0_i32_0 = arith.constant 0 : i32
    %2 = arith.cmpi ne, %1, %c0_i32_0 : i32
    scf.if %2 {
      %cst_10 = arith.constant 0.000000e+00 : f32
      %12 = vector.broadcast %cst_10 : f32 to vector<32x1024xf32>
      %c0_11 = arith.constant 0 : index
      %c0_12 = arith.constant 0 : index
      %13 = vector.load %arg7[%c0_11, %c0_12] : memref<32x1024xf32, #tpu.memory_space<vmem>>, vector<32x1024xf32>
      tpu.vector_store %arg7[%c0_11, %c0_12], %12 {strides = array<i32>} : memref<32x1024xf32, #tpu.memory_space<vmem>>, vector<32x1024xf32>,
    } else {
    }
    %c0 = arith.constant 0 : index
    %c0_1 = arith.constant 0 : index
    %3 = vector.load %arg3[%c0, %c0_1] : memref<32x128xbf16, #tpu.memory_space<vmem>>, vector<32x128xbf16>
    %c0_2 = arith.constant 0 : index
    %c0_3 = arith.constant 0 : index
    %4 = vector.load %arg7[%c0_2, %c0_3] : memref<32x1024xf32, #tpu.memory_space<vmem>>, vector<32x1024xf32>
    %c0_4 = arith.constant 0 : index
    %c0_5 = arith.constant 0 : index
    %5 = vector.load %arg4[%c0_4, %c0_5] : memref<128x1024xbf16, #tpu.memory_space<vmem>>, vector<128x1024xbf16>
    %cst = arith.constant dense<0.000000e+00> : vector<32x1024xf32>
    %6 = tpu.matmul %3, %5, %cst {dimension_numbers = #tpu.dot_dimension_numbers<[1], [0], [0], [1], [0, 0, 1, 1], [], []>} : vector<32x128xbf16>, vector<128x1024xbf16>, vector<32x1024xf32> -> vector<32x1024xf32>
    %7 = arith.addf %4, %6 : vector<32x1024xf32>
    %c0_6 = arith.constant 0 : index
    %c0_7 = arith.constant 0 : index
    %8 = vector.load %arg7[%c0_6, %c0_7] : memref<32x1024xf32, #tpu.memory_space<vmem>>, vector<32x1024xf32>
    tpu.vector_store %arg7[%c0_6, %c0_7], %7 {strides = array<i32>} : memref<32x1024xf32, #tpu.memory_space<vmem>>, vector<32x1024xf32>,
    %c0_i32_8 = arith.constant 0 : i32
    %9 = arith.cmpi eq, %arg2, %c0_i32_8 : i32
    %10 = arith.extui %9 : i1 to i32
    %c0_i32_9 = arith.constant 0 : i32
    %11 = arith.cmpi ne, %10, %c0_i32_9 : i32
    scf.if %11 {
      %c0_10 = arith.constant 0 : index
      %c0_11 = arith.constant 0 : index
      %12 = vector.load %arg7[%c0_10, %c0_11] : memref<32x1024xf32, #tpu.memory_space<vmem>>, vector<32x1024xf32>
      %c0_12 = arith.constant 0 : index
      %c0_13 = arith.constant 0 : index
      %13 = vector.load %arg5[%c0_12, %c0_13] : memref<1x1024xf32, #tpu.memory_space<vmem>>, vector<1x1024xf32>
      %14 = vector.broadcast %13 : vector<1x1024xf32> to vector<32x1024xf32>
      %15 = arith.addf %12, %14 : vector<32x1024xf32>
      %cst_14 = arith.constant 0.000000e+00 : f32
      %16 = vector.broadcast %cst_14 : f32 to vector<32x1024xf32>
      %17 = arith.maximumf %15, %16 : vector<32x1024xf32>
      %18 = arith.truncf %17 : vector<32x1024xf32> to vector<32x1024xbf16>
      %c0_15 = arith.constant 0 : index
      %c0_16 = arith.constant 0 : index
      %19 = vector.load %arg6[%c0_15, %c0_16] : memref<32x1024xbf16, #tpu.memory_space<vmem>>, vector<32x1024xbf16>
      tpu.vector_store %arg6[%c0_15, %c0_16], %18 {strides = array<i32>} : memref<32x1024xbf16, #tpu.memory_space<vmem>>, vector<32x1024xbf16>,
    } else {
    }
    return
  }
  func.func @transform_0(%arg0: i32, %arg1: i32, %arg2: i32) -> (i32, i32) {
    %c0_i32 = arith.constant 0 : i32
    return %arg0, %arg2 : i32, i32
  }
  func.func @transform_1(%arg0: i32, %arg1: i32, %arg2: i32) -> (i32, i32) {
    %c0_i32 = arith.constant 0 : i32
    return %arg2, %arg1 : i32, i32
  }
  func.func @transform_2(%arg0: i32, %arg1: i32, %arg2: i32) -> (i32, i32) {
    %c0_i32 = arith.constant 0 : i32
    %c0_i32_0 = arith.constant 0 : i32
    return %c0_i32, %arg1 : i32, i32
  }
  func.func @transform_3(%arg0: i32, %arg1: i32, %arg2: i32) -> (i32, i32) {
    %c0_i32 = arith.constant 0 : i32
    return %arg0, %arg1 : i32, i32
  }
}

module attributes {stable_mosaic.version = 11 : i64} {
  func.func @kernel(%arg0: i32, %arg1: i32, %arg2: i32, %arg3: memref<32x512xbf16, #tpu.memory_space<vmem>>, %arg4: memref<512x128xbf16, #tpu.memory_space<vmem>>, %arg5: memref<1x128xf32, #tpu.memory_space<vmem>>, %arg6: memref<32x128xf32, #tpu.memory_space<vmem>>, %arg7: memref<1x128xf32, #tpu.memory_space<vmem>>, %arg8: memref<1x128xf32, #tpu.memory_space<vmem>>, %arg9: memref<32x128xf32, #tpu.memory_space<vmem>>, %arg10: memref<32x128xf32, #tpu.memory_space<vmem>>) attributes {dimension_semantics = [#tpu.dimension_semantics<parallel>, #tpu.dimension_semantics<parallel>, #tpu.dimension_semantics<arbitrary>], iteration_bounds = array<i64: 1, 1, 4>, scalar_prefetch = 0 : i64, scratch_operands = 1 : i64, tpu.core_type = #tpu.core_type<tc>, window_params = [{transform_indices = @transform_0, window_bounds = array<i64: 32, 512>}, {transform_indices = @transform_1, window_bounds = array<i64: 512, 128>}, {transform_indices = @transform_2, window_bounds = array<i64: 1, 128>}, {transform_indices = @transform_3, window_bounds = array<i64: 32, 128>}, {transform_indices = @transform_4, window_bounds = array<i64: 1, 128>}, {transform_indices = @transform_5, window_bounds = array<i64: 1, 128>}, {transform_indices = @transform_6, window_bounds = array<i64: 32, 128>}]} {
    %c0_i32 = arith.constant 0 : i32
    %0 = arith.cmpi eq, %arg2, %c0_i32 : i32
    %1 = arith.extui %0 : i1 to i32
    %c0_i32_0 = arith.constant 0 : i32
    %2 = arith.cmpi ne, %1, %c0_i32_0 : i32
    scf.if %2 {
      %cst_9 = arith.constant 0.000000e+00 : f32
      %12 = vector.broadcast %cst_9 : f32 to vector<32x128xf32>
      %c0_10 = arith.constant 0 : index
      %c0_11 = arith.constant 0 : index
      %13 = vector.load %arg10[%c0_10, %c0_11] : memref<32x128xf32, #tpu.memory_space<vmem>>, vector<32x128xf32>
      tpu.vector_store %arg10[%c0_10, %c0_11], %12 {strides = array<i32>} : memref<32x128xf32, #tpu.memory_space<vmem>>, vector<32x128xf32>,
    } else {
    }
    %c0 = arith.constant 0 : index
    %c0_1 = arith.constant 0 : index
    %3 = vector.load %arg3[%c0, %c0_1] : memref<32x512xbf16, #tpu.memory_space<vmem>>, vector<32x512xbf16>
    %c0_2 = arith.constant 0 : index
    %c0_3 = arith.constant 0 : index
    %4 = vector.load %arg10[%c0_2, %c0_3] : memref<32x128xf32, #tpu.memory_space<vmem>>, vector<32x128xf32>
    %c0_4 = arith.constant 0 : index
    %c0_5 = arith.constant 0 : index
    %5 = vector.load %arg4[%c0_4, %c0_5] : memref<512x128xbf16, #tpu.memory_space<vmem>>, vector<512x128xbf16>
    %cst = arith.constant dense<0.000000e+00> : vector<32x128xf32>
    %6 = tpu.matmul %3, %5, %cst {dimension_numbers = #tpu.dot_dimension_numbers<[1], [0], [0], [1], [0, 0, 1, 1], [], []>} : vector<32x512xbf16>, vector<512x128xbf16>, vector<32x128xf32> -> vector<32x128xf32>
    %7 = arith.addf %4, %6 : vector<32x128xf32>
    %c0_6 = arith.constant 0 : index
    %c0_7 = arith.constant 0 : index
    %8 = vector.load %arg10[%c0_6, %c0_7] : memref<32x128xf32, #tpu.memory_space<vmem>>, vector<32x128xf32>
    tpu.vector_store %arg10[%c0_6, %c0_7], %7 {strides = array<i32>} : memref<32x128xf32, #tpu.memory_space<vmem>>, vector<32x128xf32>,
    %c3_i32 = arith.constant 3 : i32
    %9 = arith.cmpi eq, %arg2, %c3_i32 : i32
    %10 = arith.extui %9 : i1 to i32
    %c0_i32_8 = arith.constant 0 : i32
    %11 = arith.cmpi ne, %10, %c0_i32_8 : i32
    scf.if %11 {
      %c0_9 = arith.constant 0 : index
      %c0_10 = arith.constant 0 : index
      %12 = vector.load %arg10[%c0_9, %c0_10] : memref<32x128xf32, #tpu.memory_space<vmem>>, vector<32x128xf32>
      %c0_11 = arith.constant 0 : index
      %c0_12 = arith.constant 0 : index
      %13 = vector.load %arg5[%c0_11, %c0_12] : memref<1x128xf32, #tpu.memory_space<vmem>>, vector<1x128xf32>
      %14 = vector.broadcast %13 : vector<1x128xf32> to vector<32x128xf32>
      %15 = arith.addf %12, %14 : vector<32x128xf32>
      %c0_13 = arith.constant 0 : index
      %c0_14 = arith.constant 0 : index
      %16 = vector.load %arg6[%c0_13, %c0_14] : memref<32x128xf32, #tpu.memory_space<vmem>>, vector<32x128xf32>
      %17 = arith.addf %15, %16 : vector<32x128xf32>
      %cst_15 = arith.constant dense<0.000000e+00> : vector<32xf32>
      %18 = vector.multi_reduction <add>, %17, %cst_15 [1] : vector<32x128xf32> to vector<32xf32>
      %19 = vector.shape_cast %18 : vector<32xf32> to vector<32x1xf32>
      %cst_16 = arith.constant 1.280000e+02 : f32
      %20 = vector.broadcast %cst_16 : f32 to vector<32x1xf32>
      %21 = arith.divf %19, %20 : vector<32x1xf32>
      %22 = vector.broadcast %21 : vector<32x1xf32> to vector<32x128xf32>
      %23 = arith.subf %17, %22 : vector<32x128xf32>
      %24 = arith.mulf %23, %23 : vector<32x128xf32>
      %cst_17 = arith.constant dense<0.000000e+00> : vector<32xf32>
      %25 = vector.multi_reduction <add>, %24, %cst_17 [1] : vector<32x128xf32> to vector<32xf32>
      %26 = vector.shape_cast %25 : vector<32xf32> to vector<32x1xf32>
      %cst_18 = arith.constant 1.280000e+02 : f32
      %27 = vector.broadcast %cst_18 : f32 to vector<32x1xf32>
      %28 = arith.divf %26, %27 : vector<32x1xf32>
      %cst_19 = arith.constant 9.99999974E-6 : f32
      %29 = vector.broadcast %cst_19 : f32 to vector<32x1xf32>
      %30 = arith.addf %28, %29 : vector<32x1xf32>
      %31 = math.rsqrt %30 : vector<32x1xf32>
      %32 = vector.broadcast %31 : vector<32x1xf32> to vector<32x128xf32>
      %33 = arith.mulf %23, %32 : vector<32x128xf32>
      %c0_20 = arith.constant 0 : index
      %c0_21 = arith.constant 0 : index
      %34 = vector.load %arg7[%c0_20, %c0_21] : memref<1x128xf32, #tpu.memory_space<vmem>>, vector<1x128xf32>
      %35 = vector.broadcast %34 : vector<1x128xf32> to vector<32x128xf32>
      %36 = arith.mulf %33, %35 : vector<32x128xf32>
      %c0_22 = arith.constant 0 : index
      %c0_23 = arith.constant 0 : index
      %37 = vector.load %arg8[%c0_22, %c0_23] : memref<1x128xf32, #tpu.memory_space<vmem>>, vector<1x128xf32>
      %38 = vector.broadcast %37 : vector<1x128xf32> to vector<32x128xf32>
      %39 = arith.addf %36, %38 : vector<32x128xf32>
      %c0_24 = arith.constant 0 : index
      %c0_25 = arith.constant 0 : index
      %40 = vector.load %arg9[%c0_24, %c0_25] : memref<32x128xf32, #tpu.memory_space<vmem>>, vector<32x128xf32>
      tpu.vector_store %arg9[%c0_24, %c0_25], %39 {strides = array<i32>} : memref<32x128xf32, #tpu.memory_space<vmem>>, vector<32x128xf32>,
    } else {
    }
    return
  }
  func.func @transform_0(%arg0: i32, %arg1: i32, %arg2: i32) -> (i32, i32) {
    %c0_i32 = arith.constant 0 : i32
    return %arg0, %arg2 : i32, i32
  }
  func.func @transform_1(%arg0: i32, %arg1: i32, %arg2: i32) -> (i32, i32) {
    %c0_i32 = arith.constant 0 : i32
    return %arg2, %arg1 : i32, i32
  }
  func.func @transform_2(%arg0: i32, %arg1: i32, %arg2: i32) -> (i32, i32) {
    %c0_i32 = arith.constant 0 : i32
    %c0_i32_0 = arith.constant 0 : i32
    return %c0_i32, %arg1 : i32, i32
  }
  func.func @transform_3(%arg0: i32, %arg1: i32, %arg2: i32) -> (i32, i32) {
    %c0_i32 = arith.constant 0 : i32
    return %arg0, %arg1 : i32, i32
  }
  func.func @transform_4(%arg0: i32, %arg1: i32, %arg2: i32) -> (i32, i32) {
    %c0_i32 = arith.constant 0 : i32
    %c0_i32_0 = arith.constant 0 : i32
    return %c0_i32, %arg1 : i32, i32
  }
  func.func @transform_5(%arg0: i32, %arg1: i32, %arg2: i32) -> (i32, i32) {
    %c0_i32 = arith.constant 0 : i32
    %c0_i32_0 = arith.constant 0 : i32
    return %c0_i32, %arg1 : i32, i32
  }
  func.func @transform_6(%arg0: i32, %arg1: i32, %arg2: i32) -> (i32, i32) {
    %c0_i32 = arith.constant 0 : i32
    return %arg0, %arg1 : i32, i32
  }
}

module attributes {stable_mosaic.version = 11 : i64} {
  func.func @kernel(%arg0: i32, %arg1: memref<16x96xbf16, #tpu.memory_space<vmem>>, %arg2: memref<96x256xbf16, #tpu.memory_space<vmem>>, %arg3: memref<16x1xf32, #tpu.memory_space<vmem>>, %arg4: memref<16x1xf32, #tpu.memory_space<vmem>>, %arg5: memref<16x1xf32, #tpu.memory_space<vmem>>, %arg6: memref<16x256xf32, #tpu.memory_space<vmem>>) attributes {dimension_semantics = [#tpu.dimension_semantics<parallel>], iteration_bounds = array<i64: 1>, scalar_prefetch = 0 : i64, scratch_operands = 0 : i64, tpu.core_type = #tpu.core_type<tc>, window_params = [{pipeline_mode = #tpu.pipeline_mode<synchronous>, transform_indices = @transform_0, window_bounds = array<i64: 16, 96>}, {transform_indices = @transform_1, window_bounds = array<i64: 96, 256>}, {pipeline_mode = #tpu.pipeline_mode<synchronous>, transform_indices = @transform_2, window_bounds = array<i64: 16, 1>}, {pipeline_mode = #tpu.pipeline_mode<synchronous>, transform_indices = @transform_3, window_bounds = array<i64: 16, 1>}, {pipeline_mode = #tpu.pipeline_mode<synchronous>, transform_indices = @transform_4, window_bounds = array<i64: 16, 1>}, {transform_indices = @transform_5, window_bounds = array<i64: 16, 256>}]} {
    %c0 = arith.constant 0 : index
    %c0_0 = arith.constant 0 : index
    %0 = vector.load %arg1[%c0, %c0_0] : memref<16x96xbf16, #tpu.memory_space<vmem>>, vector<16x96xbf16>
    %c0_1 = arith.constant 0 : index
    %c0_2 = arith.constant 0 : index
    %1 = vector.load %arg2[%c0_1, %c0_2] : memref<96x256xbf16, #tpu.memory_space<vmem>>, vector<96x256xbf16>
    %cst = arith.constant dense<0.000000e+00> : vector<16x256xf32>
    %2 = tpu.matmul %0, %1, %cst {dimension_numbers = #tpu.dot_dimension_numbers<[1], [0], [0], [1], [0, 0, 1, 1], [], []>} : vector<16x96xbf16>, vector<96x256xbf16>, vector<16x256xf32> -> vector<16x256xf32>
    %c0_3 = arith.constant 0 : index
    %c0_4 = arith.constant 0 : index
    %3 = vector.load %arg3[%c0_3, %c0_4] : memref<16x1xf32, #tpu.memory_space<vmem>>, vector<16x1xf32>
    %4 = vector.broadcast %3 : vector<16x1xf32> to vector<16x256xf32>
    %5 = arith.addf %2, %4 : vector<16x256xf32>
    %c0_5 = arith.constant 0 : index
    %c0_6 = arith.constant 0 : index
    %6 = vector.load %arg4[%c0_5, %c0_6] : memref<16x1xf32, #tpu.memory_space<vmem>>, vector<16x1xf32>
    %7 = vector.broadcast %6 : vector<16x1xf32> to vector<16x256xf32>
    %8 = arith.mulf %5, %7 : vector<16x256xf32>
    %c0_7 = arith.constant 0 : index
    %c0_8 = arith.constant 0 : index
    %9 = vector.load %arg5[%c0_7, %c0_8] : memref<16x1xf32, #tpu.memory_space<vmem>>, vector<16x1xf32>
    %10 = vector.broadcast %9 : vector<16x1xf32> to vector<16x256xf32>
    %11 = arith.addf %8, %10 : vector<16x256xf32>
    %cst_9 = arith.constant 0.000000e+00 : f32
    %12 = vector.broadcast %cst_9 : f32 to vector<16x256xf32>
    %13 = arith.cmpf oge, %11, %12 : vector<16x256xf32>
    %cst_10 = arith.constant 0.00999999977 : f32
    %14 = vector.broadcast %cst_10 : f32 to vector<16x256xf32>
    %15 = arith.mulf %14, %11 : vector<16x256xf32>
    %16 = arith.select %13, %11, %15 : vector<16x256xi1>, vector<16x256xf32>
    %c0_11 = arith.constant 0 : index
    %c0_12 = arith.constant 0 : index
    %17 = vector.load %arg6[%c0_11, %c0_12] : memref<16x256xf32, #tpu.memory_space<vmem>>, vector<16x256xf32>
    tpu.vector_store %arg6[%c0_11, %c0_12], %16 {strides = array<i32>} : memref<16x256xf32, #tpu.memory_space<vmem>>, vector<16x256xf32>,
    return
  }
  func.func @transform_0(%arg0: i32) -> (i32, i32) {
    %c0_i32 = arith.constant 0 : i32
    %c0_i32_0 = arith.constant 0 : i32
    %c0_i32_1 = arith.constant 0 : i32
    return %c0_i32, %c0_i32_0 : i32, i32
  }
  func.func @transform_1(%arg0: i32) -> (i32, i32) {
    %c0_i32 = arith.constant 0 : i32
    %c0_i32_0 = arith.constant 0 : i32
    return %c0_i32, %arg0 : i32, i32
  }
  func.func @transform_2(%arg0: i32) -> (i32, i32) {
    %c0_i32 = arith.constant 0 : i32
    %c0_i32_0 = arith.constant 0 : i32
    %c0_i32_1 = arith.constant 0 : i32
    return %c0_i32, %c0_i32_0 : i32, i32
  }
  func.func @transform_3(%arg0: i32) -> (i32, i32) {
    %c0_i32 = arith.constant 0 : i32
    %c0_i32_0 = arith.constant 0 : i32
    %c0_i32_1 = arith.constant 0 : i32
    return %c0_i32, %c0_i32_0 : i32, i32
  }
  func.func @transform_4(%arg0: i32) -> (i32, i32) {
    %c0_i32 = arith.constant 0 : i32
    %c0_i32_0 = arith.constant 0 : i32
    %c0_i32_1 = arith.constant 0 : i32
    return %c0_i32, %c0_i32_0 : i32, i32
  }
  func.func @transform_5(%arg0: i32) -> (i32, i32) {
    %c0_i32 = arith.constant 0 : i32
    %c0_i32_0 = arith.constant 0 : i32
    return %c0_i32, %arg0 : i32, i32
  }
}

module attributes {stable_mosaic.version = 11 : i64} {
  func.func @kernel(%arg0: i32, %arg1: memref<16x96xbf16, #tpu.memory_space<vmem>>, %arg2: memref<96x512xbf16, #tpu.memory_space<vmem>>, %arg3: memref<16x1xf32, #tpu.memory_space<vmem>>, %arg4: memref<16x1xf32, #tpu.memory_space<vmem>>, %arg5: memref<16x1xf32, #tpu.memory_space<vmem>>, %arg6: memref<16x512xf32, #tpu.memory_space<vmem>>, %arg7: memref<16x512xf32, #tpu.memory_space<vmem>>) attributes {dimension_semantics = [#tpu.dimension_semantics<parallel>], iteration_bounds = array<i64: 1>, scalar_prefetch = 0 : i64, scratch_operands = 0 : i64, tpu.core_type = #tpu.core_type<tc>, window_params = [{pipeline_mode = #tpu.pipeline_mode<synchronous>, transform_indices = @transform_0, window_bounds = array<i64: 16, 96>}, {transform_indices = @transform_1, window_bounds = array<i64: 96, 512>}, {pipeline_mode = #tpu.pipeline_mode<synchronous>, transform_indices = @transform_2, window_bounds = array<i64: 16, 1>}, {pipeline_mode = #tpu.pipeline_mode<synchronous>, transform_indices = @transform_3, window_bounds = array<i64: 16, 1>}, {pipeline_mode = #tpu.pipeline_mode<synchronous>, transform_indices = @transform_4, window_bounds = array<i64: 16, 1>}, {transform_indices = @transform_5, window_bounds = array<i64: 16, 512>}, {transform_indices = @transform_6, window_bounds = array<i64: 16, 512>}]} {
    %c0 = arith.constant 0 : index
    %c0_0 = arith.constant 0 : index
    %0 = vector.load %arg1[%c0, %c0_0] : memref<16x96xbf16, #tpu.memory_space<vmem>>, vector<16x96xbf16>
    %c0_1 = arith.constant 0 : index
    %c0_2 = arith.constant 0 : index
    %1 = vector.load %arg2[%c0_1, %c0_2] : memref<96x512xbf16, #tpu.memory_space<vmem>>, vector<96x512xbf16>
    %cst = arith.constant dense<0.000000e+00> : vector<16x512xf32>
    %2 = tpu.matmul %0, %1, %cst {dimension_numbers = #tpu.dot_dimension_numbers<[1], [0], [0], [1], [0, 0, 1, 1], [], []>} : vector<16x96xbf16>, vector<96x512xbf16>, vector<16x512xf32> -> vector<16x512xf32>
    %c0_3 = arith.constant 0 : index
    %c0_4 = arith.constant 0 : index
    %3 = vector.load %arg3[%c0_3, %c0_4] : memref<16x1xf32, #tpu.memory_space<vmem>>, vector<16x1xf32>
    %4 = vector.broadcast %3 : vector<16x1xf32> to vector<16x512xf32>
    %5 = arith.addf %2, %4 : vector<16x512xf32>
    %c0_5 = arith.constant 0 : index
    %c0_6 = arith.constant 0 : index
    %6 = vector.load %arg4[%c0_5, %c0_6] : memref<16x1xf32, #tpu.memory_space<vmem>>, vector<16x1xf32>
    %7 = vector.broadcast %6 : vector<16x1xf32> to vector<16x512xf32>
    %8 = arith.mulf %5, %7 : vector<16x512xf32>
    %c0_7 = arith.constant 0 : index
    %c0_8 = arith.constant 0 : index
    %9 = vector.load %arg5[%c0_7, %c0_8] : memref<16x1xf32, #tpu.memory_space<vmem>>, vector<16x1xf32>
    %10 = vector.broadcast %9 : vector<16x1xf32> to vector<16x512xf32>
    %11 = arith.addf %8, %10 : vector<16x512xf32>
    %cst_9 = arith.constant 0.000000e+00 : f32
    %12 = vector.broadcast %cst_9 : f32 to vector<16x512xf32>
    %13 = arith.cmpf oge, %11, %12 : vector<16x512xf32>
    %cst_10 = arith.constant 0.00999999977 : f32
    %14 = vector.broadcast %cst_10 : f32 to vector<16x512xf32>
    %15 = arith.mulf %14, %11 : vector<16x512xf32>
    %16 = arith.select %13, %11, %15 : vector<16x512xi1>, vector<16x512xf32>
    %c0_11 = arith.constant 0 : index
    %c0_12 = arith.constant 0 : index
    %17 = vector.load %arg6[%c0_11, %c0_12] : memref<16x512xf32, #tpu.memory_space<vmem>>, vector<16x512xf32>
    %18 = arith.addf %16, %17 : vector<16x512xf32>
    %c0_13 = arith.constant 0 : index
    %c0_14 = arith.constant 0 : index
    %19 = vector.load %arg7[%c0_13, %c0_14] : memref<16x512xf32, #tpu.memory_space<vmem>>, vector<16x512xf32>
    tpu.vector_store %arg7[%c0_13, %c0_14], %18 {strides = array<i32>} : memref<16x512xf32, #tpu.memory_space<vmem>>, vector<16x512xf32>,
    return
  }
  func.func @transform_0(%arg0: i32) -> (i32, i32) {
    %c0_i32 = arith.constant 0 : i32
    %c0_i32_0 = arith.constant 0 : i32
    %c0_i32_1 = arith.constant 0 : i32
    return %c0_i32, %c0_i32_0 : i32, i32
  }
  func.func @transform_1(%arg0: i32) -> (i32, i32) {
    %c0_i32 = arith.constant 0 : i32
    %c0_i32_0 = arith.constant 0 : i32
    return %c0_i32, %arg0 : i32, i32
  }
  func.func @transform_2(%arg0: i32) -> (i32, i32) {
    %c0_i32 = arith.constant 0 : i32
    %c0_i32_0 = arith.constant 0 : i32
    %c0_i32_1 = arith.constant 0 : i32
    return %c0_i32, %c0_i32_0 : i32, i32
  }
  func.func @transform_3(%arg0: i32) -> (i32, i32) {
    %c0_i32 = arith.constant 0 : i32
    %c0_i32_0 = arith.constant 0 : i32
    %c0_i32_1 = arith.constant 0 : i32
    return %c0_i32, %c0_i32_0 : i32, i32
  }
  func.func @transform_4(%arg0: i32) -> (i32, i32) {
    %c0_i32 = arith.constant 0 : i32
    %c0_i32_0 = arith.constant 0 : i32
    %c0_i32_1 = arith.constant 0 : i32
    return %c0_i32, %c0_i32_0 : i32, i32
  }
  func.func @transform_5(%arg0: i32) -> (i32, i32) {
    %c0_i32 = arith.constant 0 : i32
    %c0_i32_0 = arith.constant 0 : i32
    return %c0_i32, %arg0 : i32, i32
  }
  func.func @transform_6(%arg0: i32) -> (i32, i32) {
    %c0_i32 = arith.constant 0 : i32
    %c0_i32_0 = arith.constant 0 : i32
    return %c0_i32, %arg0 : i32, i32
  }
}

module attributes {stable_mosaic.version = 11 : i64} {
  func.func @kernel(%arg0: i32, %arg1: memref<16x96xbf16, #tpu.memory_space<vmem>>, %arg2: memref<96x1024xbf16, #tpu.memory_space<vmem>>, %arg3: memref<16x1xf32, #tpu.memory_space<vmem>>, %arg4: memref<16x1xf32, #tpu.memory_space<vmem>>, %arg5: memref<16x1xf32, #tpu.memory_space<vmem>>, %arg6: memref<16x1024xf32, #tpu.memory_space<vmem>>, %arg7: memref<16x1024xf32, #tpu.memory_space<vmem>>) attributes {dimension_semantics = [#tpu.dimension_semantics<parallel>], iteration_bounds = array<i64: 1>, scalar_prefetch = 0 : i64, scratch_operands = 0 : i64, tpu.core_type = #tpu.core_type<tc>, window_params = [{pipeline_mode = #tpu.pipeline_mode<synchronous>, transform_indices = @transform_0, window_bounds = array<i64: 16, 96>}, {transform_indices = @transform_1, window_bounds = array<i64: 96, 1024>}, {pipeline_mode = #tpu.pipeline_mode<synchronous>, transform_indices = @transform_2, window_bounds = array<i64: 16, 1>}, {pipeline_mode = #tpu.pipeline_mode<synchronous>, transform_indices = @transform_3, window_bounds = array<i64: 16, 1>}, {pipeline_mode = #tpu.pipeline_mode<synchronous>, transform_indices = @transform_4, window_bounds = array<i64: 16, 1>}, {transform_indices = @transform_5, window_bounds = array<i64: 16, 1024>}, {transform_indices = @transform_6, window_bounds = array<i64: 16, 1024>}]} {
    %c0 = arith.constant 0 : index
    %c0_0 = arith.constant 0 : index
    %0 = vector.load %arg1[%c0, %c0_0] : memref<16x96xbf16, #tpu.memory_space<vmem>>, vector<16x96xbf16>
    %c0_1 = arith.constant 0 : index
    %c0_2 = arith.constant 0 : index
    %1 = vector.load %arg2[%c0_1, %c0_2] : memref<96x1024xbf16, #tpu.memory_space<vmem>>, vector<96x1024xbf16>
    %cst = arith.constant dense<0.000000e+00> : vector<16x1024xf32>
    %2 = tpu.matmul %0, %1, %cst {dimension_numbers = #tpu.dot_dimension_numbers<[1], [0], [0], [1], [0, 0, 1, 1], [], []>} : vector<16x96xbf16>, vector<96x1024xbf16>, vector<16x1024xf32> -> vector<16x1024xf32>
    %c0_3 = arith.constant 0 : index
    %c0_4 = arith.constant 0 : index
    %3 = vector.load %arg3[%c0_3, %c0_4] : memref<16x1xf32, #tpu.memory_space<vmem>>, vector<16x1xf32>
    %4 = vector.broadcast %3 : vector<16x1xf32> to vector<16x1024xf32>
    %5 = arith.addf %2, %4 : vector<16x1024xf32>
    %c0_5 = arith.constant 0 : index
    %c0_6 = arith.constant 0 : index
    %6 = vector.load %arg4[%c0_5, %c0_6] : memref<16x1xf32, #tpu.memory_space<vmem>>, vector<16x1xf32>
    %7 = vector.broadcast %6 : vector<16x1xf32> to vector<16x1024xf32>
    %8 = arith.mulf %5, %7 : vector<16x1024xf32>
    %c0_7 = arith.constant 0 : index
    %c0_8 = arith.constant 0 : index
    %9 = vector.load %arg5[%c0_7, %c0_8] : memref<16x1xf32, #tpu.memory_space<vmem>>, vector<16x1xf32>
    %10 = vector.broadcast %9 : vector<16x1xf32> to vector<16x1024xf32>
    %11 = arith.addf %8, %10 : vector<16x1024xf32>
    %cst_9 = arith.constant 0.000000e+00 : f32
    %12 = vector.broadcast %cst_9 : f32 to vector<16x1024xf32>
    %13 = arith.cmpf oge, %11, %12 : vector<16x1024xf32>
    %cst_10 = arith.constant 0.00999999977 : f32
    %14 = vector.broadcast %cst_10 : f32 to vector<16x1024xf32>
    %15 = arith.mulf %14, %11 : vector<16x1024xf32>
    %16 = arith.select %13, %11, %15 : vector<16x1024xi1>, vector<16x1024xf32>
    %c0_11 = arith.constant 0 : index
    %c0_12 = arith.constant 0 : index
    %17 = vector.load %arg6[%c0_11, %c0_12] : memref<16x1024xf32, #tpu.memory_space<vmem>>, vector<16x1024xf32>
    %18 = arith.addf %16, %17 : vector<16x1024xf32>
    %c0_13 = arith.constant 0 : index
    %c0_14 = arith.constant 0 : index
    %19 = vector.load %arg7[%c0_13, %c0_14] : memref<16x1024xf32, #tpu.memory_space<vmem>>, vector<16x1024xf32>
    tpu.vector_store %arg7[%c0_13, %c0_14], %18 {strides = array<i32>} : memref<16x1024xf32, #tpu.memory_space<vmem>>, vector<16x1024xf32>,
    return
  }
  func.func @transform_0(%arg0: i32) -> (i32, i32) {
    %c0_i32 = arith.constant 0 : i32
    %c0_i32_0 = arith.constant 0 : i32
    %c0_i32_1 = arith.constant 0 : i32
    return %c0_i32, %c0_i32_0 : i32, i32
  }
  func.func @transform_1(%arg0: i32) -> (i32, i32) {
    %c0_i32 = arith.constant 0 : i32
    %c0_i32_0 = arith.constant 0 : i32
    return %c0_i32, %arg0 : i32, i32
  }
  func.func @transform_2(%arg0: i32) -> (i32, i32) {
    %c0_i32 = arith.constant 0 : i32
    %c0_i32_0 = arith.constant 0 : i32
    %c0_i32_1 = arith.constant 0 : i32
    return %c0_i32, %c0_i32_0 : i32, i32
  }
  func.func @transform_3(%arg0: i32) -> (i32, i32) {
    %c0_i32 = arith.constant 0 : i32
    %c0_i32_0 = arith.constant 0 : i32
    %c0_i32_1 = arith.constant 0 : i32
    return %c0_i32, %c0_i32_0 : i32, i32
  }
  func.func @transform_4(%arg0: i32) -> (i32, i32) {
    %c0_i32 = arith.constant 0 : i32
    %c0_i32_0 = arith.constant 0 : i32
    %c0_i32_1 = arith.constant 0 : i32
    return %c0_i32, %c0_i32_0 : i32, i32
  }
  func.func @transform_5(%arg0: i32) -> (i32, i32) {
    %c0_i32 = arith.constant 0 : i32
    %c0_i32_0 = arith.constant 0 : i32
    return %c0_i32, %arg0 : i32, i32
  }
  func.func @transform_6(%arg0: i32) -> (i32, i32) {
    %c0_i32 = arith.constant 0 : i32
    %c0_i32_0 = arith.constant 0 : i32
    return %c0_i32, %arg0 : i32, i32
  }
}

module attributes {stable_mosaic.version = 11 : i64} {
  func.func @kernel(%arg0: i32, %arg1: memref<2x96xbf16, #tpu.memory_space<vmem>>, %arg2: memref<96x2048xbf16, #tpu.memory_space<vmem>>, %arg3: memref<2x1xf32, #tpu.memory_space<vmem>>, %arg4: memref<2x1xf32, #tpu.memory_space<vmem>>, %arg5: memref<2x1xf32, #tpu.memory_space<vmem>>, %arg6: memref<2x2048xf32, #tpu.memory_space<vmem>>) attributes {dimension_semantics = [#tpu.dimension_semantics<parallel>], iteration_bounds = array<i64: 1>, scalar_prefetch = 0 : i64, scratch_operands = 0 : i64, tpu.core_type = #tpu.core_type<tc>, window_params = [{pipeline_mode = #tpu.pipeline_mode<synchronous>, transform_indices = @transform_0, window_bounds = array<i64: 2, 96>}, {transform_indices = @transform_1, window_bounds = array<i64: 96, 2048>}, {pipeline_mode = #tpu.pipeline_mode<synchronous>, transform_indices = @transform_2, window_bounds = array<i64: 2, 1>}, {pipeline_mode = #tpu.pipeline_mode<synchronous>, transform_indices = @transform_3, window_bounds = array<i64: 2, 1>}, {pipeline_mode = #tpu.pipeline_mode<synchronous>, transform_indices = @transform_4, window_bounds = array<i64: 2, 1>}, {transform_indices = @transform_5, window_bounds = array<i64: 2, 2048>}]} {
    %c0 = arith.constant 0 : index
    %c0_0 = arith.constant 0 : index
    %0 = vector.load %arg1[%c0, %c0_0] : memref<2x96xbf16, #tpu.memory_space<vmem>>, vector<2x96xbf16>
    %c0_1 = arith.constant 0 : index
    %c0_2 = arith.constant 0 : index
    %1 = vector.load %arg2[%c0_1, %c0_2] : memref<96x2048xbf16, #tpu.memory_space<vmem>>, vector<96x2048xbf16>
    %cst = arith.constant dense<0.000000e+00> : vector<2x2048xf32>
    %2 = tpu.matmul %0, %1, %cst {dimension_numbers = #tpu.dot_dimension_numbers<[1], [0], [0], [1], [0, 0, 1, 1], [], []>} : vector<2x96xbf16>, vector<96x2048xbf16>, vector<2x2048xf32> -> vector<2x2048xf32>
    %c0_3 = arith.constant 0 : index
    %c0_4 = arith.constant 0 : index
    %3 = vector.load %arg3[%c0_3, %c0_4] : memref<2x1xf32, #tpu.memory_space<vmem>>, vector<2x1xf32>
    %4 = vector.broadcast %3 : vector<2x1xf32> to vector<2x2048xf32>
    %5 = arith.addf %2, %4 : vector<2x2048xf32>
    %c0_5 = arith.constant 0 : index
    %c0_6 = arith.constant 0 : index
    %6 = vector.load %arg4[%c0_5, %c0_6] : memref<2x1xf32, #tpu.memory_space<vmem>>, vector<2x1xf32>
    %7 = vector.broadcast %6 : vector<2x1xf32> to vector<2x2048xf32>
    %8 = arith.mulf %5, %7 : vector<2x2048xf32>
    %c0_7 = arith.constant 0 : index
    %c0_8 = arith.constant 0 : index
    %9 = vector.load %arg5[%c0_7, %c0_8] : memref<2x1xf32, #tpu.memory_space<vmem>>, vector<2x1xf32>
    %10 = vector.broadcast %9 : vector<2x1xf32> to vector<2x2048xf32>
    %11 = arith.addf %8, %10 : vector<2x2048xf32>
    %12 = math.tanh %11 : vector<2x2048xf32>
    %c0_9 = arith.constant 0 : index
    %c0_10 = arith.constant 0 : index
    %13 = vector.load %arg6[%c0_9, %c0_10] : memref<2x2048xf32, #tpu.memory_space<vmem>>, vector<2x2048xf32>
    tpu.vector_store %arg6[%c0_9, %c0_10], %12 {strides = array<i32>} : memref<2x2048xf32, #tpu.memory_space<vmem>>, vector<2x2048xf32>,
    return
  }
  func.func @transform_0(%arg0: i32) -> (i32, i32) {
    %c0_i32 = arith.constant 0 : i32
    %c0_i32_0 = arith.constant 0 : i32
    %c0_i32_1 = arith.constant 0 : i32
    return %c0_i32, %c0_i32_0 : i32, i32
  }
  func.func @transform_1(%arg0: i32) -> (i32, i32) {
    %c0_i32 = arith.constant 0 : i32
    %c0_i32_0 = arith.constant 0 : i32
    return %c0_i32, %arg0 : i32, i32
  }
  func.func @transform_2(%arg0: i32) -> (i32, i32) {
    %c0_i32 = arith.constant 0 : i32
    %c0_i32_0 = arith.constant 0 : i32
    %c0_i32_1 = arith.constant 0 : i32
    return %c0_i32, %c0_i32_0 : i32, i32
  }
  func.func @transform_3(%arg0: i32) -> (i32, i32) {
    %c0_i32 = arith.constant 0 : i32
    %c0_i32_0 = arith.constant 0 : i32
    %c0_i32_1 = arith.constant 0 : i32
    return %c0_i32, %c0_i32_0 : i32, i32
  }
  func.func @transform_4(%arg0: i32) -> (i32, i32) {
    %c0_i32 = arith.constant 0 : i32
    %c0_i32_0 = arith.constant 0 : i32
    %c0_i32_1 = arith.constant 0 : i32
    return %c0_i32, %c0_i32_0 : i32, i32
  }
  func.func @transform_5(%arg0: i32) -> (i32, i32) {
    %c0_i32 = arith.constant 0 : i32
    %c0_i32_0 = arith.constant 0 : i32
    return %c0_i32, %arg0 : i32, i32
  }
}

module attributes {stable_mosaic.version = 11 : i64} {
  func.func @kernel(%arg0: i32, %arg1: i32, %arg2: i32, %arg3: memref<16x384xf32, #tpu.memory_space<vmem>>, %arg4: memref<16x384xf32, #tpu.memory_space<vmem>>, %arg5: memref<384x512xf32, #tpu.memory_space<vmem>>, %arg6: memref<16x512xf32, #tpu.memory_space<vmem>>, %arg7: memref<16x512xf32, #tpu.memory_space<vmem>>) attributes {dimension_semantics = [#tpu.dimension_semantics<parallel>, #tpu.dimension_semantics<parallel>, #tpu.dimension_semantics<arbitrary>], iteration_bounds = array<i64: 1, 1, 2>, scalar_prefetch = 0 : i64, scratch_operands = 1 : i64, tpu.core_type = #tpu.core_type<tc>, window_params = [{transform_indices = @transform_0, window_bounds = array<i64: 16, 384>}, {transform_indices = @transform_1, window_bounds = array<i64: 16, 384>}, {transform_indices = @transform_2, window_bounds = array<i64: 384, 512>}, {transform_indices = @transform_3, window_bounds = array<i64: 16, 512>}]} {
    %c0_i32 = arith.constant 0 : i32
    %0 = arith.cmpi eq, %arg2, %c0_i32 : i32
    %1 = arith.extui %0 : i1 to i32
    %c0_i32_0 = arith.constant 0 : i32
    %2 = arith.cmpi ne, %1, %c0_i32_0 : i32
    scf.if %2 {
      %cst_11 = arith.constant 0.000000e+00 : f32
      %14 = vector.broadcast %cst_11 : f32 to vector<16x512xf32>
      %c0_12 = arith.constant 0 : index
      %c0_13 = arith.constant 0 : index
      %15 = vector.load %arg7[%c0_12, %c0_13] : memref<16x512xf32, #tpu.memory_space<vmem>>, vector<16x512xf32>
      tpu.vector_store %arg7[%c0_12, %c0_13], %14 {strides = array<i32>} : memref<16x512xf32, #tpu.memory_space<vmem>>, vector<16x512xf32>,
    } else {
    }
    %c0 = arith.constant 0 : index
    %c0_1 = arith.constant 0 : index
    %3 = vector.load %arg3[%c0, %c0_1] : memref<16x384xf32, #tpu.memory_space<vmem>>, vector<16x384xf32>
    %c0_2 = arith.constant 0 : index
    %c0_3 = arith.constant 0 : index
    %4 = vector.load %arg4[%c0_2, %c0_3] : memref<16x384xf32, #tpu.memory_space<vmem>>, vector<16x384xf32>
    %5 = arith.mulf %3, %4 : vector<16x384xf32>
    %c0_4 = arith.constant 0 : index
    %c0_5 = arith.constant 0 : index
    %6 = vector.load %arg7[%c0_4, %c0_5] : memref<16x512xf32, #tpu.memory_space<vmem>>, vector<16x512xf32>
    %c0_6 = arith.constant 0 : index
    %c0_7 = arith.constant 0 : index
    %7 = vector.load %arg5[%c0_6, %c0_7] : memref<384x512xf32, #tpu.memory_space<vmem>>, vector<384x512xf32>
    %cst = arith.constant dense<0.000000e+00> : vector<16x512xf32>
    %8 = tpu.matmul %5, %7, %cst {dimension_numbers = #tpu.dot_dimension_numbers<[1], [0], [0], [1], [0, 0, 1, 1], [], []>} : vector<16x384xf32>, vector<384x512xf32>, vector<16x512xf32> -> vector<16x512xf32>
    %9 = arith.addf %6, %8 : vector<16x512xf32>
    %c0_8 = arith.constant 0 : index
    %c0_9 = arith.constant 0 : index
    %10 = vector.load %arg7[%c0_8, %c0_9] : memref<16x512xf32, #tpu.memory_space<vmem>>, vector<16x512xf32>
    tpu.vector_store %arg7[%c0_8, %c0_9], %9 {strides = array<i32>} : memref<16x512xf32, #tpu.memory_space<vmem>>, vector<16x512xf32>,
    %c1_i32 = arith.constant 1 : i32
    %11 = arith.cmpi eq, %arg2, %c1_i32 : i32
    %12 = arith.extui %11 : i1 to i32
    %c0_i32_10 = arith.constant 0 : i32
    %13 = arith.cmpi ne, %12, %c0_i32_10 : i32
    scf.if %13 {
      %c0_11 = arith.constant 0 : index
      %c0_12 = arith.constant 0 : index
      %14 = vector.load %arg7[%c0_11, %c0_12] : memref<16x512xf32, #tpu.memory_space<vmem>>, vector<16x512xf32>
      %c0_13 = arith.constant 0 : index
      %c0_14 = arith.constant 0 : index
      %15 = vector.load %arg6[%c0_13, %c0_14] : memref<16x512xf32, #tpu.memory_space<vmem>>, vector<16x512xf32>
      tpu.vector_store %arg6[%c0_13, %c0_14], %14 {strides = array<i32>} : memref<16x512xf32, #tpu.memory_space<vmem>>, vector<16x512xf32>,
    } else {
    }
    return
  }
  func.func @transform_0(%arg0: i32, %arg1: i32, %arg2: i32) -> (i32, i32) {
    %c0_i32 = arith.constant 0 : i32
    return %arg0, %arg2 : i32, i32
  }
  func.func @transform_1(%arg0: i32, %arg1: i32, %arg2: i32) -> (i32, i32) {
    %c0_i32 = arith.constant 0 : i32
    return %arg0, %arg2 : i32, i32
  }
  func.func @transform_2(%arg0: i32, %arg1: i32, %arg2: i32) -> (i32, i32) {
    %c0_i32 = arith.constant 0 : i32
    return %arg2, %arg1 : i32, i32
  }
  func.func @transform_3(%arg0: i32, %arg1: i32, %arg2: i32) -> (i32, i32) {
    %c0_i32 = arith.constant 0 : i32
    return %arg0, %arg1 : i32, i32
  }
}

</mosaic_0001>

<bundles_post_ra>
// kernel: enhancement_forward.19
= control target key start
LH: loop header
LB: loop body
LE: loop exit
PB: predicated region body
PF: predicated region fallthrough
CT: control target
= control target key end

     0   :  { %s2227_s1 = inlined_call_operand.vmem [shape: f32[512,768], index: 1, kind: input, shape index: {}]   ;;  %s2228_s0 = inlined_call_operand.vmem [shape: f32[16,512], index: 0, kind: input, shape index: {}]   ;;  %s2229_s2 = inlined_call_operand.vmem [shape: f32[16,768], index: 2, kind: output, shape index: {}]  }
   0x1   :  { %v138_v0 = vld [vmem:[%s2227_s1 + $0x2d8] sm:$0xff]  ;;  %v137_v2 = vld [vmem:[%s2227_s1 + $0x2d0] sm:$0xff]  ;;  %v132_v4 = vld [vmem:[%s2227_s1 + $0x2a8] sm:$0xff] }
   0x2   :  { %v330_v1 = vld [vmem:[%s2227_s1 + $0x8d8] sm:$0xff]  ;;  %431 = vmatprep.subr.mxu0 %v138_v0  ;;  %v329_v3 = vld [vmem:[%s2227_s1 + $0x8d0] sm:$0xff]  ;;  %v324_v5 = vld [vmem:[%s2227_s1 + $0x8a8] sm:$0xff] }
   0x3   :  { %508 = vmatprep.subr.mxu1 %v330_v1  ;;  %432 = vmatpush1.msra.mxu0 %v137_v2  ;;  %v131_v6 = vld [vmem:[%s2227_s1 + $0x2a0] sm:$0xff]  ;;  %v126_v8 = vld [vmem:[%s2227_s1 + $0x278] sm:$0xff]  ;;  %v125_v10 = vld [vmem:[%s2227_s1 + $0x270] sm:$0xff] }
   0x4   :  { %509 = vmatpush1.msra.mxu1 %v329_v3  ;;  %v323_v7 = vld [vmem:[%s2227_s1 + $0x8a0] sm:$0xff]  ;;  %433 = vmatprep.subr.mxu0 %v132_v4  ;;  %v318_v9 = vld [vmem:[%s2227_s1 + $0x878] sm:$0xff]  ;;  %v317_v11 = vld [vmem:[%s2227_s1 + $0x870] sm:$0xff] }
   0x5   :  { %510 = vmatprep.subr.mxu1 %v324_v5  ;;  %434 = vmatpush1.msra.mxu0 %v131_v6  ;;  %v120_v12 = vld [vmem:[%s2227_s1 + $0x248] sm:$0xff]  ;;  %v119_v14 = vld [vmem:[%s2227_s1 + $0x240] sm:$0xff]  ;;  %v114_v16 = vld [vmem:[%s2227_s1 + $0x218] sm:$0xff] }
   0x6   :  { %511 = vmatpush1.msra.mxu1 %v323_v7  ;;  %v312_v13 = vld [vmem:[%s2227_s1 + $0x848] sm:$0xff]  ;;  %435 = vmatprep.subr.mxu0 %v126_v8  ;;  %v311_v15 = vld [vmem:[%s2227_s1 + $0x840] sm:$0xff]  ;;  %v306_v17 = vld [vmem:[%s2227_s1 + $0x818] sm:$0xff] }
   0x7   :  { %512 = vmatprep.subr.mxu1 %v318_v9  ;;  %436 = vmatpush1.msra.mxu0 %v125_v10  ;;  %v113_v18 = vld [vmem:[%s2227_s1 + $0x210] sm:$0xff]  ;;  %v108_v20 = vld [vmem:[%s2227_s1 + $0x1e8] sm:$0xff]  ;;  %v107_v22 = vld [vmem:[%s2227_s1 + $0x1e0] sm:$0xff] }
   0x8   :  { %513 = vmatpush1.msra.mxu1 %v317_v11  ;;  %437 = vmatprep.subr.mxu0 %v120_v12  ;;  %v305_v19 = vld [vmem:[%s2227_s1 + $0x810] sm:$0xff]  ;;  %v300_v21 = vld [vmem:[%s2227_s1 + $0x7e8] sm:$0xff]  ;;  %v299_v23 = vld [vmem:[%s2227_s1 + $0x7e0] sm:$0xff] }
   0x9   :  { %514 = vmatprep.subr.mxu1 %v312_v13  ;;  %438 = vmatpush1.msra.mxu0 %v119_v14  ;;  %v102_v24 = vld [vmem:[%s2227_s1 + $0x1b8] sm:$0xff]  ;;  %v101_v26 = vld [vmem:[%s2227_s1 + $0x1b0] sm:$0xff]  ;;  %v96_v28 = vld [vmem:[%s2227_s1 + $0x188] sm:$0xff] }
   0xa   :  { %515 = vmatpush1.msra.mxu1 %v311_v15  ;;  %439 = vmatprep.subr.mxu0 %v114_v16  ;;  %v294_v25 = vld [vmem:[%s2227_s1 + $0x7b8] sm:$0xff]  ;;  %v293_v27 = vld [vmem:[%s2227_s1 + $0x7b0] sm:$0xff]  ;;  %v288_v29 = vld [vmem:[%s2227_s1 + $0x788] sm:$0xff] }
   0xb   :  { %516 = vmatprep.subr.mxu1 %v306_v17  ;;  %440 = vmatpush1.msra.mxu0 %v113_v18  ;;  %v95_v30 = vld [vmem:[%s2227_s1 + $0x180] sm:$0xff]  ;;  %v90_v32 = vld [vmem:[%s2227_s1 + $0x158] sm:$0xff]  ;;  %v89_v34 = vld [vmem:[%s2227_s1 + $0x150] sm:$0xff] }
   0xc   :  { %517 = vmatpush1.msra.mxu1 %v305_v19  ;;  %441 = vmatprep.subr.mxu0 %v108_v20  ;;  %v287_v31 = vld [vmem:[%s2227_s1 + $0x780] sm:$0xff]  ;;  %v282_v33 = vld [vmem:[%s2227_s1 + $0x758] sm:$0xff]  ;;  %v281_v35 = vld [vmem:[%s2227_s1 + $0x750] sm:$0xff] }
   0xd   :  { %518 = vmatprep.subr.mxu1 %v300_v21  ;;  %442 = vmatpush1.msra.mxu0 %v107_v22  ;;  %v84_v36 = vld [vmem:[%s2227_s1 + $0x128] sm:$0xff]  ;;  %v83_v38 = vld [vmem:[%s2227_s1 + $0x120] sm:$0xff]  ;;  %v78_v40 = vld [vmem:[%s2227_s1 + $0xf8] sm:$0xff] }
   0xe   :  { %519 = vmatpush1.msra.mxu1 %v299_v23  ;;  %443 = vmatprep.subr.mxu0 %v102_v24  ;;  %v276_v37 = vld [vmem:[%s2227_s1 + $0x728] sm:$0xff]  ;;  %v275_v39 = vld [vmem:[%s2227_s1 + $0x720] sm:$0xff]  ;;  %v270_v41 = vld [vmem:[%s2227_s1 + $0x6f8] sm:$0xff] }
   0xf   :  { %520 = vmatprep.subr.mxu1 %v294_v25  ;;  %444 = vmatpush1.msra.mxu0 %v101_v26  ;;  %v77_v42 = vld [vmem:[%s2227_s1 + $0xf0] sm:$0xff]  ;;  %v72_v44 = vld [vmem:[%s2227_s1 + $0xc8] sm:$0xff]  ;;  %v71_v46 = vld [vmem:[%s2227_s1 + $0xc0] sm:$0xff] }
  0x10   :  { %521 = vmatpush1.msra.mxu1 %v293_v27  ;;  %445 = vmatprep.subr.mxu0 %v96_v28  ;;  %v269_v43 = vld [vmem:[%s2227_s1 + $0x6f0] sm:$0xff]  ;;  %v264_v45 = vld [vmem:[%s2227_s1 + $0x6c8] sm:$0xff]  ;;  %v263_v47 = vld [vmem:[%s2227_s1 + $0x6c0] sm:$0xff] }
  0x11   :  { %522 = vmatprep.subr.mxu1 %v288_v29  ;;  %446 = vmatpush1.msra.mxu0 %v95_v30  ;;  %v66_v48 = vld [vmem:[%s2227_s1 + $0x98] sm:$0xff]  ;;  %v65_v50 = vld [vmem:[%s2227_s1 + $0x90] sm:$0xff]  ;;  %v60_v52 = vld [vmem:[%s2227_s1 + $0x68] sm:$0xff] }
  0x12   :  { %523 = vmatpush1.msra.mxu1 %v287_v31  ;;  %447 = vmatprep.subr.mxu0 %v90_v32  ;;  %v258_v49 = vld [vmem:[%s2227_s1 + $0x698] sm:$0xff]  ;;  %v257_v51 = vld [vmem:[%s2227_s1 + $0x690] sm:$0xff]  ;;  %v252_v53 = vld [vmem:[%s2227_s1 + $0x668] sm:$0xff] }
  0x13   :  { %524 = vmatprep.subr.mxu1 %v282_v33  ;;  %448 = vmatpush1.msra.mxu0 %v89_v34  ;;  %v59_v54 = vld [vmem:[%s2227_s1 + $0x60] sm:$0xff]  ;;  %v54_v56 = vld [vmem:[%s2227_s1 + $0x38] sm:$0xff]  ;;  %v53_v58 = vld [vmem:[%s2227_s1 + $0x30] sm:$0xff] }
  0x14   :  { %525 = vmatpush1.msra.mxu1 %v281_v35  ;;  %449 = vmatprep.subr.mxu0 %v84_v36  ;;  %v251_v55 = vld [vmem:[%s2227_s1 + $0x660] sm:$0xff]  ;;  %v246_v57 = vld [vmem:[%s2227_s1 + $0x638] sm:$0xff]  ;;  %v245_v59 = vld [vmem:[%s2227_s1 + $0x630] sm:$0xff] }
  0x15   :  { %526 = vmatprep.subr.mxu1 %v276_v37  ;;  %450 = vmatpush1.msra.mxu0 %v83_v38  ;;  %v48_v60 = vld [vmem:[%s2227_s1 + $0x8] sm:$0xff]  ;;  %v47_v62 = vld [vmem:[%s2227_s1] sm:$0xff]  ;;  %v234_v0 = vld [vmem:[%s2227_s1 + $0x5d8] sm:$0xff] }
  0x16   :  { %527 = vmatpush1.msra.mxu1 %v275_v39  ;;  %451 = vmatprep.subr.mxu0 %v78_v40  ;;  %v240_v61 = vld [vmem:[%s2227_s1 + $0x608] sm:$0xff]  ;;  %v239_v63 = vld [vmem:[%s2227_s1 + $0x600] sm:$0xff]  ;;  %v426_v1 = vld [vmem:[%s2227_s1 + $0xbd8] sm:$0xff] }
  0x17   :  { %528 = vmatprep.subr.mxu1 %v270_v41  ;;  %452 = vmatpush1.msra.mxu0 %v77_v42  ;;  %v233_v2 = vld [vmem:[%s2227_s1 + $0x5d0] sm:$0xff]  ;;  %v228_v4 = vld [vmem:[%s2227_s1 + $0x5a8] sm:$0xff]  ;;  %v227_v6 = vld [vmem:[%s2227_s1 + $0x5a0] sm:$0xff] }
  0x18   :  { %529 = vmatpush1.msra.mxu1 %v269_v43  ;;  %453 = vmatprep.subr.mxu0 %v72_v44  ;;  %v425_v3 = vld [vmem:[%s2227_s1 + $0xbd0] sm:$0xff]  ;;  %v420_v5 = vld [vmem:[%s2227_s1 + $0xba8] sm:$0xff]  ;;  %v419_v7 = vld [vmem:[%s2227_s1 + $0xba0] sm:$0xff] }
  0x19   :  { %530 = vmatprep.subr.mxu1 %v264_v45  ;;  %454 = vmatpush1.msra.mxu0 %v71_v46  ;;  %v222_v8 = vld [vmem:[%s2227_s1 + $0x578] sm:$0xff]  ;;  %v221_v10 = vld [vmem:[%s2227_s1 + $0x570] sm:$0xff]  ;;  %v216_v12 = vld [vmem:[%s2227_s1 + $0x548] sm:$0xff] }
  0x1a   :  { %531 = vmatpush1.msra.mxu1 %v263_v47  ;;  %455 = vmatprep.subr.mxu0 %v66_v48  ;;  %v414_v9 = vld [vmem:[%s2227_s1 + $0xb78] sm:$0xff]  ;;  %v413_v11 = vld [vmem:[%s2227_s1 + $0xb70] sm:$0xff]  ;;  %v408_v13 = vld [vmem:[%s2227_s1 + $0xb48] sm:$0xff] }
  0x1b   :  { %532 = vmatprep.subr.mxu1 %v258_v49  ;;  %456 = vmatpush1.msra.mxu0 %v65_v50  ;;  %v215_v14 = vld [vmem:[%s2227_s1 + $0x540] sm:$0xff]  ;;  %v210_v16 = vld [vmem:[%s2227_s1 + $0x518] sm:$0xff]  ;;  %v209_v18 = vld [vmem:[%s2227_s1 + $0x510] sm:$0xff] }
  0x1c   :  { %533 = vmatpush1.msra.mxu1 %v257_v51  ;;  %457 = vmatprep.subr.mxu0 %v60_v52  ;;  %v407_v15 = vld [vmem:[%s2227_s1 + $0xb40] sm:$0xff]  ;;  %v402_v17 = vld [vmem:[%s2227_s1 + $0xb18] sm:$0xff]  ;;  %v401_v19 = vld [vmem:[%s2227_s1 + $0xb10] sm:$0xff] }
  0x1d   :  { %534 = vmatprep.subr.mxu1 %v252_v53  ;;  %458 = vmatpush1.msra.mxu0 %v59_v54  ;;  %v204_v20 = vld [vmem:[%s2227_s1 + $0x4e8] sm:$0xff]  ;;  %v203_v22 = vld [vmem:[%s2227_s1 + $0x4e0] sm:$0xff]  ;;  %v198_v24 = vld [vmem:[%s2227_s1 + $0x4b8] sm:$0xff] }
  0x1e   :  { %535 = vmatpush1.msra.mxu1 %v251_v55  ;;  %459 = vmatprep.subr.mxu0 %v54_v56  ;;  %v396_v21 = vld [vmem:[%s2227_s1 + $0xae8] sm:$0xff]  ;;  %v395_v23 = vld [vmem:[%s2227_s1 + $0xae0] sm:$0xff]  ;;  %v390_v25 = vld [vmem:[%s2227_s1 + $0xab8] sm:$0xff] }
  0x1f   :  { %536 = vmatprep.subr.mxu1 %v246_v57  ;;  %460 = vmatpush1.msra.mxu0 %v53_v58  ;;  %v197_v26 = vld [vmem:[%s2227_s1 + $0x4b0] sm:$0xff]  ;;  %v192_v28 = vld [vmem:[%s2227_s1 + $0x488] sm:$0xff]  ;;  %v191_v30 = vld [vmem:[%s2227_s1 + $0x480] sm:$0xff] }
  0x20   :  { %537 = vmatpush1.msra.mxu1 %v245_v59  ;;  %461 = vmatprep.subr.mxu0 %v48_v60  ;;  %v389_v27 = vld [vmem:[%s2227_s1 + $0xab0] sm:$0xff]  ;;  %v384_v29 = vld [vmem:[%s2227_s1 + $0xa88] sm:$0xff]  ;;  %v383_v31 = vld [vmem:[%s2227_s1 + $0xa80] sm:$0xff] }
  0x21   :  { %538 = vmatprep.subr.mxu1 %v240_v61  ;;  %462 = vmatpush1.msra.mxu0 %v47_v62  ;;  %v186_v32 = vld [vmem:[%s2227_s1 + $0x458] sm:$0xff]  ;;  %v185_v34 = vld [vmem:[%s2227_s1 + $0x450] sm:$0xff]  ;;  %v180_v36 = vld [vmem:[%s2227_s1 + $0x428] sm:$0xff] }
  0x22   :  { %539 = vmatpush1.msra.mxu1 %v239_v63  ;;  %463 = vmatprep.subr.mxu0 %v234_v0  ;;  %v378_v33 = vld [vmem:[%s2227_s1 + $0xa58] sm:$0xff]  ;;  %v377_v35 = vld [vmem:[%s2227_s1 + $0xa50] sm:$0xff]  ;;  %v372_v37 = vld [vmem:[%s2227_s1 + $0xa28] sm:$0xff] }
  0x23   :  { %540 = vmatprep.subr.mxu1 %v426_v1  ;;  %464 = vmatpush2.msra.mxu0 %v233_v2  ;;  %v179_v38 = vld [vmem:[%s2227_s1 + $0x420] sm:$0xff]  ;;  %v174_v40 = vld [vmem:[%s2227_s1 + $0x3f8] sm:$0xff]  ;;  %v173_v42 = vld [vmem:[%s2227_s1 + $0x3f0] sm:$0xff] }
  0x24   :  { %541 = vmatpush2.msra.mxu1 %v425_v3  ;;  %465 = vmatprep.subr.mxu0 %v228_v4  ;;  %v371_v39 = vld [vmem:[%s2227_s1 + $0xa20] sm:$0xff]  ;;  %v366_v41 = vld [vmem:[%s2227_s1 + $0x9f8] sm:$0xff]  ;;  %v365_v43 = vld [vmem:[%s2227_s1 + $0x9f0] sm:$0xff] }
  0x25   :  { %542 = vmatprep.subr.mxu1 %v420_v5  ;;  %466 = vmatpush2.msra.mxu0 %v227_v6  ;;  %v168_v44 = vld [vmem:[%s2227_s1 + $0x3c8] sm:$0xff]  ;;  %v167_v46 = vld [vmem:[%s2227_s1 + $0x3c0] sm:$0xff]  ;;  %v162_v48 = vld [vmem:[%s2227_s1 + $0x398] sm:$0xff] }
  0x26   :  { %543 = vmatpush2.msra.mxu1 %v419_v7  ;;  %467 = vmatprep.subr.mxu0 %v222_v8  ;;  %v360_v45 = vld [vmem:[%s2227_s1 + $0x9c8] sm:$0xff]  ;;  %v359_v47 = vld [vmem:[%s2227_s1 + $0x9c0] sm:$0xff]  ;;  %v354_v49 = vld [vmem:[%s2227_s1 + $0x998] sm:$0xff] }
  0x27   :  { %544 = vmatprep.subr.mxu1 %v414_v9  ;;  %468 = vmatpush2.msra.mxu0 %v221_v10  ;;  %v161_v50 = vld [vmem:[%s2227_s1 + $0x390] sm:$0xff]  ;;  %v156_v52 = vld [vmem:[%s2227_s1 + $0x368] sm:$0xff]  ;;  %v155_v54 = vld [vmem:[%s2227_s1 + $0x360] sm:$0xff] }
  0x28   :  { %545 = vmatpush2.msra.mxu1 %v413_v11  ;;  %469 = vmatprep.subr.mxu0 %v216_v12  ;;  %v353_v51 = vld [vmem:[%s2227_s1 + $0x990] sm:$0xff]  ;;  %v348_v53 = vld [vmem:[%s2227_s1 + $0x968] sm:$0xff]  ;;  %v347_v55 = vld [vmem:[%s2227_s1 + $0x960] sm:$0xff] }
  0x29   :  { %546 = vmatprep.subr.mxu1 %v408_v13  ;;  %470 = vmatpush2.msra.mxu0 %v215_v14  ;;  %v150_v56 = vld [vmem:[%s2227_s1 + $0x338] sm:$0xff]  ;;  %v149_v58 = vld [vmem:[%s2227_s1 + $0x330] sm:$0xff]  ;;  %v144_v60 = vld [vmem:[%s2227_s1 + $0x308] sm:$0xff] }
  0x2a   :  { %547 = vmatpush2.msra.mxu1 %v407_v15  ;;  %471 = vmatprep.subr.mxu0 %v210_v16  ;;  %v342_v57 = vld [vmem:[%s2227_s1 + $0x938] sm:$0xff]  ;;  %v341_v59 = vld [vmem:[%s2227_s1 + $0x930] sm:$0xff]  ;;  %v336_v61 = vld [vmem:[%s2227_s1 + $0x908] sm:$0xff] }
  0x2b   :  { %548 = vmatprep.subr.mxu1 %v402_v17  ;;  %472 = vmatpush2.msra.mxu0 %v209_v18  ;;  %v143_v62 = vld [vmem:[%s2227_s1 + $0x300] sm:$0xff]  ;;  %v1351_v63 = vld [vmem:[%s2228_s0 + $0x8] sm:$0xff]  ;;  %v1359_v1 = vld [vmem:[%s2228_s0 + $0x18] sm:$0xff] }
  0x2c   :  { %549 = vmatpush2.msra.mxu1 %v401_v19  ;;  %473 = vmatprep.subr.mxu0 %v204_v20  ;;  %v335_v0 = vld [vmem:[%s2227_s1 + $0x900] sm:$0xff]  ;;  %v1369_v3 = vld [vmem:[%s2228_s0 + $0x10] sm:$0xff]  ;;  %v140_v4 = vld [vmem:[%s2227_s1 + $0x2e8] sm:$0xff] }
  0x2d   :  { %550 = vmatprep.subr.mxu1 %v396_v21  ;;  %474 = vmatpush2.msra.mxu0 %v203_v22  ;;  %v1364_v2 = vld [vmem:[%s2228_s0] sm:$0xff]  ;;  %v332_v5 = vld [vmem:[%s2227_s1 + $0x8e8] sm:$0xff]  ;;  %v134_v8 = vld [vmem:[%s2227_s1 + $0x2b8] sm:$0xff] }
  0x2e   :  { %551 = vmatpush2.msra.mxu1 %v395_v23  ;;  %475 = vmatprep.subr.mxu0 %v198_v24  ;;  %v139_v6 = vld [vmem:[%s2227_s1 + $0x2e0] sm:$0xff]  ;;  %v326_v9 = vld [vmem:[%s2227_s1 + $0x8b8] sm:$0xff]  ;;  %v133_v10 = vld [vmem:[%s2227_s1 + $0x2b0] sm:$0xff] }
  0x2f   :  { %552 = vmatprep.subr.mxu1 %v390_v25  ;;  %476 = vmatpush2.msra.mxu0 %v197_v26  ;;  %v331_v7 = vld [vmem:[%s2227_s1 + $0x8e0] sm:$0xff]  ;;  %v325_v11 = vld [vmem:[%s2227_s1 + $0x8b0] sm:$0xff]  ;;  %v128_v12 = vld [vmem:[%s2227_s1 + $0x288] sm:$0xff] }
  0x30   :  { %553 = vmatpush2.msra.mxu1 %v389_v27  ;;  %477 = vmatprep.subr.mxu0 %v192_v28  ;;  %v320_v13 = vld [vmem:[%s2227_s1 + $0x888] sm:$0xff]  ;;  %v127_v14 = vld [vmem:[%s2227_s1 + $0x280] sm:$0xff]  ;;  %v122_v16 = vld [vmem:[%s2227_s1 + $0x258] sm:$0xff] }
  0x31   :  { %554 = vmatprep.subr.mxu1 %v384_v29  ;;  %478 = vmatpush2.msra.mxu0 %v191_v30  ;;  %v319_v15 = vld [vmem:[%s2227_s1 + $0x880] sm:$0xff]  ;;  %v314_v17 = vld [vmem:[%s2227_s1 + $0x858] sm:$0xff]  ;;  %v121_v18 = vld [vmem:[%s2227_s1 + $0x250] sm:$0xff] }
  0x32   :  { %555 = vmatpush2.msra.mxu1 %v383_v31  ;;  %479 = vmatprep.subr.mxu0 %v186_v32  ;;  %v313_v19 = vld [vmem:[%s2227_s1 + $0x850] sm:$0xff]  ;;  %v116_v20 = vld [vmem:[%s2227_s1 + $0x228] sm:$0xff]  ;;  %v115_v22 = vld [vmem:[%s2227_s1 + $0x220] sm:$0xff] }
  0x33   :  { %556 = vmatprep.subr.mxu1 %v378_v33  ;;  %480 = vmatpush2.msra.mxu0 %v185_v34  ;;  %v308_v21 = vld [vmem:[%s2227_s1 + $0x828] sm:$0xff]  ;;  %v307_v23 = vld [vmem:[%s2227_s1 + $0x820] sm:$0xff]  ;;  %v110_v24 = vld [vmem:[%s2227_s1 + $0x1f8] sm:$0xff] }
  0x34   :  { %557 = vmatpush2.msra.mxu1 %v377_v35  ;;  %481 = vmatprep.subr.mxu0 %v180_v36  ;;  %v302_v25 = vld [vmem:[%s2227_s1 + $0x7f8] sm:$0xff]  ;;  %v109_v26 = vld [vmem:[%s2227_s1 + $0x1f0] sm:$0xff]  ;;  %v104_v28 = vld [vmem:[%s2227_s1 + $0x1c8] sm:$0xff] }
  0x35   :  { %558 = vmatprep.subr.mxu1 %v372_v37  ;;  %482 = vmatpush2.msra.mxu0 %v179_v38  ;;  %v301_v27 = vld [vmem:[%s2227_s1 + $0x7f0] sm:$0xff]  ;;  %v296_v29 = vld [vmem:[%s2227_s1 + $0x7c8] sm:$0xff]  ;;  %v103_v30 = vld [vmem:[%s2227_s1 + $0x1c0] sm:$0xff] }
  0x36   :  { %559 = vmatpush2.msra.mxu1 %v371_v39  ;;  %483 = vmatprep.subr.mxu0 %v174_v40  ;;  %v295_v31 = vld [vmem:[%s2227_s1 + $0x7c0] sm:$0xff]  ;;  %v98_v32 = vld [vmem:[%s2227_s1 + $0x198] sm:$0xff]  ;;  %v97_v34 = vld [vmem:[%s2227_s1 + $0x190] sm:$0xff] }
  0x37   :  { %560 = vmatprep.subr.mxu1 %v366_v41  ;;  %484 = vmatpush2.msra.mxu0 %v173_v42  ;;  %v290_v33 = vld [vmem:[%s2227_s1 + $0x798] sm:$0xff]  ;;  %v289_v35 = vld [vmem:[%s2227_s1 + $0x790] sm:$0xff]  ;;  %v92_v36 = vld [vmem:[%s2227_s1 + $0x168] sm:$0xff] }
  0x38   :  { %561 = vmatpush2.msra.mxu1 %v365_v43  ;;  %485 = vmatprep.subr.mxu0 %v168_v44  ;;  %v284_v37 = vld [vmem:[%s2227_s1 + $0x768] sm:$0xff]  ;;  %v91_v38 = vld [vmem:[%s2227_s1 + $0x160] sm:$0xff]  ;;  %v86_v40 = vld [vmem:[%s2227_s1 + $0x138] sm:$0xff] }
  0x39   :  { %562 = vmatprep.subr.mxu1 %v360_v45  ;;  %486 = vmatpush2.msra.mxu0 %v167_v46  ;;  %v283_v39 = vld [vmem:[%s2227_s1 + $0x760] sm:$0xff]  ;;  %v278_v41 = vld [vmem:[%s2227_s1 + $0x738] sm:$0xff]  ;;  %v85_v42 = vld [vmem:[%s2227_s1 + $0x130] sm:$0xff] }
  0x3a   :  { %563 = vmatpush2.msra.mxu1 %v359_v47  ;;  %487 = vmatprep.subr.mxu0 %v162_v48  ;;  %v277_v43 = vld [vmem:[%s2227_s1 + $0x730] sm:$0xff]  ;;  %v80_v44 = vld [vmem:[%s2227_s1 + $0x108] sm:$0xff]  ;;  %v79_v46 = vld [vmem:[%s2227_s1 + $0x100] sm:$0xff] }
  0x3b   :  { %564 = vmatprep.subr.mxu1 %v354_v49  ;;  %488 = vmatpush2.msra.mxu0 %v161_v50  ;;  %v272_v45 = vld [vmem:[%s2227_s1 + $0x708] sm:$0xff]  ;;  %v271_v47 = vld [vmem:[%s2227_s1 + $0x700] sm:$0xff]  ;;  %v74_v48 = vld [vmem:[%s2227_s1 + $0xd8] sm:$0xff] }
  0x3c   :  { %565 = vmatpush2.msra.mxu1 %v353_v51  ;;  %489 = vmatprep.subr.mxu0 %v156_v52  ;;  %v266_v49 = vld [vmem:[%s2227_s1 + $0x6d8] sm:$0xff]  ;;  %v73_v50 = vld [vmem:[%s2227_s1 + $0xd0] sm:$0xff]  ;;  %v68_v52 = vld [vmem:[%s2227_s1 + $0xa8] sm:$0xff] }
  0x3d   :  { %566 = vmatprep.subr.mxu1 %v348_v53  ;;  %490 = vmatpush2.msra.mxu0 %v155_v54  ;;  %v265_v51 = vld [vmem:[%s2227_s1 + $0x6d0] sm:$0xff]  ;;  %v260_v53 = vld [vmem:[%s2227_s1 + $0x6a8] sm:$0xff]  ;;  %v67_v54 = vld [vmem:[%s2227_s1 + $0xa0] sm:$0xff] }
  0x3e   :  { %567 = vmatpush2.msra.mxu1 %v347_v55  ;;  %491 = vmatprep.subr.mxu0 %v150_v56  ;;  %v259_v55 = vld [vmem:[%s2227_s1 + $0x6a0] sm:$0xff]  ;;  %v62_v56 = vld [vmem:[%s2227_s1 + $0x78] sm:$0xff] }
  0x3f   :  { %568 = vmatprep.subr.mxu1 %v342_v57  ;;  %492 = vmatpush2.msra.mxu0 %v149_v58  ;;  %v254_v57 = vld [vmem:[%s2227_s1 + $0x678] sm:$0xff]  ;;  %v61_v58 = vld [vmem:[%s2227_s1 + $0x70] sm:$0xff] }
  0x40   :  { %569 = vmatpush2.msra.mxu1 %v341_v59  ;;  %493 = vmatprep.subr.mxu0 %v144_v60  ;;  %v253_v59 = vld [vmem:[%s2227_s1 + $0x670] sm:$0xff]  ;;  %v56_v60 = vld [vmem:[%s2227_s1 + $0x48] sm:$0xff] }
  0x41   :  { %570 = vmatprep.subr.mxu1 %v336_v61  ;;  %494 = vmatpush2.msra.mxu0 %v143_v62  ;;  %v248_v61 = vld [vmem:[%s2227_s1 + $0x648] sm:$0xff]  ;;  %v55_v62 = vld [vmem:[%s2227_s1 + $0x40] sm:$0xff] }
  0x42   :  { %495 = vmatprep.mubr.f32.mxu0 %v1351_v63  ;;  %571 = vmatpush2.msra.mxu1 %v335_v0  ;;  %v247_v0 = vld [vmem:[%s2227_s1 + $0x640] sm:$0xff] }
  0x43   :  { %572 = vmatprep.mubr.f32.mxu1 %v1359_v1  ;;  %496 = vmatmul.mubr.f32.vlgmr.msra.gmra.mxu0 %v1364_v2 }
  0x44   :  { %573 = vmatmul.mubr.f32.vlgmr.msra.gmra.mxu1 %v1369_v3  ;;  %585 = vmatprep.subr.mxu0 %v140_v4  ;;  %v50_v4 = vld [vmem:[%s2227_s1 + $0x18] sm:$0xff] }
  0x45   :  { %662 = vmatprep.subr.mxu1 %v332_v5  ;;  %586 = vmatpush1.msra.mxu0 %v139_v6  ;;  %v242_v5 = vld [vmem:[%s2227_s1 + $0x618] sm:$0xff]  ;;  %v49_v6 = vld [vmem:[%s2227_s1 + $0x10] sm:$0xff] }
  0x46   :  { %663 = vmatpush1.msra.mxu1 %v331_v7  ;;  %587 = vmatprep.subr.mxu0 %v134_v8  ;;  %v241_v7 = vld [vmem:[%s2227_s1 + $0x610] sm:$0xff]  ;;  %v236_v8 = vld [vmem:[%s2227_s1 + $0x5e8] sm:$0xff] }
  0x47   :  { %664 = vmatprep.subr.mxu1 %v326_v9  ;;  %588 = vmatpush1.msra.mxu0 %v133_v10  ;;  %v428_v9 = vld [vmem:[%s2227_s1 + $0xbe8] sm:$0xff]  ;;  %v235_v10 = vld [vmem:[%s2227_s1 + $0x5e0] sm:$0xff] }
  0x48   :  { %665 = vmatpush1.msra.mxu1 %v325_v11  ;;  %589 = vmatprep.subr.mxu0 %v128_v12  ;;  %v427_v11 = vld [vmem:[%s2227_s1 + $0xbe0] sm:$0xff]  ;;  %v230_v12 = vld [vmem:[%s2227_s1 + $0x5b8] sm:$0xff] }
  0x49   :  { %666 = vmatprep.subr.mxu1 %v320_v13  ;;  %590 = vmatpush1.msra.mxu0 %v127_v14  ;;  %v422_v13 = vld [vmem:[%s2227_s1 + $0xbb8] sm:$0xff]  ;;  %v229_v14 = vld [vmem:[%s2227_s1 + $0x5b0] sm:$0xff] }
  0x4a   :  { %667 = vmatpush1.msra.mxu1 %v319_v15  ;;  %591 = vmatprep.subr.mxu0 %v122_v16  ;;  %v421_v15 = vld [vmem:[%s2227_s1 + $0xbb0] sm:$0xff]  ;;  %v224_v16 = vld [vmem:[%s2227_s1 + $0x588] sm:$0xff] }
  0x4b   :  { %668 = vmatprep.subr.mxu1 %v314_v17  ;;  %592 = vmatpush1.msra.mxu0 %v121_v18  ;;  %v416_v17 = vld [vmem:[%s2227_s1 + $0xb88] sm:$0xff]  ;;  %v223_v18 = vld [vmem:[%s2227_s1 + $0x580] sm:$0xff] }
  0x4c   :  { %669 = vmatpush1.msra.mxu1 %v313_v19  ;;  %593 = vmatprep.subr.mxu0 %v116_v20  ;;  %v415_v19 = vld [vmem:[%s2227_s1 + $0xb80] sm:$0xff]  ;;  %v218_v20 = vld [vmem:[%s2227_s1 + $0x558] sm:$0xff] }
  0x4d   :  { %670 = vmatprep.subr.mxu1 %v308_v21  ;;  %594 = vmatpush1.msra.mxu0 %v115_v22  ;;  %v410_v21 = vld [vmem:[%s2227_s1 + $0xb58] sm:$0xff]  ;;  %v217_v22 = vld [vmem:[%s2227_s1 + $0x550] sm:$0xff] }
  0x4e   :  { %671 = vmatpush1.msra.mxu1 %v307_v23  ;;  %595 = vmatprep.subr.mxu0 %v110_v24  ;;  %v409_v23 = vld [vmem:[%s2227_s1 + $0xb50] sm:$0xff]  ;;  %v212_v24 = vld [vmem:[%s2227_s1 + $0x528] sm:$0xff] }
  0x4f   :  { %672 = vmatprep.subr.mxu1 %v302_v25  ;;  %596 = vmatpush1.msra.mxu0 %v109_v26  ;;  %v404_v25 = vld [vmem:[%s2227_s1 + $0xb28] sm:$0xff]  ;;  %v211_v26 = vld [vmem:[%s2227_s1 + $0x520] sm:$0xff] }
  0x50   :  { %673 = vmatpush1.msra.mxu1 %v301_v27  ;;  %597 = vmatprep.subr.mxu0 %v104_v28  ;;  %v403_v27 = vld [vmem:[%s2227_s1 + $0xb20] sm:$0xff]  ;;  %v206_v28 = vld [vmem:[%s2227_s1 + $0x4f8] sm:$0xff] }
  0x51   :  { %674 = vmatprep.subr.mxu1 %v296_v29  ;;  %598 = vmatpush1.msra.mxu0 %v103_v30  ;;  %v398_v29 = vld [vmem:[%s2227_s1 + $0xaf8] sm:$0xff]  ;;  %v205_v30 = vld [vmem:[%s2227_s1 + $0x4f0] sm:$0xff] }
  0x52   :  { %675 = vmatpush1.msra.mxu1 %v295_v31  ;;  %599 = vmatprep.subr.mxu0 %v98_v32  ;;  %v397_v31 = vld [vmem:[%s2227_s1 + $0xaf0] sm:$0xff]  ;;  %v200_v32 = vld [vmem:[%s2227_s1 + $0x4c8] sm:$0xff] }
  0x53   :  { %676 = vmatprep.subr.mxu1 %v290_v33  ;;  %600 = vmatpush1.msra.mxu0 %v97_v34  ;;  %v392_v33 = vld [vmem:[%s2227_s1 + $0xac8] sm:$0xff]  ;;  %v199_v34 = vld [vmem:[%s2227_s1 + $0x4c0] sm:$0xff] }
  0x54   :  { %677 = vmatpush1.msra.mxu1 %v289_v35  ;;  %601 = vmatprep.subr.mxu0 %v92_v36  ;;  %v391_v35 = vld [vmem:[%s2227_s1 + $0xac0] sm:$0xff]  ;;  %v194_v36 = vld [vmem:[%s2227_s1 + $0x498] sm:$0xff] }
  0x55   :  { %678 = vmatprep.subr.mxu1 %v284_v37  ;;  %602 = vmatpush1.msra.mxu0 %v91_v38  ;;  %v386_v37 = vld [vmem:[%s2227_s1 + $0xa98] sm:$0xff]  ;;  %v193_v38 = vld [vmem:[%s2227_s1 + $0x490] sm:$0xff] }
  0x56   :  { %679 = vmatpush1.msra.mxu1 %v283_v39  ;;  %603 = vmatprep.subr.mxu0 %v86_v40  ;;  %v385_v39 = vld [vmem:[%s2227_s1 + $0xa90] sm:$0xff]  ;;  %v188_v40 = vld [vmem:[%s2227_s1 + $0x468] sm:$0xff] }
  0x57   :  { %680 = vmatprep.subr.mxu1 %v278_v41  ;;  %604 = vmatpush1.msra.mxu0 %v85_v42  ;;  %v380_v41 = vld [vmem:[%s2227_s1 + $0xa68] sm:$0xff]  ;;  %v187_v42 = vld [vmem:[%s2227_s1 + $0x460] sm:$0xff] }
  0x58   :  { %681 = vmatpush1.msra.mxu1 %v277_v43  ;;  %605 = vmatprep.subr.mxu0 %v80_v44  ;;  %v379_v43 = vld [vmem:[%s2227_s1 + $0xa60] sm:$0xff]  ;;  %v182_v44 = vld [vmem:[%s2227_s1 + $0x438] sm:$0xff] }
  0x59   :  { %682 = vmatprep.subr.mxu1 %v272_v45  ;;  %606 = vmatpush1.msra.mxu0 %v79_v46  ;;  %v374_v45 = vld [vmem:[%s2227_s1 + $0xa38] sm:$0xff]  ;;  %v181_v46 = vld [vmem:[%s2227_s1 + $0x430] sm:$0xff] }
  0x5a   :  { %683 = vmatpush1.msra.mxu1 %v271_v47  ;;  %607 = vmatprep.subr.mxu0 %v74_v48  ;;  %v373_v47 = vld [vmem:[%s2227_s1 + $0xa30] sm:$0xff]  ;;  %v176_v48 = vld [vmem:[%s2227_s1 + $0x408] sm:$0xff] }
  0x5b   :  { %684 = vmatprep.subr.mxu1 %v266_v49  ;;  %608 = vmatpush1.msra.mxu0 %v73_v50  ;;  %v368_v49 = vld [vmem:[%s2227_s1 + $0xa08] sm:$0xff]  ;;  %v175_v50 = vld [vmem:[%s2227_s1 + $0x400] sm:$0xff] }
  0x5c   :  { %685 = vmatpush1.msra.mxu1 %v265_v51  ;;  %609 = vmatprep.subr.mxu0 %v68_v52  ;;  %v367_v51 = vld [vmem:[%s2227_s1 + $0xa00] sm:$0xff]  ;;  %v170_v52 = vld [vmem:[%s2227_s1 + $0x3d8] sm:$0xff] }
  0x5d   :  { %686 = vmatprep.subr.mxu1 %v260_v53  ;;  %610 = vmatpush1.msra.mxu0 %v67_v54  ;;  %v362_v53 = vld [vmem:[%s2227_s1 + $0x9d8] sm:$0xff]  ;;  %v169_v54 = vld [vmem:[%s2227_s1 + $0x3d0] sm:$0xff] }
  0x5e   :  { %687 = vmatpush1.msra.mxu1 %v259_v55  ;;  %611 = vmatprep.subr.mxu0 %v62_v56  ;;  %v361_v55 = vld [vmem:[%s2227_s1 + $0x9d0] sm:$0xff]  ;;  %v164_v56 = vld [vmem:[%s2227_s1 + $0x3a8] sm:$0xff] }
  0x5f   :  { %688 = vmatprep.subr.mxu1 %v254_v57  ;;  %612 = vmatpush1.msra.mxu0 %v61_v58  ;;  %v356_v57 = vld [vmem:[%s2227_s1 + $0x9a8] sm:$0xff]  ;;  %v163_v58 = vld [vmem:[%s2227_s1 + $0x3a0] sm:$0xff] }
  0x60   :  { %689 = vmatpush1.msra.mxu1 %v253_v59  ;;  %613 = vmatprep.subr.mxu0 %v56_v60  ;;  %v355_v59 = vld [vmem:[%s2227_s1 + $0x9a0] sm:$0xff]  ;;  %v1726_v60 = vld [vmem:[%s2228_s0 + $0x28] sm:$0xff] }
  0x61   :  { %690 = vmatprep.subr.mxu1 %v248_v61  ;;  %614 = vmatpush1.msra.mxu0 %v55_v62  ;;  %v1731_v61 = vld [vmem:[%s2228_s0 + $0x38] sm:$0xff] }
  0x62   :  { %691 = vmatpush1.msra.mxu1 %v247_v0  ;;  %615 = vmatprep.subr.mxu0 %v50_v4  ;;  %v158_v62 = vld [vmem:[%s2227_s1 + $0x378] sm:$0xff]  ;;  %v1742_v4 = vld [vmem:[%s2228_s0 + $0x20] sm:$0xff] }
  0x63   :  { %692 = vmatprep.subr.mxu1 %v242_v5  ;;  %616 = vmatpush1.msra.mxu0 %v49_v6  ;;  %v350_v0 = vld [vmem:[%s2227_s1 + $0x978] sm:$0xff]  ;;  %v1747_v5 = vld [vmem:[%s2228_s0 + $0x30] sm:$0xff] }
  0x64   :  { %693 = vmatpush1.msra.mxu1 %v241_v7  ;;  %617 = vmatprep.subr.mxu0 %v236_v8  ;;  %v157_v6 = vld [vmem:[%s2227_s1 + $0x370] sm:$0xff]  ;;  %v152_v8 = vld [vmem:[%s2227_s1 + $0x348] sm:$0xff] }
  0x65   :  { %694 = vmatprep.subr.mxu1 %v428_v9  ;;  %618 = vmatpush2.msra.mxu0 %v235_v10  ;;  %v349_v7 = vld [vmem:[%s2227_s1 + $0x970] sm:$0xff]  ;;  %v344_v9 = vld [vmem:[%s2227_s1 + $0x948] sm:$0xff]  ;;  %v151_v10 = vld [vmem:[%s2227_s1 + $0x340] sm:$0xff] }
  0x66   :  { %695 = vmatpush2.msra.mxu1 %v427_v11  ;;  %619 = vmatprep.subr.mxu0 %v230_v12  ;;  %v343_v11 = vld [vmem:[%s2227_s1 + $0x940] sm:$0xff]  ;;  %v146_v12 = vld [vmem:[%s2227_s1 + $0x318] sm:$0xff] }
  0x67   :  { %696 = vmatprep.subr.mxu1 %v422_v13  ;;  %620 = vmatpush2.msra.mxu0 %v229_v14  ;;  %v338_v13 = vld [vmem:[%s2227_s1 + $0x918] sm:$0xff]  ;;  %v145_v14 = vld [vmem:[%s2227_s1 + $0x310] sm:$0xff] }
  0x68   :  { %697 = vmatpush2.msra.mxu1 %v421_v15  ;;  %621 = vmatprep.subr.mxu0 %v224_v16  ;;  %v337_v15 = vld [vmem:[%s2227_s1 + $0x910] sm:$0xff]  ;;  %v142_v16 = vld [vmem:[%s2227_s1 + $0x2f8] sm:$0xff] }
  0x69   :  { %698 = vmatprep.subr.mxu1 %v416_v17  ;;  %622 = vmatpush2.msra.mxu0 %v223_v18  ;;  %v334_v17 = vld [vmem:[%s2227_s1 + $0x8f8] sm:$0xff]  ;;  %v141_v18 = vld [vmem:[%s2227_s1 + $0x2f0] sm:$0xff] }
  0x6a   :  { %699 = vmatpush2.msra.mxu1 %v415_v19  ;;  %623 = vmatprep.subr.mxu0 %v218_v20  ;;  %v333_v19 = vld [vmem:[%s2227_s1 + $0x8f0] sm:$0xff]  ;;  %v135_v20 = vld [vmem:[%s2227_s1 + $0x2c0] sm:$0xff] }
  0x6b   :  { %700 = vmatprep.subr.mxu1 %v410_v21  ;;  %624 = vmatpush2.msra.mxu0 %v217_v22  ;;  %v322_v21 = vld [vmem:[%s2227_s1 + $0x898] sm:$0xff]  ;;  %v129_v22 = vld [vmem:[%s2227_s1 + $0x290] sm:$0xff] }
  0x6c   :  { %701 = vmatpush2.msra.mxu1 %v409_v23  ;;  %625 = vmatprep.subr.mxu0 %v212_v24  ;;  %v321_v23 = vld [vmem:[%s2227_s1 + $0x890] sm:$0xff]  ;;  %v124_v24 = vld [vmem:[%s2227_s1 + $0x268] sm:$0xff] }
  0x6d   :  { %702 = vmatprep.subr.mxu1 %v404_v25  ;;  %626 = vmatpush2.msra.mxu0 %v211_v26  ;;  %v316_v25 = vld [vmem:[%s2227_s1 + $0x868] sm:$0xff]  ;;  %v123_v26 = vld [vmem:[%s2227_s1 + $0x260] sm:$0xff] }
  0x6e   :  { %703 = vmatpush2.msra.mxu1 %v403_v27  ;;  %627 = vmatprep.subr.mxu0 %v206_v28  ;;  %v315_v27 = vld [vmem:[%s2227_s1 + $0x860] sm:$0xff]  ;;  %v118_v28 = vld [vmem:[%s2227_s1 + $0x238] sm:$0xff] }
  0x6f   :  { %704 = vmatprep.subr.mxu1 %v398_v29  ;;  %628 = vmatpush2.msra.mxu0 %v205_v30  ;;  %v310_v29 = vld [vmem:[%s2227_s1 + $0x838] sm:$0xff]  ;;  %v117_v30 = vld [vmem:[%s2227_s1 + $0x230] sm:$0xff] }
  0x70   :  { %705 = vmatpush2.msra.mxu1 %v397_v31  ;;  %629 = vmatprep.subr.mxu0 %v200_v32  ;;  %v309_v31 = vld [vmem:[%s2227_s1 + $0x830] sm:$0xff]  ;;  %v112_v32 = vld [vmem:[%s2227_s1 + $0x208] sm:$0xff] }
  0x71   :  { %706 = vmatprep.subr.mxu1 %v392_v33  ;;  %630 = vmatpush2.msra.mxu0 %v199_v34  ;;  %v304_v33 = vld [vmem:[%s2227_s1 + $0x808] sm:$0xff]  ;;  %v111_v34 = vld [vmem:[%s2227_s1 + $0x200] sm:$0xff] }
  0x72   :  { %707 = vmatpush2.msra.mxu1 %v391_v35  ;;  %631 = vmatprep.subr.mxu0 %v194_v36  ;;  %v303_v35 = vld [vmem:[%s2227_s1 + $0x800] sm:$0xff]  ;;  %v106_v36 = vld [vmem:[%s2227_s1 + $0x1d8] sm:$0xff] }
  0x73   :  { %708 = vmatprep.subr.mxu1 %v386_v37  ;;  %632 = vmatpush2.msra.mxu0 %v193_v38  ;;  %v298_v37 = vld [vmem:[%s2227_s1 + $0x7d8] sm:$0xff]  ;;  %v105_v38 = vld [vmem:[%s2227_s1 + $0x1d0] sm:$0xff] }
  0x74   :  { %709 = vmatpush2.msra.mxu1 %v385_v39  ;;  %633 = vmatprep.subr.mxu0 %v188_v40  ;;  %v297_v39 = vld [vmem:[%s2227_s1 + $0x7d0] sm:$0xff]  ;;  %v100_v40 = vld [vmem:[%s2227_s1 + $0x1a8] sm:$0xff] }
  0x75   :  { %710 = vmatprep.subr.mxu1 %v380_v41  ;;  %634 = vmatpush2.msra.mxu0 %v187_v42  ;;  %v292_v41 = vld [vmem:[%s2227_s1 + $0x7a8] sm:$0xff]  ;;  %v99_v42 = vld [vmem:[%s2227_s1 + $0x1a0] sm:$0xff] }
  0x76   :  { %711 = vmatpush2.msra.mxu1 %v379_v43  ;;  %635 = vmatprep.subr.mxu0 %v182_v44  ;;  %v291_v43 = vld [vmem:[%s2227_s1 + $0x7a0] sm:$0xff]  ;;  %v94_v44 = vld [vmem:[%s2227_s1 + $0x178] sm:$0xff] }
  0x77   :  { %712 = vmatprep.subr.mxu1 %v374_v45  ;;  %636 = vmatpush2.msra.mxu0 %v181_v46  ;;  %v286_v45 = vld [vmem:[%s2227_s1 + $0x778] sm:$0xff]  ;;  %v93_v46 = vld [vmem:[%s2227_s1 + $0x170] sm:$0xff] }
  0x78   :  { %713 = vmatpush2.msra.mxu1 %v373_v47  ;;  %637 = vmatprep.subr.mxu0 %v176_v48  ;;  %v285_v47 = vld [vmem:[%s2227_s1 + $0x770] sm:$0xff]  ;;  %v88_v48 = vld [vmem:[%s2227_s1 + $0x148] sm:$0xff] }
  0x79   :  { %714 = vmatprep.subr.mxu1 %v368_v49  ;;  %638 = vmatpush2.msra.mxu0 %v175_v50  ;;  %v280_v49 = vld [vmem:[%s2227_s1 + $0x748] sm:$0xff]  ;;  %v87_v50 = vld [vmem:[%s2227_s1 + $0x140] sm:$0xff] }
  0x7a   :  { %715 = vmatpush2.msra.mxu1 %v367_v51  ;;  %639 = vmatprep.subr.mxu0 %v170_v52  ;;  %v279_v51 = vld [vmem:[%s2227_s1 + $0x740] sm:$0xff]  ;;  %v82_v52 = vld [vmem:[%s2227_s1 + $0x118] sm:$0xff] }
  0x7b   :  { %716 = vmatprep.subr.mxu1 %v362_v53  ;;  %640 = vmatpush2.msra.mxu0 %v169_v54  ;;  %v274_v53 = vld [vmem:[%s2227_s1 + $0x718] sm:$0xff]  ;;  %v81_v54 = vld [vmem:[%s2227_s1 + $0x110] sm:$0xff] }
  0x7c   :  { %717 = vmatpush2.msra.mxu1 %v361_v55  ;;  %641 = vmatprep.subr.mxu0 %v164_v56  ;;  %v273_v55 = vld [vmem:[%s2227_s1 + $0x710] sm:$0xff]  ;;  %v76_v56 = vld [vmem:[%s2227_s1 + $0xe8] sm:$0xff] }
  0x7d   :  { %718 = vmatprep.subr.mxu1 %v356_v57  ;;  %642 = vmatpush2.msra.mxu0 %v163_v58  ;;  %v268_v57 = vld [vmem:[%s2227_s1 + $0x6e8] sm:$0xff]  ;;  %v75_v58 = vld [vmem:[%s2227_s1 + $0xe0] sm:$0xff] }
  0x7e   :  { %719 = vmatpush2.msra.mxu1 %v355_v59  ;;  %501 = vmatprep.mubr.f32.mxu0 %v1726_v60  ;;  %v267_v59 = vld [vmem:[%s2227_s1 + $0x6e0] sm:$0xff] }
  0x7f   :  { %578 = vmatprep.mubr.f32.mxu1 %v1731_v61  ;;  %643 = vmatprep.subr.mxu0 %v158_v62  ;;  %v70_v62 = vld [vmem:[%s2227_s1 + $0xb8] sm:$0xff] }
  0x80   :  { %720 = vmatprep.subr.mxu1 %v350_v0  ;;  %502 = vmatmul.mubr.f32.gmra.mxu0 %v1742_v4  ;;  %v262_v0 = vld [vmem:[%s2227_s1 + $0x6b8] sm:$0xff] }
  0x81   :  { %579 = vmatmul.mubr.f32.gmra.mxu1 %v1747_v5  ;;  %644 = vmatpush2.msra.mxu0 %v157_v6  ;;  %v69_v6 = vld [vmem:[%s2227_s1 + $0xb0] sm:$0xff] }
  0x82   :  { %721 = vmatpush2.msra.mxu1 %v349_v7  ;;  %645 = vmatprep.subr.mxu0 %v152_v8  ;;  %v261_v7 = vld [vmem:[%s2227_s1 + $0x6b0] sm:$0xff]  ;;  %v64_v8 = vld [vmem:[%s2227_s1 + $0x88] sm:$0xff] }
  0x83   :  { %722 = vmatprep.subr.mxu1 %v344_v9  ;;  %646 = vmatpush2.msra.mxu0 %v151_v10  ;;  %v256_v9 = vld [vmem:[%s2227_s1 + $0x688] sm:$0xff]  ;;  %v63_v10 = vld [vmem:[%s2227_s1 + $0x80] sm:$0xff] }
  0x84   :  { %723 = vmatpush2.msra.mxu1 %v343_v11  ;;  %647 = vmatprep.subr.mxu0 %v146_v12  ;;  %v255_v11 = vld [vmem:[%s2227_s1 + $0x680] sm:$0xff]  ;;  %v58_v12 = vld [vmem:[%s2227_s1 + $0x58] sm:$0xff] }
  0x85   :  { %724 = vmatprep.subr.mxu1 %v338_v13  ;;  %648 = vmatpush2.msra.mxu0 %v145_v14  ;;  %v250_v13 = vld [vmem:[%s2227_s1 + $0x658] sm:$0xff]  ;;  %v57_v14 = vld [vmem:[%s2227_s1 + $0x50] sm:$0xff] }
  0x86   :  { %649 = vmatprep.mubr.f32.mxu0 %v1351_v63  ;;  %725 = vmatpush2.msra.mxu1 %v337_v15  ;;  %v136_v63 = vld [vmem:[%s2227_s1 + $0x2c8] sm:$0xff]  ;;  %v249_v15 = vld [vmem:[%s2227_s1 + $0x650] sm:$0xff] }
  0x87   :  { %726 = vmatprep.mubr.f32.mxu1 %v1359_v1  ;;  %650 = vmatmul.mubr.f32.vlgmr.msra.gmra.mxu0 %v1364_v2  ;;  %v328_v1 = vld [vmem:[%s2227_s1 + $0x8c8] sm:$0xff]  ;;  %v327_v2 = vld [vmem:[%s2227_s1 + $0x8c0] sm:$0xff] }
  0x88   :  { %727 = vmatmul.mubr.f32.vlgmr.msra.gmra.mxu1 %v1369_v3  ;;  %739 = vmatprep.subr.mxu0 %v142_v16  ;;  %v130_v3 = vld [vmem:[%s2227_s1 + $0x298] sm:$0xff]  ;;  %v52_v16 = vld [vmem:[%s2227_s1 + $0x28] sm:$0xff] }
  0x89   :  { %816 = vmatprep.subr.mxu1 %v334_v17  ;;  %740 = vmatpush1.msra.mxu0 %v141_v18  ;;  %v244_v17 = vld [vmem:[%s2227_s1 + $0x628] sm:$0xff]  ;;  %v51_v18 = vld [vmem:[%s2227_s1 + $0x20] sm:$0xff] }
  0x8a   :  { %817 = vmatpush1.msra.mxu1 %v333_v19  ;;  %741 = vmatprep.subr.mxu0 %v136_v63  ;;  %v243_v19 = vld [vmem:[%s2227_s1 + $0x620] sm:$0xff]  ;;  %v238_v63 = vld [vmem:[%s2227_s1 + $0x5f8] sm:$0xff] }
  0x8b   :  { %818 = vmatprep.subr.mxu1 %v328_v1  ;;  %742 = vmatpush1.msra.mxu0 %v135_v20  ;;  %v430_v1 = vld [vmem:[%s2227_s1 + $0xbf8] sm:$0xff]  ;;  %v237_v20 = vld [vmem:[%s2227_s1 + $0x5f0] sm:$0xff] }
  0x8c   :  { %819 = vmatpush1.msra.mxu1 %v327_v2  ;;  %743 = vmatprep.subr.mxu0 %v130_v3  ;;  %v429_v2 = vld [vmem:[%s2227_s1 + $0xbf0] sm:$0xff]  ;;  %v232_v3 = vld [vmem:[%s2227_s1 + $0x5c8] sm:$0xff] }
  0x8d   :  { %820 = vmatprep.subr.mxu1 %v322_v21  ;;  %744 = vmatpush1.msra.mxu0 %v129_v22  ;;  %v424_v21 = vld [vmem:[%s2227_s1 + $0xbc8] sm:$0xff]  ;;  %v231_v22 = vld [vmem:[%s2227_s1 + $0x5c0] sm:$0xff] }
  0x8e   :  { %821 = vmatpush1.msra.mxu1 %v321_v23  ;;  %745 = vmatprep.subr.mxu0 %v124_v24  ;;  %v423_v23 = vld [vmem:[%s2227_s1 + $0xbc0] sm:$0xff]  ;;  %v226_v24 = vld [vmem:[%s2227_s1 + $0x598] sm:$0xff] }
  0x8f   :  { %822 = vmatprep.subr.mxu1 %v316_v25  ;;  %746 = vmatpush1.msra.mxu0 %v123_v26  ;;  %v418_v25 = vld [vmem:[%s2227_s1 + $0xb98] sm:$0xff]  ;;  %v225_v26 = vld [vmem:[%s2227_s1 + $0x590] sm:$0xff] }
  0x90   :  { %823 = vmatpush1.msra.mxu1 %v315_v27  ;;  %747 = vmatprep.subr.mxu0 %v118_v28  ;;  %v417_v27 = vld [vmem:[%s2227_s1 + $0xb90] sm:$0xff]  ;;  %v220_v28 = vld [vmem:[%s2227_s1 + $0x568] sm:$0xff] }
  0x91   :  { %824 = vmatprep.subr.mxu1 %v310_v29  ;;  %748 = vmatpush1.msra.mxu0 %v117_v30  ;;  %v412_v29 = vld [vmem:[%s2227_s1 + $0xb68] sm:$0xff]  ;;  %v219_v30 = vld [vmem:[%s2227_s1 + $0x560] sm:$0xff] }
  0x92   :  { %825 = vmatpush1.msra.mxu1 %v309_v31  ;;  %749 = vmatprep.subr.mxu0 %v112_v32  ;;  %v411_v31 = vld [vmem:[%s2227_s1 + $0xb60] sm:$0xff]  ;;  %v214_v32 = vld [vmem:[%s2227_s1 + $0x538] sm:$0xff] }
  0x93   :  { %826 = vmatprep.subr.mxu1 %v304_v33  ;;  %750 = vmatpush1.msra.mxu0 %v111_v34  ;;  %v406_v33 = vld [vmem:[%s2227_s1 + $0xb38] sm:$0xff]  ;;  %v213_v34 = vld [vmem:[%s2227_s1 + $0x530] sm:$0xff] }
  0x94   :  { %827 = vmatpush1.msra.mxu1 %v303_v35  ;;  %751 = vmatprep.subr.mxu0 %v106_v36  ;;  %v405_v35 = vld [vmem:[%s2227_s1 + $0xb30] sm:$0xff]  ;;  %v208_v36 = vld [vmem:[%s2227_s1 + $0x508] sm:$0xff] }
  0x95   :  { %828 = vmatprep.subr.mxu1 %v298_v37  ;;  %752 = vmatpush1.msra.mxu0 %v105_v38  ;;  %v400_v37 = vld [vmem:[%s2227_s1 + $0xb08] sm:$0xff]  ;;  %v207_v38 = vld [vmem:[%s2227_s1 + $0x500] sm:$0xff] }
  0x96   :  { %829 = vmatpush1.msra.mxu1 %v297_v39  ;;  %753 = vmatprep.subr.mxu0 %v100_v40  ;;  %v399_v39 = vld [vmem:[%s2227_s1 + $0xb00] sm:$0xff]  ;;  %v202_v40 = vld [vmem:[%s2227_s1 + $0x4d8] sm:$0xff] }
  0x97   :  { %830 = vmatprep.subr.mxu1 %v292_v41  ;;  %754 = vmatpush1.msra.mxu0 %v99_v42  ;;  %v394_v41 = vld [vmem:[%s2227_s1 + $0xad8] sm:$0xff]  ;;  %v201_v42 = vld [vmem:[%s2227_s1 + $0x4d0] sm:$0xff] }
  0x98   :  { %831 = vmatpush1.msra.mxu1 %v291_v43  ;;  %755 = vmatprep.subr.mxu0 %v94_v44  ;;  %v393_v43 = vld [vmem:[%s2227_s1 + $0xad0] sm:$0xff]  ;;  %v196_v44 = vld [vmem:[%s2227_s1 + $0x4a8] sm:$0xff] }
  0x99   :  { %832 = vmatprep.subr.mxu1 %v286_v45  ;;  %756 = vmatpush1.msra.mxu0 %v93_v46  ;;  %v388_v45 = vld [vmem:[%s2227_s1 + $0xaa8] sm:$0xff]  ;;  %v195_v46 = vld [vmem:[%s2227_s1 + $0x4a0] sm:$0xff] }
  0x9a   :  { %833 = vmatpush1.msra.mxu1 %v285_v47  ;;  %757 = vmatprep.subr.mxu0 %v88_v48  ;;  %v387_v47 = vld [vmem:[%s2227_s1 + $0xaa0] sm:$0xff]  ;;  %v190_v48 = vld [vmem:[%s2227_s1 + $0x478] sm:$0xff] }
  0x9b   :  { %834 = vmatprep.subr.mxu1 %v280_v49  ;;  %758 = vmatpush1.msra.mxu0 %v87_v50  ;;  %v382_v49 = vld [vmem:[%s2227_s1 + $0xa78] sm:$0xff]  ;;  %v189_v50 = vld [vmem:[%s2227_s1 + $0x470] sm:$0xff] }
  0x9c   :  { %835 = vmatpush1.msra.mxu1 %v279_v51  ;;  %759 = vmatprep.subr.mxu0 %v82_v52  ;;  %v381_v51 = vld [vmem:[%s2227_s1 + $0xa70] sm:$0xff]  ;;  %v184_v52 = vld [vmem:[%s2227_s1 + $0x448] sm:$0xff] }
  0x9d   :  { %836 = vmatprep.subr.mxu1 %v274_v53  ;;  %760 = vmatpush1.msra.mxu0 %v81_v54  ;;  %v376_v53 = vld [vmem:[%s2227_s1 + $0xa48] sm:$0xff]  ;;  %v183_v54 = vld [vmem:[%s2227_s1 + $0x440] sm:$0xff] }
  0x9e   :  { %837 = vmatpush1.msra.mxu1 %v273_v55  ;;  %761 = vmatprep.subr.mxu0 %v76_v56  ;;  %v375_v55 = vld [vmem:[%s2227_s1 + $0xa40] sm:$0xff]  ;;  %v178_v56 = vld [vmem:[%s2227_s1 + $0x418] sm:$0xff] }
  0x9f   :  { %838 = vmatprep.subr.mxu1 %v268_v57  ;;  %762 = vmatpush1.msra.mxu0 %v75_v58  ;;  %v370_v57 = vld [vmem:[%s2227_s1 + $0xa18] sm:$0xff]  ;;  %v177_v58 = vld [vmem:[%s2227_s1 + $0x410] sm:$0xff] }
  0xa0   :  { %839 = vmatpush1.msra.mxu1 %v267_v59  ;;  %763 = vmatprep.subr.mxu0 %v70_v62  ;;  %v369_v59 = vld [vmem:[%s2227_s1 + $0xa10] sm:$0xff]  ;;  %v172_v62 = vld [vmem:[%s2227_s1 + $0x3e8] sm:$0xff] }
  0xa1   :  { %840 = vmatprep.subr.mxu1 %v262_v0  ;;  %764 = vmatpush1.msra.mxu0 %v69_v6  ;;  %v364_v0 = vld [vmem:[%s2227_s1 + $0x9e8] sm:$0xff]  ;;  %v171_v6 = vld [vmem:[%s2227_s1 + $0x3e0] sm:$0xff] }
  0xa2   :  { %841 = vmatpush1.msra.mxu1 %v261_v7  ;;  %765 = vmatprep.subr.mxu0 %v64_v8  ;;  %v363_v7 = vld [vmem:[%s2227_s1 + $0x9e0] sm:$0xff]  ;;  %v166_v8 = vld [vmem:[%s2227_s1 + $0x3b8] sm:$0xff] }
  0xa3   :  { %842 = vmatprep.subr.mxu1 %v256_v9  ;;  %766 = vmatpush1.msra.mxu0 %v63_v10  ;;  %v358_v9 = vld [vmem:[%s2227_s1 + $0x9b8] sm:$0xff]  ;;  %v165_v10 = vld [vmem:[%s2227_s1 + $0x3b0] sm:$0xff] }
  0xa4   :  { %843 = vmatpush1.msra.mxu1 %v255_v11  ;;  %767 = vmatprep.subr.mxu0 %v58_v12  ;;  %v357_v11 = vld [vmem:[%s2227_s1 + $0x9b0] sm:$0xff]  ;;  %v160_v12 = vld [vmem:[%s2227_s1 + $0x388] sm:$0xff] }
  0xa5   :  { %844 = vmatprep.subr.mxu1 %v250_v13  ;;  %768 = vmatpush1.msra.mxu0 %v57_v14  ;;  %v352_v13 = vld [vmem:[%s2227_s1 + $0x988] sm:$0xff]  ;;  %v159_v14 = vld [vmem:[%s2227_s1 + $0x380] sm:$0xff] }
  0xa6   :  { %845 = vmatpush1.msra.mxu1 %v249_v15  ;;  %769 = vmatprep.subr.mxu0 %v52_v16  ;;  %v351_v15 = vld [vmem:[%s2227_s1 + $0x980] sm:$0xff]  ;;  %v154_v16 = vld [vmem:[%s2227_s1 + $0x358] sm:$0xff] }
  0xa7   :  { %846 = vmatprep.subr.mxu1 %v244_v17  ;;  %770 = vmatpush1.msra.mxu0 %v51_v18  ;;  %v346_v17 = vld [vmem:[%s2227_s1 + $0x958] sm:$0xff]  ;;  %v153_v18 = vld [vmem:[%s2227_s1 + $0x350] sm:$0xff] }
  0xa8   :  { %847 = vmatpush1.msra.mxu1 %v243_v19  ;;  %771 = vmatprep.subr.mxu0 %v238_v63  ;;  %v345_v19 = vld [vmem:[%s2227_s1 + $0x950] sm:$0xff]  ;;  %v148_v63 = vld [vmem:[%s2227_s1 + $0x328] sm:$0xff] }
  0xa9   :  { %848 = vmatprep.subr.mxu1 %v430_v1  ;;  %772 = vmatpush2.msra.mxu0 %v237_v20  ;;  %v340_v1 = vld [vmem:[%s2227_s1 + $0x928] sm:$0xff]  ;;  %v147_v20 = vld [vmem:[%s2227_s1 + $0x320] sm:$0xff] }
  0xaa   :  { %849 = vmatpush2.msra.mxu1 %v429_v2  ;;  %773 = vmatprep.subr.mxu0 %v232_v3  ;;  %v339_v2 = vld [vmem:[%s2227_s1 + $0x920] sm:$0xff]  ;;  %v948_v3 = vld [vmem:[%s2228_s0 + $0x8] sm:$0xff] }
  0xab   :  { %850 = vmatprep.subr.mxu1 %v424_v21  ;;  %774 = vmatpush2.msra.mxu0 %v231_v22  ;;  %v949_v21 = vld [vmem:[%s2228_s0 + $0x18] sm:$0xff]  ;;  %v950_v22 = vld [vmem:[%s2228_s0] sm:$0xff] }
  0xac   :  { %851 = vmatpush2.msra.mxu1 %v423_v23  ;;  %775 = vmatprep.subr.mxu0 %v226_v24  ;;  %v951_v23 = vld [vmem:[%s2228_s0 + $0x10] sm:$0xff] }
  0xad   :  { %852 = vmatprep.subr.mxu1 %v418_v25  ;;  %776 = vmatpush2.msra.mxu0 %v225_v26 }
  0xae   :  { %853 = vmatpush2.msra.mxu1 %v417_v27  ;;  %777 = vmatprep.subr.mxu0 %v220_v28 }
  0xaf   :  { %854 = vmatprep.subr.mxu1 %v412_v29  ;;  %778 = vmatpush2.msra.mxu0 %v219_v30 }
  0xb0   :  { %855 = vmatpush2.msra.mxu1 %v411_v31  ;;  %779 = vmatprep.subr.mxu0 %v214_v32 }
  0xb1   :  { %856 = vmatprep.subr.mxu1 %v406_v33  ;;  %780 = vmatpush2.msra.mxu0 %v213_v34 }
  0xb2   :  { %857 = vmatpush2.msra.mxu1 %v405_v35  ;;  %781 = vmatprep.subr.mxu0 %v208_v36 }
  0xb3   :  { %858 = vmatprep.subr.mxu1 %v400_v37  ;;  %782 = vmatpush2.msra.mxu0 %v207_v38 }
  0xb4   :  { %859 = vmatpush2.msra.mxu1 %v399_v39  ;;  %783 = vmatprep.subr.mxu0 %v202_v40 }
  0xb5   :  { %860 = vmatprep.subr.mxu1 %v394_v41  ;;  %784 = vmatpush2.msra.mxu0 %v201_v42 }
  0xb6   :  { %861 = vmatpush2.msra.mxu1 %v393_v43  ;;  %785 = vmatprep.subr.mxu0 %v196_v44 }
  0xb7   :  { %862 = vmatprep.subr.mxu1 %v388_v45  ;;  %786 = vmatpush2.msra.mxu0 %v195_v46 }
  0xb8   :  { %863 = vmatpush2.msra.mxu1 %v387_v47  ;;  %787 = vmatprep.subr.mxu0 %v190_v48 }
  0xb9   :  { %864 = vmatprep.subr.mxu1 %v382_v49  ;;  %788 = vmatpush2.msra.mxu0 %v189_v50 }
  0xba   :  { %865 = vmatpush2.msra.mxu1 %v381_v51  ;;  %789 = vmatprep.subr.mxu0 %v184_v52 }
  0xbb   :  { %866 = vmatprep.subr.mxu1 %v376_v53  ;;  %790 = vmatpush2.msra.mxu0 %v183_v54 }
  0xbc   :  { %867 = vmatpush2.msra.mxu1 %v375_v55  ;;  %791 = vmatprep.subr.mxu0 %v178_v56 }
  0xbd   :  { %868 = vmatprep.subr.mxu1 %v370_v57  ;;  %792 = vmatpush2.msra.mxu0 %v177_v58 }
  0xbe   :  { %869 = vmatpush2.msra.mxu1 %v369_v59  ;;  %793 = vmatprep.subr.mxu0 %v172_v62 }
  0xbf   :  { %870 = vmatprep.subr.mxu1 %v364_v0  ;;  %794 = vmatpush2.msra.mxu0 %v171_v6 }
  0xc0   :  { %871 = vmatpush2.msra.mxu1 %v363_v7  ;;  %795 = vmatprep.subr.mxu0 %v166_v8 }
  0xc1   :  { %872 = vmatprep.subr.mxu1 %v358_v9  ;;  %655 = vmatprep.mubr.f32.mxu0 %v1726_v60 }
  0xc2   :  { %732 = vmatprep.mubr.f32.mxu1 %v1731_v61  ;;  %796 = vmatpush2.msra.mxu0 %v165_v10 }
  0xc3   :  { %873 = vmatpush2.msra.mxu1 %v357_v11  ;;  %656 = vmatmul.mubr.f32.gmra.mxu0 %v1742_v4 }
  0xc4   :  { %733 = vmatmul.mubr.f32.gmra.mxu1 %v1747_v5  ;;  %797 = vmatprep.subr.mxu0 %v160_v12 }
  0xc5   :  { %874 = vmatprep.subr.mxu1 %v352_v13  ;;  %798 = vmatpush2.msra.mxu0 %v159_v14 }
  0xc6   :  { %875 = vmatpush2.msra.mxu1 %v351_v15  ;;  %799 = vmatprep.subr.mxu0 %v154_v16 }
  0xc7   :  { %876 = vmatprep.subr.mxu1 %v346_v17  ;;  %800 = vmatpush2.msra.mxu0 %v153_v18 }
  0xc8   :  { %877 = vmatpush2.msra.mxu1 %v345_v19  ;;  %801 = vmatprep.subr.mxu0 %v148_v63 }
  0xc9   :  { %878 = vmatprep.subr.mxu1 %v340_v1  ;;  %802 = vmatpush2.msra.mxu0 %v147_v20 }
  0xca   :  { %803 = vmatprep.mubr.f32.mxu0 %v948_v3  ;;  %879 = vmatpush2.msra.mxu1 %v339_v2 }
  0xcb   :  { %880 = vmatprep.mubr.f32.mxu1 %v949_v21  ;;  %804 = vmatmul.mubr.f32.vlgmr.msra.gmra.mxu0 %v950_v22 }
  0xcc   :  { %881 = vmatmul.mubr.f32.vlgmr.msra.gmra.mxu1 %v951_v23  ;;  %809 = vmatprep.mubr.f32.mxu0 %v1726_v60 }
  0xcd   :  { %886 = vmatprep.mubr.f32.mxu1 %v1731_v61 }
  0xcf   :  { %810 = vmatmul.mubr.f32.gmra.mxu0 %v1742_v4 }
  0xd0   :  { %887 = vmatmul.mubr.f32.gmra.mxu1 %v1747_v5 }
 0x103   :  { %v497_v24 = vpop.f32.mrf.mxu0 }
 0x104   :  { %v574_v25 = vpop.f32.mrf.mxu1 }
 0x105   :  { %v575_v26 = vadd.f32 %v574_v25, %v497_v24  ;;  %v499_v27 = vpop.f32.mrf.mxu0 }
 0x106   :  { %v576_v28 = vpop.f32.mrf.mxu1 }
 0x107   :  { %932 = vst [vmem:[%s2229_s2] sm:$0xff] %v575_v26  ;;  %v577_v29 = vadd.f32 %v576_v28, %v499_v27 }
 0x109   :  { %933 = vst [vmem:[%s2229_s2 + $0x8] sm:$0xff] %v577_v29 }
 0x140   :  { %v503_v60 = vpop.f32.mrf.mxu0 }
 0x141   :  { %v580_v61 = vpop.f32.mrf.mxu1 }
 0x142   :  { %v581_v30 = vadd.f32 %v580_v61, %v503_v60  ;;  %v505_v4 = vpop.f32.mrf.mxu0 }
 0x143   :  { %v582_v31 = vpop.f32.mrf.mxu1 }
 0x144   :  { %938 = vst [vmem:[%s2229_s2 + $0x30] sm:$0xff] %v581_v30  ;;  %v583_v5 = vadd.f32 %v582_v31, %v505_v4 }
 0x146   :  { %939 = vst [vmem:[%s2229_s2 + $0x38] sm:$0xff] %v583_v5 }
 0x147   :  { %v651_v32 = vpop.f32.mrf.mxu0 }
 0x148   :  { %v728_v33 = vpop.f32.mrf.mxu1 }
 0x149   :  { %v729_v34 = vadd.f32 %v728_v33, %v651_v32  ;;  %v653_v35 = vpop.f32.mrf.mxu0 }
 0x14a   :  { %v730_v36 = vpop.f32.mrf.mxu1 }
 0x14b   :  { %934 = vst [vmem:[%s2229_s2 + $0x10] sm:$0xff] %v729_v34  ;;  %v731_v37 = vadd.f32 %v730_v36, %v653_v35 }
 0x14d   :  { %935 = vst [vmem:[%s2229_s2 + $0x18] sm:$0xff] %v731_v37 }
 0x183   :  { %v657_v38 = vpop.f32.mrf.mxu0 }
 0x184   :  { %v734_v39 = vpop.f32.mrf.mxu1 }
 0x185   :  { %v735_v40 = vadd.f32 %v734_v39, %v657_v38  ;;  %v659_v41 = vpop.f32.mrf.mxu0 }
 0x186   :  { %v736_v42 = vpop.f32.mrf.mxu1 }
 0x187   :  { %940 = vst [vmem:[%s2229_s2 + $0x40] sm:$0xff] %v735_v40  ;;  %v737_v43 = vadd.f32 %v736_v42, %v659_v41 }
 0x189   :  { %941 = vst [vmem:[%s2229_s2 + $0x48] sm:$0xff] %v737_v43 }
 0x18b   :  { %v805_v44 = vpop.f32.mrf.mxu0 }
 0x18c   :  { %v882_v45 = vpop.f32.mrf.mxu1 }
 0x18d   :  { %v883_v46 = vadd.f32 %v882_v45, %v805_v44  ;;  %v807_v47 = vpop.f32.mrf.mxu0 }
 0x18e   :  { %v884_v48 = vpop.f32.mrf.mxu1 }
 0x18f   :  { %936 = vst [vmem:[%s2229_s2 + $0x20] sm:$0xff] %v883_v46  ;;  %v885_v49 = vadd.f32 %v884_v48, %v807_v47  ;;  %v811_v50 = vpop.f32.mrf.mxu0 }
 0x190   :  { %v888_v51 = vpop.f32.mrf.mxu1 }
 0x191   :  { %937 = vst [vmem:[%s2229_s2 + $0x28] sm:$0xff] %v885_v49  ;;  %v889_v52 = vadd.f32 %v888_v51, %v811_v50  ;;  %v813_v53 = vpop.f32.mrf.mxu0 }
 0x192   :  { %v890_v54 = vpop.f32.mrf.mxu1 }
 0x193   :  { %942 = vst [vmem:[%s2229_s2 + $0x50] sm:$0xff] %v889_v52  ;;  %v891_v55 = vadd.f32 %v890_v54, %v813_v53 }
 0x195   :  { %943 = vst [vmem:[%s2229_s2 + $0x58] sm:$0xff] %v891_v55 }

// kernel: enhancement_forward.20
= control target key start
LH: loop header
LB: loop body
LE: loop exit
PB: predicated region body
PF: predicated region fallthrough
CT: control target
= control target key end

     0   :  { %vm188_vm0 = vcmask 1043456   ;;  %v870_v3 = vmov 0   ;;  %vm184_vm1 = vcmask 195584   ;;  %s1242_s1 = inlined_call_operand.vmem [shape: bf16[24,2048], index: 1, kind: input, shape index: {}]   ;;  %s1243_s0 = inlined_call_operand.vmem [shape: bf16[16,24], index: 0, kind: input, shape index: {}]   ;;  %s1244_s2 = inlined_call_operand.vmem [shape: f32[16,1], index: 2, kind: input, shape index: {}]   ;;  %s1245_s3 = inlined_call_operand.vmem [shape: f32[16,1], index: 3, kind: input, shape index: {}]   ;;  %s1246_s4 = inlined_call_operand.vmem [shape: f32[16,1], index: 4, kind: input, shape index: {}]   ;;  %s1247_s5 = inlined_call_operand.vmem [shape: f32[16,2048], index: 5, kind: output, shape index: {}]  }
   0x1   :  { %v39_v0 = vld [vmem:[%s1242_s1 + $0x80] sm:$0xff]  ;;  %v40_v1 = vld [vmem:[%s1242_s1 + $0x88] sm:$0xff]  ;;  %269 = vmatprep.mubr.bf16.mxu0 %v870_v3  ;;  %312 = vmatprep.mubr.bf16.mxu1 %v870_v3  ;;  %v41_v15 = vld [vmem:[%s1242_s1 + $0x90] sm:$0xff] }
   0x2   :  { %v23_v2 = vld [vmem:[%s1242_s1] sm:$0xff]  ;;  %v819_v4 = vcombine.high %v39_v0, %v39_v0  ;;  %v821_v5 = vcombine.high %v40_v1, %v40_v1  ;;  %v818_v6 = vcombine.low %v39_v0, %v39_v0  ;;  %v820_v7 = vcombine.low %v40_v1, %v40_v1  ;;  %v24_v9 = vld [vmem:[%s1242_s1 + $0x8] sm:$0xff]  ;;  %851 = vset.pattern.permute.xlu0 %v870_v3  ;;  %v42_v16 = vld [vmem:[%s1242_s1 + $0x98] sm:$0xff] }
   0x3   :  { %v31_v8 = vld [vmem:[%s1242_s1 + $0x40] sm:$0xff]  ;;  %v32_v10 = vld [vmem:[%s1242_s1 + $0x48] sm:$0xff]  ;;  %852 = vset.pattern.permute.xlu1 %v870_v3  ;;  %v823_v19 = vcombine.high %v41_v15, %v41_v15  ;;  %v825_v20 = vcombine.high %v42_v16, %v42_v16  ;;  %v822_v21 = vcombine.low %v41_v15, %v41_v15  ;;  %v824_v22 = vcombine.low %v42_v16, %v42_v16  ;;  %v25_v23 = vld [vmem:[%s1242_s1 + $0x10] sm:$0xff] }
   0x4   :  { %v803_v11 = vcombine.high %v23_v2, %v31_v8  ;;  %v805_v12 = vcombine.high %v24_v9, %v32_v10  ;;  %834 = vmatprep.subr.msk.bf16.mxu0 %vm188_vm0, %v819_v4  ;;  %836 = vmatprep.subr.msk.bf16.mxu1 %vm188_vm0, %v821_v5  ;;  %v190_v13 = vsel %vm188_vm0, %v818_v6, 0  ;;  %v196_v14 = vsel %vm188_vm0, %v820_v7, 0  ;;  %v33_v24 = vld [vmem:[%s1242_s1 + $0x50] sm:$0xff]  ;;  %v26_v25 = vld [vmem:[%s1242_s1 + $0x18] sm:$0xff]  ;;  %v948_v27 = vld [vmem:[%s1243_s0] sm:$0xff]  }
   0x5   :  { %250 = vmatpush1.bf16.msra.mxu0 %v190_v13  ;;  %293 = vmatpush1.bf16.msra.mxu1 %v196_v14  ;;  %v802_v17 = vcombine.low %v23_v2, %v31_v8  ;;  %v804_v18 = vcombine.low %v24_v9, %v32_v10  ;;  %v34_v26 = vld [vmem:[%s1242_s1 + $0x58] sm:$0xff]  ;;  %v202_v28 = vsel %vm188_vm0, %v822_v21, 0  ;;  %v208_v29 = vsel %vm188_vm0, %v824_v22, 0  ;;  %v43_v32 = vld [vmem:[%s1242_s1 + $0xa0] sm:$0xff]  ;;  %v44_v34 = vld [vmem:[%s1242_s1 + $0xa8] sm:$0xff] }
   0x6   :  { %251 = vmatprep.subr.bf16.mxu0 %v803_v11  ;;  %294 = vmatprep.subr.bf16.mxu1 %v805_v12  ;;  %v807_v30 = vcombine.high %v25_v23, %v33_v24  ;;  %v809_v31 = vcombine.high %v26_v25, %v34_v26  ;;  %v47_v33 = vld [vmem:[%s1244_s2] sm:$0xff]  ;;  %v806_v35 = vcombine.low %v25_v23, %v33_v24  ;;  %v48_v39 = vld [vmem:[%s1244_s2 + $0x8] sm:$0xff]  ;;  %v45_v51 = vld [vmem:[%s1242_s1 + $0xb0] sm:$0xff] }
   0x7   :  { %51 = vperm.xlu0 %851, %v47_v33   ;;  %v808_v36 = vcombine.low %v26_v25, %v34_v26  ;;  %v827_v37 = vcombine.high %v43_v32, %v43_v32  ;;  %v581_v38 = vld [vmem:[%s1245_s3] sm:$0xff]  ;;  %v829_v40 = vcombine.high %v44_v34, %v44_v34  ;;  %v826_v41 = vcombine.low %v43_v32, %v43_v32  ;;  %v28_v45 = vld [vmem:[%s1242_s1 + $0x28] sm:$0xff]  ;;  %v46_v52 = vld [vmem:[%s1242_s1 + $0xb8] sm:$0xff] }
   0x8   :  { %v828_v42 = vcombine.low %v44_v34, %v44_v34  ;;  %v27_v43 = vld [vmem:[%s1242_s1 + $0x20] sm:$0xff]  ;;  %v36_v46 = vld [vmem:[%s1242_s1 + $0x68] sm:$0xff]  ;;  %585 = vperm.xlu1 %852, %v581_v38   ;;  %v831_v55 = vcombine.high %v45_v51, %v45_v51  ;;  %v833_v58 = vcombine.high %v46_v52, %v46_v52  ;;  %v830_v59 = vcombine.low %v45_v51, %v45_v51  ;;  %v29_v61 = vld [vmem:[%s1242_s1 + $0x30] sm:$0xff] }
   0x9   :  { %252 = vmatpush1.bf16.msra.mxu0 %v802_v17  ;;  %295 = vmatpush1.bf16.msra.mxu1 %v804_v18  ;;  %v35_v44 = vld [vmem:[%s1242_s1 + $0x60] sm:$0xff]  ;;  %v214_v47 = vsel %vm188_vm0, %v826_v41, 0  ;;  %v813_v50 = vcombine.high %v28_v45, %v36_v46  ;;  %v812_v54 = vcombine.low %v28_v45, %v36_v46  ;;  %v582_v56 = vld [vmem:[%s1245_s3 + $0x8] sm:$0xff]  ;;  %v832_v60 = vcombine.low %v46_v52, %v46_v52  ;;  %v37_v62 = vld [vmem:[%s1242_s1 + $0x70] sm:$0xff] }
   0xa   :  { %838 = vmatprep.subr.msk.bf16.mxu0 %vm188_vm0, %v823_v19  ;;  %840 = vmatprep.subr.msk.bf16.mxu1 %vm188_vm0, %v825_v20  ;;  %v220_v48 = vsel %vm188_vm0, %v828_v42, 0  ;;  %v811_v49 = vcombine.high %v27_v43, %v35_v44  ;;  %v810_v53 = vcombine.low %v27_v43, %v35_v44  ;;  %v625_v57 = vld [vmem:[%s1246_s4] sm:$0xff]  ;;  %v30_v63 = vld [vmem:[%s1242_s1 + $0x38] sm:$0xff]  ;;  %v226_v1 = vsel %vm188_vm0, %v830_v59, 0  ;;  %v626_v8 = vld [vmem:[%s1246_s4 + $0x8] sm:$0xff] }
   0xb   :  { %56 = vperm.xlu0 %851, %v48_v39   ;;  %v38_v0 = vld [vmem:[%s1242_s1 + $0x78] sm:$0xff]  ;;  %v232_v2 = vsel %vm188_vm0, %v832_v60, 0  ;;  %v815_v4 = vcombine.high %v29_v61, %v37_v62  ;;  %v814_v6 = vcombine.low %v29_v61, %v37_v62 }
   0xc   :  { %835 = vmatmul.mubr.msk.bf16.vlgmr.msra.gmra.mxu0 %vm184_vm1, %v948_v27  ;;  %837 = vmatmul.mubr.msk.bf16.vlgmr.msra.gmra.mxu1 %vm184_vm1, %v948_v27  ;;  %v817_v5 = vcombine.high %v30_v63, %v38_v0  ;;  %v816_v7 = vcombine.low %v30_v63, %v38_v0 }
   0xd   :  { %336 = vmatpush1.bf16.msra.mxu0 %v202_v28  ;;  %379 = vmatpush1.bf16.msra.mxu1 %v208_v29 }
   0xe   :  { %337 = vmatprep.subr.bf16.mxu0 %v807_v30  ;;  %380 = vmatprep.subr.bf16.mxu1 %v809_v31 }
   0xf   :  { %355 = vmatprep.mubr.bf16.mxu0 %v870_v3  ;;  %398 = vmatprep.mubr.bf16.mxu1 %v870_v3 }
  0x10   :  { %590 = vperm.xlu1 %852, %v582_v56   ;;  %629 = vperm.xlu0 %851, %v625_v57  }
  0x11   :  { %338 = vmatpush1.bf16.msra.mxu0 %v806_v35  ;;  %381 = vmatpush1.bf16.msra.mxu1 %v808_v36 }
  0x12   :  { %842 = vmatprep.subr.msk.bf16.mxu0 %vm188_vm0, %v827_v37  ;;  %844 = vmatprep.subr.msk.bf16.mxu1 %vm188_vm0, %v829_v40 }
  0x14   :  { %839 = vmatmul.mubr.msk.bf16.vlgmr.msra.gmra.mxu0 %vm184_vm1, %v948_v27  ;;  %841 = vmatmul.mubr.msk.bf16.vlgmr.msra.gmra.mxu1 %vm184_vm1, %v948_v27 }
  0x15   :  { %422 = vmatpush1.bf16.msra.mxu0 %v214_v47  ;;  %465 = vmatpush1.bf16.msra.mxu1 %v220_v48 }
  0x16   :  { %423 = vmatprep.subr.bf16.mxu0 %v811_v49  ;;  %466 = vmatprep.subr.bf16.mxu1 %v813_v50 }
  0x17   :  { %441 = vmatprep.mubr.bf16.mxu0 %v870_v3  ;;  %484 = vmatprep.mubr.bf16.mxu1 %v870_v3 }
  0x18   :  { %634 = vperm.xlu1 %852, %v626_v8  }
  0x19   :  { %424 = vmatpush1.bf16.msra.mxu0 %v810_v53  ;;  %467 = vmatpush1.bf16.msra.mxu1 %v812_v54 }
  0x1a   :  { %846 = vmatprep.subr.msk.bf16.mxu0 %vm188_vm0, %v831_v55  ;;  %848 = vmatprep.subr.msk.bf16.mxu1 %vm188_vm0, %v833_v58 }
  0x1c   :  { %843 = vmatmul.mubr.msk.bf16.vlgmr.msra.gmra.mxu0 %vm184_vm1, %v948_v27  ;;  %845 = vmatmul.mubr.msk.bf16.vlgmr.msra.gmra.mxu1 %vm184_vm1, %v948_v27 }
  0x1d   :  { %508 = vmatpush1.bf16.msra.mxu0 %v226_v1  ;;  %551 = vmatpush1.bf16.msra.mxu1 %v232_v2 }
  0x1e   :  { %509 = vmatprep.subr.bf16.mxu0 %v815_v4  ;;  %552 = vmatprep.subr.bf16.mxu1 %v817_v5 }
  0x1f   :  { %527 = vmatprep.mubr.bf16.mxu0 %v870_v3  ;;  %570 = vmatprep.mubr.bf16.mxu1 %v870_v3 }
  0x21   :  { %510 = vmatpush1.bf16.msra.mxu0 %v814_v6  ;;  %553 = vmatpush1.bf16.msra.mxu1 %v816_v7 }
  0x24   :  { %847 = vmatmul.mubr.msk.bf16.vlgmr.msra.gmra.mxu0 %vm184_vm1, %v948_v27  ;;  %849 = vmatmul.mubr.msk.bf16.vlgmr.msra.gmra.mxu1 %vm184_vm1, %v948_v27 }
  0x82   :  { %v1038_v9 = vpop.permute.xlu0 %51 }
  0x83   :  { %v1040_v10 = vpop.permute.xlu1 %585 }
  0x86   :  { %v1042_v11 = vpop.permute.xlu0 %56 }
  0x8b   :  { %v1046_v15 = vpop.permute.xlu1 %590  ;;  %v1048_v16 = vpop.permute.xlu0 %629 }
  0x93   :  { %v1062_v35 = vpop.permute.xlu1 %634 }
  0xcc   :  { %v271_v12 = vpop.f32.mrf.mxu0  ;;  %v314_v13 = vpop.f32.mrf.mxu1 }
  0xcd   :  { %v272_v14 = vadd.f32 %v271_v12, %v1038_v9  ;;  %v315_v3 = vadd.f32 %v314_v13, %v1038_v9 }
  0xce   :  { %v273_v17 = vpop.f32.mrf.mxu0  ;;  %v316_v18 = vpop.f32.mrf.mxu1 }
  0xcf   :  { %v593_v19 = vmul.f32 %v1040_v10, %v272_v14  ;;  %v595_v20 = vmul.f32 %v1040_v10, %v315_v3  ;;  %v274_v21 = vadd.f32 %v273_v17, %v1038_v9  ;;  %v317_v22 = vadd.f32 %v316_v18, %v1038_v9 }
  0xd0   :  { %v275_v23 = vpop.f32.mrf.mxu0  ;;  %v318_v24 = vpop.f32.mrf.mxu1 }
  0xd1   :  { %v594_v25 = vmul.f32 %v1040_v10, %v274_v21  ;;  %v596_v26 = vmul.f32 %v1040_v10, %v317_v22  ;;  %v637_v27 = vadd.f32 %v1048_v16, %v593_v19  ;;  %v639_v28 = vadd.f32 %v1048_v16, %v595_v20 }
  0xd2   :  { %v276_v29 = vadd.f32 %v275_v23, %v1042_v11  ;;  %v319_v30 = vadd.f32 %v318_v24, %v1042_v11  ;;  %v277_v31 = vpop.f32.mrf.mxu0  ;;  %v320_v32 = vpop.f32.mrf.mxu1 }
  0xd3   :  { %v638_v33 = vadd.f32 %v1048_v16, %v594_v25  ;;  %v640_v34 = vadd.f32 %v1048_v16, %v596_v26  ;;  %vm669_vm2 = vcmp.ge.f32.partialorder %v637_v27, 0.0  ;;  %vm671_vm3 = vcmp.ge.f32.partialorder %v639_v28, 0.0 }
  0xd4   :  { %v701_v36 = vmul.f32 0.01, %v637_v27  ;;  %v703_v37 = vmul.f32 0.01, %v639_v28  ;;  %v609_v38 = vmul.f32 %v1046_v15, %v276_v29  ;;  %v611_v39 = vmul.f32 %v1046_v15, %v319_v30  ;;  %v357_v40 = vpop.f32.mrf.mxu0  ;;  %v400_v41 = vpop.f32.mrf.mxu1 }
  0xd5   :  { %vm670_vm4 = vcmp.ge.f32.partialorder %v638_v33, 0.0  ;;  %vm672_vm5 = vcmp.ge.f32.partialorder %v640_v34, 0.0  ;;  %v702_v42 = vmul.f32 0.01, %v638_v33  ;;  %v704_v43 = vmul.f32 0.01, %v640_v34 }
  0xd6   :  { %v733_v44 = vsel %vm669_vm2, %v637_v27, %v701_v36  ;;  %v735_v45 = vsel %vm671_vm3, %v639_v28, %v703_v37  ;;  %v278_v46 = vadd.f32 %v277_v31, %v1042_v11  ;;  %v321_v47 = vadd.f32 %v320_v32, %v1042_v11  ;;  %v359_v48 = vpop.f32.mrf.mxu0  ;;  %v402_v49 = vpop.f32.mrf.mxu1 }
  0xd7   :  { %v734_v50 = vsel %vm670_vm4, %v638_v33, %v702_v42  ;;  %v736_v51 = vsel %vm672_vm5, %v640_v34, %v704_v43  ;;  %765 = vst [vmem:[%s1247_s5] sm:$0xff] %v733_v44  ;;  %767 = vst [vmem:[%s1247_s5 + $0x10] sm:$0xff] %v735_v45  ;;  %v653_v52 = vadd.f32 %v1062_v35, %v609_v38 }
  0xd8   :  { %v655_v53 = vadd.f32 %v1062_v35, %v611_v39  ;;  %766 = vst [vmem:[%s1247_s5 + $0x8] sm:$0xff] %v734_v50  ;;  %768 = vst [vmem:[%s1247_s5 + $0x18] sm:$0xff] %v736_v51  ;;  %v610_v54 = vmul.f32 %v1046_v15, %v278_v46  ;;  %v612_v55 = vmul.f32 %v1046_v15, %v321_v47  ;;  %v361_v58 = vpop.f32.mrf.mxu0  ;;  %v404_v59 = vpop.f32.mrf.mxu1 }
  0xd9   :  { %v358_v56 = vadd.f32 %v357_v40, %v1038_v9  ;;  %v401_v57 = vadd.f32 %v400_v41, %v1038_v9  ;;  %vm685_vm6 = vcmp.ge.f32.partialorder %v653_v52, 0.0  ;;  %v717_v60 = vmul.f32 0.01, %v653_v52 }
  0xda   :  { %vm687_vm7 = vcmp.ge.f32.partialorder %v655_v53, 0.0  ;;  %v719_v61 = vmul.f32 0.01, %v655_v53  ;;  %v654_v62 = vadd.f32 %v1062_v35, %v610_v54  ;;  %v656_v63 = vadd.f32 %v1062_v35, %v612_v55  ;;  %v363_v2 = vpop.f32.mrf.mxu0  ;;  %v406_v4 = vpop.f32.mrf.mxu1 }
  0xdb   :  { %v597_v0 = vmul.f32 %v1040_v10, %v358_v56  ;;  %v599_v1 = vmul.f32 %v1040_v10, %v401_v57  ;;  %v749_v5 = vsel %vm685_vm6, %v653_v52, %v717_v60  ;;  %v360_v7 = vadd.f32 %v359_v48, %v1038_v9 }
  0xdc   :  { %v751_v6 = vsel %vm687_vm7, %v655_v53, %v719_v61  ;;  %v403_v8 = vadd.f32 %v402_v49, %v1038_v9  ;;  %vm686_vm8 = vcmp.ge.f32.partialorder %v654_v62, 0.0  ;;  %vm688_vm9 = vcmp.ge.f32.partialorder %v656_v63, 0.0  ;;  %781 = vst [vmem:[%s1247_s5 + $0x80] sm:$0xff] %v749_v5  ;;  %v443_v14 = vpop.f32.mrf.mxu0  ;;  %v486_v3 = vpop.f32.mrf.mxu1 }
  0xdd   :  { %v718_v12 = vmul.f32 0.01, %v654_v62  ;;  %v720_v13 = vmul.f32 0.01, %v656_v63  ;;  %783 = vst [vmem:[%s1247_s5 + $0x90] sm:$0xff] %v751_v6  ;;  %v641_v17 = vadd.f32 %v1048_v16, %v597_v0  ;;  %v643_v18 = vadd.f32 %v1048_v16, %v599_v1 }
  0xde   :  { %v598_v19 = vmul.f32 %v1040_v10, %v360_v7  ;;  %v600_v20 = vmul.f32 %v1040_v10, %v403_v8  ;;  %v362_v23 = vadd.f32 %v361_v58, %v1042_v11  ;;  %v405_v24 = vadd.f32 %v404_v59, %v1042_v11  ;;  %v445_v25 = vpop.f32.mrf.mxu0  ;;  %v488_v26 = vpop.f32.mrf.mxu1 }
  0xdf   :  { %v750_v21 = vsel %vm686_vm8, %v654_v62, %v718_v12  ;;  %v752_v22 = vsel %vm688_vm9, %v656_v63, %v720_v13  ;;  %vm673_vm10 = vcmp.ge.f32.partialorder %v641_v17, 0.0  ;;  %v705_v27 = vmul.f32 0.01, %v641_v17 }
  0xe0   :  { %782 = vst [vmem:[%s1247_s5 + $0x88] sm:$0xff] %v750_v21  ;;  %784 = vst [vmem:[%s1247_s5 + $0x98] sm:$0xff] %v752_v22  ;;  %vm675_vm11 = vcmp.ge.f32.partialorder %v643_v18, 0.0  ;;  %v707_v28 = vmul.f32 0.01, %v643_v18  ;;  %v642_v29 = vadd.f32 %v1048_v16, %v598_v19  ;;  %v644_v30 = vadd.f32 %v1048_v16, %v600_v20  ;;  %v447_v40 = vpop.f32.mrf.mxu0  ;;  %v490_v41 = vpop.f32.mrf.mxu1 }
  0xe1   :  { %v613_v31 = vmul.f32 %v1046_v15, %v362_v23  ;;  %v615_v32 = vmul.f32 %v1046_v15, %v405_v24  ;;  %v737_v33 = vsel %vm673_vm10, %v641_v17, %v705_v27  ;;  %v364_v36 = vadd.f32 %v363_v2, %v1042_v11 }
  0xe2   :  { %v739_v34 = vsel %vm675_vm11, %v643_v18, %v707_v28  ;;  %v407_v37 = vadd.f32 %v406_v4, %v1042_v11  ;;  %769 = vst [vmem:[%s1247_s5 + $0x20] sm:$0xff] %v737_v33  ;;  %vm674_vm12 = vcmp.ge.f32.partialorder %v642_v29, 0.0  ;;  %v706_v38 = vmul.f32 0.01, %v642_v29  ;;  %v449_v56 = vpop.f32.mrf.mxu0  ;;  %v492_v57 = vpop.f32.mrf.mxu1 }
  0xe3   :  { %771 = vst [vmem:[%s1247_s5 + $0x30] sm:$0xff] %v739_v34  ;;  %vm676_vm13 = vcmp.ge.f32.partialorder %v644_v30, 0.0  ;;  %v708_v39 = vmul.f32 0.01, %v644_v30  ;;  %v657_v42 = vadd.f32 %v1062_v35, %v613_v31  ;;  %v659_v43 = vadd.f32 %v1062_v35, %v615_v32 }
  0xe4   :  { %v614_v44 = vmul.f32 %v1046_v15, %v364_v36  ;;  %v616_v45 = vmul.f32 %v1046_v15, %v407_v37  ;;  %v738_v46 = vsel %vm674_vm12, %v642_v29, %v706_v38  ;;  %v444_v48 = vadd.f32 %v443_v14, %v1038_v9  ;;  %v529_v12 = vpop.f32.mrf.mxu0  ;;  %v572_v13 = vpop.f32.mrf.mxu1 }
  0xe5   :  { %v740_v47 = vsel %vm676_vm13, %v644_v30, %v708_v39  ;;  %v487_v49 = vadd.f32 %v486_v3, %v1038_v9  ;;  %770 = vst [vmem:[%s1247_s5 + $0x28] sm:$0xff] %v738_v46  ;;  %vm689_vm14 = vcmp.ge.f32.partialorder %v657_v42, 0.0  ;;  %v721_v50 = vmul.f32 0.01, %v657_v42 }
  0xe6   :  { %772 = vst [vmem:[%s1247_s5 + $0x38] sm:$0xff] %v740_v47  ;;  %vm691_vm15 = vcmp.ge.f32.partialorder %v659_v43, 0.0  ;;  %v723_v51 = vmul.f32 0.01, %v659_v43  ;;  %v658_v52 = vadd.f32 %v1062_v35, %v614_v44  ;;  %v660_v53 = vadd.f32 %v1062_v35, %v616_v45  ;;  %v531_v27 = vpop.f32.mrf.mxu0  ;;  %v574_v28 = vpop.f32.mrf.mxu1 }
  0xe7   :  { %v601_v54 = vmul.f32 %v1040_v10, %v444_v48  ;;  %v603_v55 = vmul.f32 %v1040_v10, %v487_v49  ;;  %v753_v58 = vsel %vm689_vm14, %v657_v42, %v721_v50  ;;  %v446_v60 = vadd.f32 %v445_v25, %v1038_v9 }
  0xe8   :  { %v755_v59 = vsel %vm691_vm15, %v659_v43, %v723_v51  ;;  %v489_v61 = vadd.f32 %v488_v26, %v1038_v9  ;;  %785 = vst [vmem:[%s1247_s5 + $0xa0] sm:$0xff] %v753_v58  ;;  %vm690_vm0 = vcmp.ge.f32.partialorder %v658_v52, 0.0  ;;  %v722_v62 = vmul.f32 0.01, %v658_v52  ;;  %v533_v44 = vpop.f32.mrf.mxu0  ;;  %v576_v45 = vpop.f32.mrf.mxu1 }
  0xe9   :  { %787 = vst [vmem:[%s1247_s5 + $0xb0] sm:$0xff] %v755_v59  ;;  %vm692_vm1 = vcmp.ge.f32.partialorder %v660_v53, 0.0  ;;  %v724_v63 = vmul.f32 0.01, %v660_v53  ;;  %v645_v0 = vadd.f32 %v1048_v16, %v601_v54  ;;  %v647_v1 = vadd.f32 %v1048_v16, %v603_v55 }
  0xea   :  { %v602_v2 = vmul.f32 %v1040_v10, %v446_v60  ;;  %v604_v4 = vmul.f32 %v1040_v10, %v489_v61  ;;  %v754_v5 = vsel %vm690_vm0, %v658_v52, %v722_v62  ;;  %v448_v7 = vadd.f32 %v447_v40, %v1042_v11  ;;  %v535_v59 = vpop.f32.mrf.mxu0  ;;  %v578_v60 = vpop.f32.mrf.mxu1 }
  0xeb   :  { %v756_v6 = vsel %vm692_vm1, %v660_v53, %v724_v63  ;;  %v491_v8 = vadd.f32 %v490_v41, %v1042_v11  ;;  %786 = vst [vmem:[%s1247_s5 + $0xa8] sm:$0xff] %v754_v5  ;;  %vm677_vm2 = vcmp.ge.f32.partialorder %v645_v0, 0.0  ;;  %v709_v14 = vmul.f32 0.01, %v645_v0 }
  0xec   :  { %788 = vst [vmem:[%s1247_s5 + $0xb8] sm:$0xff] %v756_v6  ;;  %vm679_vm3 = vcmp.ge.f32.partialorder %v647_v1, 0.0  ;;  %v711_v3 = vmul.f32 0.01, %v647_v1  ;;  %v646_v17 = vadd.f32 %v1048_v16, %v602_v2  ;;  %v648_v18 = vadd.f32 %v1048_v16, %v604_v4 }
  0xed   :  { %v617_v19 = vmul.f32 %v1046_v15, %v448_v7  ;;  %v619_v20 = vmul.f32 %v1046_v15, %v491_v8  ;;  %v741_v21 = vsel %vm677_vm2, %v645_v0, %v709_v14  ;;  %v450_v23 = vadd.f32 %v449_v56, %v1042_v11 }
  0xee   :  { %v743_v22 = vsel %vm679_vm3, %v647_v1, %v711_v3  ;;  %v493_v24 = vadd.f32 %v492_v57, %v1042_v11  ;;  %773 = vst [vmem:[%s1247_s5 + $0x40] sm:$0xff] %v741_v21  ;;  %vm678_vm4 = vcmp.ge.f32.partialorder %v646_v17, 0.0  ;;  %v710_v25 = vmul.f32 0.01, %v646_v17 }
  0xef   :  { %775 = vst [vmem:[%s1247_s5 + $0x50] sm:$0xff] %v743_v22  ;;  %vm680_vm5 = vcmp.ge.f32.partialorder %v648_v18, 0.0  ;;  %v712_v26 = vmul.f32 0.01, %v648_v18  ;;  %v661_v29 = vadd.f32 %v1062_v35, %v617_v19  ;;  %v663_v30 = vadd.f32 %v1062_v35, %v619_v20 }
  0xf0   :  { %v618_v31 = vmul.f32 %v1046_v15, %v450_v23  ;;  %v620_v32 = vmul.f32 %v1046_v15, %v493_v24  ;;  %v742_v33 = vsel %vm678_vm4, %v646_v17, %v710_v25  ;;  %v530_v36 = vadd.f32 %v529_v12, %v1038_v9 }
  0xf1   :  { %v744_v34 = vsel %vm680_vm5, %v648_v18, %v712_v26  ;;  %v573_v37 = vadd.f32 %v572_v13, %v1038_v9  ;;  %774 = vst [vmem:[%s1247_s5 + $0x48] sm:$0xff] %v742_v33  ;;  %vm693_vm6 = vcmp.ge.f32.partialorder %v661_v29, 0.0  ;;  %v725_v38 = vmul.f32 0.01, %v661_v29 }
  0xf2   :  { %776 = vst [vmem:[%s1247_s5 + $0x58] sm:$0xff] %v744_v34  ;;  %vm695_vm7 = vcmp.ge.f32.partialorder %v663_v30, 0.0  ;;  %v727_v39 = vmul.f32 0.01, %v663_v30  ;;  %v662_v40 = vadd.f32 %v1062_v35, %v618_v31  ;;  %v664_v41 = vadd.f32 %v1062_v35, %v620_v32 }
  0xf3   :  { %v605_v42 = vmul.f32 %v1040_v10, %v530_v36  ;;  %v607_v43 = vmul.f32 %v1040_v10, %v573_v37  ;;  %v757_v46 = vsel %vm693_vm6, %v661_v29, %v725_v38  ;;  %v532_v48 = vadd.f32 %v531_v27, %v1038_v9 }
  0xf4   :  { %v759_v47 = vsel %vm695_vm7, %v663_v30, %v727_v39  ;;  %v575_v49 = vadd.f32 %v574_v28, %v1038_v9  ;;  %789 = vst [vmem:[%s1247_s5 + $0xc0] sm:$0xff] %v757_v46  ;;  %vm694_vm8 = vcmp.ge.f32.partialorder %v662_v40, 0.0  ;;  %v726_v50 = vmul.f32 0.01, %v662_v40 }
  0xf5   :  { %791 = vst [vmem:[%s1247_s5 + $0xd0] sm:$0xff] %v759_v47  ;;  %vm696_vm9 = vcmp.ge.f32.partialorder %v664_v41, 0.0  ;;  %v728_v51 = vmul.f32 0.01, %v664_v41  ;;  %v649_v52 = vadd.f32 %v1048_v16, %v605_v42  ;;  %v651_v53 = vadd.f32 %v1048_v16, %v607_v43 }
  0xf6   :  { %v606_v54 = vmul.f32 %v1040_v10, %v532_v48  ;;  %v608_v9 = vmul.f32 %v1040_v10, %v575_v49  ;;  %v758_v55 = vsel %vm694_vm8, %v662_v40, %v726_v50  ;;  %v534_v57 = vadd.f32 %v533_v44, %v1042_v11 }
  0xf7   :  { %v760_v56 = vsel %vm696_vm9, %v664_v41, %v728_v51  ;;  %v577_v58 = vadd.f32 %v576_v45, %v1042_v11  ;;  %790 = vst [vmem:[%s1247_s5 + $0xc8] sm:$0xff] %v758_v55  ;;  %vm681_vm10 = vcmp.ge.f32.partialorder %v649_v52, 0.0  ;;  %v713_v61 = vmul.f32 0.01, %v649_v52 }
  0xf8   :  { %792 = vst [vmem:[%s1247_s5 + $0xd8] sm:$0xff] %v760_v56  ;;  %vm683_vm11 = vcmp.ge.f32.partialorder %v651_v53, 0.0  ;;  %v715_v10 = vmul.f32 0.01, %v651_v53  ;;  %v650_v62 = vadd.f32 %v1048_v16, %v606_v54  ;;  %v652_v63 = vadd.f32 %v1048_v16, %v608_v9 }
  0xf9   :  { %v621_v0 = vmul.f32 %v1046_v15, %v534_v57  ;;  %v623_v1 = vmul.f32 %v1046_v15, %v577_v58  ;;  %v745_v2 = vsel %vm681_vm10, %v649_v52, %v713_v61  ;;  %v536_v5 = vadd.f32 %v535_v59, %v1042_v11 }
  0xfa   :  { %v747_v4 = vsel %vm683_vm11, %v651_v53, %v715_v10  ;;  %v579_v6 = vadd.f32 %v578_v60, %v1042_v11  ;;  %777 = vst [vmem:[%s1247_s5 + $0x60] sm:$0xff] %v745_v2  ;;  %vm682_vm12 = vcmp.ge.f32.partialorder %v650_v62, 0.0  ;;  %v714_v16 = vmul.f32 0.01, %v650_v62 }
  0xfb   :  { %779 = vst [vmem:[%s1247_s5 + $0x70] sm:$0xff] %v747_v4  ;;  %vm684_vm13 = vcmp.ge.f32.partialorder %v652_v63, 0.0  ;;  %v716_v7 = vmul.f32 0.01, %v652_v63  ;;  %v665_v8 = vadd.f32 %v1062_v35, %v621_v0  ;;  %v667_v12 = vadd.f32 %v1062_v35, %v623_v1 }
  0xfc   :  { %v622_v13 = vmul.f32 %v1046_v15, %v536_v5  ;;  %v624_v11 = vmul.f32 %v1046_v15, %v579_v6  ;;  %v746_v14 = vsel %vm682_vm12, %v650_v62, %v714_v16 }
  0xfd   :  { %v748_v3 = vsel %vm684_vm13, %v652_v63, %v716_v7  ;;  %778 = vst [vmem:[%s1247_s5 + $0x68] sm:$0xff] %v746_v14  ;;  %vm697_vm14 = vcmp.ge.f32.partialorder %v665_v8, 0.0  ;;  %v729_v17 = vmul.f32 0.01, %v665_v8  ;;  %vm699_vm15 = vcmp.ge.f32.partialorder %v667_v12, 0.0 }
  0xfe   :  { %780 = vst [vmem:[%s1247_s5 + $0x78] sm:$0xff] %v748_v3  ;;  %v731_v18 = vmul.f32 0.01, %v667_v12  ;;  %v666_v19 = vadd.f32 %v1062_v35, %v622_v13  ;;  %v668_v20 = vadd.f32 %v1062_v35, %v624_v11 }
  0xff   :  { %v761_v21 = vsel %vm697_vm14, %v665_v8, %v729_v17 }
 0x100   :  { %v763_v15 = vsel %vm699_vm15, %v667_v12, %v731_v18  ;;  %793 = vst [vmem:[%s1247_s5 + $0xe0] sm:$0xff] %v761_v21  ;;  %vm698_vm0 = vcmp.ge.f32.partialorder %v666_v19, 0.0  ;;  %v730_v22 = vmul.f32 0.01, %v666_v19  ;;  %vm700_vm1 = vcmp.ge.f32.partialorder %v668_v20, 0.0 }
 0x101   :  { %795 = vst [vmem:[%s1247_s5 + $0xf0] sm:$0xff] %v763_v15  ;;  %v732_v23 = vmul.f32 0.01, %v668_v20 }
 0x102   :  { %v762_v24 = vsel %vm698_vm0, %v666_v19, %v730_v22 }
 0x103   :  { %v764_v25 = vsel %vm700_vm1, %v668_v20, %v732_v23  ;;  %794 = vst [vmem:[%s1247_s5 + $0xe8] sm:$0xff] %v762_v24 }
 0x104   :  { %796 = vst [vmem:[%s1247_s5 + $0xf8] sm:$0xff] %v764_v25 }

// kernel: enhancement_forward.21
= control target key start
LH: loop header
LB: loop body
LE: loop exit
PB: predicated region body
PF: predicated region fallthrough
CT: control target
= control target key end

     0   :  { %v1028_v3 = vmov 0   ;;  %vm620_vm0 = vcmask 523264   ;;  %s1495_s1 = inlined_call_operand.vmem [shape: bf16[192,1024], index: 1, kind: input, shape index: {}]   ;;  %s1496_s0 = inlined_call_operand.vmem [shape: bf16[16,192], index: 0, kind: input, shape index: {}]   ;;  %s1497_s2 = inlined_call_operand.vmem [shape: f32[16,1], index: 2, kind: input, shape index: {}]   ;;  %s1498_s3 = inlined_call_operand.vmem [shape: f32[16,1], index: 3, kind: input, shape index: {}]   ;;  %s1499_s4 = inlined_call_operand.vmem [shape: f32[16,1], index: 4, kind: input, shape index: {}]   ;;  %s1500_s5 = inlined_call_operand.vmem [shape: f32[16,1024], index: 5, kind: output, shape index: {}]  }
   0x1   :  { %v79_v0 = vld [vmem:[%s1495_s1 + $0x1c0] sm:$0xff]  ;;  %v80_v2 = vld [vmem:[%s1495_s1 + $0x1c8] sm:$0xff]  ;;  %1023 = vset.pattern.permute.xlu0 %v1028_v3  ;;  %1024 = vset.pattern.permute.xlu1 %v1028_v3 }
   0x2   :  { %v83_v1 = vld [vmem:[%s1495_s1 + $0x1e0] sm:$0xff]  ;;  %v84_v5 = vld [vmem:[%s1495_s1 + $0x1e8] sm:$0xff] }
   0x3   :  { %v979_v4 = vcombine.high %v79_v0, %v83_v1  ;;  %v978_v6 = vcombine.low %v79_v0, %v83_v1  ;;  %v71_v7 = vld [vmem:[%s1495_s1 + $0x180] sm:$0xff]  ;;  %v981_v9 = vcombine.high %v80_v2, %v84_v5  ;;  %v980_v10 = vcombine.low %v80_v2, %v84_v5  ;;  %v72_v12 = vld [vmem:[%s1495_s1 + $0x188] sm:$0xff] }
   0x4   :  { %v75_v8 = vld [vmem:[%s1495_s1 + $0x1a0] sm:$0xff]  ;;  %v76_v13 = vld [vmem:[%s1495_s1 + $0x1a8] sm:$0xff] }
   0x5   :  { %v971_v11 = vcombine.high %v71_v7, %v75_v8  ;;  %v63_v14 = vld [vmem:[%s1495_s1 + $0x140] sm:$0xff]  ;;  %624 = vmatprep.subr.bf16.mxu0 %v979_v4  ;;  %v973_v15 = vcombine.high %v72_v12, %v76_v13  ;;  %v64_v17 = vld [vmem:[%s1495_s1 + $0x148] sm:$0xff]  ;;  %667 = vmatprep.subr.bf16.mxu1 %v981_v9  ;;  %v970_v19 = vcombine.low %v71_v7, %v75_v8 }
   0x6   :  { %v67_v16 = vld [vmem:[%s1495_s1 + $0x160] sm:$0xff]  ;;  %v68_v18 = vld [vmem:[%s1495_s1 + $0x168] sm:$0xff]  ;;  %625 = vmatpush1.bf16.msra.mxu0 %v978_v6  ;;  %668 = vmatpush1.bf16.msra.mxu1 %v980_v10  ;;  %v972_v20 = vcombine.low %v72_v12, %v76_v13 }
   0x7   :  { %626 = vmatprep.subr.bf16.mxu0 %v971_v11  ;;  %v963_v21 = vcombine.high %v63_v14, %v67_v16  ;;  %669 = vmatprep.subr.bf16.mxu1 %v973_v15  ;;  %v965_v22 = vcombine.high %v64_v17, %v68_v18  ;;  %v55_v23 = vld [vmem:[%s1495_s1 + $0x100] sm:$0xff]  ;;  %v56_v25 = vld [vmem:[%s1495_s1 + $0x108] sm:$0xff]  ;;  %v962_v27 = vcombine.low %v63_v14, %v67_v16 }
   0x8   :  { %v59_v24 = vld [vmem:[%s1495_s1 + $0x120] sm:$0xff]  ;;  %v60_v26 = vld [vmem:[%s1495_s1 + $0x128] sm:$0xff]  ;;  %v964_v28 = vcombine.low %v64_v17, %v68_v18 }
   0x9   :  { %v955_v29 = vcombine.high %v55_v23, %v59_v24  ;;  %v957_v30 = vcombine.high %v56_v25, %v60_v26  ;;  %v47_v31 = vld [vmem:[%s1495_s1 + $0xc0] sm:$0xff]  ;;  %v48_v33 = vld [vmem:[%s1495_s1 + $0xc8] sm:$0xff]  ;;  %v954_v35 = vcombine.low %v55_v23, %v59_v24  ;;  %v956_v36 = vcombine.low %v56_v25, %v60_v26 }
   0xa   :  { %627 = vmatpush1.bf16.msra.mxu0 %v970_v19  ;;  %670 = vmatpush1.bf16.msra.mxu1 %v972_v20  ;;  %v51_v32 = vld [vmem:[%s1495_s1 + $0xe0] sm:$0xff]  ;;  %v52_v34 = vld [vmem:[%s1495_s1 + $0xe8] sm:$0xff] }
   0xb   :  { %628 = vmatprep.subr.bf16.mxu0 %v963_v21  ;;  %671 = vmatprep.subr.bf16.mxu1 %v965_v22  ;;  %v947_v37 = vcombine.high %v47_v31, %v51_v32  ;;  %v949_v38 = vcombine.high %v48_v33, %v52_v34  ;;  %v39_v39 = vld [vmem:[%s1495_s1 + $0x80] sm:$0xff]  ;;  %v40_v41 = vld [vmem:[%s1495_s1 + $0x88] sm:$0xff]  ;;  %v946_v43 = vcombine.low %v47_v31, %v51_v32 }
   0xc   :  { %v43_v40 = vld [vmem:[%s1495_s1 + $0xa0] sm:$0xff]  ;;  %v44_v42 = vld [vmem:[%s1495_s1 + $0xa8] sm:$0xff]  ;;  %v948_v45 = vcombine.low %v48_v33, %v52_v34 }
   0xd   :  { %v1134_v44 = vld [vmem:[%s1496_s0 + $0x4] ss:$8 sps:$4 sm:$0xff]   ;;  %v939_v46 = vcombine.high %v39_v39, %v43_v40  ;;  %v941_v47 = vcombine.high %v40_v41, %v44_v42  ;;  %v938_v52 = vcombine.low %v39_v39, %v43_v40  ;;  %v940_v53 = vcombine.low %v40_v41, %v44_v42  ;;  %v85_v39 = vld [vmem:[%s1495_s1 + $0x1f0] sm:$0xff]  ;;  %v82_v40 = vld [vmem:[%s1495_s1 + $0x1d8] sm:$0xff] }
   0xe   :  { %629 = vmatpush1.bf16.msra.mxu0 %v962_v27  ;;  %672 = vmatpush1.bf16.msra.mxu1 %v964_v28  ;;  %v31_v48 = vld [vmem:[%s1495_s1 + $0x40] sm:$0xff]  ;;  %v32_v50 = vld [vmem:[%s1495_s1 + $0x48] sm:$0xff]  ;;  %v86_v41 = vld [vmem:[%s1495_s1 + $0x1f8] sm:$0xff] }
   0xf   :  { %630 = vmatprep.subr.bf16.mxu0 %v955_v29  ;;  %673 = vmatprep.subr.bf16.mxu1 %v957_v30  ;;  %v35_v49 = vld [vmem:[%s1495_s1 + $0x60] sm:$0xff]  ;;  %v36_v51 = vld [vmem:[%s1495_s1 + $0x68] sm:$0xff] }
  0x10   :  { %1018 = vmatprep.mubr.msk.bf16.mxu0 %vm620_vm0, %v1134_v44  ;;  %1019 = vmatprep.mubr.msk.bf16.mxu1 %vm620_vm0, %v1134_v44  ;;  %v931_v54 = vcombine.high %v31_v48, %v35_v49  ;;  %v933_v55 = vcombine.high %v32_v50, %v36_v51  ;;  %v23_v56 = vld [vmem:[%s1495_s1] sm:$0xff]  ;;  %v24_v58 = vld [vmem:[%s1495_s1 + $0x8] sm:$0xff]  ;;  %v930_v60 = vcombine.low %v31_v48, %v35_v49  ;;  %v77_v48 = vld [vmem:[%s1495_s1 + $0x1b0] sm:$0xff] }
  0x11   :  { %v27_v57 = vld [vmem:[%s1495_s1 + $0x20] sm:$0xff]  ;;  %v28_v59 = vld [vmem:[%s1495_s1 + $0x28] sm:$0xff]  ;;  %v932_v61 = vcombine.low %v32_v50, %v36_v51  ;;  %v74_v50 = vld [vmem:[%s1495_s1 + $0x198] sm:$0xff] }
  0x12   :  { %631 = vmatpush1.bf16.msra.mxu0 %v954_v35  ;;  %674 = vmatpush1.bf16.msra.mxu1 %v956_v36  ;;  %v923_v62 = vcombine.high %v23_v56, %v27_v57  ;;  %v925_v63 = vcombine.high %v24_v58, %v28_v59  ;;  %v111_v0 = vld [vmem:[%s1495_s1 + $0x2c0] sm:$0xff]  ;;  %v112_v2 = vld [vmem:[%s1495_s1 + $0x2c8] sm:$0xff]  ;;  %v922_v4 = vcombine.low %v23_v56, %v27_v57  ;;  %v78_v51 = vld [vmem:[%s1495_s1 + $0x1b8] sm:$0xff] }
  0x13   :  { %632 = vmatprep.subr.bf16.mxu0 %v947_v37  ;;  %675 = vmatprep.subr.bf16.mxu1 %v949_v38  ;;  %v115_v1 = vld [vmem:[%s1495_s1 + $0x2e0] sm:$0xff]  ;;  %v116_v3 = vld [vmem:[%s1495_s1 + $0x2e8] sm:$0xff]  ;;  %v924_v5 = vcombine.low %v24_v58, %v28_v59  ;;  %v81_v38 = vld [vmem:[%s1495_s1 + $0x1d0] sm:$0xff] }
  0x14   :  { %v1011_v6 = vcombine.high %v111_v0, %v115_v1  ;;  %v1013_v7 = vcombine.high %v112_v2, %v116_v3  ;;  %v103_v8 = vld [vmem:[%s1495_s1 + $0x280] sm:$0xff]  ;;  %v104_v10 = vld [vmem:[%s1495_s1 + $0x288] sm:$0xff]  ;;  %v1010_v12 = vcombine.low %v111_v0, %v115_v1  ;;  %v1012_v13 = vcombine.low %v112_v2, %v116_v3  ;;  %v65_v56 = vld [vmem:[%s1495_s1 + $0x150] sm:$0xff] }
  0x15   :  { %v107_v9 = vld [vmem:[%s1495_s1 + $0x2a0] sm:$0xff]  ;;  %v108_v11 = vld [vmem:[%s1495_s1 + $0x2a8] sm:$0xff]  ;;  %v69_v57 = vld [vmem:[%s1495_s1 + $0x170] sm:$0xff] }
  0x16   :  { %633 = vmatpush1.bf16.msra.mxu0 %v946_v43  ;;  %676 = vmatpush1.bf16.msra.mxu1 %v948_v45  ;;  %v1003_v14 = vcombine.high %v103_v8, %v107_v9  ;;  %v119_v15 = vld [vmem:[%s1497_s2] sm:$0xff]  ;;  %v1005_v17 = vcombine.high %v104_v10, %v108_v11  ;;  %v96_v20 = vld [vmem:[%s1495_s1 + $0x248] sm:$0xff]  ;;  %v1002_v23 = vcombine.low %v103_v8, %v107_v9  ;;  %v66_v58 = vld [vmem:[%s1495_s1 + $0x158] sm:$0xff] }
  0x17   :  { %634 = vmatprep.subr.bf16.mxu0 %v939_v46  ;;  %677 = vmatprep.subr.bf16.mxu1 %v941_v47  ;;  %v796_v16 = vld [vmem:[%s1498_s3] sm:$0xff]  ;;  %v100_v21 = vld [vmem:[%s1495_s1 + $0x268] sm:$0xff]  ;;  %v1004_v25 = vcombine.low %v104_v10, %v108_v11  ;;  %v983_v45 = vcombine.high %v81_v38, %v85_v39  ;;  %v985_v46 = vcombine.high %v82_v40, %v86_v41  ;;  %v73_v47 = vld [vmem:[%s1495_s1 + $0x190] sm:$0xff] }
  0x18   :  { %v95_v18 = vld [vmem:[%s1495_s1 + $0x240] sm:$0xff]  ;;  %123 = vperm.xlu0 %1023, %v119_v15   ;;  %800 = vperm.xlu1 %1024, %v796_v16   ;;  %v120_v22 = vld [vmem:[%s1497_s2 + $0x8] sm:$0xff]  ;;  %v997_v27 = vcombine.high %v96_v20, %v100_v21  ;;  %v996_v35 = vcombine.low %v96_v20, %v100_v21  ;;  %v70_v59 = vld [vmem:[%s1495_s1 + $0x178] sm:$0xff] }
  0x19   :  { %v99_v19 = vld [vmem:[%s1495_s1 + $0x260] sm:$0xff]  ;;  %v797_v24 = vld [vmem:[%s1498_s3 + $0x8] sm:$0xff]  ;;  %v57_v0 = vld [vmem:[%s1495_s1 + $0x110] sm:$0xff] }
  0x1a   :  { %635 = vmatpush1.bf16.msra.mxu0 %v938_v52  ;;  %678 = vmatpush1.bf16.msra.mxu1 %v940_v53  ;;  %v995_v26 = vcombine.high %v95_v18, %v99_v19  ;;  %v87_v28 = vld [vmem:[%s1495_s1 + $0x200] sm:$0xff]  ;;  %v88_v30 = vld [vmem:[%s1495_s1 + $0x208] sm:$0xff]  ;;  %v994_v33 = vcombine.low %v95_v18, %v99_v19  ;;  %v982_v52 = vcombine.low %v81_v38, %v85_v39  ;;  %v61_v1 = vld [vmem:[%s1495_s1 + $0x130] sm:$0xff] }
  0x1b   :  { %636 = vmatprep.subr.bf16.mxu0 %v931_v54  ;;  %679 = vmatprep.subr.bf16.mxu1 %v933_v55  ;;  %v91_v29 = vld [vmem:[%s1495_s1 + $0x220] sm:$0xff]  ;;  %v92_v31 = vld [vmem:[%s1495_s1 + $0x228] sm:$0xff]  ;;  %v984_v53 = vcombine.low %v82_v40, %v86_v41  ;;  %v975_v54 = vcombine.high %v73_v47, %v77_v48  ;;  %v977_v55 = vcombine.high %v74_v50, %v78_v51  ;;  %v58_v2 = vld [vmem:[%s1495_s1 + $0x118] sm:$0xff] }
  0x1c   :  { %128 = vperm.xlu0 %1023, %v120_v22   ;;  %805 = vperm.xlu1 %1024, %v797_v24   ;;  %v824_v32 = vld [vmem:[%s1499_s4] sm:$0xff]  ;;  %v825_v34 = vld [vmem:[%s1499_s4 + $0x8] sm:$0xff]  ;;  %v987_v36 = vcombine.high %v87_v28, %v91_v29  ;;  %v989_v37 = vcombine.high %v88_v30, %v92_v31  ;;  %v986_v42 = vcombine.low %v87_v28, %v91_v29  ;;  %v62_v3 = vld [vmem:[%s1495_s1 + $0x138] sm:$0xff] }
  0x1d   :  { %v988_v43 = vcombine.low %v88_v30, %v92_v31  ;;  %v1251_v49 = vld [vmem:[%s1496_s0] ss:$8 sps:$4 sm:$0xff]   ;;  %v49_v8 = vld [vmem:[%s1495_s1 + $0xd0] sm:$0xff]  ;;  %v54_v10 = vld [vmem:[%s1495_s1 + $0xf8] sm:$0xff]  ;;  %v958_v11 = vcombine.low %v57_v0, %v61_v1 }
  0x1e   :  { %637 = vmatpush1.bf16.msra.mxu0 %v930_v60  ;;  %680 = vmatpush1.bf16.msra.mxu1 %v932_v61  ;;  %v974_v60 = vcombine.low %v73_v47, %v77_v48  ;;  %v976_v61 = vcombine.low %v74_v50, %v78_v51  ;;  %v53_v9 = vld [vmem:[%s1495_s1 + $0xf0] sm:$0xff]  ;;  %v46_v18 = vld [vmem:[%s1495_s1 + $0xb8] sm:$0xff] }
  0x1f   :  { %638 = vmatprep.subr.bf16.mxu0 %v923_v62  ;;  %681 = vmatprep.subr.bf16.mxu1 %v925_v63  ;;  %v967_v62 = vcombine.high %v65_v56, %v69_v57  ;;  %v969_v63 = vcombine.high %v66_v58, %v70_v59  ;;  %v41_v15 = vld [vmem:[%s1495_s1 + $0x90] sm:$0xff]  ;;  %v950_v19 = vcombine.low %v49_v8, %v53_v9  ;;  %v114_v41 = vld [vmem:[%s1495_s1 + $0x2d8] sm:$0xff] }
  0x20   :  { %828 = vperm.xlu0 %1023, %v824_v32   ;;  %833 = vperm.xlu1 %1024, %v825_v34   ;;  %v45_v16 = vld [vmem:[%s1495_s1 + $0xb0] sm:$0xff]  ;;  %v30_v34 = vld [vmem:[%s1495_s1 + $0x38] sm:$0xff] }
  0x21   :  { %v943_v21 = vcombine.high %v41_v15, %v45_v16  ;;  %v37_v24 = vld [vmem:[%s1495_s1 + $0x70] sm:$0xff]  ;;  %v106_v51 = vld [vmem:[%s1495_s1 + $0x298] sm:$0xff] }
  0x22   :  { %639 = vmatpush1.bf16.msra.mxu0 %v922_v4  ;;  %682 = vmatpush1.bf16.msra.mxu1 %v924_v5  ;;  %v966_v4 = vcombine.low %v65_v56, %v69_v57  ;;  %v968_v5 = vcombine.low %v66_v58, %v70_v59  ;;  %v25_v31 = vld [vmem:[%s1495_s1 + $0x10] sm:$0xff]  ;;  %v98_v59 = vld [vmem:[%s1495_s1 + $0x258] sm:$0xff] }
  0x23   :  { %648 = vmatprep.subr.bf16.mxu0 %v1011_v6  ;;  %691 = vmatprep.subr.bf16.mxu1 %v1013_v7  ;;  %v959_v6 = vcombine.high %v57_v0, %v61_v1  ;;  %v961_v7 = vcombine.high %v58_v2, %v62_v3  ;;  %v29_v32 = vld [vmem:[%s1495_s1 + $0x30] sm:$0xff] }
  0x24   :  { %v113_v39 = vld [vmem:[%s1495_s1 + $0x2d0] sm:$0xff] }
  0x25   :  { %v117_v40 = vld [vmem:[%s1495_s1 + $0x2f0] sm:$0xff] }
  0x26   :  { %649 = vmatpush2.bf16.msra.mxu0 %v1010_v12  ;;  %692 = vmatpush2.bf16.msra.mxu1 %v1012_v13  ;;  %v960_v12 = vcombine.low %v58_v2, %v62_v3  ;;  %v951_v13 = vcombine.high %v49_v8, %v53_v9  ;;  %v105_v48 = vld [vmem:[%s1495_s1 + $0x290] sm:$0xff]  ;;  %v90_v3 = vld [vmem:[%s1495_s1 + $0x218] sm:$0xff] }
  0x27   :  { %650 = vmatprep.subr.bf16.mxu0 %v1003_v14  ;;  %693 = vmatprep.subr.bf16.mxu1 %v1005_v17  ;;  %v42_v17 = vld [vmem:[%s1495_s1 + $0x98] sm:$0xff]  ;;  %v109_v50 = vld [vmem:[%s1495_s1 + $0x2b0] sm:$0xff] }
  0x28   :  { %v945_v22 = vcombine.high %v42_v17, %v46_v18  ;;  %v944_v28 = vcombine.low %v42_v17, %v46_v18  ;;  %v97_v57 = vld [vmem:[%s1495_s1 + $0x250] sm:$0xff] }
  0x29   :  { %v101_v58 = vld [vmem:[%s1495_s1 + $0x270] sm:$0xff] }
  0x2a   :  { %651 = vmatpush2.bf16.msra.mxu0 %v1002_v23  ;;  %694 = vmatpush2.bf16.msra.mxu1 %v1004_v25  ;;  %v33_v23 = vld [vmem:[%s1495_s1 + $0x50] sm:$0xff]  ;;  %v34_v25 = vld [vmem:[%s1495_s1 + $0x58] sm:$0xff] }
  0x2b   :  { %652 = vmatprep.subr.bf16.mxu0 %v995_v26  ;;  %695 = vmatprep.subr.bf16.mxu1 %v997_v27  ;;  %v38_v26 = vld [vmem:[%s1495_s1 + $0x78] sm:$0xff]  ;;  %v942_v27 = vcombine.low %v41_v15, %v45_v16  ;;  %v935_v29 = vcombine.high %v33_v23, %v37_v24  ;;  %v89_v1 = vld [vmem:[%s1495_s1 + $0x210] sm:$0xff] }
  0x2c   :  { %v937_v30 = vcombine.high %v34_v25, %v38_v26  ;;  %v93_v2 = vld [vmem:[%s1495_s1 + $0x230] sm:$0xff] }
  0x2d   :  { %v990_v9 = vcombine.low %v89_v1, %v93_v2 }
  0x2e   :  { %653 = vmatpush2.bf16.msra.mxu0 %v994_v33  ;;  %696 = vmatpush2.bf16.msra.mxu1 %v996_v35  ;;  %v26_v33 = vld [vmem:[%s1495_s1 + $0x18] sm:$0xff]  ;;  %v934_v35 = vcombine.low %v33_v23, %v37_v24 }
  0x2f   :  { %654 = vmatprep.subr.bf16.mxu0 %v987_v36  ;;  %697 = vmatprep.subr.bf16.mxu1 %v989_v37  ;;  %v936_v36 = vcombine.low %v34_v25, %v38_v26  ;;  %v927_v37 = vcombine.high %v25_v31, %v29_v32  ;;  %v929_v38 = vcombine.high %v26_v33, %v30_v34 }
  0x32   :  { %655 = vmatpush2.bf16.msra.mxu0 %v986_v42  ;;  %698 = vmatpush2.bf16.msra.mxu1 %v988_v43  ;;  %v118_v42 = vld [vmem:[%s1495_s1 + $0x2f8] sm:$0xff]  ;;  %v926_v43 = vcombine.low %v25_v31, %v29_v32 }
  0x33   :  { %710 = vmatprep.subr.bf16.mxu0 %v983_v45  ;;  %753 = vmatprep.subr.bf16.mxu1 %v985_v46  ;;  %v928_v45 = vcombine.low %v26_v33, %v30_v34  ;;  %v1015_v46 = vcombine.high %v113_v39, %v117_v40  ;;  %v1017_v47 = vcombine.high %v114_v41, %v118_v42 }
  0x35   :  { %657 = vmatmul.mubr.bf16.vlgmr.msra.gmra.mxu0 %v1251_v49  ;;  %700 = vmatmul.mubr.bf16.vlgmr.msra.gmra.mxu1 %v1251_v49 }
  0x36   :  { %711 = vmatpush1.bf16.msra.mxu0 %v982_v52  ;;  %754 = vmatpush1.bf16.msra.mxu1 %v984_v53  ;;  %v110_v52 = vld [vmem:[%s1495_s1 + $0x2b8] sm:$0xff]  ;;  %v1014_v53 = vcombine.low %v113_v39, %v117_v40 }
  0x37   :  { %712 = vmatprep.subr.bf16.mxu0 %v975_v54  ;;  %755 = vmatprep.subr.bf16.mxu1 %v977_v55  ;;  %v1016_v54 = vcombine.low %v114_v41, %v118_v42  ;;  %v1007_v55 = vcombine.high %v105_v48, %v109_v50  ;;  %v1009_v56 = vcombine.high %v106_v51, %v110_v52 }
  0x38   :  { %1020 = vmatprep.mubr.msk.bf16.mxu0 %vm620_vm0, %v1134_v44  ;;  %1021 = vmatprep.mubr.msk.bf16.mxu1 %vm620_vm0, %v1134_v44  ;;  %v50_v44 = vld [vmem:[%s1495_s1 + $0xd8] sm:$0xff] }
  0x39   :  { %v953_v14 = vcombine.high %v50_v44, %v54_v10  ;;  %v952_v20 = vcombine.low %v50_v44, %v54_v10 }
  0x3a   :  { %713 = vmatpush1.bf16.msra.mxu0 %v974_v60  ;;  %756 = vmatpush1.bf16.msra.mxu1 %v976_v61  ;;  %v102_v60 = vld [vmem:[%s1495_s1 + $0x278] sm:$0xff]  ;;  %v1006_v61 = vcombine.low %v105_v48, %v109_v50 }
  0x3b   :  { %714 = vmatprep.subr.bf16.mxu0 %v967_v62  ;;  %757 = vmatprep.subr.bf16.mxu1 %v969_v63  ;;  %v1008_v62 = vcombine.low %v106_v51, %v110_v52  ;;  %v999_v63 = vcombine.high %v97_v57, %v101_v58  ;;  %v1001_v0 = vcombine.high %v98_v59, %v102_v60 }
  0x3e   :  { %715 = vmatpush1.bf16.msra.mxu0 %v966_v4  ;;  %758 = vmatpush1.bf16.msra.mxu1 %v968_v5  ;;  %v94_v4 = vld [vmem:[%s1495_s1 + $0x238] sm:$0xff]  ;;  %v998_v5 = vcombine.low %v97_v57, %v101_v58 }
  0x3f   :  { %716 = vmatprep.subr.bf16.mxu0 %v959_v6  ;;  %759 = vmatprep.subr.bf16.mxu1 %v961_v7  ;;  %v1000_v6 = vcombine.low %v98_v59, %v102_v60  ;;  %v991_v7 = vcombine.high %v89_v1, %v93_v2  ;;  %v993_v8 = vcombine.high %v90_v3, %v94_v4 }
  0x40   :  { %v992_v44 = vcombine.low %v90_v3, %v94_v4 }
  0x42   :  { %717 = vmatpush1.bf16.msra.mxu0 %v958_v11  ;;  %760 = vmatpush1.bf16.msra.mxu1 %v960_v12 }
  0x43   :  { %718 = vmatprep.subr.bf16.mxu0 %v951_v13  ;;  %761 = vmatprep.subr.bf16.mxu1 %v953_v14 }
  0x46   :  { %719 = vmatpush1.bf16.msra.mxu0 %v950_v19  ;;  %762 = vmatpush1.bf16.msra.mxu1 %v952_v20 }
  0x47   :  { %720 = vmatprep.subr.bf16.mxu0 %v943_v21  ;;  %763 = vmatprep.subr.bf16.mxu1 %v945_v22 }
  0x4a   :  { %721 = vmatpush1.bf16.msra.mxu0 %v942_v27  ;;  %764 = vmatpush1.bf16.msra.mxu1 %v944_v28 }
  0x4b   :  { %722 = vmatprep.subr.bf16.mxu0 %v935_v29  ;;  %765 = vmatprep.subr.bf16.mxu1 %v937_v30 }
  0x4e   :  { %723 = vmatpush1.bf16.msra.mxu0 %v934_v35  ;;  %766 = vmatpush1.bf16.msra.mxu1 %v936_v36 }
  0x4f   :  { %724 = vmatprep.subr.bf16.mxu0 %v927_v37  ;;  %767 = vmatprep.subr.bf16.mxu1 %v929_v38 }
  0x52   :  { %725 = vmatpush1.bf16.msra.mxu0 %v926_v43  ;;  %768 = vmatpush1.bf16.msra.mxu1 %v928_v45 }
  0x53   :  { %734 = vmatprep.subr.bf16.mxu0 %v1015_v46  ;;  %777 = vmatprep.subr.bf16.mxu1 %v1017_v47 }
  0x56   :  { %735 = vmatpush2.bf16.msra.mxu0 %v1014_v53  ;;  %778 = vmatpush2.bf16.msra.mxu1 %v1016_v54 }
  0x57   :  { %736 = vmatprep.subr.bf16.mxu0 %v1007_v55  ;;  %779 = vmatprep.subr.bf16.mxu1 %v1009_v56 }
  0x5a   :  { %737 = vmatpush2.bf16.msra.mxu0 %v1006_v61  ;;  %780 = vmatpush2.bf16.msra.mxu1 %v1008_v62 }
  0x5b   :  { %738 = vmatprep.subr.bf16.mxu0 %v999_v63  ;;  %781 = vmatprep.subr.bf16.mxu1 %v1001_v0 }
  0x5e   :  { %739 = vmatpush2.bf16.msra.mxu0 %v998_v5  ;;  %782 = vmatpush2.bf16.msra.mxu1 %v1000_v6 }
  0x5f   :  { %740 = vmatprep.subr.bf16.mxu0 %v991_v7  ;;  %783 = vmatprep.subr.bf16.mxu1 %v993_v8 }
  0x62   :  { %741 = vmatpush2.bf16.msra.mxu0 %v990_v9  ;;  %784 = vmatpush2.bf16.msra.mxu1 %v992_v44 }
  0x65   :  { %743 = vmatmul.mubr.bf16.vlgmr.msra.gmra.mxu0 %v1251_v49  ;;  %786 = vmatmul.mubr.bf16.vlgmr.msra.gmra.mxu1 %v1251_v49 }
  0x93   :  { %v1387_v10 = vpop.permute.xlu0 %123  ;;  %v1389_v11 = vpop.permute.xlu1 %800 }
  0x97   :  { %v1391_v12 = vpop.permute.xlu0 %128  ;;  %v1394_v16 = vpop.permute.xlu1 %805 }
  0x9b   :  { %v1397_v19 = vpop.permute.xlu0 %828  ;;  %v1413_v40 = vpop.permute.xlu1 %833 }
  0xf5   :  { %v658_v13 = vpop.f32.mrf.mxu0  ;;  %v701_v15 = vpop.f32.mrf.mxu1 }
  0xf6   :  { %v659_v14 = vadd.f32 %v658_v13, %v1387_v10  ;;  %v702_v17 = vadd.f32 %v701_v15, %v1387_v10 }
  0xf7   :  { %v660_v18 = vpop.f32.mrf.mxu0  ;;  %v703_v21 = vpop.f32.mrf.mxu1 }
  0xf8   :  { %v808_v20 = vmul.f32 %v1389_v11, %v659_v14  ;;  %v661_v49 = vadd.f32 %v660_v18, %v1387_v10  ;;  %v810_v22 = vmul.f32 %v1389_v11, %v702_v17  ;;  %v704_v23 = vadd.f32 %v703_v21, %v1387_v10 }
  0xf9   :  { %v662_v24 = vpop.f32.mrf.mxu0  ;;  %v705_v28 = vpop.f32.mrf.mxu1 }
  0xfa   :  { %v809_v25 = vmul.f32 %v1389_v11, %v661_v49  ;;  %v836_v26 = vadd.f32 %v1397_v19, %v808_v20  ;;  %v663_v27 = vadd.f32 %v662_v24, %v1391_v12  ;;  %v811_v29 = vmul.f32 %v1389_v11, %v704_v23 }
  0xfb   :  { %v838_v30 = vadd.f32 %v1397_v19, %v810_v22  ;;  %v706_v31 = vadd.f32 %v705_v28, %v1391_v12  ;;  %v664_v32 = vpop.f32.mrf.mxu0  ;;  %v707_v36 = vpop.f32.mrf.mxu1 }
  0xfc   :  { %v837_v33 = vadd.f32 %v1397_v19, %v809_v25  ;;  %vm852_vm1 = vcmp.ge.f32.partialorder %v836_v26, 0.0  ;;  %v868_v34 = vmul.f32 0.01, %v836_v26  ;;  %v816_v35 = vmul.f32 %v1394_v16, %v663_v27 }
  0xfd   :  { %v839_v37 = vadd.f32 %v1397_v19, %v811_v29  ;;  %vm854_vm2 = vcmp.ge.f32.partialorder %v838_v30, 0.0  ;;  %v870_v38 = vmul.f32 0.01, %v838_v30  ;;  %v818_v39 = vmul.f32 %v1394_v16, %v706_v31 }
  0xfe   :  { %vm853_vm3 = vcmp.ge.f32.partialorder %v837_v33, 0.0  ;;  %v869_v41 = vmul.f32 0.01, %v837_v33  ;;  %v884_v42 = vsel %vm852_vm1, %v836_v26, %v868_v34  ;;  %v665_v43 = vadd.f32 %v664_v32, %v1391_v12 }
  0xff   :  { %vm855_vm4 = vcmp.ge.f32.partialorder %v839_v37, 0.0  ;;  %v871_v45 = vmul.f32 0.01, %v839_v37  ;;  %v886_v46 = vsel %vm854_vm2, %v838_v30, %v870_v38  ;;  %900 = vst [vmem:[%s1500_s5] sm:$0xff] %v884_v42  ;;  %v708_v47 = vadd.f32 %v707_v36, %v1391_v12 }
 0x100   :  { %v885_v48 = vsel %vm853_vm3, %v837_v33, %v869_v41  ;;  %902 = vst [vmem:[%s1500_s5 + $0x10] sm:$0xff] %v886_v46  ;;  %v817_v50 = vmul.f32 %v1394_v16, %v665_v43  ;;  %v844_v51 = vadd.f32 %v1413_v40, %v816_v35  ;;  %v846_v52 = vadd.f32 %v1413_v40, %v818_v39 }
 0x101   :  { %v887_v53 = vsel %vm855_vm4, %v839_v37, %v871_v45  ;;  %901 = vst [vmem:[%s1500_s5 + $0x8] sm:$0xff] %v885_v48  ;;  %v819_v54 = vmul.f32 %v1394_v16, %v708_v47 }
 0x102   :  { %903 = vst [vmem:[%s1500_s5 + $0x18] sm:$0xff] %v887_v53  ;;  %v845_v55 = vadd.f32 %v1413_v40, %v817_v50  ;;  %vm860_vm5 = vcmp.ge.f32.partialorder %v844_v51, 0.0  ;;  %vm862_vm6 = vcmp.ge.f32.partialorder %v846_v52, 0.0  ;;  %v876_v56 = vmul.f32 0.01, %v844_v51 }
 0x103   :  { %v847_v57 = vadd.f32 %v1413_v40, %v819_v54  ;;  %v878_v58 = vmul.f32 0.01, %v846_v52 }
 0x104   :  { %vm861_vm7 = vcmp.ge.f32.partialorder %v845_v55, 0.0  ;;  %v877_v59 = vmul.f32 0.01, %v845_v55  ;;  %v892_v60 = vsel %vm860_vm5, %v844_v51, %v876_v56 }
 0x105   :  { %vm863_vm8 = vcmp.ge.f32.partialorder %v847_v57, 0.0  ;;  %v879_v61 = vmul.f32 0.01, %v847_v57  ;;  %v894_v62 = vsel %vm862_vm6, %v846_v52, %v878_v58  ;;  %908 = vst [vmem:[%s1500_s5 + $0x40] sm:$0xff] %v892_v60 }
 0x106   :  { %v893_v63 = vsel %vm861_vm7, %v845_v55, %v877_v59  ;;  %910 = vst [vmem:[%s1500_s5 + $0x50] sm:$0xff] %v894_v62 }
 0x107   :  { %v895_v0 = vsel %vm863_vm8, %v847_v57, %v879_v61  ;;  %909 = vst [vmem:[%s1500_s5 + $0x48] sm:$0xff] %v893_v63 }
 0x108   :  { %911 = vst [vmem:[%s1500_s5 + $0x58] sm:$0xff] %v895_v0 }
 0x125   :  { %v744_v1 = vpop.f32.mrf.mxu0  ;;  %v787_v3 = vpop.f32.mrf.mxu1 }
 0x126   :  { %v745_v2 = vadd.f32 %v744_v1, %v1387_v10  ;;  %v788_v4 = vadd.f32 %v787_v3, %v1387_v10 }
 0x127   :  { %v746_v5 = vpop.f32.mrf.mxu0  ;;  %v789_v8 = vpop.f32.mrf.mxu1 }
 0x128   :  { %v812_v6 = vmul.f32 %v1389_v11, %v745_v2  ;;  %v747_v7 = vadd.f32 %v746_v5, %v1387_v10  ;;  %v814_v9 = vmul.f32 %v1389_v11, %v788_v4  ;;  %v790_v44 = vadd.f32 %v789_v8, %v1387_v10 }
 0x129   :  { %v748_v13 = vpop.f32.mrf.mxu0  ;;  %v791_v18 = vpop.f32.mrf.mxu1 }
 0x12a   :  { %v840_v14 = vadd.f32 %v1397_v19, %v812_v6  ;;  %v813_v15 = vmul.f32 %v1389_v11, %v747_v7  ;;  %v749_v17 = vadd.f32 %v748_v13, %v1391_v12  ;;  %v842_v20 = vadd.f32 %v1397_v19, %v814_v9 }
 0x12b   :  { %v815_v49 = vmul.f32 %v1389_v11, %v790_v44  ;;  %v792_v21 = vadd.f32 %v791_v18, %v1391_v12  ;;  %v750_v27 = vpop.f32.mrf.mxu0  ;;  %v793_v30 = vpop.f32.mrf.mxu1 }
 0x12c   :  { %vm856_vm9 = vcmp.ge.f32.partialorder %v840_v14, 0.0  ;;  %v872_v22 = vmul.f32 0.01, %v840_v14  ;;  %v841_v23 = vadd.f32 %v1397_v19, %v813_v15  ;;  %v820_v10 = vmul.f32 %v1394_v16, %v749_v17 }
 0x12d   :  { %vm858_vm10 = vcmp.ge.f32.partialorder %v842_v20, 0.0  ;;  %v874_v24 = vmul.f32 0.01, %v842_v20  ;;  %v843_v25 = vadd.f32 %v1397_v19, %v815_v49  ;;  %v822_v26 = vmul.f32 %v1394_v16, %v792_v21 }
 0x12e   :  { %v888_v28 = vsel %vm856_vm9, %v840_v14, %v872_v22  ;;  %vm857_vm11 = vcmp.ge.f32.partialorder %v841_v23, 0.0  ;;  %v873_v29 = vmul.f32 0.01, %v841_v23  ;;  %v848_v11 = vadd.f32 %v1413_v40, %v820_v10 }
 0x12f   :  { %904 = vst [vmem:[%s1500_s5 + $0x20] sm:$0xff] %v888_v28  ;;  %v890_v31 = vsel %vm858_vm10, %v842_v20, %v874_v24  ;;  %vm859_vm12 = vcmp.ge.f32.partialorder %v843_v25, 0.0  ;;  %v875_v32 = vmul.f32 0.01, %v843_v25  ;;  %v850_v33 = vadd.f32 %v1413_v40, %v822_v26 }
 0x130   :  { %906 = vst [vmem:[%s1500_s5 + $0x30] sm:$0xff] %v890_v31  ;;  %v889_v19 = vsel %vm857_vm11, %v841_v23, %v873_v29  ;;  %vm864_vm13 = vcmp.ge.f32.partialorder %v848_v11, 0.0  ;;  %v880_v34 = vmul.f32 0.01, %v848_v11  ;;  %v751_v35 = vadd.f32 %v750_v27, %v1391_v12 }
 0x131   :  { %905 = vst [vmem:[%s1500_s5 + $0x28] sm:$0xff] %v889_v19  ;;  %v891_v36 = vsel %vm859_vm12, %v843_v25, %v875_v32  ;;  %vm866_vm14 = vcmp.ge.f32.partialorder %v850_v33, 0.0  ;;  %v882_v37 = vmul.f32 0.01, %v850_v33  ;;  %v794_v38 = vadd.f32 %v793_v30, %v1391_v12 }
 0x132   :  { %907 = vst [vmem:[%s1500_s5 + $0x38] sm:$0xff] %v891_v36  ;;  %v896_v39 = vsel %vm864_vm13, %v848_v11, %v880_v34  ;;  %v821_v41 = vmul.f32 %v1394_v16, %v751_v35 }
 0x133   :  { %912 = vst [vmem:[%s1500_s5 + $0x60] sm:$0xff] %v896_v39  ;;  %v898_v42 = vsel %vm866_vm14, %v850_v33, %v882_v37  ;;  %v823_v43 = vmul.f32 %v1394_v16, %v794_v38 }
 0x134   :  { %914 = vst [vmem:[%s1500_s5 + $0x70] sm:$0xff] %v898_v42  ;;  %v849_v12 = vadd.f32 %v1413_v40, %v821_v41 }
 0x135   :  { %v851_v45 = vadd.f32 %v1413_v40, %v823_v43 }
 0x136   :  { %vm865_vm15 = vcmp.ge.f32.partialorder %v849_v12, 0.0  ;;  %v881_v46 = vmul.f32 0.01, %v849_v12 }
 0x137   :  { %vm867_vm0 = vcmp.ge.f32.partialorder %v851_v45, 0.0  ;;  %v883_v47 = vmul.f32 0.01, %v851_v45 }
 0x138   :  { %v897_v48 = vsel %vm865_vm15, %v849_v12, %v881_v46 }
 0x139   :  { %913 = vst [vmem:[%s1500_s5 + $0x68] sm:$0xff] %v897_v48  ;;  %v899_v50 = vsel %vm867_vm0, %v851_v45, %v883_v47 }
 0x13a   :  { %915 = vst [vmem:[%s1500_s5 + $0x78] sm:$0xff] %v899_v50 }

// kernel: enhancement_forward.22
= control target key start
LH: loop header
LB: loop body
LE: loop exit
PB: predicated region body
PF: predicated region fallthrough
CT: control target
= control target key end

     0   :  { %v628_v1 = vmov 0   ;;  %vm332_vm0 = vcmask 523264   ;;  %s851_s1 = inlined_call_operand.vmem [shape: bf16[192,512], index: 1, kind: input, shape index: {}]   ;;  %s852_s0 = inlined_call_operand.vmem [shape: bf16[16,192], index: 0, kind: input, shape index: {}]   ;;  %s853_s3 = inlined_call_operand.vmem [shape: f32[16,1], index: 3, kind: input, shape index: {}]   ;;  %s854_s2 = inlined_call_operand.vmem [shape: f32[16,1], index: 2, kind: input, shape index: {}]   ;;  %s855_s4 = inlined_call_operand.vmem [shape: f32[16,1], index: 4, kind: input, shape index: {}]   ;;  %s856_s5 = inlined_call_operand.vmem [shape: f32[16,512], index: 5, kind: output, shape index: {}]  }
   0x1   :  { %v553_v0 = vld [vmem:[%s851_s1 + $0xe4] ss:$16 sps:$4 sm:$0xff]   ;;  %552 = vset.pattern.permute.xlu1 %v628_v1  ;;  %551 = vset.pattern.permute.xlu0 %v628_v1  ;;  %v555_v2 = vld [vmem:[%s851_s1 + $0xec] ss:$16 sps:$4 sm:$0xff]   ;;  %v557_v3 = vld [vmem:[%s851_s1 + $0xe0] ss:$16 sps:$4 sm:$0xff]  }
   0x2   :  { %336 = vmatprep.subr.bf16.mxu0 %v553_v0  ;;  %v558_v4 = vld [vmem:[%s851_s1 + $0xe8] ss:$16 sps:$4 sm:$0xff]   ;;  %379 = vmatprep.subr.bf16.mxu1 %v555_v2  ;;  %v559_v5 = vld [vmem:[%s851_s1 + $0xc4] ss:$16 sps:$4 sm:$0xff]   ;;  %v561_v6 = vld [vmem:[%s851_s1 + $0xcc] ss:$16 sps:$4 sm:$0xff]  }
   0x3   :  { %337 = vmatpush1.bf16.msra.mxu0 %v557_v3  ;;  %380 = vmatpush1.bf16.msra.mxu1 %v558_v4  ;;  %v563_v7 = vld [vmem:[%s851_s1 + $0xc0] ss:$16 sps:$4 sm:$0xff]   ;;  %v564_v8 = vld [vmem:[%s851_s1 + $0xc8] ss:$16 sps:$4 sm:$0xff]   ;;  %v565_v9 = vld [vmem:[%s851_s1 + $0xa4] ss:$16 sps:$4 sm:$0xff]  }
   0x4   :  { %338 = vmatprep.subr.bf16.mxu0 %v559_v5  ;;  %381 = vmatprep.subr.bf16.mxu1 %v561_v6  ;;  %v567_v10 = vld [vmem:[%s851_s1 + $0xac] ss:$16 sps:$4 sm:$0xff]   ;;  %v569_v11 = vld [vmem:[%s851_s1 + $0xa0] ss:$16 sps:$4 sm:$0xff]   ;;  %v570_v12 = vld [vmem:[%s851_s1 + $0xa8] ss:$16 sps:$4 sm:$0xff]  }
   0x5   :  { %v571_v13 = vld [vmem:[%s851_s1 + $0x84] ss:$16 sps:$4 sm:$0xff]   ;;  %v573_v14 = vld [vmem:[%s851_s1 + $0x8c] ss:$16 sps:$4 sm:$0xff]   ;;  %v575_v15 = vld [vmem:[%s851_s1 + $0x80] ss:$16 sps:$4 sm:$0xff]  }
   0x6   :  { %v576_v16 = vld [vmem:[%s851_s1 + $0x88] ss:$16 sps:$4 sm:$0xff]   ;;  %v577_v17 = vld [vmem:[%s851_s1 + $0x64] ss:$16 sps:$4 sm:$0xff]   ;;  %v579_v18 = vld [vmem:[%s851_s1 + $0x6c] ss:$16 sps:$4 sm:$0xff]  }
   0x7   :  { %339 = vmatpush1.bf16.msra.mxu0 %v563_v7  ;;  %382 = vmatpush1.bf16.msra.mxu1 %v564_v8  ;;  %v581_v19 = vld [vmem:[%s851_s1 + $0x60] ss:$16 sps:$4 sm:$0xff]   ;;  %v582_v20 = vld [vmem:[%s851_s1 + $0x68] ss:$16 sps:$4 sm:$0xff]   ;;  %v583_v21 = vld [vmem:[%s851_s1 + $0x44] ss:$16 sps:$4 sm:$0xff]  }
   0x8   :  { %340 = vmatprep.subr.bf16.mxu0 %v565_v9  ;;  %383 = vmatprep.subr.bf16.mxu1 %v567_v10  ;;  %v585_v22 = vld [vmem:[%s851_s1 + $0x4c] ss:$16 sps:$4 sm:$0xff]   ;;  %v587_v23 = vld [vmem:[%s851_s1 + $0x40] ss:$16 sps:$4 sm:$0xff]   ;;  %v588_v24 = vld [vmem:[%s851_s1 + $0x48] ss:$16 sps:$4 sm:$0xff]  }
   0x9   :  { %v589_v25 = vld [vmem:[%s851_s1 + $0x24] ss:$16 sps:$4 sm:$0xff]   ;;  %v591_v26 = vld [vmem:[%s851_s1 + $0x2c] ss:$16 sps:$4 sm:$0xff]   ;;  %v593_v27 = vld [vmem:[%s851_s1 + $0x20] ss:$16 sps:$4 sm:$0xff]  }
   0xa   :  { %v594_v28 = vld [vmem:[%s851_s1 + $0x28] ss:$16 sps:$4 sm:$0xff]   ;;  %v595_v29 = vld [vmem:[%s851_s1 + $0x4] ss:$16 sps:$4 sm:$0xff]   ;;  %v597_v30 = vld [vmem:[%s851_s1 + $0xc] ss:$16 sps:$4 sm:$0xff]  }
   0xb   :  { %341 = vmatpush1.bf16.msra.mxu0 %v569_v11  ;;  %384 = vmatpush1.bf16.msra.mxu1 %v570_v12  ;;  %v599_v31 = vld [vmem:[%s851_s1] ss:$16 sps:$4 sm:$0xff]   ;;  %v600_v32 = vld [vmem:[%s851_s1 + $0x8] ss:$16 sps:$4 sm:$0xff]   ;;  %v601_v33 = vld [vmem:[%s851_s1 + $0x164] ss:$16 sps:$4 sm:$0xff]  }
   0xc   :  { %342 = vmatprep.subr.bf16.mxu0 %v571_v13  ;;  %385 = vmatprep.subr.bf16.mxu1 %v573_v14  ;;  %v603_v34 = vld [vmem:[%s851_s1 + $0x16c] ss:$16 sps:$4 sm:$0xff]   ;;  %v605_v35 = vld [vmem:[%s851_s1 + $0x160] ss:$16 sps:$4 sm:$0xff]   ;;  %v606_v36 = vld [vmem:[%s851_s1 + $0x168] ss:$16 sps:$4 sm:$0xff]  }
   0xd   :  { %v607_v37 = vld [vmem:[%s851_s1 + $0x144] ss:$16 sps:$4 sm:$0xff]   ;;  %v609_v38 = vld [vmem:[%s851_s1 + $0x14c] ss:$16 sps:$4 sm:$0xff]   ;;  %v611_v44 = vld [vmem:[%s851_s1 + $0x140] ss:$16 sps:$4 sm:$0xff]  }
   0xe   :  { %v627_v39 = vld [vmem:[%s852_s0 + $0x4] ss:$8 sps:$4 sm:$0xff]   ;;  %v612_v45 = vld [vmem:[%s851_s1 + $0x148] ss:$16 sps:$4 sm:$0xff]   ;;  %v617_v50 = vld [vmem:[%s851_s1 + $0x120] ss:$16 sps:$4 sm:$0xff]  }
   0xf   :  { %343 = vmatpush1.bf16.msra.mxu0 %v575_v15  ;;  %386 = vmatpush1.bf16.msra.mxu1 %v576_v16  ;;  %v422_v40 = vld [vmem:[%s853_s3] sm:$0xff]  ;;  %v423_v42 = vld [vmem:[%s853_s3 + $0x8] sm:$0xff] }
  0x10   :  { %344 = vmatprep.subr.bf16.mxu0 %v577_v17  ;;  %387 = vmatprep.subr.bf16.mxu1 %v579_v18  ;;  %v71_v41 = vld [vmem:[%s854_s2] sm:$0xff]  ;;  %v72_v43 = vld [vmem:[%s854_s2 + $0x8] sm:$0xff] }
  0x11   :  { %426 = vperm.xlu1 %552, %v422_v40   ;;  %75 = vperm.xlu0 %551, %v71_v41   ;;  %v613_v46 = vld [vmem:[%s851_s1 + $0x124] ss:$16 sps:$4 sm:$0xff]   ;;  %v615_v47 = vld [vmem:[%s851_s1 + $0x12c] ss:$16 sps:$4 sm:$0xff]   ;;  %v618_v51 = vld [vmem:[%s851_s1 + $0x128] ss:$16 sps:$4 sm:$0xff]  }
  0x12   :  { %548 = vmatprep.mubr.msk.bf16.mxu0 %vm332_vm0, %v627_v39  ;;  %549 = vmatprep.mubr.msk.bf16.mxu1 %vm332_vm0, %v627_v39  ;;  %v443_v48 = vld [vmem:[%s855_s4 + $0x8] sm:$0xff]  ;;  %v442_v49 = vld [vmem:[%s855_s4] sm:$0xff] }
  0x13   :  { %345 = vmatpush1.bf16.msra.mxu0 %v581_v19  ;;  %388 = vmatpush1.bf16.msra.mxu1 %v582_v20  ;;  %v619_v52 = vld [vmem:[%s851_s1 + $0x104] ss:$16 sps:$4 sm:$0xff]   ;;  %v621_v53 = vld [vmem:[%s851_s1 + $0x10c] ss:$16 sps:$4 sm:$0xff]   ;;  %v623_v54 = vld [vmem:[%s851_s1 + $0x100] ss:$16 sps:$4 sm:$0xff]  }
  0x14   :  { %346 = vmatprep.subr.bf16.mxu0 %v583_v21  ;;  %389 = vmatprep.subr.bf16.mxu1 %v585_v22  ;;  %v624_v55 = vld [vmem:[%s851_s1 + $0x108] ss:$16 sps:$4 sm:$0xff]  }
  0x15   :  { %431 = vperm.xlu1 %552, %v423_v42   ;;  %80 = vperm.xlu0 %551, %v72_v43   ;;  %v625_v56 = vld [vmem:[%s852_s0] ss:$8 sps:$4 sm:$0xff]  }
  0x17   :  { %347 = vmatpush1.bf16.msra.mxu0 %v587_v23  ;;  %390 = vmatpush1.bf16.msra.mxu1 %v588_v24 }
  0x18   :  { %348 = vmatprep.subr.bf16.mxu0 %v589_v25  ;;  %391 = vmatprep.subr.bf16.mxu1 %v591_v26 }
  0x19   :  { %451 = vperm.xlu1 %552, %v443_v48   ;;  %446 = vperm.xlu0 %551, %v442_v49  }
  0x1b   :  { %349 = vmatpush1.bf16.msra.mxu0 %v593_v27  ;;  %392 = vmatpush1.bf16.msra.mxu1 %v594_v28 }
  0x1c   :  { %350 = vmatprep.subr.bf16.mxu0 %v595_v29  ;;  %393 = vmatprep.subr.bf16.mxu1 %v597_v30 }
  0x1f   :  { %351 = vmatpush1.bf16.msra.mxu0 %v599_v31  ;;  %394 = vmatpush1.bf16.msra.mxu1 %v600_v32 }
  0x20   :  { %360 = vmatprep.subr.bf16.mxu0 %v601_v33  ;;  %403 = vmatprep.subr.bf16.mxu1 %v603_v34 }
  0x23   :  { %361 = vmatpush2.bf16.msra.mxu0 %v605_v35  ;;  %404 = vmatpush2.bf16.msra.mxu1 %v606_v36 }
  0x24   :  { %362 = vmatprep.subr.bf16.mxu0 %v607_v37  ;;  %405 = vmatprep.subr.bf16.mxu1 %v609_v38 }
  0x27   :  { %363 = vmatpush2.bf16.msra.mxu0 %v611_v44  ;;  %406 = vmatpush2.bf16.msra.mxu1 %v612_v45 }
  0x28   :  { %364 = vmatprep.subr.bf16.mxu0 %v613_v46  ;;  %407 = vmatprep.subr.bf16.mxu1 %v615_v47 }
  0x2b   :  { %365 = vmatpush2.bf16.msra.mxu0 %v617_v50  ;;  %408 = vmatpush2.bf16.msra.mxu1 %v618_v51 }
  0x2c   :  { %366 = vmatprep.subr.bf16.mxu0 %v619_v52  ;;  %409 = vmatprep.subr.bf16.mxu1 %v621_v53 }
  0x2f   :  { %367 = vmatpush2.bf16.msra.mxu0 %v623_v54  ;;  %410 = vmatpush2.bf16.msra.mxu1 %v624_v55 }
  0x32   :  { %369 = vmatmul.mubr.bf16.vlgmr.msra.gmra.mxu0 %v625_v56  ;;  %412 = vmatmul.mubr.bf16.vlgmr.msra.gmra.mxu1 %v625_v56 }
  0x8c   :  { %v76_v57 = vpop.permute.xlu0 %75  ;;  %v427_v58 = vpop.permute.xlu1 %426 }
  0x90   :  { %v81_v59 = vpop.permute.xlu0 %80  ;;  %v432_v2 = vpop.permute.xlu1 %431 }
  0x94   :  { %v447_v5 = vpop.permute.xlu0 %446  ;;  %v452_v28 = vpop.permute.xlu1 %451 }
  0xf2   :  { %v370_v60 = vpop.f32.mrf.mxu0  ;;  %v413_v61 = vpop.f32.mrf.mxu1 }
  0xf3   :  { %v371_v62 = vadd.f32 %v370_v60, %v76_v57  ;;  %v414_v63 = vadd.f32 %v413_v61, %v76_v57 }
  0xf4   :  { %v372_v0 = vpop.f32.mrf.mxu0  ;;  %v415_v1 = vpop.f32.mrf.mxu1 }
  0xf5   :  { %v434_v3 = vmul.f32 %v427_v58, %v371_v62  ;;  %v436_v4 = vmul.f32 %v427_v58, %v414_v63  ;;  %v373_v6 = vadd.f32 %v372_v0, %v76_v57  ;;  %v416_v7 = vadd.f32 %v415_v1, %v76_v57 }
  0xf6   :  { %v374_v8 = vpop.f32.mrf.mxu0  ;;  %v417_v9 = vpop.f32.mrf.mxu1 }
  0xf7   :  { %v454_v10 = vadd.f32 %v447_v5, %v434_v3  ;;  %v456_v11 = vadd.f32 %v447_v5, %v436_v4  ;;  %v435_v12 = vmul.f32 %v427_v58, %v373_v6  ;;  %v437_v13 = vmul.f32 %v427_v58, %v416_v7 }
  0xf8   :  { %v375_v14 = vadd.f32 %v374_v8, %v81_v59  ;;  %v418_v15 = vadd.f32 %v417_v9, %v81_v59  ;;  %v376_v16 = vpop.f32.mrf.mxu0  ;;  %v419_v17 = vpop.f32.mrf.mxu1 }
  0xf9   :  { %vm462_vm1 = vcmp.ge.f32.partialorder %v454_v10, 0.0  ;;  %vm464_vm2 = vcmp.ge.f32.partialorder %v456_v11, 0.0  ;;  %v470_v18 = vmul.f32 0.01, %v454_v10  ;;  %v472_v19 = vmul.f32 0.01, %v456_v11 }
  0xfa   :  { %v455_v20 = vadd.f32 %v447_v5, %v435_v12  ;;  %v457_v21 = vadd.f32 %v447_v5, %v437_v13  ;;  %v438_v22 = vmul.f32 %v432_v2, %v375_v14  ;;  %v440_v23 = vmul.f32 %v432_v2, %v418_v15 }
  0xfb   :  { %v478_v24 = vsel %vm462_vm1, %v454_v10, %v470_v18  ;;  %v480_v25 = vsel %vm464_vm2, %v456_v11, %v472_v19  ;;  %v377_v26 = vadd.f32 %v376_v16, %v81_v59  ;;  %v420_v27 = vadd.f32 %v419_v17, %v81_v59 }
  0xfc   :  { %486 = vst [vmem:[%s856_s5] sm:$0xff] %v478_v24  ;;  %488 = vst [vmem:[%s856_s5 + $0x10] sm:$0xff] %v480_v25  ;;  %vm463_vm3 = vcmp.ge.f32.partialorder %v455_v20, 0.0  ;;  %v471_v29 = vmul.f32 0.01, %v455_v20  ;;  %vm465_vm4 = vcmp.ge.f32.partialorder %v457_v21, 0.0  ;;  %v458_v31 = vadd.f32 %v452_v28, %v438_v22 }
  0xfd   :  { %v473_v30 = vmul.f32 0.01, %v457_v21  ;;  %v460_v32 = vadd.f32 %v452_v28, %v440_v23  ;;  %v439_v33 = vmul.f32 %v432_v2, %v377_v26  ;;  %v441_v34 = vmul.f32 %v432_v2, %v420_v27 }
  0xfe   :  { %v479_v35 = vsel %vm463_vm3, %v455_v20, %v471_v29  ;;  %vm466_vm5 = vcmp.ge.f32.partialorder %v458_v31, 0.0  ;;  %v474_v37 = vmul.f32 0.01, %v458_v31 }
  0xff   :  { %v481_v36 = vsel %vm465_vm4, %v457_v21, %v473_v30  ;;  %487 = vst [vmem:[%s856_s5 + $0x8] sm:$0xff] %v479_v35  ;;  %vm468_vm6 = vcmp.ge.f32.partialorder %v460_v32, 0.0  ;;  %v476_v38 = vmul.f32 0.01, %v460_v32  ;;  %v459_v39 = vadd.f32 %v452_v28, %v439_v33 }
 0x100   :  { %489 = vst [vmem:[%s856_s5 + $0x18] sm:$0xff] %v481_v36  ;;  %v461_v40 = vadd.f32 %v452_v28, %v441_v34  ;;  %v482_v41 = vsel %vm466_vm5, %v458_v31, %v474_v37 }
 0x101   :  { %v484_v42 = vsel %vm468_vm6, %v460_v32, %v476_v38  ;;  %490 = vst [vmem:[%s856_s5 + $0x20] sm:$0xff] %v482_v41  ;;  %vm467_vm7 = vcmp.ge.f32.partialorder %v459_v39, 0.0  ;;  %v475_v43 = vmul.f32 0.01, %v459_v39 }
 0x102   :  { %492 = vst [vmem:[%s856_s5 + $0x30] sm:$0xff] %v484_v42  ;;  %vm469_vm8 = vcmp.ge.f32.partialorder %v461_v40, 0.0  ;;  %v477_v44 = vmul.f32 0.01, %v461_v40 }
 0x103   :  { %v483_v45 = vsel %vm467_vm7, %v459_v39, %v475_v43 }
 0x104   :  { %v485_v46 = vsel %vm469_vm8, %v461_v40, %v477_v44  ;;  %491 = vst [vmem:[%s856_s5 + $0x28] sm:$0xff] %v483_v45 }
 0x105   :  { %493 = vst [vmem:[%s856_s5 + $0x38] sm:$0xff] %v485_v46 }

// kernel: enhancement_forward.23
= control target key start
LH: loop header
LB: loop body
LE: loop exit
PB: predicated region body
PF: predicated region fallthrough
CT: control target
= control target key end

     0   :  { %v356_v1 = vmov 0   ;;  %vm188_vm0 = vcmask 523264   ;;  %s495_s1 = inlined_call_operand.vmem [shape: bf16[192,256], index: 1, kind: input, shape index: {}]   ;;  %s496_s0 = inlined_call_operand.vmem [shape: bf16[16,192], index: 0, kind: input, shape index: {}]   ;;  %s497_s3 = inlined_call_operand.vmem [shape: f32[16,1], index: 3, kind: input, shape index: {}]   ;;  %s498_s2 = inlined_call_operand.vmem [shape: f32[16,1], index: 2, kind: input, shape index: {}]   ;;  %s499_s4 = inlined_call_operand.vmem [shape: f32[16,1], index: 4, kind: input, shape index: {}]   ;;  %s500_s5 = inlined_call_operand.vmem [shape: f32[16,256], index: 5, kind: output, shape index: {}]  }
   0x1   :  { %v317_v0 = vld [vmem:[%s495_s1 + $0x74] ss:$8 sps:$4 sm:$0xff]   ;;  %316 = vset.pattern.permute.xlu1 %v356_v1  ;;  %315 = vset.pattern.permute.xlu0 %v356_v1  ;;  %v319_v2 = vld [vmem:[%s495_s1 + $0x70] ss:$8 sps:$4 sm:$0xff]   ;;  %v320_v3 = vld [vmem:[%s495_s1 + $0x64] ss:$8 sps:$4 sm:$0xff]  }
   0x2   :  { %192 = vmatprep.subr.bf16.mxu0 %v317_v0  ;;  %v322_v4 = vld [vmem:[%s495_s1 + $0x60] ss:$8 sps:$4 sm:$0xff]   ;;  %v323_v5 = vld [vmem:[%s495_s1 + $0x54] ss:$8 sps:$4 sm:$0xff]   ;;  %v325_v6 = vld [vmem:[%s495_s1 + $0x50] ss:$8 sps:$4 sm:$0xff]  }
   0x3   :  { %193 = vmatpush1.bf16.msra.mxu0 %v319_v2  ;;  %v326_v7 = vld [vmem:[%s495_s1 + $0x44] ss:$8 sps:$4 sm:$0xff]   ;;  %v328_v8 = vld [vmem:[%s495_s1 + $0x40] ss:$8 sps:$4 sm:$0xff]   ;;  %v329_v9 = vld [vmem:[%s495_s1 + $0x34] ss:$8 sps:$4 sm:$0xff]  }
   0x4   :  { %194 = vmatprep.subr.bf16.mxu0 %v320_v3  ;;  %v331_v10 = vld [vmem:[%s495_s1 + $0x30] ss:$8 sps:$4 sm:$0xff]   ;;  %v332_v11 = vld [vmem:[%s495_s1 + $0x24] ss:$8 sps:$4 sm:$0xff]   ;;  %v334_v15 = vld [vmem:[%s495_s1 + $0x20] ss:$8 sps:$4 sm:$0xff]  }
   0x5   :  { %v355_v12 = vld [vmem:[%s496_s0 + $0x4] ss:$8 sps:$4 sm:$0xff]   ;;  %v335_v18 = vld [vmem:[%s495_s1 + $0x14] ss:$8 sps:$4 sm:$0xff]   ;;  %v337_v19 = vld [vmem:[%s495_s1 + $0x10] ss:$8 sps:$4 sm:$0xff]  }
   0x6   :  { %v235_v13 = vld [vmem:[%s497_s3] sm:$0xff]  ;;  %313 = vmatprep.mubr.msk.bf16.mxu0 %vm188_vm0, %v355_v12  ;;  %v236_v16 = vld [vmem:[%s497_s3 + $0x8] sm:$0xff]  ;;  %v341_v24 = vld [vmem:[%s495_s1 + $0xb4] ss:$8 sps:$4 sm:$0xff]  }
   0x7   :  { %195 = vmatpush1.bf16.msra.mxu0 %v322_v4  ;;  %v47_v14 = vld [vmem:[%s498_s2] sm:$0xff]  ;;  %239 = vperm.xlu1 %316, %v235_v13   ;;  %v48_v17 = vld [vmem:[%s498_s2 + $0x8] sm:$0xff]  ;;  %v343_v25 = vld [vmem:[%s495_s1 + $0xb0] ss:$8 sps:$4 sm:$0xff]  }
   0x8   :  { %196 = vmatprep.subr.bf16.mxu0 %v323_v5  ;;  %51 = vperm.xlu0 %315, %v47_v14   ;;  %v252_v20 = vld [vmem:[%s499_s4 + $0x8] sm:$0xff]  ;;  %v251_v21 = vld [vmem:[%s499_s4] sm:$0xff]  ;;  %v347_v28 = vld [vmem:[%s495_s1 + $0x94] ss:$8 sps:$4 sm:$0xff]  }
   0x9   :  { %v338_v22 = vld [vmem:[%s495_s1 + $0x4] ss:$8 sps:$4 sm:$0xff]   ;;  %v340_v23 = vld [vmem:[%s495_s1] ss:$8 sps:$4 sm:$0xff]   ;;  %v349_v29 = vld [vmem:[%s495_s1 + $0x90] ss:$8 sps:$4 sm:$0xff]  }
   0xa   :  { %v344_v26 = vld [vmem:[%s495_s1 + $0xa4] ss:$8 sps:$4 sm:$0xff]   ;;  %v346_v27 = vld [vmem:[%s495_s1 + $0xa0] ss:$8 sps:$4 sm:$0xff]  }
   0xb   :  { %197 = vmatpush1.bf16.msra.mxu0 %v325_v6  ;;  %244 = vperm.xlu1 %316, %v236_v16   ;;  %v350_v30 = vld [vmem:[%s495_s1 + $0x84] ss:$8 sps:$4 sm:$0xff]   ;;  %v352_v31 = vld [vmem:[%s495_s1 + $0x80] ss:$8 sps:$4 sm:$0xff]  }
   0xc   :  { %198 = vmatprep.subr.bf16.mxu0 %v326_v7  ;;  %56 = vperm.xlu0 %315, %v48_v17   ;;  %v353_v32 = vld [vmem:[%s496_s0] ss:$8 sps:$4 sm:$0xff]  }
   0xf   :  { %199 = vmatpush1.bf16.msra.mxu0 %v328_v8  ;;  %260 = vperm.xlu1 %316, %v252_v20  }
  0x10   :  { %200 = vmatprep.subr.bf16.mxu0 %v329_v9  ;;  %255 = vperm.xlu0 %315, %v251_v21  }
  0x13   :  { %201 = vmatpush1.bf16.msra.mxu0 %v331_v10 }
  0x14   :  { %202 = vmatprep.subr.bf16.mxu0 %v332_v11 }
  0x17   :  { %203 = vmatpush1.bf16.msra.mxu0 %v334_v15 }
  0x18   :  { %204 = vmatprep.subr.bf16.mxu0 %v335_v18 }
  0x1b   :  { %205 = vmatpush1.bf16.msra.mxu0 %v337_v19 }
  0x1c   :  { %206 = vmatprep.subr.bf16.mxu0 %v338_v22 }
  0x1f   :  { %207 = vmatpush1.bf16.msra.mxu0 %v340_v23 }
  0x20   :  { %216 = vmatprep.subr.bf16.mxu0 %v341_v24 }
  0x23   :  { %217 = vmatpush2.bf16.msra.mxu0 %v343_v25 }
  0x24   :  { %218 = vmatprep.subr.bf16.mxu0 %v344_v26 }
  0x27   :  { %219 = vmatpush2.bf16.msra.mxu0 %v346_v27 }
  0x28   :  { %220 = vmatprep.subr.bf16.mxu0 %v347_v28 }
  0x2b   :  { %221 = vmatpush2.bf16.msra.mxu0 %v349_v29 }
  0x2c   :  { %222 = vmatprep.subr.bf16.mxu0 %v350_v30 }
  0x2f   :  { %223 = vmatpush2.bf16.msra.mxu0 %v352_v31 }
  0x32   :  { %225 = vmatmul.mubr.bf16.vlgmr.msra.gmra.mxu0 %v353_v32 }
  0x82   :  { %v240_v34 = vpop.permute.xlu1 %239 }
  0x83   :  { %v52_v33 = vpop.permute.xlu0 %51 }
  0x86   :  { %v245_v38 = vpop.permute.xlu1 %244 }
  0x87   :  { %v57_v35 = vpop.permute.xlu0 %56 }
  0x8a   :  { %v261_v51 = vpop.permute.xlu1 %260 }
  0x8b   :  { %v256_v42 = vpop.permute.xlu0 %255 }
  0xf2   :  { %v226_v36 = vpop.f32.mrf.mxu0 }
  0xf3   :  { %v227_v37 = vadd.f32 %v226_v36, %v52_v33 }
  0xf4   :  { %v228_v39 = vpop.f32.mrf.mxu0 }
  0xf5   :  { %v247_v40 = vmul.f32 %v240_v34, %v227_v37  ;;  %v229_v41 = vadd.f32 %v228_v39, %v52_v33 }
  0xf6   :  { %v230_v43 = vpop.f32.mrf.mxu0 }
  0xf7   :  { %v263_v44 = vadd.f32 %v256_v42, %v247_v40  ;;  %v248_v45 = vmul.f32 %v240_v34, %v229_v41  ;;  %v231_v46 = vadd.f32 %v230_v43, %v57_v35 }
  0xf8   :  { %v232_v47 = vpop.f32.mrf.mxu0 }
  0xf9   :  { %vm267_vm1 = vcmp.ge.f32.partialorder %v263_v44, 0.0  ;;  %v271_v48 = vmul.f32 0.01, %v263_v44  ;;  %v264_v49 = vadd.f32 %v256_v42, %v248_v45  ;;  %v249_v50 = vmul.f32 %v245_v38, %v231_v46 }
  0xfa   :  { %v233_v52 = vadd.f32 %v232_v47, %v57_v35 }
  0xfb   :  { %v275_v53 = vsel %vm267_vm1, %v263_v44, %v271_v48  ;;  %vm268_vm2 = vcmp.ge.f32.partialorder %v264_v49, 0.0  ;;  %v272_v54 = vmul.f32 0.01, %v264_v49  ;;  %v265_v55 = vadd.f32 %v261_v51, %v249_v50 }
  0xfc   :  { %279 = vst [vmem:[%s500_s5] sm:$0xff] %v275_v53  ;;  %v250_v56 = vmul.f32 %v245_v38, %v233_v52 }
  0xfd   :  { %v276_v57 = vsel %vm268_vm2, %v264_v49, %v272_v54  ;;  %vm269_vm3 = vcmp.ge.f32.partialorder %v265_v55, 0.0  ;;  %v273_v58 = vmul.f32 0.01, %v265_v55 }
  0xfe   :  { %280 = vst [vmem:[%s500_s5 + $0x8] sm:$0xff] %v276_v57  ;;  %v266_v59 = vadd.f32 %v261_v51, %v250_v56 }
  0xff   :  { %v277_v60 = vsel %vm269_vm3, %v265_v55, %v273_v58 }
 0x100   :  { %281 = vst [vmem:[%s500_s5 + $0x10] sm:$0xff] %v277_v60  ;;  %vm270_vm4 = vcmp.ge.f32.partialorder %v266_v59, 0.0  ;;  %v274_v61 = vmul.f32 0.01, %v266_v59 }
 0x102   :  { %v278_v62 = vsel %vm270_vm4, %v266_v59, %v274_v61 }
 0x103   :  { %282 = vst [vmem:[%s500_s5 + $0x18] sm:$0xff] %v278_v62 }

// kernel: enhancement_forward.24
= control target key start
LH: loop header
LB: loop body
LE: loop exit
PB: predicated region body
PF: predicated region fallthrough
CT: control target
= control target key end

     0   :  { %s879_s12 = smov 0   ;;  %s881_s13 = smov 0   ;;  %s984_s0 = inlined_call_operand.vmem [shape: bf16[32,128], index: 0, kind: input, shape index: {}]   ;;  %s985_s1 = inlined_call_operand.vmem [shape: bf16[128,384], index: 1, kind: input, shape index: {}]   ;;  %s986_s2 = inlined_call_operand.vmem [shape: f32[1,384], index: 2, kind: input, shape index: {}]   ;;  %s987_s3 = inlined_call_operand.vmem [shape: bf16[32,384], index: 3, kind: output, shape index: {}]  }
   0x1   :  { %s883_s14 = smov 0   ;;  %s885_s15 = smov 0  }
   0x2   :  { %s887_s16 = smov 0  }
   0x3 LB: > { %s28_s17 = sadd.s32 1, %s853_s15  ;;  %s695_s18 = sadd.s32 4294967295, %s857_s16   ;;  %s857_s16 = sphi %s887_s16, %s13_s16   ;;  %s853_s15 = sphi %s885_s15, %s992_s15   ;;  %s849_s14 = sphi %s883_s14, %s991_s14   ;;  %s845_s13 = sphi %s881_s13, %s990_s13   ;;  %s841_s12 = sphi %s879_s12, %s989_s12  }
   0x4   : > { %p30_p0 = scmp.ge.s32.totalorder %s28_s17, 3  ;;  %p76_p1 = scmp.ne.s32.totalorder %s845_s13, %s841_s12 }
   0x5   : > { %p77_p2 = scmp.eq.s32.totalorder %s857_s16, 0  ;;  %p134_p4 = scmp.eq.s32.totalorder %s695_s18, 2 }
   0x6   : > { %s994_s17 = smov (%p30_p0, %s28_s17), 0  ;;  %s69_s20 = sadd.s32 1, %s845_s13 }
   0x7   : > { %p78_p3 = por %p77_p2, %p76_p1  ;;  %s65_s19 = ssub.s32 %s853_s15, %s994_s17 }
   0x8   : > { %p67_p5 = scmp.eq.s32.totalorder %s65_s19, 0  ;;  %p914_p6 = por %p134_p4, %p76_p1 }
   0x9   : > { %p699_p7 = scmp.ge.s32.totalorder %s857_s16, 3 }
   0xa   : > { %s919_s22 = scalar_select %p67_p5, %s845_s13, %s69_s20  }
   0xb   : > { %168 = sbr.rel (%p699_p7) target bundleno = 30 (0x1e), region = 20 }
  0x10   : > { %171 = sbr.rel (!%p78_p3) target bundleno = 30 (0x1e), region = 24  ;;  %s173_s23 = sand.u32 (%p78_p3), 1, %s845_s13  }
  0x11   : > { %s701_s24 = sshll.u32 (%p78_p3), %s853_s15, 2  ;;  %s700_s25 = sshll.u32 (%p78_p3), %s173_s23, 6 }
  0x12   : > { %s927_s28 = scalar_lea.vmem (%p78_p3), %s985_s1, %s701_s24  ;;  %s175_s29 = scalar_lea.vmem (%p78_p3), [#allocation3], %s700_s25 }
  0x13   : > { %v197_v0 = vld [vmem:[%s927_s28] sm:$0xf] (%p78_p3)  ;;  %v199_v1 = vld [vmem:[%s927_s28 + $0xc] sm:$0xf] (%p78_p3)  ;;  %v201_v2 = vld [vmem:[%s927_s28 + $0x18] sm:$0xf] (%p78_p3) }
  0x14   : > { %198 = vst [vmem:[%s175_s29] sm:$0xf] (%p78_p3), %v197_v0  ;;  %200 = vst [vmem:[%s175_s29 + $0x4] sm:$0xf] (%p78_p3), %v199_v1  ;;  %v203_v3 = vld [vmem:[%s927_s28 + $0x24] sm:$0xf] (%p78_p3) }
  0x15   : > { %v205_v4 = vld [vmem:[%s927_s28 + $0x30] sm:$0xf]  ;;  %202 = vst [vmem:[%s175_s29 + $0x8] sm:$0xf] %v201_v2  ;;  %204 = vst [vmem:[%s175_s29 + $0xc] sm:$0xf] %v203_v3 }
  0x16   : > { %206 = vst [vmem:[%s175_s29 + $0x10] sm:$0xf] %v205_v4  ;;  %v207_v5 = vld [vmem:[%s927_s28 + $0x3c] sm:$0xf]  ;;  %v209_v6 = vld [vmem:[%s927_s28 + $0x48] sm:$0xf] }
  0x17   : > { %v211_v7 = vld [vmem:[%s927_s28 + $0x54] sm:$0xf]  ;;  %208 = vst [vmem:[%s175_s29 + $0x14] sm:$0xf] %v207_v5  ;;  %210 = vst [vmem:[%s175_s29 + $0x18] sm:$0xf] %v209_v6 }
  0x18   : > { %212 = vst [vmem:[%s175_s29 + $0x1c] sm:$0xf] %v211_v7  ;;  %v213_v8 = vld [vmem:[%s927_s28 + $0x60] sm:$0xf]  ;;  %v215_v9 = vld [vmem:[%s927_s28 + $0x6c] sm:$0xf] }
  0x19   : > { %v217_v10 = vld [vmem:[%s927_s28 + $0x78] sm:$0xf]  ;;  %214 = vst [vmem:[%s175_s29 + $0x20] sm:$0xf] %v213_v8  ;;  %216 = vst [vmem:[%s175_s29 + $0x24] sm:$0xf] %v215_v9 }
  0x1a   : > { %218 = vst [vmem:[%s175_s29 + $0x28] sm:$0xf] %v217_v10  ;;  %v219_v11 = vld [vmem:[%s927_s28 + $0x84] sm:$0xf]  ;;  %v221_v12 = vld [vmem:[%s927_s28 + $0x90] sm:$0xf] }
  0x1b   : > { %v223_v13 = vld [vmem:[%s927_s28 + $0x9c] sm:$0xf]  ;;  %220 = vst [vmem:[%s175_s29 + $0x2c] sm:$0xf] %v219_v11  ;;  %222 = vst [vmem:[%s175_s29 + $0x30] sm:$0xf] %v221_v12 }
  0x1c   : > { %224 = vst [vmem:[%s175_s29 + $0x34] sm:$0xf] %v223_v13  ;;  %v225_v14 = vld [vmem:[%s927_s28 + $0xa8] sm:$0xf]  ;;  %v227_v15 = vld [vmem:[%s927_s28 + $0xb4] sm:$0xf] }
  0x1d   : > { %226 = vst [vmem:[%s175_s29 + $0x38] sm:$0xf] %v225_v14  ;;  %228 = vst [vmem:[%s175_s29 + $0x3c] sm:$0xf] %v227_v15 }
  0x1e PF: > { %p702_p8 = scmp.ge.s32.totalorder %s857_s16, 1  ;;  %p289_p9 = scmp.lt.s32.totalorder %s857_s16, 4 }
  0x20   : > { %p290_p10 = pnand %p702_p8, %p289_p9 }
  0x21   : > { %s296_s30 = sand.u32 (!%p290_p10), 1, %s841_s12   ;;  %p339_p11 = scmp.lt.s32.totalorder (!%p290_p10), %s849_s14, 2 }
  0x22   : > { %293 = sbr.rel (%p290_p10) target bundleno = 284 (0x11c), region = 69  ;;  %s703_s6 = sshll.u32 (!%p290_p10), %s296_s30, 6 }
  0x23   : > { %s298_s7 = scalar_lea.vmem (!%p290_p10), [#allocation3], %s703_s6  ;;  %s704_s20 = sshll.u32 (!%p290_p10), %s296_s30, 4 }
  0x24   : > { %s328_s23 = scalar_lea.vmem (!%p290_p10), [#allocation4], %s704_s20 }
  0x27   : > { %v817_v16 = vld [vmem:[%s984_s0] sm:$0xff]   ;;  %v809_v17 = vld [vmem:[%s298_s7 + $0x38] sm:$0xff]   ;;  %v810_v18 = vld [vmem:[%s298_s7 + $0x30] sm:$0xff]   ;;  %s340_s10 = scalar_select %p339_p11, %s849_s14, 2 }
  0x28   : > { %765 = vmatprep.mubr.bf16.mxu0 %v817_v16  ;;  %749 = vmatprep.subr.bf16.mxu0 %v809_v17  ;;  %v811_v19 = vld [vmem:[%s298_s7 + $0x28] sm:$0xff]   ;;  %v812_v20 = vld [vmem:[%s298_s7 + $0x20] sm:$0xff]   ;;  %v813_v21 = vld [vmem:[%s298_s7 + $0x18] sm:$0xff]   ;;  %s721_s24 = sshll.u32 (%p914_p6), %s849_s14, 2 }
  0x29   : > { %750 = vmatpush3.bf16.msra.mxu0 %v809_v17  ;;  %v814_v22 = vld [vmem:[%s298_s7 + $0x10] sm:$0xff]   ;;  %v815_v23 = vld [vmem:[%s298_s7 + $0x8] sm:$0xff]   ;;  %v816_v24 = vld [vmem:[%s298_s7] sm:$0xff]   ;;  %s341_s19 = scalar_lea.vmem %s986_s2, %s340_s10  ;;  %s542_s26 = scalar_lea.vmem (%p914_p6), %s987_s3, %s721_s24 }
  0x2a   : > { %751 = vmatprep.subr.bf16.mxu0 %v810_v18  ;;  %v818_v25 = vld [vmem:[%s984_s0 + $0x8] sm:$0xff]   ;;  %v715_v27 = vld [vmem:[%s341_s19] ss:$0 sm:$0xff] }
  0x2d   : > { %752 = vmatpush3.bf16.msra.mxu0 %v810_v18 }
  0x2e   : > { %753 = vmatprep.subr.bf16.mxu0 %v811_v19 }
  0x31   : > { %754 = vmatpush3.bf16.msra.mxu0 %v811_v19 }
  0x32   : > { %755 = vmatprep.subr.bf16.mxu0 %v812_v20 }
  0x35   : > { %756 = vmatpush3.bf16.msra.mxu0 %v812_v20 }
  0x36   : > { %757 = vmatprep.subr.bf16.mxu0 %v813_v21 }
  0x39   : > { %758 = vmatpush3.bf16.msra.mxu0 %v813_v21 }
  0x3a   : > { %759 = vmatprep.subr.bf16.mxu0 %v814_v22 }
  0x3d   : > { %760 = vmatpush3.bf16.msra.mxu0 %v814_v22 }
  0x3e   : > { %761 = vmatprep.subr.bf16.mxu0 %v815_v23 }
  0x41   : > { %762 = vmatpush3.bf16.msra.mxu0 %v815_v23 }
  0x42   : > { %763 = vmatprep.subr.bf16.mxu0 %v816_v24 }
  0x45   : > { %764 = vmatpush3.bf16.msra.mxu0 %v816_v24 }
  0x48   : > { %766 = vmatmul.mubr.bf16.vlgmr.msra.gmra.mxu0 %v818_v25 }
 0x108   : > { %v767_v26 = vpop.f32.mrf.mxu0 }
 0x109   : > { %v509_v30 = vadd.f32 %v767_v26, %v715_v27 }
 0x10a   : > { %v470_v28 = vpop.f32.mrf.mxu0 }
 0x10b   : > { %v507_v33 = vadd.f32 %v715_v27, %v470_v28 }
 0x10c   : > { %v768_v29 = vpop.f32.mrf.mxu0 }
 0x10d   : > { %v510_v31 = vadd.f32 %v768_v29, %v715_v27 }
 0x10e   : > { %v473_v32 = vpop.f32.mrf.mxu0 }
 0x10f   : > { %v736_v34 = vpack.c.bf16 %v510_v31, %v509_v30  ;;  %v508_v35 = vadd.f32 %v715_v27, %v473_v32  ;;  %537 = sbr.rel (!%p914_p6) target bundleno = 284 (0x11c), region = 85 }
 0x111   : > { %738 = vst [vmem:[%s328_s23 + $0x8] sm:$0xff] %v736_v34   ;;  %v731_v36 = vpack.c.bf16 %v508_v35, %v507_v33 }
 0x113   : > { %732 = vst [vmem:[%s328_s23] sm:$0xff] %v731_v36  }
 0x118   : > { %v563_v39 = vld [vmem:[%s328_s23 + $0x8] sm:$0xf]  ;;  %v565_v40 = vld [vmem:[%s328_s23 + $0xc] sm:$0xf] }
 0x119   : > { %564 = vst [vmem:[%s542_s26 + $0x18] sm:$0xf] %v563_v39  ;;  %566 = vst [vmem:[%s542_s26 + $0x24] sm:$0xf] %v565_v40 }
 0x11a   : > { %v559_v37 = vld [vmem:[%s328_s23] sm:$0xf]  ;;  %v561_v38 = vld [vmem:[%s328_s23 + $0x4] sm:$0xf] }
 0x11b   : > { %560 = vst [vmem:[%s542_s26] sm:$0xf] %v559_v37  ;;  %562 = vst [vmem:[%s542_s26 + $0xc] sm:$0xf] %v561_v38 }
 0x11c PF: > { %s13_s16 = sadd.s32 1, %s857_s16   ;;  %s989_s12 = smov %s845_s13 }
 0x11d   : > { %p10_p12 = scmp.ge.s32.totalorder %s13_s16, 5   ;;  %s990_s13 = smov %s919_s22 }
 0x11e   : > { %s991_s14 = smov %s853_s15  ;;  %s992_s15 = smov %s994_s17 }
 0x11f   :  { %12 = sbr.rel (!%p10_p12) target bundleno = 3 (0x3), region = 163 }

// kernel: enhancement_forward.26
= control target key start
LH: loop header
LB: loop body
LE: loop exit
PB: predicated region body
PF: predicated region fallthrough
CT: control target
= control target key end

     0   :  { %s462_s1 = inlined_call_operand.vmem [shape: bf16[128,128], index: 1, kind: input, shape index: {}]   ;;  %s463_s0 = inlined_call_operand.vmem [shape: bf16[32,128], index: 0, kind: input, shape index: {}]   ;;  %s464_s2 = inlined_call_operand.vmem [shape: f32[1,128], index: 2, kind: input, shape index: {}]   ;;  %s465_s3 = inlined_call_operand.vmem [shape: f32[32,128], index: 3, kind: input, shape index: {}]   ;;  %s466_s4 = inlined_call_operand.vmem [shape: f32[1,128], index: 4, kind: input, shape index: {}]   ;;  %s467_s5 = inlined_call_operand.vmem [shape: f32[1,128], index: 5, kind: input, shape index: {}]   ;;  %s468_s6 = inlined_call_operand.vmem [shape: bf16[32,128], index: 6, kind: output, shape index: {}]  }
   0x1   :  { %v352_v0 = vld [vmem:[%s462_s1 + $0x38] sm:$0xff]   ;;  %v353_v1 = vld [vmem:[%s462_s1 + $0x30] sm:$0xff]   ;;  %v354_v2 = vld [vmem:[%s462_s1 + $0x28] sm:$0xff]  }
   0x2   :  { %332 = vmatprep.subr.bf16.mxu0 %v352_v0  ;;  %v355_v3 = vld [vmem:[%s462_s1 + $0x20] sm:$0xff]   ;;  %v356_v5 = vld [vmem:[%s462_s1 + $0x18] sm:$0xff]   ;;  %v357_v6 = vld [vmem:[%s462_s1 + $0x10] sm:$0xff]  }
   0x3   :  { %333 = vmatpush3.bf16.msra.mxu0 %v352_v0  ;;  %v360_v4 = vld [vmem:[%s463_s0] sm:$0xff]   ;;  %v358_v7 = vld [vmem:[%s462_s1 + $0x8] sm:$0xff]   ;;  %v193_v12 = vld [vmem:[%s465_s3 + $0x10] sm:$0xff] }
   0x4   :  { %334 = vmatprep.subr.bf16.mxu0 %v353_v1  ;;  %348 = vmatprep.mubr.bf16.mxu0 %v360_v4  ;;  %v359_v8 = vld [vmem:[%s462_s1] sm:$0xff]   ;;  %v361_v9 = vld [vmem:[%s463_s0 + $0x8] sm:$0xff]   ;;  %v194_v19 = vld [vmem:[%s465_s3 + $0x18] sm:$0xff] }
   0x5   :  { %v300_v10 = vld [vmem:[%s464_s2] ss:$0 sm:$0xff]  ;;  %v192_v23 = vld [vmem:[%s465_s3 + $0x8] sm:$0xff] }
   0x6   :  { %v191_v15 = vld [vmem:[%s465_s3] sm:$0xff] }
   0x7   :  { %335 = vmatpush3.bf16.msra.mxu0 %v353_v1  ;;  %v301_v57 = vld [vmem:[%s466_s4] ss:$0 sm:$0xff] }
   0x8   :  { %336 = vmatprep.subr.bf16.mxu0 %v354_v2  ;;  %v302_v62 = vld [vmem:[%s467_s5] ss:$0 sm:$0xff] }
   0xb   :  { %337 = vmatpush3.bf16.msra.mxu0 %v354_v2 }
   0xc   :  { %338 = vmatprep.subr.bf16.mxu0 %v355_v3 }
   0xf   :  { %339 = vmatpush3.bf16.msra.mxu0 %v355_v3 }
  0x10   :  { %340 = vmatprep.subr.bf16.mxu0 %v356_v5 }
  0x13   :  { %341 = vmatpush3.bf16.msra.mxu0 %v356_v5 }
  0x14   :  { %342 = vmatprep.subr.bf16.mxu0 %v357_v6 }
  0x17   :  { %343 = vmatpush3.bf16.msra.mxu0 %v357_v6 }
  0x18   :  { %344 = vmatprep.subr.bf16.mxu0 %v358_v7 }
  0x1b   :  { %345 = vmatpush3.bf16.msra.mxu0 %v358_v7 }
  0x1c   :  { %346 = vmatprep.subr.bf16.mxu0 %v359_v8 }
  0x1f   :  { %347 = vmatpush3.bf16.msra.mxu0 %v359_v8 }
  0x22   :  { %349 = vmatmul.mubr.bf16.vlgmr.msra.gmra.mxu0 %v361_v9 }
  0xe2   :  { %v350_v11 = vpop.f32.mrf.mxu0 }
  0xe3   :  { %v189_v13 = vadd.f32 %v350_v11, %v300_v10 }
  0xe4   :  { %v150_v14 = vpop.f32.mrf.mxu0 }
  0xe5   :  { %v187_v16 = vadd.f32 %v300_v10, %v150_v14  ;;  %v197_v17 = vadd.f32 %v193_v12, %v189_v13 }
  0xe6   :  { %v351_v18 = vpop.f32.mrf.mxu0 }
  0xe7   :  { %v190_v20 = vadd.f32 %v351_v18, %v300_v10  ;;  %203 = vadd.xlane.f32.xlu1 %v197_v17  ;;  %v195_v21 = vadd.f32 %v191_v15, %v187_v16 }
  0xe8   :  { %v153_v22 = vpop.f32.mrf.mxu0 }
  0xe9   :  { %v188_v24 = vadd.f32 %v300_v10, %v153_v22  ;;  %199 = vadd.xlane.f32.xlu0 %v195_v21  ;;  %v198_v25 = vadd.f32 %v194_v19, %v190_v20 }
  0xeb   :  { %205 = vadd.xlane.f32.xlu1 %v198_v25  ;;  %v196_v26 = vadd.f32 %v192_v23, %v188_v24 }
  0xed   :  { %201 = vadd.xlane.f32.xlu0 %v196_v26 }
 0x170   :  { %v204_v27 = vpop.xlane.xlu1 %203 }
 0x171   :  { %v210_v29 = vmul.f32 0.0078125, %v204_v27 }
 0x172   :  { %v200_v28 = vpop.xlane.xlu0 %199 }
 0x173   :  { %v208_v30 = vmul.f32 0.0078125, %v200_v28  ;;  %v214_v34 = vsub.f32 %v197_v17, %v210_v29 }
 0x174   :  { %v206_v31 = vpop.xlane.xlu1 %205 }
 0x175   :  { %v212_v32 = vsub.f32 %v195_v21, %v208_v30  ;;  %v211_v35 = vmul.f32 0.0078125, %v206_v31  ;;  %v218_v40 = vmul.f32 %v214_v34, %v214_v34 }
 0x176   :  { %v202_v33 = vpop.xlane.xlu0 %201 }
 0x177   :  { %v209_v36 = vmul.f32 0.0078125, %v202_v33  ;;  %v216_v37 = vmul.f32 %v212_v32, %v212_v32  ;;  %v215_v39 = vsub.f32 %v198_v25, %v211_v35 }
 0x179   :  { %v213_v38 = vsub.f32 %v196_v26, %v209_v36  ;;  %220 = vadd.xlane.f32.xlu0 %v216_v37  ;;  %v219_v42 = vmul.f32 %v215_v39, %v215_v39 }
 0x17b   :  { %v217_v41 = vmul.f32 %v213_v38, %v213_v38 }
 0x17d   :  { %224 = vadd.xlane.f32.xlu0 %v218_v40  ;;  %222 = vadd.xlane.f32.xlu1 %v217_v41 }
 0x181   :  { %226 = vadd.xlane.f32.xlu1 %v219_v42 }
 0x202   :  { %v221_v43 = vpop.xlane.xlu0 %220 }
 0x203   :  { %v228_v44 = vmul.f32 0.0078125, %v221_v43 }
 0x205   :  { %v232_v45 = vadd.f32 1e-05, %v228_v44 }
 0x206   :  { %v223_v46 = vpop.xlane.xlu1 %222  ;;  %v225_v47 = vpop.xlane.xlu0 %224 }
 0x207   :  { %362 = vrsqrt.f32 %v232_v45  ;;  %v229_v48 = vmul.f32 0.0078125, %v223_v46  ;;  %v230_v49 = vmul.f32 0.0078125, %v225_v47 }
 0x209   :  { %v233_v50 = vadd.f32 1e-05, %v229_v48  ;;  %v234_v51 = vadd.f32 1e-05, %v230_v49 }
 0x20a   :  { %v227_v52 = vpop.xlane.xlu1 %226 }
 0x20b   :  { %364 = vrsqrt.f32 %v233_v50  ;;  %v231_v53 = vmul.f32 0.0078125, %v227_v52 }
 0x20c   :  { %366 = vrsqrt.f32 %v234_v51 }
 0x20d   :  { %v235_v54 = vadd.f32 1e-05, %v231_v53 }
 0x20f   :  { %368 = vrsqrt.f32 %v235_v54 }
 0x214   :  { %v363_v55 = vpop.eup %362 }
 0x215   :  { %v240_v56 = vmul.f32 %v363_v55, %v212_v32 }
 0x217   :  { %v251_v60 = vmul.f32 %v301_v57, %v240_v56 }
 0x218   :  { %v365_v58 = vpop.eup %364 }
 0x219   :  { %v367_v59 = vpop.eup %366  ;;  %v241_v61 = vmul.f32 %v365_v58, %v213_v38  ;;  %v262_v2 = vadd.f32 %v302_v62, %v251_v60 }
 0x21a   :  { %v242_v63 = vmul.f32 %v367_v59, %v214_v34 }
 0x21b   :  { %v252_v0 = vmul.f32 %v301_v57, %v241_v61 }
 0x21c   :  { %v369_v1 = vpop.eup %368  ;;  %v253_v4 = vmul.f32 %v301_v57, %v242_v63 }
 0x21d   :  { %v263_v3 = vadd.f32 %v302_v62, %v252_v0  ;;  %v243_v5 = vmul.f32 %v369_v1, %v215_v39 }
 0x21e   :  { %v264_v8 = vadd.f32 %v302_v62, %v253_v4 }
 0x21f   :  { %v314_v6 = vpack.c.bf16 %v263_v3, %v262_v2  ;;  %v254_v7 = vmul.f32 %v301_v57, %v243_v5 }
 0x221   :  { %315 = vst [vmem:[%s468_s6] sm:$0xff] %v314_v6   ;;  %v265_v9 = vadd.f32 %v302_v62, %v254_v7 }
 0x223   :  { %v319_v10 = vpack.c.bf16 %v265_v9, %v264_v8 }
 0x225   :  { %321 = vst [vmem:[%s468_s6 + $0x8] sm:$0xff] %v319_v10  }

// kernel: enhancement_forward.25
= control target key start
LH: loop header
LB: loop body
LE: loop exit
PB: predicated region body
PF: predicated region fallthrough
CT: control target
= control target key end

     0   :  { %s1114_s12 = smov 0   ;;  %s1219_s0 = inlined_call_operand.vmem [shape: bf16[8,16,32], index: 0, kind: input, shape index: {}]   ;;  %s1220_s1 = inlined_call_operand.vmem [shape: bf16[8,16,32], index: 1, kind: input, shape index: {}]   ;;  %s1221_s2 = inlined_call_operand.vmem [shape: bf16[8,16,32], index: 2, kind: input, shape index: {}]   ;;  %s1222_s3 = inlined_call_operand.vmem [shape: bf16[8,16,32], index: 3, kind: output, shape index: {}]  }
   0x1 LB: > { %s907_s13 = sadd.s32 4294967295, %s1090_s12   ;;  %p911_p0 = scmp.ge.s32.totalorder %s1090_s12, 1  ;;  %s1090_s12 = sphi %s1114_s12, %s13_s12  }
   0x2   : > { %p163_p1 = scmp.lt.s32.totalorder %s1090_s12, 3 }
   0x4   : > { %p164_p2 = pnand %p911_p0, %p163_p1 }
   0x5   : > { %s912_s14 = sshll.u32 (!%p164_p2), %s907_s13, 2 }
   0x6   : > { %167 = sbr.rel (%p164_p2) target bundleno = 749 (0x2ed), region = 32  ;;  %p202_p3 = scmp.lt.s32.totalorder (!%p164_p2), %s912_s14, 7 }
   0xb   : > { %v1092_v0 = vmov 0.0   ;;  %vm1093_vm0 = vmmov 0   ;;  %s1224_s14 = smov (!%p202_p3, %s912_s14), 7  ;;  %vm256_vm1 = vcmask 261120   ;;  %vm483_vm2 = vcmask 130048  }
   0xc   : > { %982 = vmatprep.subr.bf16.mxu0 %v1092_v0  ;;  %988 = vmatprep.subr.bf16.mxu1 %v1092_v0  ;;  %s1128_s15 = sshll.u32 %s1224_s14, 3  ;;  %vm816_vm3 = vcmask 257024  }
   0xd   : > { %984 = vmatprep.mubr.msk.bf16.mxu0 %vm1093_vm0, %v1092_v0  ;;  %990 = vmatprep.mubr.msk.bf16.mxu1 %vm1093_vm0, %v1092_v0  ;;  %s213_s18 = scalar_lea.vmem %s1220_s1, %s1128_s15  ;;  %s206_s21 = scalar_lea.vmem %s1219_s0, %s1128_s15 }
   0xe   : > { %v1040_v1 = vld [vmem:[%s213_s18] sm:$0xff]   ;;  %v1041_v2 = vld [vmem:[%s213_s18 + $0x8] sm:$0xff]   ;;  %v1044_v5 = vld [vmem:[%s213_s18 + $0x10] sm:$0xff]   ;;  %s1178_s24 = scalar_lea.vmem %s1221_s2, %s1128_s15  ;;  %s1198_s27 = scalar_lea.vmem %s1222_s3, %s1128_s15 }
   0xf   : > { %v261_v3 = vsel %vm256_vm1, %v1040_v1, 0  ;;  %v318_v4 = vsel %vm256_vm1, %v1041_v2, 0  ;;  %v1045_v6 = vld [vmem:[%s213_s18 + $0x18] sm:$0xff]   ;;  %v1042_v7 = vld [vmem:[%s206_s21] sm:$0xff]   ;;  %v1043_v8 = vld [vmem:[%s206_s21 + $0x8] sm:$0xff]   ;;  %v375_v9 = vsel %vm256_vm1, %v1044_v5, 0 }
  0x10   : > { %983 = vmatpush3.bf16.xpose.msra.mxu0 %v261_v3  ;;  %989 = vmatpush3.bf16.xpose.msra.mxu1 %v318_v4  ;;  %v432_v10 = vsel %vm256_vm1, %v1045_v6, 0  ;;  %v1046_v11 = vld [vmem:[%s206_s21 + $0x10] sm:$0xff]   ;;  %v1047_v12 = vld [vmem:[%s206_s21 + $0x18] sm:$0xff]  }
  0x11   : > { %994 = vmatprep.subr.bf16.mxu0 %v1092_v0  ;;  %1000 = vmatprep.subr.bf16.mxu1 %v1092_v0 }
  0x17   : > { %985 = vmatmul.mubr.msk.bf16.vlgmr.msra.gmra.mxu0 %vm256_vm1, %v1042_v7  ;;  %991 = vmatmul.mubr.msk.bf16.vlgmr.msra.gmra.mxu1 %vm256_vm1, %v1043_v8 }
  0x18   : > { %995 = vmatpush3.bf16.xpose.msra.mxu0 %v375_v9  ;;  %1001 = vmatpush3.bf16.xpose.msra.mxu1 %v432_v10 }
  0x19   : > { %996 = vmatprep.mubr.msk.bf16.mxu0 %vm1093_vm0, %v1092_v0  ;;  %1002 = vmatprep.mubr.msk.bf16.mxu1 %vm1093_vm0, %v1092_v0 }
  0x1a   : > { %1006 = vmatprep.subr.bf16.mxu0 %v1092_v0  ;;  %1012 = vmatprep.subr.bf16.mxu1 %v1092_v0 }
  0x1f   : > { %997 = vmatmul.mubr.msk.bf16.vlgmr.msra.gmra.mxu0 %vm256_vm1, %v1046_v11  ;;  %1003 = vmatmul.mubr.msk.bf16.vlgmr.msra.gmra.mxu1 %vm256_vm1, %v1047_v12 }
  0x20   : > { %1008 = vmatprep.mubr.msk.bf16.mxu0 %vm1093_vm0, %v1092_v0  ;;  %1014 = vmatprep.mubr.msk.bf16.mxu1 %vm1093_vm0, %v1092_v0 }
  0xd7   : > { %v297_v13 = vpop.f32.mrf.mxu0  ;;  %v354_v15 = vpop.f32.mrf.mxu1 }
  0xd8   : > { %v475_v14 = vmul.f32 0.17677669, %v297_v13  ;;  %v477_v16 = vmul.f32 0.17677669, %v354_v15 }
  0xd9   : > { %v986_v17 = vpop.f32.mrf.mxu0  ;;  %v992_v18 = vpop.f32.mrf.mxu1 }
  0xda   : > { %v484_v19 = vsel %vm483_vm2, %v475_v14, -inf  ;;  %v490_v20 = vsel %vm483_vm2, %v477_v16, -inf }
  0xdb   : > { %485 = vmax.xlane.f32.xlu0 %v484_v19  ;;  %v300_v21 = vpop.f32.mrf.mxu0  ;;  %491 = vmax.xlane.f32.xlu1 %v490_v20  ;;  %v357_v22 = vpop.f32.mrf.mxu1 }
  0xdc   : > { %v476_v23 = vmul.f32 0.17677669, %v300_v21  ;;  %v478_v24 = vmul.f32 0.17677669, %v357_v22  ;;  %v1048_v22 = vld [vmem:[%s1178_s24] sm:$0xff]  }
  0xdd   : > { %v987_v25 = vpop.f32.mrf.mxu0  ;;  %v993_v26 = vpop.f32.mrf.mxu1  ;;  %1007 = vmatpush3.bf16.msra.mxu0 %v1048_v22 }
  0xde   : > { %v487_v27 = vsel %vm483_vm2, %v476_v23, -inf  ;;  %v493_v28 = vsel %vm483_vm2, %v478_v24, -inf  ;;  %1018 = vmatprep.subr.bf16.mxu0 %v1092_v0 }
  0xdf   : > { %488 = vmax.xlane.f32.xlu0 %v487_v27  ;;  %v411_v29 = vpop.f32.mrf.mxu0  ;;  %494 = vmax.xlane.f32.xlu1 %v493_v28  ;;  %v468_v30 = vpop.f32.mrf.mxu1 }
  0xe0   : > { %v479_v31 = vmul.f32 0.17677669, %v411_v29  ;;  %v481_v32 = vmul.f32 0.17677669, %v468_v30 }
  0xe1   : > { %v998_v33 = vpop.f32.mrf.mxu0  ;;  %v1004_v34 = vpop.f32.mrf.mxu1 }
  0xe2   : > { %v496_v35 = vsel %vm483_vm2, %v479_v31, -inf  ;;  %v502_v39 = vsel %vm483_vm2, %v481_v32, -inf }
  0xe3   : > { %497 = vmax.xlane.f32.xlu0 %v496_v35  ;;  %v414_v36 = vpop.f32.mrf.mxu0  ;;  %v471_v37 = vpop.f32.mrf.mxu1 }
  0xe4   : > { %v480_v38 = vmul.f32 0.17677669, %v414_v36  ;;  %v482_v41 = vmul.f32 0.17677669, %v471_v37  ;;  %v1050_v37 = vld [vmem:[%s1178_s24 + $0x10] sm:$0xff]  }
  0xe5   : > { %v999_v40 = vpop.f32.mrf.mxu0  ;;  %v1005_v42 = vpop.f32.mrf.mxu1 }
  0xe6   : > { %v499_v43 = vsel %vm483_vm2, %v480_v38, -inf  ;;  %v505_v44 = vsel %vm483_vm2, %v482_v41, -inf }
  0xe7   : > { %503 = vmax.xlane.f32.xlu0 %v502_v39  ;;  %500 = vmax.xlane.f32.xlu1 %v499_v43  ;;  %v1051_v43 = vld [vmem:[%s1178_s24 + $0x18] sm:$0xff]  }
  0xeb   : > { %506 = vmax.xlane.f32.xlu1 %v505_v44 }
 0x164   : > { %v486_v45 = vpop.xlane.xlu0 %485  ;;  %v492_v46 = vpop.xlane.xlu1 %491 }
 0x165   : > { %v508_v47 = vsub.f32 %v475_v14, %v486_v45  ;;  %v510_v48 = vsub.f32 %v477_v16, %v492_v46 }
 0x167   : > { %v516_v49 = vmul.f32 1.442695, %v508_v47  ;;  %v520_v50 = vmul.f32 1.442695, %v510_v48 }
 0x168   : > { %v489_v51 = vpop.xlane.xlu0 %488  ;;  %v495_v52 = vpop.xlane.xlu1 %494 }
 0x169   : > { %1052 = vpow2.f32 %v516_v49  ;;  %v509_v53 = vsub.f32 %v476_v23, %v489_v51  ;;  %v511_v54 = vsub.f32 %v478_v24, %v495_v52  ;;  %v1049_v23 = vld [vmem:[%s1178_s24 + $0x8] sm:$0xff]  }
 0x16a   : > { %1054 = vpow2.f32 %v520_v50  ;;  %1013 = vmatpush3.bf16.msra.mxu1 %v1049_v23 }
 0x16b   : > { %v518_v55 = vmul.f32 1.442695, %v509_v53  ;;  %v522_v56 = vmul.f32 1.442695, %v511_v54  ;;  %1024 = vmatprep.subr.bf16.mxu1 %v1092_v0 }
 0x16c   : > { %v498_v57 = vpop.xlane.xlu0 %497 }
 0x16d   : > { %1056 = vpow2.f32 %v518_v55  ;;  %v512_v58 = vsub.f32 %v479_v31, %v498_v57 }
 0x16e   : > { %1058 = vpow2.f32 %v522_v56 }
 0x16f   : > { %v524_v59 = vmul.f32 1.442695, %v512_v58 }
 0x170   : > { %v504_v60 = vpop.xlane.xlu0 %503  ;;  %v501_v61 = vpop.xlane.xlu1 %500 }
 0x171   : > { %1060 = vpow2.f32 %v524_v59  ;;  %v514_v62 = vsub.f32 %v481_v32, %v504_v60  ;;  %v513_v63 = vsub.f32 %v480_v38, %v501_v61 }
 0x173   : > { %v528_v1 = vmul.f32 1.442695, %v514_v62  ;;  %v526_v2 = vmul.f32 1.442695, %v513_v63 }
 0x174   : > { %v507_v3 = vpop.xlane.xlu1 %506 }
 0x175   : > { %1062 = vpow2.f32 %v528_v1  ;;  %v515_v4 = vsub.f32 %v482_v41, %v507_v3 }
 0x176   : > { %v1053_v5 = vpop.eup %1052  ;;  %1064 = vpow2.f32 %v526_v2 }
 0x177   : > { %v530_v6 = vmul.f32 1.442695, %v515_v4  ;;  %v532_v7 = vsel %vm483_vm2, %v1053_v5, 0.0  ;;  %v1055_v8 = vpop.eup %1054 }
 0x178   : > { %533 = vadd.xlane.f32.xlu0 %v532_v7  ;;  %v538_v10 = vsel %vm483_vm2, %v1055_v8, 0.0 }
 0x179   : > { %1066 = vpow2.f32 %v530_v6 }
 0x17a   : > { %v1057_v9 = vpop.eup %1056 }
 0x17b   : > { %v535_v11 = vsel %vm483_vm2, %v1057_v9, 0.0  ;;  %v1059_v12 = vpop.eup %1058 }
 0x17c   : > { %539 = vadd.xlane.f32.xlu0 %v538_v10  ;;  %536 = vadd.xlane.f32.xlu1 %v535_v11  ;;  %v541_v15 = vsel %vm483_vm2, %v1059_v12, 0.0 }
 0x17e   : > { %v1061_v13 = vpop.eup %1060 }
 0x17f   : > { %v544_v14 = vsel %vm483_vm2, %v1061_v13, 0.0 }
 0x180   : > { %545 = vadd.xlane.f32.xlu0 %v544_v14  ;;  %542 = vadd.xlane.f32.xlu1 %v541_v15 }
 0x182   : > { %v1063_v16 = vpop.eup %1062 }
 0x183   : > { %v1065_v17 = vpop.eup %1064  ;;  %v550_v18 = vsel %vm483_vm2, %v1063_v16, 0.0 }
 0x184   : > { %551 = vadd.xlane.f32.xlu0 %v550_v18  ;;  %v547_v19 = vsel %vm483_vm2, %v1065_v17, 0.0 }
 0x185   : > { %548 = vadd.xlane.f32.xlu1 %v547_v19 }
 0x186   : > { %v1067_v20 = vpop.eup %1066 }
 0x187   : > { %v553_v21 = vsel %vm483_vm2, %v1067_v20, 0.0 }
 0x189   : > { %554 = vadd.xlane.f32.xlu1 %v553_v21 }
 0x201   : > { %v534_v24 = vpop.xlane.xlu0 %533 }
 0x202   : > { %1068 = vrcp.f32 %v534_v24 }
 0x205   : > { %v540_v25 = vpop.xlane.xlu0 %539  ;;  %v537_v26 = vpop.xlane.xlu1 %536 }
 0x206   : > { %1070 = vrcp.f32 %v537_v26 }
 0x207   : > { %1072 = vrcp.f32 %v540_v25 }
 0x209   : > { %v546_v27 = vpop.xlane.xlu0 %545  ;;  %v543_v28 = vpop.xlane.xlu1 %542 }
 0x20a   : > { %1074 = vrcp.f32 %v543_v28 }
 0x20b   : > { %1076 = vrcp.f32 %v546_v27 }
 0x20d   : > { %v552_v29 = vpop.xlane.xlu0 %551 }
 0x20e   : > { %v549_v30 = vpop.xlane.xlu1 %548 }
 0x20f   : > { %1078 = vrcp.f32 %v549_v30  ;;  %v1069_v31 = vpop.eup %1068 }
 0x210   : > { %1080 = vrcp.f32 %v552_v29  ;;  %v557_v34 = vmul.f32 %v1069_v31, %v1053_v5 }
 0x212   : > { %v555_v32 = vpop.xlane.xlu1 %554 }
 0x213   : > { %1082 = vrcp.f32 %v555_v32  ;;  %v1071_v33 = vpop.eup %1070 }
 0x214   : > { %v559_v35 = vmul.f32 %v1071_v33, %v1057_v9  ;;  %v1073_v36 = vpop.eup %1072 }
 0x215   : > { %v561_v40 = vmul.f32 %v1073_v36, %v1055_v8 }
 0x216   : > { %v572_v38 = vpack.c.bf16 %v559_v35, %v557_v34 }
 0x217   : > { %v1075_v39 = vpop.eup %1074 }
 0x218   : > { %1009 = vmatmul.mubr.msk.bf16.vlgmr.msra.gmra.mxu0 %vm483_vm2, %v572_v38  ;;  %v563_v41 = vmul.f32 %v1075_v39, %v1059_v12  ;;  %v1077_v42 = vpop.eup %1076 }
 0x219   : > { %1019 = vmatpush3.bf16.msra.mxu0 %v1050_v37  ;;  %1020 = vmatprep.mubr.msk.bf16.mxu0 %vm1093_vm0, %v1092_v0  ;;  %v565_v46 = vmul.f32 %v1077_v42, %v1061_v13 }
 0x21a   : > { %v573_v44 = vpack.c.bf16 %v563_v41, %v561_v40 }
 0x21c   : > { %v1079_v45 = vpop.eup %1078  ;;  %1015 = vmatmul.mubr.msk.bf16.vlgmr.msra.gmra.mxu1 %vm483_vm2, %v573_v44 }
 0x21d   : > { %v567_v47 = vmul.f32 %v1079_v45, %v1065_v17  ;;  %v1081_v48 = vpop.eup %1080  ;;  %1025 = vmatpush3.bf16.msra.mxu1 %v1051_v43  ;;  %1026 = vmatprep.mubr.msk.bf16.mxu1 %vm1093_vm0, %v1092_v0 }
 0x21e   : > { %v569_v51 = vmul.f32 %v1081_v48, %v1063_v16 }
 0x21f   : > { %v574_v49 = vpack.c.bf16 %v567_v47, %v565_v46 }
 0x220   : > { %v1083_v50 = vpop.eup %1082 }
 0x221   : > { %v571_v52 = vmul.f32 %v1083_v50, %v1067_v20  ;;  %1021 = vmatmul.mubr.msk.bf16.vlgmr.msra.gmra.mxu0 %vm483_vm2, %v574_v49 }
 0x223   : > { %v575_v53 = vpack.c.bf16 %v571_v52, %v569_v51 }
 0x225   : > { %1027 = vmatmul.mubr.msk.bf16.vlgmr.msra.gmra.mxu1 %vm483_vm2, %v575_v53 }
 0x2d8   : > { %v627_v54 = vpop.f32.mrf.mxu0 }
 0x2d9   : > { %v958_v0 = vpack.c.bf16 %v627_v54, %v627_v54 }
 0x2da   : > { %v1010_v55 = vpop.f32.mrf.mxu0 }
 0x2db   : > { %817 = vst.msk [vmem:[%s1198_s27] sm:$0xf] %vm816_vm3, %v958_v0 }
 0x2dc   : > { %v630_v56 = vpop.f32.mrf.mxu0  ;;  %v677_v57 = vpop.f32.mrf.mxu1 }
 0x2dd   : > { %v959_v58 = vpack.c.bf16 %v630_v56, %v630_v56  ;;  %v960_v59 = vpack.c.bf16 %v677_v57, %v677_v57 }
 0x2de   : > { %v1011_v60 = vpop.f32.mrf.mxu0  ;;  %v1016_v61 = vpop.f32.mrf.mxu1 }
 0x2df   : > { %818 = vst.msk [vmem:[%s1198_s27 + $0x4] sm:$0xf] %vm816_vm3, %v959_v58  ;;  %819 = vst.msk [vmem:[%s1198_s27 + $0x8] sm:$0xf] %vm816_vm3, %v960_v59 }
 0x2e0   : > { %v680_v62 = vpop.f32.mrf.mxu1 }
 0x2e1   : > { %v727_v63 = vpop.f32.mrf.mxu0  ;;  %v961_v1 = vpack.c.bf16 %v680_v62, %v680_v62 }
 0x2e2   : > { %v962_v2 = vpack.c.bf16 %v727_v63, %v727_v63  ;;  %v1017_v3 = vpop.f32.mrf.mxu1 }
 0x2e3   : > { %v1022_v4 = vpop.f32.mrf.mxu0  ;;  %820 = vst.msk [vmem:[%s1198_s27 + $0xc] sm:$0xf] %vm816_vm3, %v961_v1 }
 0x2e4   : > { %821 = vst.msk [vmem:[%s1198_s27 + $0x10] sm:$0xf] %vm816_vm3, %v962_v2 }
 0x2e5   : > { %v730_v5 = vpop.f32.mrf.mxu0  ;;  %v777_v6 = vpop.f32.mrf.mxu1 }
 0x2e6   : > { %v963_v7 = vpack.c.bf16 %v730_v5, %v730_v5  ;;  %v964_v8 = vpack.c.bf16 %v777_v6, %v777_v6 }
 0x2e7   : > { %v1023_v9 = vpop.f32.mrf.mxu0  ;;  %v1028_v10 = vpop.f32.mrf.mxu1 }
 0x2e8   : > { %822 = vst.msk [vmem:[%s1198_s27 + $0x14] sm:$0xf] %vm816_vm3, %v963_v7  ;;  %823 = vst.msk [vmem:[%s1198_s27 + $0x18] sm:$0xf] %vm816_vm3, %v964_v8 }
 0x2e9   : > { %v780_v11 = vpop.f32.mrf.mxu1 }
 0x2ea   : > { %v965_v12 = vpack.c.bf16 %v780_v11, %v780_v11 }
 0x2eb   : > { %v1029_v13 = vpop.f32.mrf.mxu1 }
 0x2ec   : > { %824 = vst.msk [vmem:[%s1198_s27 + $0x1c] sm:$0xf] %vm816_vm3, %v965_v12 }
 0x2ed PF: > { %s13_s12 = sadd.s32 1, %s1090_s12  }
 0x2ee   : > { %p10_p4 = scmp.ge.s32.totalorder %s13_s12, 4  }
 0x2f0   :  { %12 = sbr.rel (!%p10_p4) target bundleno = 1 (0x1), region = 68 }

// kernel: enhancement_forward.28
= control target key start
LH: loop header
LB: loop body
LE: loop exit
PB: predicated region body
PF: predicated region fallthrough
CT: control target
= control target key end

     0   :  { %s1392_s21 = smov 0   ;;  %s1394_s22 = smov 0   ;;  %s1536_s0 = inlined_call_operand.vmem [shape: bf16[32,2048], index: 0, kind: input, shape index: {}]   ;;  %s1537_s1 = inlined_call_operand.vmem [shape: bf16[2048,128], index: 1, kind: input, shape index: {}]   ;;  %s1538_s2 = inlined_call_operand.vmem [shape: f32[1,128], index: 2, kind: input, shape index: {}]   ;;  %s1539_s3 = inlined_call_operand.vmem [shape: f32[32,128], index: 3, kind: input, shape index: {}]   ;;  %s1540_s4 = inlined_call_operand.vmem [shape: f32[1,128], index: 4, kind: input, shape index: {}]   ;;  %s1541_s5 = inlined_call_operand.vmem [shape: f32[1,128], index: 5, kind: input, shape index: {}]   ;;  %s1542_s6 = inlined_call_operand.vmem [shape: f32[32,128], index: 6, kind: output, shape index: {}]  }
   0x1   :  { %s1396_s23 = smov 0   ;;  %s1398_s24 = smov 0  }
   0x2   :  { %s1400_s25 = smov 0  }
   0x3 LB: > { %s28_s26 = sadd.s32 1, %s1350_s24  ;;  %p51_p1 = scmp.ne.s32.totalorder %s1342_s22, %s1338_s21  ;;  %s1354_s25 = sphi %s1400_s25, %s16_s25   ;;  %s1350_s24 = sphi %s1398_s24, %s1546_s24   ;;  %s1346_s23 = sphi %s1396_s23, %s1545_s23   ;;  %s1342_s22 = sphi %s1394_s22, %s1544_s22   ;;  %s1338_s21 = sphi %s1392_s21, %s1543_s21  }
   0x4   : > { %p29_p0 = scmp.ge.s32.totalorder %s28_s26, 4  ;;  %p52_p2 = scmp.eq.s32.totalorder %s1354_s25, 0 }
   0x5   : > { %s44_s28 = sadd.s32 1, %s1342_s22  ;;  %p1109_p5 = scmp.ge.s32.totalorder %s1354_s25, 4 }
   0x6   : > { %s1548_s26 = smov (%p29_p0, %s28_s26), 0  ;;  %p53_p3 = por %p52_p2, %p51_p1 }
   0x7   : > { %s40_s27 = ssub.s32 %s1350_s24, %s1548_s26  ;;  %269 = sbr.rel (%p1109_p5) target bundleno = 20 (0x14), region = 32 }
   0x8   : > { %p42_p4 = scmp.eq.s32.totalorder %s40_s27, 0 }
   0xa   : > { %s1427_s29 = scalar_select %p42_p4, %s1342_s22, %s44_s28  }
   0xc   : > { %272 = sbr.rel (!%p53_p3) target bundleno = 20 (0x14), region = 36  ;;  %s274_s30 = sand.u32 (%p53_p3), 1, %s1342_s22  }
   0xd   : > { %s1166_s7 = sshll.u32 (%p53_p3), %s1350_s24, 4  ;;  %s1110_s8 = sshll.u32 (%p53_p3), %s274_s30, 6 }
   0xe   : > { %s282_s11 = scalar_lea.vmem (%p53_p3), %s1536_s0, %s1166_s7  ;;  %s276_s12 = scalar_lea.vmem (%p53_p3), [#allocation3], %s1110_s8 }
   0xf   : > { %v295_v0 = vld [vmem:[%s282_s11] sm:$0xff] (%p53_p3)  ;;  %v297_v1 = vld [vmem:[%s282_s11 + $0x8] sm:$0xff] (%p53_p3) }
  0x10   : > { %v299_v2 = vld [vmem:[%s282_s11 + $0x40] sm:$0xff] (%p53_p3)  ;;  %296 = vst [vmem:[%s276_s12] sm:$0xff] (%p53_p3), %v295_v0  ;;  %298 = vst [vmem:[%s276_s12 + $0x8] sm:$0xff] (%p53_p3), %v297_v1  ;;  %v301_v3 = vld [vmem:[%s282_s11 + $0x48] sm:$0xff] (%p53_p3) }
  0x11   : > { %300 = vst [vmem:[%s276_s12 + $0x10] sm:$0xff] %v299_v2  ;;  %v303_v4 = vld [vmem:[%s282_s11 + $0x80] sm:$0xff]  ;;  %v305_v5 = vld [vmem:[%s282_s11 + $0x88] sm:$0xff]  ;;  %302 = vst [vmem:[%s276_s12 + $0x18] sm:$0xff] %v301_v3 }
  0x12   : > { %304 = vst [vmem:[%s276_s12 + $0x20] sm:$0xff] %v303_v4  ;;  %306 = vst [vmem:[%s276_s12 + $0x28] sm:$0xff] %v305_v5  ;;  %v307_v6 = vld [vmem:[%s282_s11 + $0xc0] sm:$0xff]  ;;  %v309_v7 = vld [vmem:[%s282_s11 + $0xc8] sm:$0xff] }
  0x13   : > { %308 = vst [vmem:[%s276_s12 + $0x30] sm:$0xff] %v307_v6  ;;  %310 = vst [vmem:[%s276_s12 + $0x38] sm:$0xff] %v309_v7 }
  0x14 PF: > { %p1113_p6 = scmp.ge.s32.totalorder %s1354_s25, 1  ;;  %p327_p7 = scmp.lt.s32.totalorder %s1354_s25, 5 }
  0x16   : > { %p328_p8 = pnand %p1113_p6, %p327_p7 }
  0x17   : > { %s334_s13 = sand.u32 (!%p328_p8), 1, %s1338_s21   ;;  %s1115_s14 = sshll.u32 (!%p328_p8), %s1346_s23, 6 }
  0x18   : > { %331 = sbr.rel (%p328_p8) target bundleno = 606 (0x25e), region = 63  ;;  %s1114_s15 = sshll.u32 (!%p328_p8), %s334_s13, 6 }
  0x19   : > { %p394_p9 = scmp.lt.s32.totalorder (!%p328_p8), %s1115_s14, 255  ;;  %s1444_s20 = scalar_lea.vmem (!%p328_p8), [#allocation3], %s1114_s15 }
  0x1a   : > { %p1117_p10 = scmp.ne.s32.totalorder (!%p328_p8), %s1346_s23, 0 }
  0x1d   : > { %s1550_s14 = smov (!%p394_p9, %s1115_s14), 255  ;;  %433 = sbr.rel (%p1117_p10) target bundleno = 37 (0x25), region = 71 }
  0x1e   : > { %s1116_s16 = sshll.u32 %s1550_s14, 2 }
  0x1f   : > { %s1442_s19 = scalar_lea.vmem %s1537_s1, %s1116_s16 }
  0x22   : > { %v1356_v8 = vmov 0.0  }
  0x23   : > { %434 = vst [vmem:[#allocation2 + $0x10] sm:$0xff] %v1356_v8  ;;  %435 = vst [vmem:[#allocation2] sm:$0xff] %v1356_v8 }
  0x24   : > { %436 = vst [vmem:[#allocation2 + $0x18] sm:$0xff] %v1356_v8  ;;  %437 = vst [vmem:[#allocation2 + $0x8] sm:$0xff] %v1356_v8 }
  0x25 PF: > { %v1264_v9 = vld [vmem:[%s1442_s19 + $0x78] sm:$0xff]   ;;  %v1268_v13 = vld [vmem:[%s1442_s19 + $0x70] sm:$0xff]   ;;  %v1272_v17 = vld [vmem:[%s1442_s19 + $0x68] sm:$0xff]   ;;  %p1158_p11 = scmp.ne.s32.totalorder %s1346_s23, 3 }
  0x26   : > { %v1265_v10 = vld [vmem:[%s1442_s19 + $0xf8] sm:$0xff]   ;;  %1167 = vmatprep.subr.bf16.mxu0 %v1264_v9  ;;  %v1269_v14 = vld [vmem:[%s1442_s19 + $0xf0] sm:$0xff]   ;;  %v1273_v18 = vld [vmem:[%s1442_s19 + $0xe8] sm:$0xff]  }
  0x27   : > { %v1266_v11 = vld [vmem:[%s1442_s19 + $0x38] sm:$0xff]   ;;  %1195 = vmatprep.subr.bf16.mxu1 %v1265_v10  ;;  %v1270_v15 = vld [vmem:[%s1442_s19 + $0x30] sm:$0xff]   ;;  %v1274_v19 = vld [vmem:[%s1442_s19 + $0x28] sm:$0xff]  }
  0x28   : > { %v1267_v12 = vld [vmem:[%s1442_s19 + $0xb8] sm:$0xff]   ;;  %1168 = vmatpush3.bf16.msra.mxu0 %v1266_v11  ;;  %v1271_v16 = vld [vmem:[%s1442_s19 + $0xb0] sm:$0xff]   ;;  %v1275_v20 = vld [vmem:[%s1442_s19 + $0xa8] sm:$0xff]  }
  0x29   : > { %1196 = vmatpush3.bf16.msra.mxu1 %v1267_v12  ;;  %1169 = vmatprep.subr.bf16.mxu0 %v1268_v13  ;;  %v1276_v21 = vld [vmem:[%s1442_s19 + $0x60] sm:$0xff]   ;;  %v1280_v25 = vld [vmem:[%s1442_s19 + $0x58] sm:$0xff]   ;;  %v1284_v29 = vld [vmem:[%s1442_s19 + $0x50] sm:$0xff]  }
  0x2a   : > { %1197 = vmatprep.subr.bf16.mxu1 %v1269_v14  ;;  %v1277_v22 = vld [vmem:[%s1442_s19 + $0xe0] sm:$0xff]   ;;  %v1281_v26 = vld [vmem:[%s1442_s19 + $0xd8] sm:$0xff]   ;;  %v1285_v30 = vld [vmem:[%s1442_s19 + $0xd0] sm:$0xff]  }
  0x2b   : > { %v1278_v23 = vld [vmem:[%s1442_s19 + $0x20] sm:$0xff]   ;;  %v1282_v27 = vld [vmem:[%s1442_s19 + $0x18] sm:$0xff]   ;;  %v1286_v31 = vld [vmem:[%s1442_s19 + $0x10] sm:$0xff]  }
  0x2c   : > { %1170 = vmatpush3.bf16.msra.mxu0 %v1270_v15  ;;  %v1279_v24 = vld [vmem:[%s1442_s19 + $0xa0] sm:$0xff]   ;;  %v1283_v28 = vld [vmem:[%s1442_s19 + $0x98] sm:$0xff]   ;;  %v1287_v32 = vld [vmem:[%s1442_s19 + $0x90] sm:$0xff]  }
  0x2d   : > { %1198 = vmatpush3.bf16.msra.mxu1 %v1271_v16  ;;  %1171 = vmatprep.subr.bf16.mxu0 %v1272_v17  ;;  %v1288_v33 = vld [vmem:[%s1442_s19 + $0x48] sm:$0xff]   ;;  %v1292_v37 = vld [vmem:[%s1442_s19 + $0x40] sm:$0xff]   ;;  %v446_v56 = vld [vmem:[#allocation2 + $0x10] sm:$0xff] }
  0x2e   : > { %1199 = vmatprep.subr.bf16.mxu1 %v1273_v18  ;;  %v1289_v34 = vld [vmem:[%s1442_s19 + $0xc8] sm:$0xff]   ;;  %v1293_v38 = vld [vmem:[%s1442_s19 + $0xc0] sm:$0xff]   ;;  %v448_v10 = vld [vmem:[#allocation2 + $0x18] sm:$0xff] }
  0x2f   : > { %v1290_v35 = vld [vmem:[%s1442_s19 + $0x8] sm:$0xff]   ;;  %v1294_v39 = vld [vmem:[%s1442_s19] sm:$0xff]  }
  0x30   : > { %1172 = vmatpush3.bf16.msra.mxu0 %v1274_v19  ;;  %v1291_v36 = vld [vmem:[%s1442_s19 + $0x88] sm:$0xff]   ;;  %v1295_v40 = vld [vmem:[%s1442_s19 + $0x80] sm:$0xff]  }
  0x31   : > { %1200 = vmatpush3.bf16.msra.mxu1 %v1275_v20  ;;  %1173 = vmatprep.subr.bf16.mxu0 %v1276_v21  ;;  %v1296_v41 = vld [vmem:[%s1444_s20] ss:$16 sps:$4 sm:$0xff]   ;;  %v1298_v42 = vld [vmem:[%s1444_s20 + $0x4] ss:$16 sps:$4 sm:$0xff]   ;;  %v1299_v43 = vld [vmem:[%s1444_s20 + $0x8] ss:$16 sps:$4 sm:$0xff]  }
  0x32   : > { %1201 = vmatprep.subr.bf16.mxu1 %v1277_v22  ;;  %v1301_v44 = vld [vmem:[%s1444_s20 + $0xc] ss:$16 sps:$4 sm:$0xff]   ;;  %778 = vmatprep.mubr.bf16.mxu0 %v1298_v42  ;;  %v1302_v45 = vld [vmem:[%s1444_s20 + $0x24] ss:$16 sps:$4 sm:$0xff]   ;;  %v1306_v47 = vld [vmem:[%s1444_s20 + $0x20] ss:$16 sps:$4 sm:$0xff]  }
  0x33   : > { %827 = vmatprep.mubr.bf16.mxu1 %v1301_v44  ;;  %v1304_v46 = vld [vmem:[%s1444_s20 + $0x2c] ss:$16 sps:$4 sm:$0xff]   ;;  %v1307_v48 = vld [vmem:[%s1444_s20 + $0x28] ss:$16 sps:$4 sm:$0xff]   ;;  %v447_v1 = vld [vmem:[#allocation2] sm:$0xff] }
  0x34   : > { %1174 = vmatpush3.bf16.msra.mxu0 %v1278_v23  ;;  %v449_v18 = vld [vmem:[#allocation2 + $0x8] sm:$0xff] }
  0x35   : > { %1202 = vmatpush3.bf16.msra.mxu1 %v1279_v24  ;;  %1175 = vmatprep.subr.bf16.mxu0 %v1280_v25 }
  0x36   : > { %1203 = vmatprep.subr.bf16.mxu1 %v1281_v26 }
  0x38   : > { %1176 = vmatpush3.bf16.msra.mxu0 %v1282_v27 }
  0x39   : > { %1204 = vmatpush3.bf16.msra.mxu1 %v1283_v28  ;;  %1177 = vmatprep.subr.bf16.mxu0 %v1284_v29 }
  0x3a   : > { %1205 = vmatprep.subr.bf16.mxu1 %v1285_v30 }
  0x3c   : > { %1178 = vmatpush3.bf16.msra.mxu0 %v1286_v31 }
  0x3d   : > { %1206 = vmatpush3.bf16.msra.mxu1 %v1287_v32  ;;  %1179 = vmatprep.subr.bf16.mxu0 %v1288_v33 }
  0x3e   : > { %1207 = vmatprep.subr.bf16.mxu1 %v1289_v34 }
  0x40   : > { %1180 = vmatpush3.bf16.msra.mxu0 %v1290_v35 }
  0x41   : > { %1208 = vmatpush3.bf16.msra.mxu1 %v1291_v36  ;;  %1181 = vmatprep.subr.bf16.mxu0 %v1292_v37 }
  0x42   : > { %1209 = vmatprep.subr.bf16.mxu1 %v1293_v38 }
  0x44   : > { %1182 = vmatpush3.bf16.msra.mxu0 %v1294_v39 }
  0x45   : > { %1210 = vmatpush3.bf16.msra.mxu1 %v1295_v40 }
  0x47   : > { %779 = vmatmul.mubr.bf16.vlgmr.msra.gmra.mxu0 %v1296_v41 }
  0x48   : > { %828 = vmatmul.mubr.bf16.vlgmr.msra.gmra.mxu1 %v1299_v43  ;;  %786 = vmatprep.mubr.bf16.mxu0 %v1302_v45 }
  0x49   : > { %835 = vmatprep.mubr.bf16.mxu1 %v1304_v46 }
  0x4f   : > { %787 = vmatmul.mubr.bf16.gmra.mxu0 %v1306_v47 }
  0x50   : > { %836 = vmatmul.mubr.bf16.gmra.mxu1 %v1307_v48 }
 0x107   : > { %v1183_v49 = vpop.f32.mrf.mxu0 }
 0x108   : > { %v1211_v50 = vpop.f32.mrf.mxu1 }
 0x109   : > { %v1184_v51 = vpop.f32.mrf.mxu0 }
 0x10a   : > { %v1185_v52 = vadd.f32 %v1184_v51, %v1183_v49  ;;  %v1212_v53 = vpop.f32.mrf.mxu1 }
 0x10b   : > { %v1213_v54 = vadd.f32 %v1212_v53, %v1211_v50  ;;  %v1186_v55 = vpop.f32.mrf.mxu0 }
 0x10c   : > { %v1214_v57 = vpop.f32.mrf.mxu1 }
 0x10d   : > { %v830_v58 = vadd.f32 %v1213_v54, %v1185_v52  ;;  %v1187_v59 = vpop.f32.mrf.mxu0 }
 0x10e   : > { %v1188_v60 = vadd.f32 %v1187_v59, %v1186_v55  ;;  %v1215_v61 = vpop.f32.mrf.mxu1 }
 0x10f   : > { %v844_v62 = vadd.f32 %v830_v58, %v446_v56  ;;  %v1216_v63 = vadd.f32 %v1215_v61, %v1214_v57  ;;  %v1189_v0 = vpop.f32.mrf.mxu0 }
 0x110   : > { %v1217_v2 = vpop.f32.mrf.mxu1 }
 0x111   : > { %848 = vst [vmem:[#allocation2 + $0x10] sm:$0xff] %v844_v62  ;;  %v833_v3 = vadd.f32 %v1216_v63, %v1188_v60  ;;  %v1190_v4 = vpop.f32.mrf.mxu0 }
 0x112   : > { %v1191_v5 = vadd.f32 %v1190_v4, %v1189_v0  ;;  %v1218_v6 = vpop.f32.mrf.mxu1 }
 0x113   : > { %v845_v7 = vadd.f32 %v833_v3, %v447_v1  ;;  %v1219_v8 = vadd.f32 %v1218_v6, %v1217_v2  ;;  %v1192_v9 = vpop.f32.mrf.mxu0 }
 0x114   : > { %v1220_v11 = vpop.f32.mrf.mxu1 }
 0x115   : > { %849 = vst [vmem:[#allocation2] sm:$0xff] %v845_v7  ;;  %v838_v12 = vadd.f32 %v1219_v8, %v1191_v5  ;;  %v1193_v13 = vpop.f32.mrf.mxu0 }
 0x116   : > { %v1194_v14 = vadd.f32 %v1193_v13, %v1192_v9  ;;  %v1221_v15 = vpop.f32.mrf.mxu1 }
 0x117   : > { %v846_v16 = vadd.f32 %v838_v12, %v448_v10  ;;  %v1222_v17 = vadd.f32 %v1221_v15, %v1220_v11 }
 0x119   : > { %850 = vst [vmem:[#allocation2 + $0x18] sm:$0xff] %v846_v16  ;;  %v841_v19 = vadd.f32 %v1222_v17, %v1194_v14  ;;  %855 = sbr.rel (%p1158_p11) target bundleno = 606 (0x25e), region = 75 }
 0x11b   : > { %v847_v20 = vadd.f32 %v841_v19, %v449_v18 }
 0x11d   : > { %851 = vst [vmem:[#allocation2 + $0x8] sm:$0xff] %v847_v20 }
 0x11e   : > { %v856_v21 = vld [vmem:[#allocation2 + $0x10] sm:$0xff]  ;;  %v1159_v22 = vld [vmem:[%s1538_s2] ss:$0 sm:$0xff]  ;;  %v872_v30 = vld [vmem:[%s1539_s3 + $0x8] sm:$0xff] }
 0x11f   : > { %v871_v23 = vld [vmem:[%s1539_s3] sm:$0xff]  ;;  %v867_v24 = vadd.f32 %v1159_v22, %v856_v21  ;;  %v873_v26 = vld [vmem:[%s1539_s3 + $0x10] sm:$0xff]  ;;  %v874_v34 = vld [vmem:[%s1539_s3 + $0x18] sm:$0xff] }
 0x120   : > { %v858_v25 = vld [vmem:[#allocation2 + $0x18] sm:$0xff]  ;;  %v857_v27 = vld [vmem:[#allocation2] sm:$0xff] }
 0x121   : > { %v869_v28 = vadd.f32 %v1159_v22, %v858_v25  ;;  %v868_v29 = vadd.f32 %v1159_v22, %v857_v27  ;;  %v875_v32 = vadd.f32 %v871_v23, %v867_v24  ;;  %v1160_v3 = vld [vmem:[%s1540_s4] ss:$0 sm:$0xff] }
 0x122   : > { %v1161_v5 = vld [vmem:[%s1541_s5] ss:$0 sm:$0xff] }
 0x123   : > { %v877_v35 = vadd.f32 %v873_v26, %v869_v28  ;;  %879 = vadd.xlane.f32.xlu0 %v875_v32  ;;  %v876_v36 = vadd.f32 %v872_v30, %v868_v29 }
 0x124   : > { %v859_v31 = vld [vmem:[#allocation2 + $0x8] sm:$0xff] }
 0x125   : > { %v870_v33 = vadd.f32 %v1159_v22, %v859_v31  ;;  %883 = vadd.xlane.f32.xlu1 %v877_v35 }
 0x127   : > { %v878_v37 = vadd.f32 %v874_v34, %v870_v33  ;;  %881 = vadd.xlane.f32.xlu0 %v876_v36 }
 0x129   : > { %885 = vadd.xlane.f32.xlu1 %v878_v37 }
 0x1ac   : > { %v880_v38 = vpop.xlane.xlu0 %879 }
 0x1ad   : > { %v888_v39 = vmul.f32 0.0078125, %v880_v38 }
 0x1ae   : > { %v884_v40 = vpop.xlane.xlu1 %883 }
 0x1af   : > { %v890_v41 = vmul.f32 0.0078125, %v884_v40  ;;  %v892_v42 = vsub.f32 %v875_v32, %v888_v39 }
 0x1b0   : > { %v882_v44 = vpop.xlane.xlu0 %881 }
 0x1b1   : > { %v894_v43 = vsub.f32 %v877_v35, %v890_v41  ;;  %v889_v45 = vmul.f32 0.0078125, %v882_v44  ;;  %v896_v46 = vmul.f32 %v892_v42, %v892_v42 }
 0x1b2   : > { %v886_v47 = vpop.xlane.xlu1 %885 }
 0x1b3   : > { %v891_v48 = vmul.f32 0.0078125, %v886_v47  ;;  %v893_v49 = vsub.f32 %v876_v36, %v889_v45  ;;  %900 = vadd.xlane.f32.xlu0 %v896_v46  ;;  %v898_v50 = vmul.f32 %v894_v43, %v894_v43 }
 0x1b5   : > { %v895_v51 = vsub.f32 %v878_v37, %v891_v48  ;;  %v897_v52 = vmul.f32 %v893_v49, %v893_v49 }
 0x1b7   : > { %904 = vadd.xlane.f32.xlu0 %v898_v50  ;;  %902 = vadd.xlane.f32.xlu1 %v897_v52  ;;  %v899_v53 = vmul.f32 %v895_v51, %v895_v51 }
 0x1bb   : > { %906 = vadd.xlane.f32.xlu1 %v899_v53 }
 0x23c   : > { %v901_v54 = vpop.xlane.xlu0 %900 }
 0x23d   : > { %v908_v55 = vmul.f32 0.0078125, %v901_v54 }
 0x23f   : > { %v912_v56 = vadd.f32 1e-05, %v908_v55 }
 0x240   : > { %v903_v57 = vpop.xlane.xlu1 %902  ;;  %v905_v58 = vpop.xlane.xlu0 %904 }
 0x241   : > { %1308 = vrsqrt.f32 %v912_v56  ;;  %v909_v59 = vmul.f32 0.0078125, %v903_v57  ;;  %v910_v60 = vmul.f32 0.0078125, %v905_v58 }
 0x243   : > { %v913_v61 = vadd.f32 1e-05, %v909_v59  ;;  %v914_v62 = vadd.f32 1e-05, %v910_v60 }
 0x244   : > { %v907_v63 = vpop.xlane.xlu1 %906 }
 0x245   : > { %1310 = vrsqrt.f32 %v913_v61  ;;  %v911_v0 = vmul.f32 0.0078125, %v907_v63 }
 0x246   : > { %1312 = vrsqrt.f32 %v914_v62 }
 0x247   : > { %v915_v1 = vadd.f32 1e-05, %v911_v0 }
 0x249   : > { %1314 = vrsqrt.f32 %v915_v1 }
 0x24e   : > { %v1309_v2 = vpop.eup %1308 }
 0x24f   : > { %v920_v4 = vmul.f32 %v1309_v2, %v892_v42 }
 0x251   : > { %v931_v6 = vmul.f32 %v1160_v3, %v920_v4 }
 0x252   : > { %v1311_v7 = vpop.eup %1310 }
 0x253   : > { %v1313_v8 = vpop.eup %1312  ;;  %v942_v9 = vadd.f32 %v1161_v5, %v931_v6  ;;  %v921_v10 = vmul.f32 %v1311_v7, %v893_v49 }
 0x254   : > { %v922_v11 = vmul.f32 %v1313_v8, %v894_v43 }
 0x255   : > { %946 = vst [vmem:[%s1542_s6] sm:$0xff] %v942_v9  ;;  %v932_v12 = vmul.f32 %v1160_v3, %v921_v10 }
 0x256   : > { %v1315_v13 = vpop.eup %1314  ;;  %v933_v14 = vmul.f32 %v1160_v3, %v922_v11 }
 0x257   : > { %v943_v15 = vadd.f32 %v1161_v5, %v932_v12  ;;  %v923_v16 = vmul.f32 %v1315_v13, %v895_v51 }
 0x258   : > { %v944_v17 = vadd.f32 %v1161_v5, %v933_v14 }
 0x259   : > { %947 = vst [vmem:[%s1542_s6 + $0x8] sm:$0xff] %v943_v15  ;;  %v934_v18 = vmul.f32 %v1160_v3, %v923_v16 }
 0x25a   : > { %948 = vst [vmem:[%s1542_s6 + $0x10] sm:$0xff] %v944_v17 }
 0x25b   : > { %v945_v19 = vadd.f32 %v1161_v5, %v934_v18 }
 0x25d   : > { %949 = vst [vmem:[%s1542_s6 + $0x18] sm:$0xff] %v945_v19 }
 0x25e PF: > { %s16_s25 = sadd.s32 1, %s1354_s25   ;;  %s1543_s21 = smov %s1342_s22 }
 0x25f   : > { %p13_p12 = scmp.ge.s32.totalorder %s16_s25, 6   ;;  %s1544_s22 = smov %s1427_s29 }
 0x260   : > { %s1545_s23 = smov %s1350_s24  ;;  %s1546_s24 = smov %s1548_s26 }
 0x261   :  { %15 = sbr.rel (!%p13_p12) target bundleno = 3 (0x3), region = 125 }

// kernel: enhancement_forward.27
= control target key start
LH: loop header
LB: loop body
LE: loop exit
PB: predicated region body
PF: predicated region fallthrough
CT: control target
= control target key end

     0   :  { %s1773_s12 = smov 0   ;;  %s1775_s13 = smov 0   ;;  %s2131_s0 = inlined_call_operand.vmem [shape: bf16[32,128], index: 0, kind: input, shape index: {}]   ;;  %s2132_s1 = inlined_call_operand.vmem [shape: bf16[128,2048], index: 1, kind: input, shape index: {}]   ;;  %s2133_s2 = inlined_call_operand.vmem [shape: f32[1,2048], index: 2, kind: input, shape index: {}]   ;;  %s2134_s3 = inlined_call_operand.vmem [shape: bf16[32,2048], index: 3, kind: output, shape index: {}]  }
   0x1   :  { %s1777_s14 = smov 0   ;;  %s1779_s15 = smov 0  }
   0x2   :  { %s1781_s16 = smov 0  }
   0x3 LB: > { %s28_s17 = sadd.s32 1, %s1746_s15  ;;  %s1552_s18 = sadd.s32 4294967295, %s1750_s16   ;;  %s1750_s16 = sphi %s1781_s16, %s13_s16   ;;  %s1746_s15 = sphi %s1779_s15, %s2139_s15   ;;  %s1742_s14 = sphi %s1777_s14, %s2138_s14   ;;  %s1738_s13 = sphi %s1775_s13, %s2137_s13   ;;  %s1734_s12 = sphi %s1773_s12, %s2136_s12  }
   0x4   : > { %p30_p0 = scmp.ge.s32.totalorder %s28_s17, 2  ;;  %p76_p1 = scmp.ne.s32.totalorder %s1738_s13, %s1734_s12 }
   0x5   : > { %p77_p2 = scmp.eq.s32.totalorder %s1750_s16, 0  ;;  %p134_p4 = scmp.eq.s32.totalorder %s1552_s18, 1 }
   0x6   : > { %s2141_s17 = smov (%p30_p0, %s28_s17), 0  ;;  %s69_s20 = sadd.s32 1, %s1738_s13 }
   0x7   : > { %p78_p3 = por %p77_p2, %p76_p1  ;;  %s65_s19 = ssub.s32 %s1746_s15, %s2141_s17 }
   0x8   : > { %p67_p5 = scmp.eq.s32.totalorder %s65_s19, 0  ;;  %p1808_p6 = por %p134_p4, %p76_p1 }
   0x9   : > { %p1556_p7 = scmp.ge.s32.totalorder %s1750_s16, 2 }
   0xa   : > { %s1813_s22 = scalar_select %p67_p5, %s1738_s13, %s69_s20  }
   0xb   : > { %168 = sbr.rel (%p1556_p7) target bundleno = 52 (0x34), region = 20 }
  0x10   : > { %171 = sbr.rel (!%p78_p3) target bundleno = 52 (0x34), region = 24  ;;  %s173_s23 = sand.u32 (%p78_p3), 1, %s1738_s13  }
  0x11   : > { %s1651_s24 = sshll.u32 (%p78_p3), %s1746_s15, 5  ;;  %s1557_s25 = sshll.u32 (%p78_p3), %s173_s23, 9 }
  0x12   : > { %s1821_s28 = scalar_lea.vmem (%p78_p3), %s2132_s1, %s1651_s24  ;;  %s1826_s29 = scalar_lea.vmem (%p78_p3), [#allocation3], %s1557_s25 }
  0x13   : > { %v194_v0 = vld [vmem:[%s1821_s28] sm:$0xff] (%p78_p3)  ;;  %v196_v1 = vld [vmem:[%s1821_s28 + $0x8] sm:$0xff] (%p78_p3)  ;;  %v198_v2 = vld [vmem:[%s1821_s28 + $0x10] sm:$0xff] (%p78_p3) }
  0x14   : > { %195 = vst [vmem:[%s1826_s29] sm:$0xff] (%p78_p3), %v194_v0  ;;  %197 = vst [vmem:[%s1826_s29 + $0x8] sm:$0xff] (%p78_p3), %v196_v1  ;;  %v200_v3 = vld [vmem:[%s1821_s28 + $0x18] sm:$0xff] (%p78_p3)  ;;  %v202_v4 = vld [vmem:[%s1821_s28 + $0x40] sm:$0xff] (%p78_p3) }
  0x15   : > { %199 = vst [vmem:[%s1826_s29 + $0x10] sm:$0xff] %v198_v2  ;;  %v204_v5 = vld [vmem:[%s1821_s28 + $0x48] sm:$0xff]  ;;  %201 = vst [vmem:[%s1826_s29 + $0x18] sm:$0xff] %v200_v3  ;;  %v206_v6 = vld [vmem:[%s1821_s28 + $0x50] sm:$0xff] }
  0x16   : > { %203 = vst [vmem:[%s1826_s29 + $0x20] sm:$0xff] %v202_v4  ;;  %205 = vst [vmem:[%s1826_s29 + $0x28] sm:$0xff] %v204_v5  ;;  %v208_v7 = vld [vmem:[%s1821_s28 + $0x58] sm:$0xff]  ;;  %v210_v8 = vld [vmem:[%s1821_s28 + $0x80] sm:$0xff] }
  0x17   : > { %207 = vst [vmem:[%s1826_s29 + $0x30] sm:$0xff] %v206_v6  ;;  %209 = vst [vmem:[%s1826_s29 + $0x38] sm:$0xff] %v208_v7  ;;  %v212_v9 = vld [vmem:[%s1821_s28 + $0x88] sm:$0xff]  ;;  %v214_v10 = vld [vmem:[%s1821_s28 + $0x90] sm:$0xff] }
  0x18   : > { %211 = vst [vmem:[%s1826_s29 + $0x40] sm:$0xff] %v210_v8  ;;  %v216_v11 = vld [vmem:[%s1821_s28 + $0x98] sm:$0xff]  ;;  %213 = vst [vmem:[%s1826_s29 + $0x48] sm:$0xff] %v212_v9  ;;  %v218_v12 = vld [vmem:[%s1821_s28 + $0xc0] sm:$0xff] }
  0x19   : > { %215 = vst [vmem:[%s1826_s29 + $0x50] sm:$0xff] %v214_v10  ;;  %217 = vst [vmem:[%s1826_s29 + $0x58] sm:$0xff] %v216_v11  ;;  %v220_v13 = vld [vmem:[%s1821_s28 + $0xc8] sm:$0xff]  ;;  %v222_v14 = vld [vmem:[%s1821_s28 + $0xd0] sm:$0xff] }
  0x1a   : > { %219 = vst [vmem:[%s1826_s29 + $0x60] sm:$0xff] %v218_v12  ;;  %221 = vst [vmem:[%s1826_s29 + $0x68] sm:$0xff] %v220_v13  ;;  %v224_v15 = vld [vmem:[%s1821_s28 + $0xd8] sm:$0xff]  ;;  %v226_v16 = vld [vmem:[%s1821_s28 + $0x100] sm:$0xff] }
  0x1b   : > { %223 = vst [vmem:[%s1826_s29 + $0x70] sm:$0xff] %v222_v14  ;;  %v228_v17 = vld [vmem:[%s1821_s28 + $0x108] sm:$0xff]  ;;  %225 = vst [vmem:[%s1826_s29 + $0x78] sm:$0xff] %v224_v15  ;;  %v230_v18 = vld [vmem:[%s1821_s28 + $0x110] sm:$0xff] }
  0x1c   : > { %227 = vst [vmem:[%s1826_s29 + $0x80] sm:$0xff] %v226_v16  ;;  %229 = vst [vmem:[%s1826_s29 + $0x88] sm:$0xff] %v228_v17  ;;  %v232_v19 = vld [vmem:[%s1821_s28 + $0x118] sm:$0xff]  ;;  %v234_v20 = vld [vmem:[%s1821_s28 + $0x140] sm:$0xff] }
  0x1d   : > { %231 = vst [vmem:[%s1826_s29 + $0x90] sm:$0xff] %v230_v18  ;;  %233 = vst [vmem:[%s1826_s29 + $0x98] sm:$0xff] %v232_v19  ;;  %v236_v21 = vld [vmem:[%s1821_s28 + $0x148] sm:$0xff]  ;;  %v238_v22 = vld [vmem:[%s1821_s28 + $0x150] sm:$0xff] }
  0x1e   : > { %235 = vst [vmem:[%s1826_s29 + $0xa0] sm:$0xff] %v234_v20  ;;  %v240_v23 = vld [vmem:[%s1821_s28 + $0x158] sm:$0xff]  ;;  %237 = vst [vmem:[%s1826_s29 + $0xa8] sm:$0xff] %v236_v21  ;;  %v242_v24 = vld [vmem:[%s1821_s28 + $0x180] sm:$0xff] }
  0x1f   : > { %239 = vst [vmem:[%s1826_s29 + $0xb0] sm:$0xff] %v238_v22  ;;  %241 = vst [vmem:[%s1826_s29 + $0xb8] sm:$0xff] %v240_v23  ;;  %v244_v25 = vld [vmem:[%s1821_s28 + $0x188] sm:$0xff]  ;;  %v246_v26 = vld [vmem:[%s1821_s28 + $0x190] sm:$0xff] }
  0x20   : > { %243 = vst [vmem:[%s1826_s29 + $0xc0] sm:$0xff] %v242_v24  ;;  %245 = vst [vmem:[%s1826_s29 + $0xc8] sm:$0xff] %v244_v25  ;;  %v248_v27 = vld [vmem:[%s1821_s28 + $0x198] sm:$0xff]  ;;  %v250_v28 = vld [vmem:[%s1821_s28 + $0x1c0] sm:$0xff] }
  0x21   : > { %247 = vst [vmem:[%s1826_s29 + $0xd0] sm:$0xff] %v246_v26  ;;  %v252_v29 = vld [vmem:[%s1821_s28 + $0x1c8] sm:$0xff]  ;;  %249 = vst [vmem:[%s1826_s29 + $0xd8] sm:$0xff] %v248_v27  ;;  %v254_v30 = vld [vmem:[%s1821_s28 + $0x1d0] sm:$0xff] }
  0x22   : > { %251 = vst [vmem:[%s1826_s29 + $0xe0] sm:$0xff] %v250_v28  ;;  %253 = vst [vmem:[%s1826_s29 + $0xe8] sm:$0xff] %v252_v29  ;;  %v256_v31 = vld [vmem:[%s1821_s28 + $0x1d8] sm:$0xff]  ;;  %v258_v32 = vld [vmem:[%s1821_s28 + $0x200] sm:$0xff] }
  0x23   : > { %255 = vst [vmem:[%s1826_s29 + $0xf0] sm:$0xff] %v254_v30  ;;  %257 = vst [vmem:[%s1826_s29 + $0xf8] sm:$0xff] %v256_v31  ;;  %v260_v33 = vld [vmem:[%s1821_s28 + $0x208] sm:$0xff]  ;;  %v262_v34 = vld [vmem:[%s1821_s28 + $0x210] sm:$0xff] }
  0x24   : > { %259 = vst [vmem:[%s1826_s29 + $0x100] sm:$0xff] %v258_v32  ;;  %v264_v35 = vld [vmem:[%s1821_s28 + $0x218] sm:$0xff]  ;;  %261 = vst [vmem:[%s1826_s29 + $0x108] sm:$0xff] %v260_v33  ;;  %v266_v36 = vld [vmem:[%s1821_s28 + $0x240] sm:$0xff] }
  0x25   : > { %263 = vst [vmem:[%s1826_s29 + $0x110] sm:$0xff] %v262_v34  ;;  %265 = vst [vmem:[%s1826_s29 + $0x118] sm:$0xff] %v264_v35  ;;  %v268_v37 = vld [vmem:[%s1821_s28 + $0x248] sm:$0xff]  ;;  %v270_v38 = vld [vmem:[%s1821_s28 + $0x250] sm:$0xff] }
  0x26   : > { %267 = vst [vmem:[%s1826_s29 + $0x120] sm:$0xff] %v266_v36  ;;  %269 = vst [vmem:[%s1826_s29 + $0x128] sm:$0xff] %v268_v37  ;;  %v272_v39 = vld [vmem:[%s1821_s28 + $0x258] sm:$0xff]  ;;  %v274_v40 = vld [vmem:[%s1821_s28 + $0x280] sm:$0xff] }
  0x27   : > { %271 = vst [vmem:[%s1826_s29 + $0x130] sm:$0xff] %v270_v38  ;;  %v276_v41 = vld [vmem:[%s1821_s28 + $0x288] sm:$0xff]  ;;  %273 = vst [vmem:[%s1826_s29 + $0x138] sm:$0xff] %v272_v39  ;;  %v278_v42 = vld [vmem:[%s1821_s28 + $0x290] sm:$0xff] }
  0x28   : > { %275 = vst [vmem:[%s1826_s29 + $0x140] sm:$0xff] %v274_v40  ;;  %277 = vst [vmem:[%s1826_s29 + $0x148] sm:$0xff] %v276_v41  ;;  %v280_v43 = vld [vmem:[%s1821_s28 + $0x298] sm:$0xff]  ;;  %v282_v44 = vld [vmem:[%s1821_s28 + $0x2c0] sm:$0xff] }
  0x29   : > { %279 = vst [vmem:[%s1826_s29 + $0x150] sm:$0xff] %v278_v42  ;;  %281 = vst [vmem:[%s1826_s29 + $0x158] sm:$0xff] %v280_v43  ;;  %v284_v45 = vld [vmem:[%s1821_s28 + $0x2c8] sm:$0xff]  ;;  %v286_v46 = vld [vmem:[%s1821_s28 + $0x2d0] sm:$0xff] }
  0x2a   : > { %283 = vst [vmem:[%s1826_s29 + $0x160] sm:$0xff] %v282_v44  ;;  %v288_v47 = vld [vmem:[%s1821_s28 + $0x2d8] sm:$0xff]  ;;  %285 = vst [vmem:[%s1826_s29 + $0x168] sm:$0xff] %v284_v45  ;;  %v290_v48 = vld [vmem:[%s1821_s28 + $0x300] sm:$0xff] }
  0x2b   : > { %287 = vst [vmem:[%s1826_s29 + $0x170] sm:$0xff] %v286_v46  ;;  %289 = vst [vmem:[%s1826_s29 + $0x178] sm:$0xff] %v288_v47  ;;  %v292_v49 = vld [vmem:[%s1821_s28 + $0x308] sm:$0xff]  ;;  %v294_v50 = vld [vmem:[%s1821_s28 + $0x310] sm:$0xff] }
  0x2c   : > { %291 = vst [vmem:[%s1826_s29 + $0x180] sm:$0xff] %v290_v48  ;;  %293 = vst [vmem:[%s1826_s29 + $0x188] sm:$0xff] %v292_v49  ;;  %v296_v51 = vld [vmem:[%s1821_s28 + $0x318] sm:$0xff]  ;;  %v298_v52 = vld [vmem:[%s1821_s28 + $0x340] sm:$0xff] }
  0x2d   : > { %295 = vst [vmem:[%s1826_s29 + $0x190] sm:$0xff] %v294_v50  ;;  %v300_v53 = vld [vmem:[%s1821_s28 + $0x348] sm:$0xff]  ;;  %297 = vst [vmem:[%s1826_s29 + $0x198] sm:$0xff] %v296_v51  ;;  %v302_v54 = vld [vmem:[%s1821_s28 + $0x350] sm:$0xff] }
  0x2e   : > { %299 = vst [vmem:[%s1826_s29 + $0x1a0] sm:$0xff] %v298_v52  ;;  %301 = vst [vmem:[%s1826_s29 + $0x1a8] sm:$0xff] %v300_v53  ;;  %v304_v55 = vld [vmem:[%s1821_s28 + $0x358] sm:$0xff]  ;;  %v306_v56 = vld [vmem:[%s1821_s28 + $0x380] sm:$0xff] }
  0x2f   : > { %303 = vst [vmem:[%s1826_s29 + $0x1b0] sm:$0xff] %v302_v54  ;;  %305 = vst [vmem:[%s1826_s29 + $0x1b8] sm:$0xff] %v304_v55  ;;  %v308_v57 = vld [vmem:[%s1821_s28 + $0x388] sm:$0xff]  ;;  %v310_v58 = vld [vmem:[%s1821_s28 + $0x390] sm:$0xff] }
  0x30   : > { %307 = vst [vmem:[%s1826_s29 + $0x1c0] sm:$0xff] %v306_v56  ;;  %v312_v59 = vld [vmem:[%s1821_s28 + $0x398] sm:$0xff]  ;;  %309 = vst [vmem:[%s1826_s29 + $0x1c8] sm:$0xff] %v308_v57  ;;  %v314_v60 = vld [vmem:[%s1821_s28 + $0x3c0] sm:$0xff] }
  0x31   : > { %311 = vst [vmem:[%s1826_s29 + $0x1d0] sm:$0xff] %v310_v58  ;;  %313 = vst [vmem:[%s1826_s29 + $0x1d8] sm:$0xff] %v312_v59  ;;  %v316_v61 = vld [vmem:[%s1821_s28 + $0x3c8] sm:$0xff]  ;;  %v318_v62 = vld [vmem:[%s1821_s28 + $0x3d0] sm:$0xff] }
  0x32   : > { %315 = vst [vmem:[%s1826_s29 + $0x1e0] sm:$0xff] %v314_v60  ;;  %317 = vst [vmem:[%s1826_s29 + $0x1e8] sm:$0xff] %v316_v61  ;;  %v320_v63 = vld [vmem:[%s1821_s28 + $0x3d8] sm:$0xff] }
  0x33   : > { %319 = vst [vmem:[%s1826_s29 + $0x1f0] sm:$0xff] %v318_v62  ;;  %321 = vst [vmem:[%s1826_s29 + $0x1f8] sm:$0xff] %v320_v63 }
  0x34 PF: > { %p1560_p8 = scmp.ge.s32.totalorder %s1750_s16, 1  ;;  %p334_p9 = scmp.lt.s32.totalorder %s1750_s16, 3 }
  0x36   : > { %p335_p10 = pnand %p1560_p8, %p334_p9 }
  0x37   : > { %s341_s30 = sand.u32 (!%p335_p10), 1, %s1734_s12   ;;  %s1563_s10 = sshll.u32 (!%p335_p10), %s1742_s14, 3 }
  0x38   : > { %338 = sbr.rel (%p335_p10) target bundleno = 351 (0x15f), region = 51  ;;  %s1561_s4 = sshll.u32 (!%p335_p10), %s341_s30, 9 }
  0x39   : > { %s1960_s5 = scalar_lea.vmem (!%p335_p10), [#allocation3], %s1561_s4  ;;  %p387_p11 = scmp.lt.s32.totalorder (!%p335_p10), %s1563_s10, 15 }
  0x3a   : > { %s1562_s20 = sshll.u32 (!%p335_p10), %s341_s30, 7 }
  0x3b   : > { %s2068_s23 = scalar_lea.vmem (!%p335_p10), [#allocation4], %s1562_s20 }
  0x3d   : > { %v1752_v0 = vmov 0   ;;  %v522_v1 = vld [vmem:[%s1960_s5 + $0x1c0] sm:$0xff]  ;;  %v523_v3 = vld [vmem:[%s1960_s5 + $0x1c8] sm:$0xff]  ;;  %v524_v63 = vld [vmem:[%s1960_s5 + $0x1d0] sm:$0xff]  ;;  %s2143_s10 = smov (!%p387_p11, %s1563_s10), 15  ;;  %s1668_s12 = sshll.u32 (%p1808_p6), %s1742_s14, 5 }
  0x3e   : > { %894 = vmatprep.mubr.bf16.mxu0 %v1752_v0  ;;  %947 = vmatprep.mubr.bf16.mxu1 %v1752_v0  ;;  %v526_v2 = vld [vmem:[%s1960_s5 + $0x1e0] sm:$0xff]  ;;  %v527_v5 = vld [vmem:[%s1960_s5 + $0x1e8] sm:$0xff]  ;;  %s389_s19 = scalar_lea.vmem %s2133_s2, %s2143_s10  ;;  %s1403_s26 = scalar_lea.vmem (%p1808_p6), %s2134_s3, %s1668_s12 }
  0x3f   : > { %v1623_v4 = vcombine.high %v522_v1, %v526_v2  ;;  %v1622_v6 = vcombine.low %v522_v1, %v526_v2  ;;  %v514_v7 = vld [vmem:[%s1960_s5 + $0x180] sm:$0xff]  ;;  %v1625_v9 = vcombine.high %v523_v3, %v527_v5  ;;  %v1624_v10 = vcombine.low %v523_v3, %v527_v5  ;;  %v515_v12 = vld [vmem:[%s1960_s5 + $0x188] sm:$0xff]  ;;  %v528_v1 = vld [vmem:[%s1960_s5 + $0x1f0] sm:$0xff] }
  0x40   : > { %v518_v8 = vld [vmem:[%s1960_s5 + $0x1a0] sm:$0xff]  ;;  %v519_v13 = vld [vmem:[%s1960_s5 + $0x1a8] sm:$0xff]  ;;  %v525_v2 = vld [vmem:[%s1960_s5 + $0x1d8] sm:$0xff] }
  0x41   : > { %v1615_v11 = vcombine.high %v514_v7, %v518_v8  ;;  %v506_v14 = vld [vmem:[%s1960_s5 + $0x140] sm:$0xff]  ;;  %862 = vmatprep.subr.bf16.mxu0 %v1623_v4  ;;  %v1617_v15 = vcombine.high %v515_v12, %v519_v13  ;;  %v507_v17 = vld [vmem:[%s1960_s5 + $0x148] sm:$0xff]  ;;  %915 = vmatprep.subr.bf16.mxu1 %v1625_v9  ;;  %v1614_v19 = vcombine.low %v514_v7, %v518_v8  ;;  %v529_v3 = vld [vmem:[%s1960_s5 + $0x1f8] sm:$0xff] }
  0x42   : > { %v510_v16 = vld [vmem:[%s1960_s5 + $0x160] sm:$0xff]  ;;  %v511_v18 = vld [vmem:[%s1960_s5 + $0x168] sm:$0xff]  ;;  %863 = vmatpush1.bf16.msra.mxu0 %v1622_v6  ;;  %916 = vmatpush1.bf16.msra.mxu1 %v1624_v10  ;;  %v1616_v20 = vcombine.low %v515_v12, %v519_v13  ;;  %v1627_v6 = vcombine.high %v524_v63, %v528_v1  ;;  %v1629_v7 = vcombine.high %v525_v2, %v529_v3  ;;  %v516_v8 = vld [vmem:[%s1960_s5 + $0x190] sm:$0xff] }
  0x43   : > { %864 = vmatprep.subr.bf16.mxu0 %v1615_v11  ;;  %v1607_v21 = vcombine.high %v506_v14, %v510_v16  ;;  %917 = vmatprep.subr.bf16.mxu1 %v1617_v15  ;;  %v1609_v22 = vcombine.high %v507_v17, %v511_v18  ;;  %v498_v23 = vld [vmem:[%s1960_s5 + $0x100] sm:$0xff]  ;;  %v499_v25 = vld [vmem:[%s1960_s5 + $0x108] sm:$0xff]  ;;  %v1606_v27 = vcombine.low %v506_v14, %v510_v16  ;;  %v520_v9 = vld [vmem:[%s1960_s5 + $0x1b0] sm:$0xff] }
  0x44   : > { %v502_v24 = vld [vmem:[%s1960_s5 + $0x120] sm:$0xff]  ;;  %v503_v26 = vld [vmem:[%s1960_s5 + $0x128] sm:$0xff]  ;;  %v1608_v28 = vcombine.low %v507_v17, %v511_v18  ;;  %v517_v11 = vld [vmem:[%s1960_s5 + $0x198] sm:$0xff]  ;;  %v1626_v13 = vcombine.low %v524_v63, %v528_v1  ;;  %v1628_v14 = vcombine.low %v525_v2, %v529_v3  ;;  %v1619_v15 = vcombine.high %v516_v8, %v520_v9 }
  0x45   : > { %v1599_v29 = vcombine.high %v498_v23, %v502_v24  ;;  %v1601_v30 = vcombine.high %v499_v25, %v503_v26  ;;  %v490_v31 = vld [vmem:[%s1960_s5 + $0xc0] sm:$0xff]  ;;  %v491_v33 = vld [vmem:[%s1960_s5 + $0xc8] sm:$0xff]  ;;  %v1598_v35 = vcombine.low %v498_v23, %v502_v24  ;;  %v1600_v36 = vcombine.low %v499_v25, %v503_v26  ;;  %v521_v12 = vld [vmem:[%s1960_s5 + $0x1b8] sm:$0xff] }
  0x46   : > { %865 = vmatpush1.bf16.msra.mxu0 %v1614_v19  ;;  %918 = vmatpush1.bf16.msra.mxu1 %v1616_v20  ;;  %v494_v32 = vld [vmem:[%s1960_s5 + $0xe0] sm:$0xff]  ;;  %v495_v34 = vld [vmem:[%s1960_s5 + $0xe8] sm:$0xff]  ;;  %v1621_v16 = vcombine.high %v517_v11, %v521_v12  ;;  %v508_v17 = vld [vmem:[%s1960_s5 + $0x150] sm:$0xff] }
  0x47   : > { %866 = vmatprep.subr.bf16.mxu0 %v1607_v21  ;;  %919 = vmatprep.subr.bf16.mxu1 %v1609_v22  ;;  %v1591_v37 = vcombine.high %v490_v31, %v494_v32  ;;  %v1593_v38 = vcombine.high %v491_v33, %v495_v34  ;;  %v482_v39 = vld [vmem:[%s1960_s5 + $0x80] sm:$0xff]  ;;  %v483_v41 = vld [vmem:[%s1960_s5 + $0x88] sm:$0xff]  ;;  %v1590_v43 = vcombine.low %v490_v31, %v494_v32  ;;  %v512_v18 = vld [vmem:[%s1960_s5 + $0x170] sm:$0xff] }
  0x48   : > { %v486_v40 = vld [vmem:[%s1960_s5 + $0xa0] sm:$0xff]  ;;  %v487_v42 = vld [vmem:[%s1960_s5 + $0xa8] sm:$0xff]  ;;  %v1592_v44 = vcombine.low %v491_v33, %v495_v34  ;;  %v509_v19 = vld [vmem:[%s1960_s5 + $0x158] sm:$0xff]  ;;  %v1618_v21 = vcombine.low %v516_v8, %v520_v9  ;;  %v1620_v22 = vcombine.low %v517_v11, %v521_v12  ;;  %v1611_v23 = vcombine.high %v508_v17, %v512_v18 }
  0x49   : > { %v1583_v45 = vcombine.high %v482_v39, %v486_v40  ;;  %v1585_v46 = vcombine.high %v483_v41, %v487_v42  ;;  %v474_v47 = vld [vmem:[%s1960_s5 + $0x40] sm:$0xff]  ;;  %v475_v49 = vld [vmem:[%s1960_s5 + $0x48] sm:$0xff]  ;;  %v1582_v51 = vcombine.low %v482_v39, %v486_v40  ;;  %v1584_v52 = vcombine.low %v483_v41, %v487_v42  ;;  %v513_v20 = vld [vmem:[%s1960_s5 + $0x178] sm:$0xff] }
  0x4a   : > { %867 = vmatpush1.bf16.msra.mxu0 %v1606_v27  ;;  %920 = vmatpush1.bf16.msra.mxu1 %v1608_v28  ;;  %v478_v48 = vld [vmem:[%s1960_s5 + $0x60] sm:$0xff]  ;;  %v479_v50 = vld [vmem:[%s1960_s5 + $0x68] sm:$0xff]  ;;  %v1613_v24 = vcombine.high %v509_v19, %v513_v20  ;;  %v500_v25 = vld [vmem:[%s1960_s5 + $0x110] sm:$0xff]  ;;  %v1612_v31 = vcombine.low %v509_v19, %v513_v20 }
  0x4b   : > { %868 = vmatprep.subr.bf16.mxu0 %v1599_v29  ;;  %921 = vmatprep.subr.bf16.mxu1 %v1601_v30  ;;  %v1575_v53 = vcombine.high %v474_v47, %v478_v48  ;;  %v1577_v54 = vcombine.high %v475_v49, %v479_v50  ;;  %v466_v55 = vld [vmem:[%s1960_s5] sm:$0xff]  ;;  %v467_v57 = vld [vmem:[%s1960_s5 + $0x8] sm:$0xff]  ;;  %v1574_v59 = vcombine.low %v474_v47, %v478_v48  ;;  %v504_v26 = vld [vmem:[%s1960_s5 + $0x130] sm:$0xff] }
  0x4c   : > { %v470_v56 = vld [vmem:[%s1960_s5 + $0x20] sm:$0xff]  ;;  %v471_v58 = vld [vmem:[%s1960_s5 + $0x28] sm:$0xff]  ;;  %v1576_v60 = vcombine.low %v475_v49, %v479_v50  ;;  %v501_v27 = vld [vmem:[%s1960_s5 + $0x118] sm:$0xff]  ;;  %v1610_v30 = vcombine.low %v508_v17, %v512_v18  ;;  %v1603_v32 = vcombine.high %v500_v25, %v504_v26 }
  0x4d   : > { %v1567_v61 = vcombine.high %v466_v55, %v470_v56  ;;  %v1569_v62 = vcombine.high %v467_v57, %v471_v58  ;;  %v1566_v4 = vcombine.low %v466_v55, %v470_v56  ;;  %v1568_v5 = vcombine.low %v467_v57, %v471_v58  ;;  %v2003_v10 = vld [vmem:[%s2131_s0] sm:$0xff]   ;;  %v505_v28 = vld [vmem:[%s1960_s5 + $0x138] sm:$0xff]  ;;  %v2022_v29 = vld [vmem:[%s2131_s0 + $0x8] sm:$0xff]  }
  0x4e   : > { %869 = vmatpush1.bf16.msra.mxu0 %v1598_v35  ;;  %922 = vmatpush1.bf16.msra.mxu1 %v1600_v36  ;;  %v1605_v33 = vcombine.high %v501_v27, %v505_v28  ;;  %v492_v34 = vld [vmem:[%s1960_s5 + $0xd0] sm:$0xff]  ;;  %v493_v36 = vld [vmem:[%s1960_s5 + $0xd8] sm:$0xff]  ;;  %v1604_v39 = vcombine.low %v501_v27, %v505_v28  ;;  %v2057_v8 = vld [vmem:[%s389_s19] sm:$0xff] }
  0x4f   : > { %870 = vmatprep.subr.bf16.mxu0 %v1591_v37  ;;  %923 = vmatprep.subr.bf16.mxu1 %v1593_v38  ;;  %v496_v35 = vld [vmem:[%s1960_s5 + $0xf0] sm:$0xff]  ;;  %v497_v37 = vld [vmem:[%s1960_s5 + $0xf8] sm:$0xff]  ;;  %v1602_v38 = vcombine.low %v500_v25, %v504_v26 }
  0x50   : > { %v1595_v40 = vcombine.high %v492_v34, %v496_v35  ;;  %v1597_v41 = vcombine.high %v493_v36, %v497_v37  ;;  %v484_v42 = vld [vmem:[%s1960_s5 + $0x90] sm:$0xff]  ;;  %v1596_v47 = vcombine.low %v493_v36, %v497_v37 }
  0x51   : > { %v476_v50 = vld [vmem:[%s1960_s5 + $0x50] sm:$0xff] }
  0x52   : > { %871 = vmatpush1.bf16.msra.mxu0 %v1590_v43  ;;  %924 = vmatpush1.bf16.msra.mxu1 %v1592_v44  ;;  %v488_v43 = vld [vmem:[%s1960_s5 + $0xb0] sm:$0xff]  ;;  %v485_v44 = vld [vmem:[%s1960_s5 + $0x98] sm:$0xff] }
  0x53   : > { %872 = vmatprep.subr.bf16.mxu0 %v1583_v45  ;;  %925 = vmatprep.subr.bf16.mxu1 %v1585_v46  ;;  %v489_v45 = vld [vmem:[%s1960_s5 + $0xb8] sm:$0xff]  ;;  %v1594_v46 = vcombine.low %v492_v34, %v496_v35  ;;  %v1587_v48 = vcombine.high %v484_v42, %v488_v43  ;;  %v468_v58 = vld [vmem:[%s1960_s5 + $0x10] sm:$0xff] }
  0x54   : > { %v1589_v49 = vcombine.high %v485_v44, %v489_v45  ;;  %v1588_v55 = vcombine.low %v485_v44, %v489_v45 }
  0x56   : > { %873 = vmatpush1.bf16.msra.mxu0 %v1582_v51  ;;  %926 = vmatpush1.bf16.msra.mxu1 %v1584_v52  ;;  %v480_v51 = vld [vmem:[%s1960_s5 + $0x70] sm:$0xff]  ;;  %v477_v52 = vld [vmem:[%s1960_s5 + $0x58] sm:$0xff] }
  0x57   : > { %874 = vmatprep.subr.bf16.mxu0 %v1575_v53  ;;  %927 = vmatprep.subr.bf16.mxu1 %v1577_v54  ;;  %v481_v53 = vld [vmem:[%s1960_s5 + $0x78] sm:$0xff]  ;;  %v1586_v54 = vcombine.low %v484_v42, %v488_v43  ;;  %v1579_v56 = vcombine.high %v476_v50, %v480_v51 }
  0x58   : > { %v1581_v57 = vcombine.high %v477_v52, %v481_v53  ;;  %v1580_v63 = vcombine.low %v477_v52, %v481_v53 }
  0x5a   : > { %875 = vmatpush1.bf16.msra.mxu0 %v1574_v59  ;;  %928 = vmatpush1.bf16.msra.mxu1 %v1576_v60  ;;  %v472_v59 = vld [vmem:[%s1960_s5 + $0x30] sm:$0xff]  ;;  %v469_v60 = vld [vmem:[%s1960_s5 + $0x18] sm:$0xff] }
  0x5b   : > { %876 = vmatprep.subr.bf16.mxu0 %v1567_v61  ;;  %929 = vmatprep.subr.bf16.mxu1 %v1569_v62  ;;  %v473_v61 = vld [vmem:[%s1960_s5 + $0x38] sm:$0xff]  ;;  %v1578_v62 = vcombine.low %v476_v50, %v480_v51  ;;  %v1571_v1 = vcombine.high %v468_v58, %v472_v59  ;;  %v1570_v3 = vcombine.low %v468_v58, %v472_v59 }
  0x5c   : > { %v1573_v2 = vcombine.high %v469_v60, %v473_v61 }
  0x5e   : > { %877 = vmatpush1.bf16.msra.mxu0 %v1566_v4  ;;  %930 = vmatpush1.bf16.msra.mxu1 %v1568_v5  ;;  %v1572_v4 = vcombine.low %v469_v60, %v473_v61  ;;  %v1175_v5 = vlaneseq }
  0x5f   : > { %968 = vmatprep.subr.bf16.mxu0 %v1627_v6  ;;  %1021 = vmatprep.subr.bf16.mxu1 %v1629_v7 }
  0x60   : > { %v2051_v6 = vshrl.u32 %v1175_v5, 7 }
  0x61   : > { %895 = vmatmul.mubr.bf16.vlgmr.msra.gmra.mxu0 %v2003_v10  ;;  %948 = vmatmul.mubr.bf16.vlgmr.msra.gmra.mxu1 %v2003_v10 }
  0x62   : > { %969 = vmatpush1.bf16.msra.mxu0 %v1626_v13  ;;  %1022 = vmatpush1.bf16.msra.mxu1 %v1628_v14  ;;  %v1177_v7 = vsub.s32 0, %v2051_v6  ;;  %v1181_v9 = vsub.s32 1, %v2051_v6 }
  0x63   : > { %970 = vmatprep.subr.bf16.mxu0 %v1619_v15  ;;  %1023 = vmatprep.subr.bf16.mxu1 %v1621_v16 }
  0x64   : > { %904 = vmatprep.mubr.bf16.mxu0 %v1752_v0  ;;  %957 = vmatprep.mubr.bf16.mxu1 %v1752_v0  ;;  %v1178_v11 = vrot.slane %v2057_v8, %v1177_v7  ;;  %v1182_v13 = vrot.slane %v2057_v8, %v1181_v9  ;;  %v1193_v9 = vsub.s32 4, %v2051_v6 }
  0x66   : > { %971 = vmatpush1.bf16.msra.mxu0 %v1618_v21  ;;  %1024 = vmatpush1.bf16.msra.mxu1 %v1620_v22 }
  0x67   : > { %972 = vmatprep.subr.bf16.mxu0 %v1611_v23  ;;  %1025 = vmatprep.subr.bf16.mxu1 %v1613_v24 }
  0x69   : > { %905 = vmatmul.mubr.bf16.gmra.mxu0 %v2022_v29  ;;  %958 = vmatmul.mubr.bf16.gmra.mxu1 %v2022_v29 }
  0x6a   : > { %973 = vmatpush1.bf16.msra.mxu0 %v1610_v30  ;;  %1026 = vmatpush1.bf16.msra.mxu1 %v1612_v31 }
  0x6b   : > { %974 = vmatprep.subr.bf16.mxu0 %v1603_v32  ;;  %1027 = vmatprep.subr.bf16.mxu1 %v1605_v33 }
  0x6c   : > { %1000 = vmatprep.mubr.bf16.mxu0 %v1752_v0  ;;  %1053 = vmatprep.mubr.bf16.mxu1 %v1752_v0 }
  0x6e   : > { %975 = vmatpush1.bf16.msra.mxu0 %v1602_v38  ;;  %1028 = vmatpush1.bf16.msra.mxu1 %v1604_v39 }
  0x6f   : > { %976 = vmatprep.subr.bf16.mxu0 %v1595_v40  ;;  %1029 = vmatprep.subr.bf16.mxu1 %v1597_v41 }
  0x72   : > { %977 = vmatpush1.bf16.msra.mxu0 %v1594_v46  ;;  %1030 = vmatpush1.bf16.msra.mxu1 %v1596_v47 }
  0x73   : > { %978 = vmatprep.subr.bf16.mxu0 %v1587_v48  ;;  %1031 = vmatprep.subr.bf16.mxu1 %v1589_v49 }
  0x76   : > { %979 = vmatpush1.bf16.msra.mxu0 %v1586_v54  ;;  %1032 = vmatpush1.bf16.msra.mxu1 %v1588_v55 }
  0x77   : > { %980 = vmatprep.subr.bf16.mxu0 %v1579_v56  ;;  %1033 = vmatprep.subr.bf16.mxu1 %v1581_v57 }
  0x7a   : > { %981 = vmatpush1.bf16.msra.mxu0 %v1578_v62  ;;  %1034 = vmatpush1.bf16.msra.mxu1 %v1580_v63 }
  0x7b   : > { %982 = vmatprep.subr.bf16.mxu0 %v1571_v1  ;;  %1035 = vmatprep.subr.bf16.mxu1 %v1573_v2 }
  0x7e   : > { %983 = vmatpush1.bf16.msra.mxu0 %v1570_v3  ;;  %1036 = vmatpush1.bf16.msra.mxu1 %v1572_v4 }
  0x81   : > { %1001 = vmatmul.mubr.bf16.vlgmr.msra.gmra.mxu0 %v2003_v10  ;;  %1054 = vmatmul.mubr.bf16.vlgmr.msra.gmra.mxu1 %v2003_v10  ;;  %v1189_v10 = vsub.s32 3, %v2051_v6 }
  0x82   : > { %1010 = vmatprep.mubr.bf16.mxu0 %v1752_v0  ;;  %1063 = vmatprep.mubr.bf16.mxu1 %v1752_v0  ;;  %v1185_v0 = vsub.s32 2, %v2051_v6 }
  0x83   : > { %v1190_v15 = vrot.slane %v2057_v8, %v1189_v10  ;;  %v1201_v10 = vsub.s32 6, %v2051_v6 }
  0x84   : > { %v1186_v12 = vrot.slane %v2057_v8, %v1185_v0 }
  0x89   : > { %1011 = vmatmul.mubr.bf16.gmra.mxu0 %v2022_v29  ;;  %1064 = vmatmul.mubr.bf16.gmra.mxu1 %v2022_v29 }
 0x121   : > { %v896_v14 = vpop.f32.mrf.mxu0  ;;  %v949_v17 = vpop.f32.mrf.mxu1 }
 0x122   : > { %v1215_v16 = vadd.f32 %v1178_v11, %v896_v14  ;;  %v1217_v18 = vadd.f32 %v1186_v12, %v949_v17  ;;  %v1202_v14 = vrot.slane %v2057_v8, %v1201_v10 }
 0x123   : > { %v898_v19 = vpop.f32.mrf.mxu0  ;;  %v951_v22 = vpop.f32.mrf.mxu1 }
 0x124   : > { %v1247_v20 = vmax.f32 %v1215_v16, 0.0  ;;  %v1216_v21 = vadd.f32 %v1182_v13, %v898_v19  ;;  %v1249_v23 = vmax.f32 %v1217_v18, 0.0  ;;  %v1218_v24 = vadd.f32 %v1190_v15, %v951_v22 }
 0x125   : > { %v900_v25 = vpop.f32.mrf.mxu0  ;;  %v953_v28 = vpop.f32.mrf.mxu1 }
 0x126   : > { %v1248_v26 = vmax.f32 %v1216_v21, 0.0  ;;  %v1223_v27 = vadd.f32 %v1178_v11, %v900_v25  ;;  %v1250_v29 = vmax.f32 %v1218_v24, 0.0  ;;  %v1225_v30 = vadd.f32 %v1186_v12, %v953_v28 }
 0x127   : > { %v902_v31 = vpop.f32.mrf.mxu0  ;;  %v955_v34 = vpop.f32.mrf.mxu1 }
 0x128   : > { %v1652_v32 = vpack.c.bf16 %v1248_v26, %v1247_v20  ;;  %v1224_v33 = vadd.f32 %v1182_v13, %v902_v31  ;;  %v1653_v35 = vpack.c.bf16 %v1250_v29, %v1249_v23  ;;  %v1226_v36 = vadd.f32 %v1190_v15, %v955_v34 }
 0x129   : > { %v906_v37 = vpop.f32.mrf.mxu0  ;;  %v1255_v38 = vmax.f32 %v1223_v27, 0.0  ;;  %v959_v41 = vpop.f32.mrf.mxu1  ;;  %v1257_v42 = vmax.f32 %v1225_v30, 0.0 }
 0x12a   : > { %1375 = vst [vmem:[%s2068_s23] sm:$0xff] %v1652_v32  ;;  %v1256_v39 = vmax.f32 %v1224_v33, 0.0  ;;  %v1231_v40 = vadd.f32 %v1178_v11, %v906_v37  ;;  %1376 = vst [vmem:[%s2068_s23 + $0x8] sm:$0xff] %v1653_v35  ;;  %v1258_v43 = vmax.f32 %v1226_v36, 0.0  ;;  %v1233_v44 = vadd.f32 %v1186_v12, %v959_v41 }
 0x12b   : > { %v908_v45 = vpop.f32.mrf.mxu0  ;;  %v961_v49 = vpop.f32.mrf.mxu1 }
 0x12c   : > { %v1656_v46 = vpack.c.bf16 %v1256_v39, %v1255_v38  ;;  %v1263_v47 = vmax.f32 %v1231_v40, 0.0  ;;  %v1232_v48 = vadd.f32 %v1182_v13, %v908_v45  ;;  %v1657_v50 = vpack.c.bf16 %v1258_v43, %v1257_v42 }
 0x12d   : > { %v1265_v51 = vmax.f32 %v1233_v44, 0.0  ;;  %v1234_v52 = vadd.f32 %v1190_v15, %v961_v49  ;;  %v910_v53 = vpop.f32.mrf.mxu0  ;;  %v963_v56 = vpop.f32.mrf.mxu1 }
 0x12e   : > { %1379 = vst [vmem:[%s2068_s23 + $0x20] sm:$0xff] %v1656_v46  ;;  %v1264_v54 = vmax.f32 %v1232_v48, 0.0  ;;  %v1239_v55 = vadd.f32 %v1178_v11, %v910_v53  ;;  %1380 = vst [vmem:[%s2068_s23 + $0x28] sm:$0xff] %v1657_v50  ;;  %v1241_v58 = vadd.f32 %v1186_v12, %v963_v56  ;;  %v1197_v11 = vsub.s32 5, %v2051_v6 }
 0x12f   : > { %v1266_v57 = vmax.f32 %v1234_v52, 0.0  ;;  %v912_v59 = vpop.f32.mrf.mxu0  ;;  %v965_v63 = vpop.f32.mrf.mxu1  ;;  %v1205_v12 = vsub.s32 7, %v2051_v6 }
 0x130   : > { %v1660_v60 = vpack.c.bf16 %v1264_v54, %v1263_v47  ;;  %v1271_v61 = vmax.f32 %v1239_v55, 0.0  ;;  %v1240_v62 = vadd.f32 %v1182_v13, %v912_v59  ;;  %v1273_v2 = vmax.f32 %v1241_v58, 0.0 }
 0x131   : > { %v1661_v1 = vpack.c.bf16 %v1266_v57, %v1265_v51  ;;  %v1242_v3 = vadd.f32 %v1190_v15, %v965_v63  ;;  %v1194_v13 = vrot.slane %v2057_v8, %v1193_v9  ;;  %v1198_v15 = vrot.slane %v2057_v8, %v1197_v11  ;;  %v1416_v9 = vld [vmem:[%s2068_s23] sm:$0xff] (%p1808_p6)  ;;  %v1418_v10 = vld [vmem:[%s2068_s23 + $0x8] sm:$0xff] (%p1808_p6) }
 0x132   : > { %1383 = vst [vmem:[%s2068_s23 + $0x40] sm:$0xff] %v1660_v60  ;;  %v1272_v4 = vmax.f32 %v1240_v62, 0.0  ;;  %v1206_v17 = vrot.slane %v2057_v8, %v1205_v12  ;;  %1417 = vst [vmem:[%s1403_s26] sm:$0xff] (%p1808_p6), %v1416_v9 }
 0x133   : > { %1384 = vst [vmem:[%s2068_s23 + $0x48] sm:$0xff] %v1661_v1  ;;  %v1274_v5 = vmax.f32 %v1242_v3, 0.0  ;;  %1419 = vst [vmem:[%s1403_s26 + $0x8] sm:$0xff] (%p1808_p6), %v1418_v10 }
 0x134   : > { %v1664_v7 = vpack.c.bf16 %v1272_v4, %v1271_v61 }
 0x135   : > { %v1665_v0 = vpack.c.bf16 %v1274_v5, %v1273_v2 }
 0x136   : > { %1387 = vst [vmem:[%s2068_s23 + $0x60] sm:$0xff] %v1664_v7 }
 0x137   : > { %1388 = vst [vmem:[%s2068_s23 + $0x68] sm:$0xff] %v1665_v0 }
 0x141   : > { %v1002_v16 = vpop.f32.mrf.mxu0  ;;  %v1055_v19 = vpop.f32.mrf.mxu1 }
 0x142   : > { %v1219_v18 = vadd.f32 %v1194_v13, %v1002_v16  ;;  %v1221_v20 = vadd.f32 %v1202_v14, %v1055_v19 }
 0x143   : > { %v1004_v21 = vpop.f32.mrf.mxu0  ;;  %v1057_v23 = vpop.f32.mrf.mxu1 }
 0x144   : > { %v1220_v22 = vadd.f32 %v1198_v15, %v1004_v21  ;;  %v1222_v24 = vadd.f32 %v1206_v17, %v1057_v23  ;;  %v1251_v26 = vmax.f32 %v1219_v18, 0.0  ;;  %v1253_v29 = vmax.f32 %v1221_v20, 0.0  ;;  %v1434_v18 = vld [vmem:[%s2068_s23 + $0x48] sm:$0xff] (%p1808_p6)  ;;  %v1440_v21 = vld [vmem:[%s2068_s23 + $0x60] sm:$0xff] (%p1808_p6) }
 0x145   : > { %v1006_v25 = vpop.f32.mrf.mxu0  ;;  %v1059_v28 = vpop.f32.mrf.mxu1  ;;  %1435 = vst [vmem:[%s1403_s26 + $0x88] sm:$0xff] (%p1808_p6), %v1434_v18  ;;  %1441 = vst [vmem:[%s1403_s26 + $0xc0] sm:$0xff] (%p1808_p6), %v1440_v21 }
 0x146   : > { %v1252_v6 = vmax.f32 %v1220_v22, 0.0  ;;  %v1227_v27 = vadd.f32 %v1194_v13, %v1006_v25  ;;  %v1254_v30 = vmax.f32 %v1222_v24, 0.0  ;;  %v1229_v31 = vadd.f32 %v1202_v14, %v1059_v28  ;;  %v1442_v22 = vld [vmem:[%s2068_s23 + $0x68] sm:$0xff] (%p1808_p6) }
 0x147   : > { %v1008_v32 = vpop.f32.mrf.mxu0  ;;  %v1061_v34 = vpop.f32.mrf.mxu1  ;;  %1443 = vst [vmem:[%s1403_s26 + $0xc8] sm:$0xff] (%p1808_p6), %v1442_v22 }
 0x148   : > { %v1654_v33 = vpack.c.bf16 %v1252_v6, %v1251_v26  ;;  %v1228_v8 = vadd.f32 %v1198_v15, %v1008_v32  ;;  %v1655_v35 = vpack.c.bf16 %v1254_v30, %v1253_v29  ;;  %v1230_v36 = vadd.f32 %v1206_v17, %v1061_v34 }
 0x149   : > { %v1012_v37 = vpop.f32.mrf.mxu0  ;;  %v1259_v38 = vmax.f32 %v1227_v27, 0.0  ;;  %v1065_v41 = vpop.f32.mrf.mxu1  ;;  %v1261_v42 = vmax.f32 %v1229_v31, 0.0 }
 0x14a   : > { %1377 = vst [vmem:[%s2068_s23 + $0x10] sm:$0xff] %v1654_v33  ;;  %v1260_v39 = vmax.f32 %v1228_v8, 0.0  ;;  %v1235_v40 = vadd.f32 %v1194_v13, %v1012_v37  ;;  %1378 = vst [vmem:[%s2068_s23 + $0x18] sm:$0xff] %v1655_v35  ;;  %v1262_v43 = vmax.f32 %v1230_v36, 0.0  ;;  %v1237_v44 = vadd.f32 %v1202_v14, %v1065_v41 }
 0x14b   : > { %v1014_v45 = vpop.f32.mrf.mxu0  ;;  %v1067_v48 = vpop.f32.mrf.mxu1 }
 0x14c   : > { %v1658_v46 = vpack.c.bf16 %v1260_v39, %v1259_v38  ;;  %v1236_v47 = vadd.f32 %v1198_v15, %v1014_v45  ;;  %v1659_v49 = vpack.c.bf16 %v1262_v43, %v1261_v42  ;;  %v1238_v50 = vadd.f32 %v1206_v17, %v1067_v48 }
 0x14d   : > { %v1016_v51 = vpop.f32.mrf.mxu0  ;;  %v1267_v52 = vmax.f32 %v1235_v40, 0.0  ;;  %v1069_v55 = vpop.f32.mrf.mxu1  ;;  %v1269_v56 = vmax.f32 %v1237_v44, 0.0 }
 0x14e   : > { %1381 = vst [vmem:[%s2068_s23 + $0x30] sm:$0xff] %v1658_v46  ;;  %v1268_v53 = vmax.f32 %v1236_v47, 0.0  ;;  %v1243_v54 = vadd.f32 %v1194_v13, %v1016_v51  ;;  %1382 = vst [vmem:[%s2068_s23 + $0x38] sm:$0xff] %v1659_v49  ;;  %v1270_v57 = vmax.f32 %v1238_v50, 0.0  ;;  %v1245_v58 = vadd.f32 %v1202_v14, %v1069_v55  ;;  %v1424_v13 = vld [vmem:[%s2068_s23 + $0x20] sm:$0xff] (%p1808_p6)  ;;  %v1426_v14 = vld [vmem:[%s2068_s23 + $0x28] sm:$0xff] (%p1808_p6) }
 0x14f   : > { %v1018_v59 = vpop.f32.mrf.mxu0  ;;  %v1071_v62 = vpop.f32.mrf.mxu1  ;;  %1425 = vst [vmem:[%s1403_s26 + $0x40] sm:$0xff] (%p1808_p6), %v1424_v13  ;;  %1427 = vst [vmem:[%s1403_s26 + $0x48] sm:$0xff] (%p1808_p6), %v1426_v14 }
 0x150   : > { %v1662_v60 = vpack.c.bf16 %v1268_v53, %v1267_v52  ;;  %v1244_v61 = vadd.f32 %v1198_v15, %v1018_v59  ;;  %v1663_v63 = vpack.c.bf16 %v1270_v57, %v1269_v56  ;;  %v1246_v1 = vadd.f32 %v1206_v17, %v1071_v62  ;;  %v1432_v17 = vld [vmem:[%s2068_s23 + $0x40] sm:$0xff] (%p1808_p6) }
 0x151   : > { %v1275_v2 = vmax.f32 %v1243_v54, 0.0  ;;  %v1277_v4 = vmax.f32 %v1245_v58, 0.0  ;;  %v1420_v11 = vld [vmem:[%s2068_s23 + $0x10] sm:$0xff] (%p1808_p6)  ;;  %v1422_v12 = vld [vmem:[%s2068_s23 + $0x18] sm:$0xff] (%p1808_p6)  ;;  %1433 = vst [vmem:[%s1403_s26 + $0x80] sm:$0xff] (%p1808_p6), %v1432_v17 }
 0x152   : > { %1385 = vst [vmem:[%s2068_s23 + $0x50] sm:$0xff] %v1662_v60  ;;  %v1276_v3 = vmax.f32 %v1244_v61, 0.0  ;;  %1386 = vst [vmem:[%s2068_s23 + $0x58] sm:$0xff] %v1663_v63  ;;  %v1278_v5 = vmax.f32 %v1246_v1, 0.0  ;;  %1397 = sbr.rel (!%p1808_p6) target bundleno = 351 (0x15f), region = 67 }
 0x153   : > { %1421 = vst [vmem:[%s1403_s26 + $0x10] sm:$0xff] (%p1808_p6), %v1420_v11  ;;  %1423 = vst [vmem:[%s1403_s26 + $0x18] sm:$0xff] (%p1808_p6), %v1422_v12 }
 0x154   : > { %v1666_v7 = vpack.c.bf16 %v1276_v3, %v1275_v2  ;;  %v1667_v0 = vpack.c.bf16 %v1278_v5, %v1277_v4 }
 0x155   : > { %v1428_v15 = vld [vmem:[%s2068_s23 + $0x30] sm:$0xff] (%p1808_p6)  ;;  %v1430_v16 = vld [vmem:[%s2068_s23 + $0x38] sm:$0xff] (%p1808_p6) }
 0x156   : > { %1389 = vst [vmem:[%s2068_s23 + $0x70] sm:$0xff] %v1666_v7  ;;  %1390 = vst [vmem:[%s2068_s23 + $0x78] sm:$0xff] %v1667_v0 }
 0x157   : > { %1429 = vst [vmem:[%s1403_s26 + $0x50] sm:$0xff] %v1428_v15  ;;  %1431 = vst [vmem:[%s1403_s26 + $0x58] sm:$0xff] %v1430_v16 }
 0x159   : > { %v1436_v19 = vld [vmem:[%s2068_s23 + $0x50] sm:$0xff]  ;;  %v1438_v20 = vld [vmem:[%s2068_s23 + $0x58] sm:$0xff] }
 0x15a   : > { %1437 = vst [vmem:[%s1403_s26 + $0x90] sm:$0xff] %v1436_v19  ;;  %1439 = vst [vmem:[%s1403_s26 + $0x98] sm:$0xff] %v1438_v20 }
 0x15d   : > { %v1444_v23 = vld [vmem:[%s2068_s23 + $0x70] sm:$0xff]  ;;  %v1446_v24 = vld [vmem:[%s2068_s23 + $0x78] sm:$0xff] }
 0x15e   : > { %1445 = vst [vmem:[%s1403_s26 + $0xd0] sm:$0xff] %v1444_v23  ;;  %1447 = vst [vmem:[%s1403_s26 + $0xd8] sm:$0xff] %v1446_v24 }
 0x15f PF: > { %s13_s16 = sadd.s32 1, %s1750_s16   ;;  %s2136_s12 = smov %s1738_s13 }
 0x160   : > { %p10_p12 = scmp.ge.s32.totalorder %s13_s16, 4   ;;  %s2137_s13 = smov %s1813_s22 }
 0x161   : > { %s2138_s14 = smov %s1746_s15  ;;  %s2139_s15 = smov %s2141_s17 }
 0x162   :  { %12 = sbr.rel (!%p10_p12) target bundleno = 3 (0x3), region = 127 }

// kernel: enhancement_forward.29
= control target key start
LH: loop header
LB: loop body
LE: loop exit
PB: predicated region body
PF: predicated region fallthrough
CT: control target
= control target key end

     0   :  { %v247_v1 = vmov 0   ;;  %vm112_vm0 = vcmask 785408   ;;  %s347_s1 = inlined_call_operand.vmem [shape: bf16[96,256], index: 1, kind: input, shape index: {}]   ;;  %s348_s3 = inlined_call_operand.vmem [shape: f32[16,1], index: 3, kind: input, shape index: {}]   ;;  %s349_s2 = inlined_call_operand.vmem [shape: f32[16,1], index: 2, kind: input, shape index: {}]   ;;  %s350_s0 = inlined_call_operand.vmem [shape: bf16[16,96], index: 0, kind: input, shape index: {}]   ;;  %s351_s4 = inlined_call_operand.vmem [shape: f32[16,1], index: 4, kind: input, shape index: {}]   ;;  %s352_s5 = inlined_call_operand.vmem [shape: f32[16,256], index: 5, kind: output, shape index: {}]  }
   0x1   :  { %v228_v0 = vld [vmem:[%s347_s1 + $0x54] ss:$8 sps:$4 sm:$0xff]   ;;  %148 = vmatprep.mubr.bf16.mxu0 %v247_v1  ;;  %227 = vset.pattern.permute.xlu1 %v247_v1  ;;  %v230_v2 = vld [vmem:[%s347_s1 + $0x50] ss:$8 sps:$4 sm:$0xff]   ;;  %v231_v3 = vld [vmem:[%s347_s1 + $0x44] ss:$8 sps:$4 sm:$0xff]  }
   0x2   :  { %226 = vset.pattern.permute.xlu0 %v247_v1  ;;  %120 = vmatprep.subr.bf16.mxu0 %v228_v0  ;;  %v233_v4 = vld [vmem:[%s347_s1 + $0x40] ss:$8 sps:$4 sm:$0xff]   ;;  %v234_v5 = vld [vmem:[%s347_s1 + $0x34] ss:$8 sps:$4 sm:$0xff]   ;;  %v236_v6 = vld [vmem:[%s347_s1 + $0x30] ss:$8 sps:$4 sm:$0xff]  }
   0x3   :  { %121 = vmatpush1.bf16.msra.mxu0 %v230_v2  ;;  %v237_v7 = vld [vmem:[%s347_s1 + $0x24] ss:$8 sps:$4 sm:$0xff]   ;;  %v239_v10 = vld [vmem:[%s347_s1 + $0x20] ss:$8 sps:$4 sm:$0xff]   ;;  %v240_v13 = vld [vmem:[%s347_s1 + $0x14] ss:$8 sps:$4 sm:$0xff]  }
   0x4   :  { %122 = vmatprep.subr.bf16.mxu0 %v231_v3  ;;  %v159_v8 = vld [vmem:[%s348_s3] sm:$0xff]  ;;  %v160_v11 = vld [vmem:[%s348_s3 + $0x8] sm:$0xff]  ;;  %v242_v14 = vld [vmem:[%s347_s1 + $0x10] ss:$8 sps:$4 sm:$0xff]  }
   0x5   :  { %v35_v9 = vld [vmem:[%s349_s2] sm:$0xff]  ;;  %163 = vperm.xlu1 %227, %v159_v8   ;;  %v36_v12 = vld [vmem:[%s349_s2 + $0x8] sm:$0xff] }
   0x6   :  { %39 = vperm.xlu0 %226, %v35_v9   ;;  %v176_v15 = vld [vmem:[%s351_s4 + $0x8] sm:$0xff]  ;;  %v175_v16 = vld [vmem:[%s351_s4] sm:$0xff] }
   0x7   :  { %123 = vmatpush1.bf16.msra.mxu0 %v233_v4  ;;  %v243_v17 = vld [vmem:[%s347_s1 + $0x4] ss:$8 sps:$4 sm:$0xff]   ;;  %v245_v18 = vld [vmem:[%s347_s1] ss:$8 sps:$4 sm:$0xff]  }
   0x8   :  { %124 = vmatprep.subr.bf16.mxu0 %v234_v5  ;;  %v246_v19 = vld [vmem:[%s350_s0] sm:$0xff]  }
   0x9   :  { %168 = vperm.xlu1 %227, %v160_v11  }
   0xa   :  { %44 = vperm.xlu0 %226, %v36_v12  }
   0xb   :  { %125 = vmatpush1.bf16.msra.mxu0 %v236_v6 }
   0xc   :  { %126 = vmatprep.subr.bf16.mxu0 %v237_v7 }
   0xd   :  { %184 = vperm.xlu1 %227, %v176_v15  }
   0xe   :  { %179 = vperm.xlu0 %226, %v175_v16  }
   0xf   :  { %127 = vmatpush1.bf16.msra.mxu0 %v239_v10 }
  0x10   :  { %128 = vmatprep.subr.bf16.mxu0 %v240_v13 }
  0x13   :  { %129 = vmatpush1.bf16.msra.mxu0 %v242_v14 }
  0x14   :  { %130 = vmatprep.subr.bf16.mxu0 %v243_v17 }
  0x17   :  { %131 = vmatpush1.bf16.msra.mxu0 %v245_v18 }
  0x1a   :  { %224 = vmatmul.mubr.msk.bf16.vlgmr.msra.gmra.mxu0 %vm112_vm0, %v246_v19 }
  0x80   :  { %v164_v21 = vpop.permute.xlu1 %163 }
  0x81   :  { %v40_v20 = vpop.permute.xlu0 %39 }
  0x84   :  { %v169_v25 = vpop.permute.xlu1 %168 }
  0x85   :  { %v45_v22 = vpop.permute.xlu0 %44 }
  0x88   :  { %v185_v38 = vpop.permute.xlu1 %184 }
  0x89   :  { %v180_v29 = vpop.permute.xlu0 %179 }
  0xda   :  { %v150_v23 = vpop.f32.mrf.mxu0 }
  0xdb   :  { %v151_v24 = vadd.f32 %v150_v23, %v40_v20 }
  0xdc   :  { %v152_v26 = vpop.f32.mrf.mxu0 }
  0xdd   :  { %v171_v27 = vmul.f32 %v164_v21, %v151_v24  ;;  %v153_v28 = vadd.f32 %v152_v26, %v40_v20 }
  0xde   :  { %v154_v30 = vpop.f32.mrf.mxu0 }
  0xdf   :  { %v187_v31 = vadd.f32 %v180_v29, %v171_v27  ;;  %v172_v32 = vmul.f32 %v164_v21, %v153_v28  ;;  %v155_v33 = vadd.f32 %v154_v30, %v45_v22 }
  0xe0   :  { %v156_v34 = vpop.f32.mrf.mxu0 }
  0xe1   :  { %vm191_vm1 = vcmp.ge.f32.partialorder %v187_v31, 0.0  ;;  %v195_v35 = vmul.f32 0.01, %v187_v31  ;;  %v188_v36 = vadd.f32 %v180_v29, %v172_v32  ;;  %v173_v37 = vmul.f32 %v169_v25, %v155_v33 }
  0xe2   :  { %v157_v39 = vadd.f32 %v156_v34, %v45_v22 }
  0xe3   :  { %v199_v40 = vsel %vm191_vm1, %v187_v31, %v195_v35  ;;  %vm192_vm2 = vcmp.ge.f32.partialorder %v188_v36, 0.0  ;;  %v196_v41 = vmul.f32 0.01, %v188_v36  ;;  %v189_v42 = vadd.f32 %v185_v38, %v173_v37 }
  0xe4   :  { %203 = vst [vmem:[%s352_s5] sm:$0xff] %v199_v40  ;;  %v174_v43 = vmul.f32 %v169_v25, %v157_v39 }
  0xe5   :  { %v200_v44 = vsel %vm192_vm2, %v188_v36, %v196_v41  ;;  %vm193_vm3 = vcmp.ge.f32.partialorder %v189_v42, 0.0  ;;  %v197_v45 = vmul.f32 0.01, %v189_v42 }
  0xe6   :  { %204 = vst [vmem:[%s352_s5 + $0x8] sm:$0xff] %v200_v44  ;;  %v190_v46 = vadd.f32 %v185_v38, %v174_v43 }
  0xe7   :  { %v201_v47 = vsel %vm193_vm3, %v189_v42, %v197_v45 }
  0xe8   :  { %205 = vst [vmem:[%s352_s5 + $0x10] sm:$0xff] %v201_v47  ;;  %vm194_vm4 = vcmp.ge.f32.partialorder %v190_v46, 0.0  ;;  %v198_v48 = vmul.f32 0.01, %v190_v46 }
  0xea   :  { %v202_v49 = vsel %vm194_vm4, %v190_v46, %v198_v48 }
  0xeb   :  { %206 = vst [vmem:[%s352_s5 + $0x18] sm:$0xff] %v202_v49 }

// kernel: enhancement_forward.31
= control target key start
LH: loop header
LB: loop body
LE: loop exit
PB: predicated region body
PF: predicated region fallthrough
CT: control target
= control target key end

     0   :  { %v436_v1 = vmov 0   ;;  %vm187_vm0 = vcmask 785408   ;;  %s613_s1 = inlined_call_operand.vmem [shape: bf16[96,512], index: 1, kind: input, shape index: {}]   ;;  %s614_s3 = inlined_call_operand.vmem [shape: f32[16,1], index: 3, kind: input, shape index: {}]   ;;  %s615_s2 = inlined_call_operand.vmem [shape: f32[16,1], index: 2, kind: input, shape index: {}]   ;;  %s616_s0 = inlined_call_operand.vmem [shape: bf16[16,96], index: 0, kind: input, shape index: {}]   ;;  %s617_s4 = inlined_call_operand.vmem [shape: f32[16,1], index: 4, kind: input, shape index: {}]   ;;  %s618_s5 = inlined_call_operand.vmem [shape: f32[16,512], index: 5, kind: input, shape index: {}]   ;;  %s619_s6 = inlined_call_operand.vmem [shape: f32[16,512], index: 6, kind: output, shape index: {}]  }
   0x1   :  { %v399_v0 = vld [vmem:[%s613_s1 + $0xa4] ss:$16 sps:$4 sm:$0xff]   ;;  %223 = vmatprep.mubr.bf16.mxu0 %v436_v1  ;;  %266 = vmatprep.mubr.bf16.mxu1 %v436_v1  ;;  %v401_v2 = vld [vmem:[%s613_s1 + $0xac] ss:$16 sps:$4 sm:$0xff]   ;;  %v403_v3 = vld [vmem:[%s613_s1 + $0xa0] ss:$16 sps:$4 sm:$0xff]  }
   0x2   :  { %398 = vset.pattern.permute.xlu1 %v436_v1  ;;  %397 = vset.pattern.permute.xlu0 %v436_v1  ;;  %v404_v4 = vld [vmem:[%s613_s1 + $0xa8] ss:$16 sps:$4 sm:$0xff]   ;;  %v405_v5 = vld [vmem:[%s613_s1 + $0x84] ss:$16 sps:$4 sm:$0xff]   ;;  %v407_v6 = vld [vmem:[%s613_s1 + $0x8c] ss:$16 sps:$4 sm:$0xff]  }
   0x3   :  { %195 = vmatprep.subr.bf16.mxu0 %v399_v0  ;;  %238 = vmatprep.subr.bf16.mxu1 %v401_v2  ;;  %v409_v7 = vld [vmem:[%s613_s1 + $0x80] ss:$16 sps:$4 sm:$0xff]   ;;  %v410_v8 = vld [vmem:[%s613_s1 + $0x88] ss:$16 sps:$4 sm:$0xff]   ;;  %v411_v9 = vld [vmem:[%s613_s1 + $0x64] ss:$16 sps:$4 sm:$0xff]  }
   0x4   :  { %196 = vmatpush1.bf16.msra.mxu0 %v403_v3  ;;  %239 = vmatpush1.bf16.msra.mxu1 %v404_v4  ;;  %v413_v10 = vld [vmem:[%s613_s1 + $0x6c] ss:$16 sps:$4 sm:$0xff]   ;;  %v415_v11 = vld [vmem:[%s613_s1 + $0x60] ss:$16 sps:$4 sm:$0xff]   ;;  %v416_v12 = vld [vmem:[%s613_s1 + $0x68] ss:$16 sps:$4 sm:$0xff]  }
   0x5   :  { %197 = vmatprep.subr.bf16.mxu0 %v405_v5  ;;  %240 = vmatprep.subr.bf16.mxu1 %v407_v6  ;;  %v417_v13 = vld [vmem:[%s613_s1 + $0x44] ss:$16 sps:$4 sm:$0xff]   ;;  %v419_v14 = vld [vmem:[%s613_s1 + $0x4c] ss:$16 sps:$4 sm:$0xff]   ;;  %v421_v15 = vld [vmem:[%s613_s1 + $0x40] ss:$16 sps:$4 sm:$0xff]  }
   0x6   :  { %v422_v16 = vld [vmem:[%s613_s1 + $0x48] ss:$16 sps:$4 sm:$0xff]   ;;  %v423_v17 = vld [vmem:[%s613_s1 + $0x24] ss:$16 sps:$4 sm:$0xff]   ;;  %v425_v18 = vld [vmem:[%s613_s1 + $0x2c] ss:$16 sps:$4 sm:$0xff]  }
   0x7   :  { %v427_v19 = vld [vmem:[%s613_s1 + $0x20] ss:$16 sps:$4 sm:$0xff]   ;;  %v428_v20 = vld [vmem:[%s613_s1 + $0x28] ss:$16 sps:$4 sm:$0xff]   ;;  %v429_v21 = vld [vmem:[%s613_s1 + $0x4] ss:$16 sps:$4 sm:$0xff]  }
   0x8   :  { %198 = vmatpush1.bf16.msra.mxu0 %v409_v7  ;;  %241 = vmatpush1.bf16.msra.mxu1 %v410_v8  ;;  %v431_v22 = vld [vmem:[%s613_s1 + $0xc] ss:$16 sps:$4 sm:$0xff]   ;;  %v277_v23 = vld [vmem:[%s614_s3] sm:$0xff]  ;;  %v434_v28 = vld [vmem:[%s613_s1 + $0x8] ss:$16 sps:$4 sm:$0xff]  }
   0x9   :  { %199 = vmatprep.subr.bf16.mxu0 %v411_v9  ;;  %242 = vmatprep.subr.bf16.mxu1 %v413_v10  ;;  %v50_v24 = vld [vmem:[%s615_s2] sm:$0xff]  ;;  %v278_v25 = vld [vmem:[%s614_s3 + $0x8] sm:$0xff]  ;;  %v343_v54 = vld [vmem:[%s618_s5 + $0x10] sm:$0xff] }
   0xa   :  { %281 = vperm.xlu1 %398, %v277_v23   ;;  %54 = vperm.xlu0 %397, %v50_v24   ;;  %v51_v26 = vld [vmem:[%s615_s2 + $0x8] sm:$0xff]  ;;  %v433_v27 = vld [vmem:[%s613_s1] ss:$16 sps:$4 sm:$0xff]  }
   0xb   :  { %v435_v29 = vld [vmem:[%s616_s0] sm:$0xff]   ;;  %v298_v30 = vld [vmem:[%s617_s4 + $0x8] sm:$0xff]  ;;  %v347_v23 = vld [vmem:[%s618_s5 + $0x30] sm:$0xff] }
   0xc   :  { %200 = vmatpush1.bf16.msra.mxu0 %v415_v11  ;;  %243 = vmatpush1.bf16.msra.mxu1 %v416_v12  ;;  %v297_v31 = vld [vmem:[%s617_s4] sm:$0xff]  ;;  %v342_v9 = vld [vmem:[%s618_s5 + $0x8] sm:$0xff]  ;;  %v344_v11 = vld [vmem:[%s618_s5 + $0x18] sm:$0xff] }
   0xd   :  { %201 = vmatprep.subr.bf16.mxu0 %v417_v13  ;;  %244 = vmatprep.subr.bf16.mxu1 %v419_v14  ;;  %v341_v53 = vld [vmem:[%s618_s5] sm:$0xff] }
   0xe   :  { %286 = vperm.xlu1 %398, %v278_v25   ;;  %59 = vperm.xlu0 %397, %v51_v26  }
  0x10   :  { %202 = vmatpush1.bf16.msra.mxu0 %v421_v15  ;;  %245 = vmatpush1.bf16.msra.mxu1 %v422_v16 }
  0x11   :  { %203 = vmatprep.subr.bf16.mxu0 %v423_v17  ;;  %246 = vmatprep.subr.bf16.mxu1 %v425_v18 }
  0x12   :  { %306 = vperm.xlu1 %398, %v298_v30   ;;  %301 = vperm.xlu0 %397, %v297_v31   ;;  %v346_v30 = vld [vmem:[%s618_s5 + $0x28] sm:$0xff] }
  0x14   :  { %204 = vmatpush1.bf16.msra.mxu0 %v427_v19  ;;  %247 = vmatpush1.bf16.msra.mxu1 %v428_v20  ;;  %v345_v20 = vld [vmem:[%s618_s5 + $0x20] sm:$0xff] }
  0x15   :  { %205 = vmatprep.subr.bf16.mxu0 %v429_v21  ;;  %248 = vmatprep.subr.bf16.mxu1 %v431_v22 }
  0x18   :  { %206 = vmatpush1.bf16.msra.mxu0 %v433_v27  ;;  %249 = vmatpush1.bf16.msra.mxu1 %v434_v28 }
  0x1b   :  { %394 = vmatmul.mubr.msk.bf16.vlgmr.msra.gmra.mxu0 %vm187_vm0, %v435_v29  ;;  %395 = vmatmul.mubr.msk.bf16.vlgmr.msra.gmra.mxu1 %vm187_vm0, %v435_v29 }
  0x85   :  { %v55_v32 = vpop.permute.xlu0 %54  ;;  %v282_v33 = vpop.permute.xlu1 %281 }
  0x89   :  { %v60_v34 = vpop.permute.xlu0 %59  ;;  %v287_v41 = vpop.permute.xlu1 %286 }
  0x8d   :  { %v302_v44 = vpop.permute.xlu0 %301  ;;  %v307_v5 = vpop.permute.xlu1 %306 }
  0xdb   :  { %v225_v35 = vpop.f32.mrf.mxu0  ;;  %v268_v36 = vpop.f32.mrf.mxu1 }
  0xdc   :  { %v226_v37 = vadd.f32 %v225_v35, %v55_v32  ;;  %v269_v38 = vadd.f32 %v268_v36, %v55_v32 }
  0xdd   :  { %v227_v39 = vpop.f32.mrf.mxu0  ;;  %v270_v40 = vpop.f32.mrf.mxu1 }
  0xde   :  { %v289_v42 = vmul.f32 %v282_v33, %v226_v37  ;;  %v291_v43 = vmul.f32 %v282_v33, %v269_v38  ;;  %v228_v45 = vadd.f32 %v227_v39, %v55_v32  ;;  %v271_v46 = vadd.f32 %v270_v40, %v55_v32 }
  0xdf   :  { %v229_v47 = vpop.f32.mrf.mxu0  ;;  %v272_v48 = vpop.f32.mrf.mxu1 }
  0xe0   :  { %v309_v49 = vadd.f32 %v302_v44, %v289_v42  ;;  %v311_v50 = vadd.f32 %v302_v44, %v291_v43  ;;  %v290_v51 = vmul.f32 %v282_v33, %v228_v45  ;;  %v292_v52 = vmul.f32 %v282_v33, %v271_v46  ;;  %v348_v33 = vld [vmem:[%s618_s5 + $0x38] sm:$0xff] }
  0xe1   :  { %v230_v55 = vadd.f32 %v229_v47, %v60_v34  ;;  %v273_v56 = vadd.f32 %v272_v48, %v60_v34  ;;  %v231_v57 = vpop.f32.mrf.mxu0  ;;  %v274_v58 = vpop.f32.mrf.mxu1 }
  0xe2   :  { %vm317_vm1 = vcmp.ge.f32.partialorder %v309_v49, 0.0  ;;  %vm319_vm2 = vcmp.ge.f32.partialorder %v311_v50, 0.0  ;;  %v325_v59 = vmul.f32 0.01, %v309_v49  ;;  %v327_v60 = vmul.f32 0.01, %v311_v50 }
  0xe3   :  { %v310_v61 = vadd.f32 %v302_v44, %v290_v51  ;;  %v312_v62 = vadd.f32 %v302_v44, %v292_v52  ;;  %v293_v63 = vmul.f32 %v287_v41, %v230_v55  ;;  %v295_v0 = vmul.f32 %v287_v41, %v273_v56 }
  0xe4   :  { %v333_v1 = vsel %vm317_vm1, %v309_v49, %v325_v59  ;;  %v335_v2 = vsel %vm319_vm2, %v311_v50, %v327_v60  ;;  %v232_v3 = vadd.f32 %v231_v57, %v60_v34  ;;  %v275_v4 = vadd.f32 %v274_v58, %v60_v34 }
  0xe5   :  { %v349_v6 = vadd.f32 %v341_v53, %v333_v1  ;;  %v351_v7 = vadd.f32 %v343_v54, %v335_v2  ;;  %vm318_vm3 = vcmp.ge.f32.partialorder %v310_v61, 0.0  ;;  %v326_v8 = vmul.f32 0.01, %v310_v61 }
  0xe6   :  { %vm320_vm4 = vcmp.ge.f32.partialorder %v312_v62, 0.0  ;;  %v328_v10 = vmul.f32 0.01, %v312_v62  ;;  %v313_v12 = vadd.f32 %v307_v5, %v293_v63  ;;  %v315_v13 = vadd.f32 %v307_v5, %v295_v0 }
  0xe7   :  { %357 = vst [vmem:[%s619_s6] sm:$0xff] %v349_v6  ;;  %359 = vst [vmem:[%s619_s6 + $0x10] sm:$0xff] %v351_v7  ;;  %v334_v14 = vsel %vm318_vm3, %v310_v61, %v326_v8  ;;  %v294_v15 = vmul.f32 %v287_v41, %v232_v3  ;;  %v296_v16 = vmul.f32 %v287_v41, %v275_v4 }
  0xe8   :  { %v350_v17 = vadd.f32 %v342_v9, %v334_v14  ;;  %v336_v18 = vsel %vm320_vm4, %v312_v62, %v328_v10  ;;  %vm321_vm5 = vcmp.ge.f32.partialorder %v313_v12, 0.0  ;;  %v329_v19 = vmul.f32 0.01, %v313_v12 }
  0xe9   :  { %v352_v21 = vadd.f32 %v344_v11, %v336_v18  ;;  %vm323_vm6 = vcmp.ge.f32.partialorder %v315_v13, 0.0  ;;  %v331_v22 = vmul.f32 0.01, %v315_v13  ;;  %v314_v24 = vadd.f32 %v307_v5, %v294_v15 }
  0xea   :  { %358 = vst [vmem:[%s619_s6 + $0x8] sm:$0xff] %v350_v17  ;;  %v337_v25 = vsel %vm321_vm5, %v313_v12, %v329_v19  ;;  %v316_v26 = vadd.f32 %v307_v5, %v296_v16 }
  0xeb   :  { %360 = vst [vmem:[%s619_s6 + $0x18] sm:$0xff] %v352_v21  ;;  %v353_v27 = vadd.f32 %v345_v20, %v337_v25  ;;  %v339_v28 = vsel %vm323_vm6, %v315_v13, %v331_v22  ;;  %vm322_vm7 = vcmp.ge.f32.partialorder %v314_v24, 0.0  ;;  %v330_v29 = vmul.f32 0.01, %v314_v24 }
  0xec   :  { %v355_v31 = vadd.f32 %v347_v23, %v339_v28  ;;  %vm324_vm8 = vcmp.ge.f32.partialorder %v316_v26, 0.0  ;;  %v332_v32 = vmul.f32 0.01, %v316_v26 }
  0xed   :  { %361 = vst [vmem:[%s619_s6 + $0x20] sm:$0xff] %v353_v27  ;;  %v338_v34 = vsel %vm322_vm7, %v314_v24, %v330_v29 }
  0xee   :  { %363 = vst [vmem:[%s619_s6 + $0x30] sm:$0xff] %v355_v31  ;;  %v354_v35 = vadd.f32 %v346_v30, %v338_v34  ;;  %v340_v36 = vsel %vm324_vm8, %v316_v26, %v332_v32 }
  0xef   :  { %v356_v37 = vadd.f32 %v348_v33, %v340_v36 }
  0xf0   :  { %362 = vst [vmem:[%s619_s6 + $0x28] sm:$0xff] %v354_v35 }
  0xf1   :  { %364 = vst [vmem:[%s619_s6 + $0x38] sm:$0xff] %v356_v37 }

// kernel: enhancement_forward.33
= control target key start
LH: loop header
LB: loop body
LE: loop exit
PB: predicated region body
PF: predicated region fallthrough
CT: control target
= control target key end

     0   :  { %v720_v3 = vmov 0   ;;  %vm331_vm0 = vcmask 785408   ;;  %s1093_s1 = inlined_call_operand.vmem [shape: bf16[96,1024], index: 1, kind: input, shape index: {}]   ;;  %s1094_s0 = inlined_call_operand.vmem [shape: bf16[16,96], index: 0, kind: input, shape index: {}]   ;;  %s1095_s2 = inlined_call_operand.vmem [shape: f32[16,1], index: 2, kind: input, shape index: {}]   ;;  %s1096_s3 = inlined_call_operand.vmem [shape: f32[16,1], index: 3, kind: input, shape index: {}]   ;;  %s1097_s4 = inlined_call_operand.vmem [shape: f32[16,1], index: 4, kind: input, shape index: {}]   ;;  %s1098_s5 = inlined_call_operand.vmem [shape: f32[16,1024], index: 5, kind: input, shape index: {}]   ;;  %s1099_s6 = inlined_call_operand.vmem [shape: f32[16,1024], index: 6, kind: output, shape index: {}]  }
   0x1   :  { %v66_v0 = vld [vmem:[%s1093_s1 + $0x140] sm:$0xff]  ;;  %v67_v2 = vld [vmem:[%s1093_s1 + $0x148] sm:$0xff]  ;;  %367 = vmatprep.mubr.bf16.mxu0 %v720_v3  ;;  %410 = vmatprep.mubr.bf16.mxu1 %v720_v3  ;;  %v68_v49 = vld [vmem:[%s1093_s1 + $0x150] sm:$0xff] }
   0x2   :  { %v70_v1 = vld [vmem:[%s1093_s1 + $0x160] sm:$0xff]  ;;  %v71_v5 = vld [vmem:[%s1093_s1 + $0x168] sm:$0xff]  ;;  %717 = vset.pattern.permute.xlu0 %v720_v3  ;;  %718 = vset.pattern.permute.xlu1 %v720_v3  ;;  %v72_v50 = vld [vmem:[%s1093_s1 + $0x170] sm:$0xff] }
   0x3   :  { %v705_v4 = vcombine.high %v66_v0, %v70_v1  ;;  %v704_v6 = vcombine.low %v66_v0, %v70_v1  ;;  %v58_v7 = vld [vmem:[%s1093_s1 + $0x100] sm:$0xff]  ;;  %v707_v9 = vcombine.high %v67_v2, %v71_v5  ;;  %v706_v10 = vcombine.low %v67_v2, %v71_v5  ;;  %v59_v12 = vld [vmem:[%s1093_s1 + $0x108] sm:$0xff]  ;;  %v69_v51 = vld [vmem:[%s1093_s1 + $0x158] sm:$0xff] }
   0x4   :  { %v62_v8 = vld [vmem:[%s1093_s1 + $0x120] sm:$0xff]  ;;  %v63_v13 = vld [vmem:[%s1093_s1 + $0x128] sm:$0xff]  ;;  %v73_v52 = vld [vmem:[%s1093_s1 + $0x178] sm:$0xff]  ;;  %v709_v57 = vcombine.high %v68_v49, %v72_v50  ;;  %v708_v1 = vcombine.low %v68_v49, %v72_v50 }
   0x5   :  { %v697_v11 = vcombine.high %v58_v7, %v62_v8  ;;  %v50_v14 = vld [vmem:[%s1093_s1 + $0xc0] sm:$0xff]  ;;  %339 = vmatprep.subr.bf16.mxu0 %v705_v4  ;;  %v699_v15 = vcombine.high %v59_v12, %v63_v13  ;;  %v51_v17 = vld [vmem:[%s1093_s1 + $0xc8] sm:$0xff]  ;;  %382 = vmatprep.subr.bf16.mxu1 %v707_v9  ;;  %v696_v19 = vcombine.low %v58_v7, %v62_v8  ;;  %v60_v60 = vld [vmem:[%s1093_s1 + $0x110] sm:$0xff] }
   0x6   :  { %v54_v16 = vld [vmem:[%s1093_s1 + $0xe0] sm:$0xff]  ;;  %v55_v18 = vld [vmem:[%s1093_s1 + $0xe8] sm:$0xff]  ;;  %340 = vmatpush1.bf16.msra.mxu0 %v704_v6  ;;  %383 = vmatpush1.bf16.msra.mxu1 %v706_v10  ;;  %v698_v20 = vcombine.low %v59_v12, %v63_v13  ;;  %v711_v59 = vcombine.high %v69_v51, %v73_v52  ;;  %v64_v61 = vld [vmem:[%s1093_s1 + $0x130] sm:$0xff]  ;;  %v710_v4 = vcombine.low %v69_v51, %v73_v52 }
   0x7   :  { %341 = vmatprep.subr.bf16.mxu0 %v697_v11  ;;  %v689_v21 = vcombine.high %v50_v14, %v54_v16  ;;  %384 = vmatprep.subr.bf16.mxu1 %v699_v15  ;;  %v691_v22 = vcombine.high %v51_v17, %v55_v18  ;;  %v42_v23 = vld [vmem:[%s1093_s1 + $0x80] sm:$0xff]  ;;  %v43_v25 = vld [vmem:[%s1093_s1 + $0x88] sm:$0xff]  ;;  %v688_v27 = vcombine.low %v50_v14, %v54_v16  ;;  %v61_v62 = vld [vmem:[%s1093_s1 + $0x118] sm:$0xff] }
   0x8   :  { %v46_v24 = vld [vmem:[%s1093_s1 + $0xa0] sm:$0xff]  ;;  %v47_v26 = vld [vmem:[%s1093_s1 + $0xa8] sm:$0xff]  ;;  %v690_v28 = vcombine.low %v51_v17, %v55_v18  ;;  %v65_v63 = vld [vmem:[%s1093_s1 + $0x138] sm:$0xff]  ;;  %v701_v5 = vcombine.high %v60_v60, %v64_v61  ;;  %v700_v11 = vcombine.low %v60_v60, %v64_v61 }
   0x9   :  { %v681_v29 = vcombine.high %v42_v23, %v46_v24  ;;  %v683_v30 = vcombine.high %v43_v25, %v47_v26  ;;  %v34_v31 = vld [vmem:[%s1093_s1 + $0x40] sm:$0xff]  ;;  %v35_v33 = vld [vmem:[%s1093_s1 + $0x48] sm:$0xff]  ;;  %v680_v35 = vcombine.low %v42_v23, %v46_v24  ;;  %v682_v36 = vcombine.low %v43_v25, %v47_v26  ;;  %v52_v7 = vld [vmem:[%s1093_s1 + $0xd0] sm:$0xff] }
   0xa   :  { %342 = vmatpush1.bf16.msra.mxu0 %v696_v19  ;;  %385 = vmatpush1.bf16.msra.mxu1 %v698_v20  ;;  %v38_v32 = vld [vmem:[%s1093_s1 + $0x60] sm:$0xff]  ;;  %v39_v34 = vld [vmem:[%s1093_s1 + $0x68] sm:$0xff]  ;;  %v703_v6 = vcombine.high %v61_v62, %v65_v63  ;;  %v56_v8 = vld [vmem:[%s1093_s1 + $0xf0] sm:$0xff]  ;;  %v702_v12 = vcombine.low %v61_v62, %v65_v63 }
   0xb   :  { %343 = vmatprep.subr.bf16.mxu0 %v689_v21  ;;  %386 = vmatprep.subr.bf16.mxu1 %v691_v22  ;;  %v673_v37 = vcombine.high %v34_v31, %v38_v32  ;;  %v675_v38 = vcombine.high %v35_v33, %v39_v34  ;;  %v26_v39 = vld [vmem:[%s1093_s1] sm:$0xff]  ;;  %v27_v41 = vld [vmem:[%s1093_s1 + $0x8] sm:$0xff]  ;;  %v672_v43 = vcombine.low %v34_v31, %v38_v32  ;;  %v53_v9 = vld [vmem:[%s1093_s1 + $0xd8] sm:$0xff] }
   0xc   :  { %v30_v40 = vld [vmem:[%s1093_s1 + $0x20] sm:$0xff]  ;;  %v31_v42 = vld [vmem:[%s1093_s1 + $0x28] sm:$0xff]  ;;  %v674_v44 = vcombine.low %v35_v33, %v39_v34  ;;  %v57_v10 = vld [vmem:[%s1093_s1 + $0xf8] sm:$0xff]  ;;  %v693_v13 = vcombine.high %v52_v7, %v56_v8  ;;  %v692_v19 = vcombine.low %v52_v7, %v56_v8 }
   0xd   :  { %v665_v45 = vcombine.high %v26_v39, %v30_v40  ;;  %v74_v46 = vld [vmem:[%s1095_s2] sm:$0xff]  ;;  %v667_v48 = vcombine.high %v27_v41, %v31_v42  ;;  %v75_v53 = vld [vmem:[%s1095_s2 + $0x8] sm:$0xff]  ;;  %v664_v54 = vcombine.low %v26_v39, %v30_v40  ;;  %v666_v56 = vcombine.low %v27_v41, %v31_v42  ;;  %v44_v15 = vld [vmem:[%s1093_s1 + $0x90] sm:$0xff] }
   0xe   :  { %344 = vmatpush1.bf16.msra.mxu0 %v688_v27  ;;  %387 = vmatpush1.bf16.msra.mxu1 %v690_v28  ;;  %v507_v47 = vld [vmem:[%s1096_s3] sm:$0xff]  ;;  %v508_v55 = vld [vmem:[%s1096_s3 + $0x8] sm:$0xff]  ;;  %v695_v14 = vcombine.high %v53_v9, %v57_v10  ;;  %v48_v16 = vld [vmem:[%s1093_s1 + $0xb0] sm:$0xff]  ;;  %v694_v20 = vcombine.low %v53_v9, %v57_v10 }
   0xf   :  { %345 = vmatprep.subr.bf16.mxu0 %v681_v29  ;;  %388 = vmatprep.subr.bf16.mxu1 %v683_v30  ;;  %v859_v58 = vld [vmem:[%s1094_s0] sm:$0xff]   ;;  %v536_v2 = vld [vmem:[%s1097_s4 + $0x8] sm:$0xff]  ;;  %v45_v17 = vld [vmem:[%s1093_s1 + $0x98] sm:$0xff]  ;;  %v685_v21 = vcombine.high %v44_v15, %v48_v16  ;;  %v684_v26 = vcombine.low %v44_v15, %v48_v16 }
  0x10   :  { %78 = vperm.xlu0 %717, %v74_v46   ;;  %511 = vperm.xlu1 %718, %v507_v47   ;;  %v535_v0 = vld [vmem:[%s1097_s4] sm:$0xff]  ;;  %v49_v18 = vld [vmem:[%s1093_s1 + $0xb8] sm:$0xff]  ;;  %v36_v23 = vld [vmem:[%s1093_s1 + $0x50] sm:$0xff] }
  0x11   :  { %v687_v22 = vcombine.high %v45_v17, %v49_v18  ;;  %v40_v24 = vld [vmem:[%s1093_s1 + $0x70] sm:$0xff]  ;;  %v41_v25 = vld [vmem:[%s1093_s1 + $0x78] sm:$0xff]  ;;  %v686_v27 = vcombine.low %v45_v17, %v49_v18  ;;  %v612_v10 = vld [vmem:[%s1098_s5 + $0x8] sm:$0xff] }
  0x12   :  { %346 = vmatpush1.bf16.msra.mxu0 %v680_v35  ;;  %389 = vmatpush1.bf16.msra.mxu1 %v682_v36  ;;  %v677_v28 = vcombine.high %v36_v23, %v40_v24  ;;  %v28_v30 = vld [vmem:[%s1093_s1 + $0x10] sm:$0xff]  ;;  %v29_v32 = vld [vmem:[%s1093_s1 + $0x18] sm:$0xff]  ;;  %v676_v34 = vcombine.low %v36_v23, %v40_v24 }
  0x13   :  { %347 = vmatprep.subr.bf16.mxu0 %v673_v37  ;;  %390 = vmatprep.subr.bf16.mxu1 %v675_v38  ;;  %v32_v31 = vld [vmem:[%s1093_s1 + $0x30] sm:$0xff]  ;;  %v33_v33 = vld [vmem:[%s1093_s1 + $0x38] sm:$0xff] }
  0x14   :  { %83 = vperm.xlu0 %717, %v75_v53   ;;  %516 = vperm.xlu1 %718, %v508_v55   ;;  %v669_v36 = vcombine.high %v28_v30, %v32_v31  ;;  %v671_v37 = vcombine.high %v29_v32, %v33_v33  ;;  %v668_v38 = vcombine.low %v28_v30, %v32_v31  ;;  %v614_v15 = vld [vmem:[%s1098_s5 + $0x18] sm:$0xff] }
  0x15   :  { %v670_v39 = vcombine.low %v29_v32, %v33_v33  ;;  %v620_v32 = vld [vmem:[%s1098_s5 + $0x48] sm:$0xff]  ;;  %v621_v33 = vld [vmem:[%s1098_s5 + $0x50] sm:$0xff] }
  0x16   :  { %348 = vmatpush1.bf16.msra.mxu0 %v672_v43  ;;  %391 = vmatpush1.bf16.msra.mxu1 %v674_v44 }
  0x17   :  { %349 = vmatprep.subr.bf16.mxu0 %v665_v45  ;;  %392 = vmatprep.subr.bf16.mxu1 %v667_v48 }
  0x18   :  { %539 = vperm.xlu0 %717, %v535_v0   ;;  %544 = vperm.xlu1 %718, %v536_v2   ;;  %v611_v0 = vld [vmem:[%s1098_s5] sm:$0xff] }
  0x1a   :  { %350 = vmatpush1.bf16.msra.mxu0 %v664_v54  ;;  %393 = vmatpush1.bf16.msra.mxu1 %v666_v56 }
  0x1b   :  { %425 = vmatprep.subr.bf16.mxu0 %v709_v57  ;;  %468 = vmatprep.subr.bf16.mxu1 %v711_v59 }
  0x1d   :  { %712 = vmatmul.mubr.msk.bf16.vlgmr.msra.gmra.mxu0 %vm331_vm0, %v859_v58  ;;  %713 = vmatmul.mubr.msk.bf16.vlgmr.msra.gmra.mxu1 %vm331_vm0, %v859_v58 }
  0x1e   :  { %426 = vmatpush1.bf16.msra.mxu0 %v708_v1  ;;  %469 = vmatpush1.bf16.msra.mxu1 %v710_v4 }
  0x1f   :  { %427 = vmatprep.subr.bf16.mxu0 %v701_v5  ;;  %470 = vmatprep.subr.bf16.mxu1 %v703_v6  ;;  %v613_v5 = vld [vmem:[%s1098_s5 + $0x10] sm:$0xff] }
  0x20   :  { %453 = vmatprep.mubr.bf16.mxu0 %v720_v3  ;;  %496 = vmatprep.mubr.bf16.mxu1 %v720_v3  ;;  %v37_v3 = vld [vmem:[%s1093_s1 + $0x58] sm:$0xff] }
  0x21   :  { %v679_v29 = vcombine.high %v37_v3, %v41_v25  ;;  %v678_v35 = vcombine.low %v37_v3, %v41_v25 }
  0x22   :  { %428 = vmatpush1.bf16.msra.mxu0 %v700_v11  ;;  %471 = vmatpush1.bf16.msra.mxu1 %v702_v12 }
  0x23   :  { %429 = vmatprep.subr.bf16.mxu0 %v693_v13  ;;  %472 = vmatprep.subr.bf16.mxu1 %v695_v14 }
  0x26   :  { %430 = vmatpush1.bf16.msra.mxu0 %v692_v19  ;;  %473 = vmatpush1.bf16.msra.mxu1 %v694_v20 }
  0x27   :  { %431 = vmatprep.subr.bf16.mxu0 %v685_v21  ;;  %474 = vmatprep.subr.bf16.mxu1 %v687_v22 }
  0x2a   :  { %432 = vmatpush1.bf16.msra.mxu0 %v684_v26  ;;  %475 = vmatpush1.bf16.msra.mxu1 %v686_v27 }
  0x2b   :  { %433 = vmatprep.subr.bf16.mxu0 %v677_v28  ;;  %476 = vmatprep.subr.bf16.mxu1 %v679_v29  ;;  %v619_v28 = vld [vmem:[%s1098_s5 + $0x40] sm:$0xff] }
  0x2e   :  { %434 = vmatpush1.bf16.msra.mxu0 %v676_v34  ;;  %477 = vmatpush1.bf16.msra.mxu1 %v678_v35 }
  0x2f   :  { %435 = vmatprep.subr.bf16.mxu0 %v669_v36  ;;  %478 = vmatprep.subr.bf16.mxu1 %v671_v37 }
  0x32   :  { %436 = vmatpush1.bf16.msra.mxu0 %v668_v38  ;;  %479 = vmatpush1.bf16.msra.mxu1 %v670_v39  ;;  %v622_v38 = vld [vmem:[%s1098_s5 + $0x58] sm:$0xff] }
  0x35   :  { %714 = vmatmul.mubr.msk.bf16.vlgmr.msra.gmra.mxu0 %vm331_vm0, %v859_v58  ;;  %715 = vmatmul.mubr.msk.bf16.vlgmr.msra.gmra.mxu1 %vm331_vm0, %v859_v58 }
  0x8b   :  { %v937_v40 = vpop.permute.xlu0 %78  ;;  %v941_v42 = vpop.permute.xlu1 %511 }
  0x8f   :  { %v939_v41 = vpop.permute.xlu0 %83  ;;  %v949_v52 = vpop.permute.xlu1 %516 }
  0x93   :  { %v945_v48 = vpop.permute.xlu0 %539  ;;  %v973_v14 = vpop.permute.xlu1 %544 }
  0xdd   :  { %v369_v43 = vpop.f32.mrf.mxu0  ;;  %v412_v45 = vpop.f32.mrf.mxu1 }
  0xde   :  { %v370_v44 = vadd.f32 %v369_v43, %v937_v40  ;;  %v413_v46 = vadd.f32 %v412_v45, %v937_v40 }
  0xdf   :  { %v371_v47 = vpop.f32.mrf.mxu0  ;;  %v414_v51 = vpop.f32.mrf.mxu1 }
  0xe0   :  { %v519_v49 = vmul.f32 %v941_v42, %v370_v44  ;;  %v372_v50 = vadd.f32 %v371_v47, %v937_v40  ;;  %v521_v53 = vmul.f32 %v941_v42, %v413_v46  ;;  %v415_v54 = vadd.f32 %v414_v51, %v937_v40 }
  0xe1   :  { %v373_v55 = vpop.f32.mrf.mxu0  ;;  %v416_v59 = vpop.f32.mrf.mxu1 }
  0xe2   :  { %v520_v56 = vmul.f32 %v941_v42, %v372_v50  ;;  %v547_v57 = vadd.f32 %v945_v48, %v519_v49  ;;  %v374_v58 = vadd.f32 %v373_v55, %v939_v41  ;;  %v522_v60 = vmul.f32 %v941_v42, %v415_v54 }
  0xe3   :  { %v549_v61 = vadd.f32 %v945_v48, %v521_v53  ;;  %v417_v62 = vadd.f32 %v416_v59, %v939_v41  ;;  %v375_v63 = vpop.f32.mrf.mxu0  ;;  %v418_v9 = vpop.f32.mrf.mxu1 }
  0xe4   :  { %v548_v1 = vadd.f32 %v945_v48, %v520_v56  ;;  %vm563_vm1 = vcmp.ge.f32.partialorder %v547_v57, 0.0  ;;  %v579_v2 = vmul.f32 0.01, %v547_v57  ;;  %v527_v4 = vmul.f32 %v949_v52, %v374_v58 }
  0xe5   :  { %v550_v6 = vadd.f32 %v945_v48, %v522_v60  ;;  %vm565_vm2 = vcmp.ge.f32.partialorder %v549_v61, 0.0  ;;  %v581_v7 = vmul.f32 0.01, %v549_v61  ;;  %v529_v8 = vmul.f32 %v949_v52, %v417_v62 }
  0xe6   :  { %vm564_vm3 = vcmp.ge.f32.partialorder %v548_v1, 0.0  ;;  %v580_v11 = vmul.f32 0.01, %v548_v1  ;;  %v595_v12 = vsel %vm563_vm1, %v547_v57, %v579_v2  ;;  %v376_v13 = vadd.f32 %v375_v63, %v939_v41 }
  0xe7   :  { %vm566_vm4 = vcmp.ge.f32.partialorder %v550_v6, 0.0  ;;  %v582_v16 = vmul.f32 0.01, %v550_v6  ;;  %v597_v17 = vsel %vm565_vm2, %v549_v61, %v581_v7  ;;  %v627_v18 = vadd.f32 %v611_v0, %v595_v12 }
  0xe8   :  { %v596_v19 = vsel %vm564_vm3, %v548_v1, %v580_v11  ;;  %v629_v20 = vadd.f32 %v613_v5, %v597_v17  ;;  %v528_v21 = vmul.f32 %v949_v52, %v376_v13  ;;  %v419_v22 = vadd.f32 %v418_v9, %v939_v41 }
  0xe9   :  { %v598_v23 = vsel %vm566_vm4, %v550_v6, %v582_v16  ;;  %v628_v24 = vadd.f32 %v612_v10, %v596_v19  ;;  %643 = vst [vmem:[%s1099_s6] sm:$0xff] %v627_v18  ;;  %v555_v3 = vadd.f32 %v973_v14, %v527_v4  ;;  %v557_v25 = vadd.f32 %v973_v14, %v529_v8  ;;  %v617_v10 = vld [vmem:[%s1098_s5 + $0x30] sm:$0xff] }
  0xea   :  { %v630_v26 = vadd.f32 %v614_v15, %v598_v23  ;;  %645 = vst [vmem:[%s1099_s6 + $0x10] sm:$0xff] %v629_v20  ;;  %v530_v27 = vmul.f32 %v949_v52, %v419_v22  ;;  %v556_v29 = vadd.f32 %v973_v14, %v528_v21  ;;  %v616_v15 = vld [vmem:[%s1098_s5 + $0x28] sm:$0xff] }
  0xeb   :  { %644 = vst [vmem:[%s1099_s6 + $0x8] sm:$0xff] %v628_v24  ;;  %vm571_vm5 = vcmp.ge.f32.partialorder %v555_v3, 0.0  ;;  %vm573_vm6 = vcmp.ge.f32.partialorder %v557_v25, 0.0  ;;  %v587_v30 = vmul.f32 0.01, %v555_v3 }
  0xec   :  { %v589_v31 = vmul.f32 0.01, %v557_v25  ;;  %646 = vst [vmem:[%s1099_s6 + $0x18] sm:$0xff] %v630_v26  ;;  %v558_v34 = vadd.f32 %v973_v14, %v530_v27  ;;  %vm572_vm7 = vcmp.ge.f32.partialorder %v556_v29, 0.0  ;;  %v588_v35 = vmul.f32 0.01, %v556_v29 }
  0xed   :  { %v603_v36 = vsel %vm571_vm5, %v555_v3, %v587_v30  ;;  %v623_v3 = vld [vmem:[%s1098_s5 + $0x60] sm:$0xff] }
  0xee   :  { %v605_v37 = vsel %vm573_vm6, %v557_v25, %v589_v31  ;;  %vm574_vm8 = vcmp.ge.f32.partialorder %v558_v34, 0.0  ;;  %v590_v39 = vmul.f32 0.01, %v558_v34  ;;  %v604_v43 = vsel %vm572_vm7, %v556_v29, %v588_v35 }
  0xef   :  { %v635_v44 = vadd.f32 %v619_v28, %v603_v36  ;;  %v636_v45 = vadd.f32 %v620_v32, %v604_v43  ;;  %v637_v46 = vadd.f32 %v621_v33, %v605_v37 }
  0xf0   :  { %v606_v47 = vsel %vm574_vm8, %v558_v34, %v590_v39  ;;  %v625_v34 = vld [vmem:[%s1098_s5 + $0x70] sm:$0xff] }
  0xf1   :  { %651 = vst [vmem:[%s1099_s6 + $0x40] sm:$0xff] %v635_v44  ;;  %v638_v49 = vadd.f32 %v622_v38, %v606_v47  ;;  %652 = vst [vmem:[%s1099_s6 + $0x48] sm:$0xff] %v636_v45  ;;  %v624_v44 = vld [vmem:[%s1098_s5 + $0x68] sm:$0xff]  ;;  %v626_v45 = vld [vmem:[%s1098_s5 + $0x78] sm:$0xff] }
  0xf2   :  { %653 = vst [vmem:[%s1099_s6 + $0x50] sm:$0xff] %v637_v46 }
  0xf3   :  { %654 = vst [vmem:[%s1099_s6 + $0x58] sm:$0xff] %v638_v49 }
  0xf5   :  { %v455_v50 = vpop.f32.mrf.mxu0  ;;  %v498_v53 = vpop.f32.mrf.mxu1 }
  0xf6   :  { %v456_v51 = vadd.f32 %v455_v50, %v937_v40  ;;  %v499_v54 = vadd.f32 %v498_v53, %v937_v40 }
  0xf7   :  { %v457_v55 = vpop.f32.mrf.mxu0  ;;  %v500_v58 = vpop.f32.mrf.mxu1 }
  0xf8   :  { %v523_v56 = vmul.f32 %v941_v42, %v456_v51  ;;  %v458_v57 = vadd.f32 %v457_v55, %v937_v40  ;;  %v525_v59 = vmul.f32 %v941_v42, %v499_v54  ;;  %v501_v60 = vadd.f32 %v500_v58, %v937_v40  ;;  %v615_v40 = vld [vmem:[%s1098_s5 + $0x20] sm:$0xff] }
  0xf9   :  { %v459_v61 = vpop.f32.mrf.mxu0  ;;  %v502_v1 = vpop.f32.mrf.mxu1 }
  0xfa   :  { %v551_v62 = vadd.f32 %v945_v48, %v523_v56  ;;  %v524_v63 = vmul.f32 %v941_v42, %v458_v57  ;;  %v460_v0 = vadd.f32 %v459_v61, %v939_v41  ;;  %v553_v2 = vadd.f32 %v945_v48, %v525_v59 }
  0xfb   :  { %v526_v4 = vmul.f32 %v941_v42, %v501_v60  ;;  %v503_v5 = vadd.f32 %v502_v1, %v939_v41  ;;  %v461_v17 = vpop.f32.mrf.mxu0  ;;  %v504_v21 = vpop.f32.mrf.mxu1 }
  0xfc   :  { %vm567_vm9 = vcmp.ge.f32.partialorder %v551_v62, 0.0  ;;  %v583_v6 = vmul.f32 0.01, %v551_v62  ;;  %v552_v7 = vadd.f32 %v945_v48, %v524_v63  ;;  %v531_v8 = vmul.f32 %v949_v52, %v460_v0 }
  0xfd   :  { %vm569_vm10 = vcmp.ge.f32.partialorder %v553_v2, 0.0  ;;  %v585_v9 = vmul.f32 0.01, %v553_v2  ;;  %v554_v42 = vadd.f32 %v945_v48, %v526_v4  ;;  %v533_v11 = vmul.f32 %v949_v52, %v503_v5  ;;  %v618_v48 = vld [vmem:[%s1098_s5 + $0x38] sm:$0xff] }
  0xfe   :  { %v599_v12 = vsel %vm567_vm9, %v551_v62, %v583_v6  ;;  %vm568_vm11 = vcmp.ge.f32.partialorder %v552_v7, 0.0  ;;  %v584_v13 = vmul.f32 0.01, %v552_v7  ;;  %v559_v16 = vadd.f32 %v973_v14, %v531_v8 }
  0xff   :  { %v631_v18 = vadd.f32 %v615_v40, %v599_v12  ;;  %v601_v19 = vsel %vm569_vm10, %v553_v2, %v585_v9  ;;  %vm570_vm12 = vcmp.ge.f32.partialorder %v554_v42, 0.0  ;;  %v586_v20 = vmul.f32 0.01, %v554_v42 }
 0x100   :  { %v633_v22 = vadd.f32 %v617_v10, %v601_v19  ;;  %v600_v23 = vsel %vm568_vm11, %v552_v7, %v584_v13  ;;  %vm575_vm13 = vcmp.ge.f32.partialorder %v559_v16, 0.0  ;;  %v591_v24 = vmul.f32 0.01, %v559_v16 }
 0x101   :  { %647 = vst [vmem:[%s1099_s6 + $0x20] sm:$0xff] %v631_v18  ;;  %v632_v25 = vadd.f32 %v616_v15, %v600_v23  ;;  %v602_v26 = vsel %vm570_vm12, %v554_v42, %v586_v20  ;;  %v561_v27 = vadd.f32 %v973_v14, %v533_v11  ;;  %v462_v28 = vadd.f32 %v461_v17, %v939_v41 }
 0x102   :  { %649 = vst [vmem:[%s1099_s6 + $0x30] sm:$0xff] %v633_v22  ;;  %v634_v29 = vadd.f32 %v618_v48, %v602_v26  ;;  %v607_v30 = vsel %vm575_vm13, %v559_v16, %v591_v24  ;;  %v505_v31 = vadd.f32 %v504_v21, %v939_v41 }
 0x103   :  { %648 = vst [vmem:[%s1099_s6 + $0x28] sm:$0xff] %v632_v25  ;;  %v639_v32 = vadd.f32 %v623_v3, %v607_v30  ;;  %vm577_vm14 = vcmp.ge.f32.partialorder %v561_v27, 0.0  ;;  %v593_v33 = vmul.f32 0.01, %v561_v27  ;;  %v532_v35 = vmul.f32 %v949_v52, %v462_v28 }
 0x104   :  { %650 = vst [vmem:[%s1099_s6 + $0x38] sm:$0xff] %v634_v29  ;;  %v534_v36 = vmul.f32 %v949_v52, %v505_v31 }
 0x105   :  { %655 = vst [vmem:[%s1099_s6 + $0x60] sm:$0xff] %v639_v32  ;;  %v609_v41 = vsel %vm577_vm14, %v561_v27, %v593_v33  ;;  %v560_v37 = vadd.f32 %v973_v14, %v532_v35 }
 0x106   :  { %v641_v38 = vadd.f32 %v625_v34, %v609_v41  ;;  %v562_v39 = vadd.f32 %v973_v14, %v534_v36 }
 0x107   :  { %vm576_vm15 = vcmp.ge.f32.partialorder %v560_v37, 0.0  ;;  %v592_v43 = vmul.f32 0.01, %v560_v37 }
 0x108   :  { %657 = vst [vmem:[%s1099_s6 + $0x70] sm:$0xff] %v641_v38  ;;  %vm578_vm0 = vcmp.ge.f32.partialorder %v562_v39, 0.0  ;;  %v594_v52 = vmul.f32 0.01, %v562_v39 }
 0x109   :  { %v608_v46 = vsel %vm576_vm15, %v560_v37, %v592_v43 }
 0x10a   :  { %v640_v47 = vadd.f32 %v624_v44, %v608_v46  ;;  %v610_v49 = vsel %vm578_vm0, %v562_v39, %v594_v52 }
 0x10b   :  { %v642_v14 = vadd.f32 %v626_v45, %v610_v49 }
 0x10c   :  { %656 = vst [vmem:[%s1099_s6 + $0x68] sm:$0xff] %v640_v47 }
 0x10d   :  { %658 = vst [vmem:[%s1099_s6 + $0x78] sm:$0xff] %v642_v14 }

// kernel: enhancement_forward.35
= control target key start
LH: loop header
LB: loop body
LE: loop exit
PB: predicated region body
PF: predicated region fallthrough
CT: control target
= control target key end

     0   :  { %v1232_v3 = vmov 0   ;;  %vm604_vm0 = vcmask 785408   ;;  %s1668_s1 = inlined_call_operand.vmem [shape: bf16[96,2048], index: 1, kind: input, shape index: {}]   ;;  %s1669_s0 = inlined_call_operand.vmem [shape: bf16[2,96], index: 0, kind: input, shape index: {}]   ;;  %s1670_s2 = inlined_call_operand.vmem [shape: f32[2,1], index: 2, kind: input, shape index: {}]   ;;  %s1671_s3 = inlined_call_operand.vmem [shape: f32[2,1], index: 3, kind: input, shape index: {}]   ;;  %s1672_s4 = inlined_call_operand.vmem [shape: f32[2,1], index: 4, kind: input, shape index: {}]   ;;  %s1673_s5 = inlined_call_operand.vmem [shape: f32[2,2048], index: 5, kind: output, shape index: {}]  }
   0x1   :  { %v102_v0 = vld [vmem:[%s1668_s1 + $0x280] sm:$0xff]  ;;  %v103_v2 = vld [vmem:[%s1668_s1 + $0x288] sm:$0xff]  ;;  %640 = vmatprep.mubr.bf16.mxu0 %v1232_v3  ;;  %681 = vmatprep.mubr.bf16.mxu1 %v1232_v3  ;;  %v104_v47 = vld [vmem:[%s1668_s1 + $0x290] sm:$0xff] }
   0x2   :  { %v110_v1 = vld [vmem:[%s1668_s1 + $0x2c0] sm:$0xff]  ;;  %v111_v5 = vld [vmem:[%s1668_s1 + $0x2c8] sm:$0xff]  ;;  %1198 = vset.pattern.permute.xlu0 %v1232_v3  ;;  %1199 = vset.pattern.permute.xlu1 %v1232_v3  ;;  %v112_v48 = vld [vmem:[%s1668_s1 + $0x2d0] sm:$0xff] }
   0x3   :  { %v1173_v4 = vcombine.high %v102_v0, %v110_v1  ;;  %v1172_v6 = vcombine.low %v102_v0, %v110_v1  ;;  %v86_v7 = vld [vmem:[%s1668_s1 + $0x200] sm:$0xff]  ;;  %v1175_v9 = vcombine.high %v103_v2, %v111_v5  ;;  %v1174_v10 = vcombine.low %v103_v2, %v111_v5  ;;  %v87_v12 = vld [vmem:[%s1668_s1 + $0x208] sm:$0xff]  ;;  %v105_v49 = vld [vmem:[%s1668_s1 + $0x298] sm:$0xff] }
   0x4   :  { %v94_v8 = vld [vmem:[%s1668_s1 + $0x240] sm:$0xff]  ;;  %v95_v13 = vld [vmem:[%s1668_s1 + $0x248] sm:$0xff]  ;;  %v113_v50 = vld [vmem:[%s1668_s1 + $0x2d8] sm:$0xff]  ;;  %v1177_v53 = vcombine.high %v104_v47, %v112_v48  ;;  %v1176_v60 = vcombine.low %v104_v47, %v112_v48 }
   0x5   :  { %v1157_v11 = vcombine.high %v86_v7, %v94_v8  ;;  %v70_v14 = vld [vmem:[%s1668_s1 + $0x180] sm:$0xff]  ;;  %612 = vmatprep.subr.bf16.mxu0 %v1173_v4  ;;  %v1159_v15 = vcombine.high %v87_v12, %v95_v13  ;;  %v71_v17 = vld [vmem:[%s1668_s1 + $0x188] sm:$0xff]  ;;  %653 = vmatprep.subr.bf16.mxu1 %v1175_v9  ;;  %v1156_v19 = vcombine.low %v86_v7, %v94_v8  ;;  %v88_v55 = vld [vmem:[%s1668_s1 + $0x210] sm:$0xff] }
   0x6   :  { %v78_v16 = vld [vmem:[%s1668_s1 + $0x1c0] sm:$0xff]  ;;  %v79_v18 = vld [vmem:[%s1668_s1 + $0x1c8] sm:$0xff]  ;;  %613 = vmatpush1.bf16.msra.mxu0 %v1172_v6  ;;  %654 = vmatpush1.bf16.msra.mxu1 %v1174_v10  ;;  %v1158_v20 = vcombine.low %v87_v12, %v95_v13  ;;  %v1179_v54 = vcombine.high %v105_v49, %v113_v50  ;;  %v96_v56 = vld [vmem:[%s1668_s1 + $0x250] sm:$0xff]  ;;  %v1178_v61 = vcombine.low %v105_v49, %v113_v50 }
   0x7   :  { %614 = vmatprep.subr.bf16.mxu0 %v1157_v11  ;;  %v1141_v21 = vcombine.high %v70_v14, %v78_v16  ;;  %655 = vmatprep.subr.bf16.mxu1 %v1159_v15  ;;  %v1143_v22 = vcombine.high %v71_v17, %v79_v18  ;;  %v54_v23 = vld [vmem:[%s1668_s1 + $0x100] sm:$0xff]  ;;  %v55_v25 = vld [vmem:[%s1668_s1 + $0x108] sm:$0xff]  ;;  %v1140_v27 = vcombine.low %v70_v14, %v78_v16  ;;  %v89_v57 = vld [vmem:[%s1668_s1 + $0x218] sm:$0xff] }
   0x8   :  { %v62_v24 = vld [vmem:[%s1668_s1 + $0x140] sm:$0xff]  ;;  %v63_v26 = vld [vmem:[%s1668_s1 + $0x148] sm:$0xff]  ;;  %v1142_v28 = vcombine.low %v71_v17, %v79_v18  ;;  %v97_v58 = vld [vmem:[%s1668_s1 + $0x258] sm:$0xff]  ;;  %v1161_v62 = vcombine.high %v88_v55, %v96_v56  ;;  %v1160_v5 = vcombine.low %v88_v55, %v96_v56 }
   0x9   :  { %v1125_v29 = vcombine.high %v54_v23, %v62_v24  ;;  %v1127_v30 = vcombine.high %v55_v25, %v63_v26  ;;  %v38_v31 = vld [vmem:[%s1668_s1 + $0x80] sm:$0xff]  ;;  %v39_v33 = vld [vmem:[%s1668_s1 + $0x88] sm:$0xff]  ;;  %v1124_v35 = vcombine.low %v54_v23, %v62_v24  ;;  %v1126_v36 = vcombine.low %v55_v25, %v63_v26  ;;  %v72_v0 = vld [vmem:[%s1668_s1 + $0x190] sm:$0xff] }
   0xa   :  { %615 = vmatpush1.bf16.msra.mxu0 %v1156_v19  ;;  %656 = vmatpush1.bf16.msra.mxu1 %v1158_v20  ;;  %v46_v32 = vld [vmem:[%s1668_s1 + $0xc0] sm:$0xff]  ;;  %v47_v34 = vld [vmem:[%s1668_s1 + $0xc8] sm:$0xff]  ;;  %v1163_v63 = vcombine.high %v89_v57, %v97_v58  ;;  %v80_v1 = vld [vmem:[%s1668_s1 + $0x1d0] sm:$0xff]  ;;  %v1162_v6 = vcombine.low %v89_v57, %v97_v58 }
   0xb   :  { %616 = vmatprep.subr.bf16.mxu0 %v1141_v21  ;;  %657 = vmatprep.subr.bf16.mxu1 %v1143_v22  ;;  %v1109_v37 = vcombine.high %v38_v31, %v46_v32  ;;  %v1111_v38 = vcombine.high %v39_v33, %v47_v34  ;;  %v22_v39 = vld [vmem:[%s1668_s1] sm:$0xff]  ;;  %v23_v41 = vld [vmem:[%s1668_s1 + $0x8] sm:$0xff]  ;;  %v1108_v43 = vcombine.low %v38_v31, %v46_v32  ;;  %v73_v2 = vld [vmem:[%s1668_s1 + $0x198] sm:$0xff] }
   0xc   :  { %v30_v40 = vld [vmem:[%s1668_s1 + $0x40] sm:$0xff]  ;;  %v31_v42 = vld [vmem:[%s1668_s1 + $0x48] sm:$0xff]  ;;  %v1110_v44 = vcombine.low %v39_v33, %v47_v34  ;;  %v81_v4 = vld [vmem:[%s1668_s1 + $0x1d8] sm:$0xff]  ;;  %v1145_v7 = vcombine.high %v72_v0, %v80_v1  ;;  %v1144_v14 = vcombine.low %v72_v0, %v80_v1 }
   0xd   :  { %v1093_v45 = vcombine.high %v22_v39, %v30_v40  ;;  %v1095_v46 = vcombine.high %v23_v41, %v31_v42  ;;  %v1092_v51 = vcombine.low %v22_v39, %v30_v40  ;;  %v1094_v52 = vcombine.low %v23_v41, %v31_v42  ;;  %v1367_v59 = vld [vmem:[%s1669_s0] sm:$0x1]  ;;  %v56_v9 = vld [vmem:[%s1668_s1 + $0x110] sm:$0xff]  ;;  %v57_v11 = vld [vmem:[%s1668_s1 + $0x118] sm:$0xff] }
   0xe   :  { %617 = vmatpush1.bf16.msra.mxu0 %v1140_v27  ;;  %658 = vmatpush1.bf16.msra.mxu1 %v1142_v28  ;;  %v1147_v8 = vcombine.high %v73_v2, %v81_v4  ;;  %v64_v10 = vld [vmem:[%s1668_s1 + $0x150] sm:$0xff]  ;;  %v65_v12 = vld [vmem:[%s1668_s1 + $0x158] sm:$0xff]  ;;  %v118_v13 = vld [vmem:[%s1670_s2] sm:$0x3]  ;;  %v1146_v15 = vcombine.low %v73_v2, %v81_v4 }
   0xf   :  { %618 = vmatprep.subr.bf16.mxu0 %v1125_v29  ;;  %659 = vmatprep.subr.bf16.mxu1 %v1127_v30  ;;  %v1129_v16 = vcombine.high %v56_v9, %v64_v10  ;;  %v936_v17 = vld [vmem:[%s1671_s3] sm:$0x3]  ;;  %v1131_v19 = vcombine.high %v57_v11, %v65_v12  ;;  %v40_v20 = vld [vmem:[%s1668_s1 + $0x90] sm:$0xff]  ;;  %v41_v22 = vld [vmem:[%s1668_s1 + $0x98] sm:$0xff]  ;;  %v1128_v24 = vcombine.low %v56_v9, %v64_v10 }
  0x10   :  { %121 = vperm.xlu0 %1198, %v118_v13   ;;  %v958_v18 = vld [vmem:[%s1672_s4] sm:$0x3]  ;;  %v48_v21 = vld [vmem:[%s1668_s1 + $0xd0] sm:$0xff]  ;;  %v49_v23 = vld [vmem:[%s1668_s1 + $0xd8] sm:$0xff]  ;;  %v1130_v25 = vcombine.low %v57_v11, %v65_v12 }
  0x11   :  { %961 = vperm.xlu1 %1199, %v958_v18   ;;  %v1113_v26 = vcombine.high %v40_v20, %v48_v21  ;;  %v1115_v27 = vcombine.high %v41_v22, %v49_v23  ;;  %v24_v28 = vld [vmem:[%s1668_s1 + $0x10] sm:$0xff]  ;;  %v25_v30 = vld [vmem:[%s1668_s1 + $0x18] sm:$0xff]  ;;  %v1112_v32 = vcombine.low %v40_v20, %v48_v21  ;;  %v1114_v33 = vcombine.low %v41_v22, %v49_v23  ;;  %v115_v39 = vld [vmem:[%s1668_s1 + $0x2e8] sm:$0xff] }
  0x12   :  { %619 = vmatpush1.bf16.msra.mxu0 %v1124_v35  ;;  %660 = vmatpush1.bf16.msra.mxu1 %v1126_v36  ;;  %v32_v29 = vld [vmem:[%s1668_s1 + $0x50] sm:$0xff]  ;;  %v33_v31 = vld [vmem:[%s1668_s1 + $0x58] sm:$0xff]  ;;  %v106_v36 = vld [vmem:[%s1668_s1 + $0x2a0] sm:$0xff] }
  0x13   :  { %620 = vmatprep.subr.bf16.mxu0 %v1109_v37  ;;  %661 = vmatprep.subr.bf16.mxu1 %v1111_v38  ;;  %v1097_v34 = vcombine.high %v24_v28, %v32_v29  ;;  %v1099_v35 = vcombine.high %v25_v30, %v33_v31  ;;  %v114_v37 = vld [vmem:[%s1668_s1 + $0x2e0] sm:$0xff]  ;;  %v107_v38 = vld [vmem:[%s1668_s1 + $0x2a8] sm:$0xff]  ;;  %v1096_v40 = vcombine.low %v24_v28, %v32_v29  ;;  %v108_v22 = vld [vmem:[%s1668_s1 + $0x2b0] sm:$0xff] }
  0x14   :  { %939 = vperm.xlu0 %1198, %v936_v17   ;;  %v1098_v41 = vcombine.low %v25_v30, %v33_v31  ;;  %v1181_v42 = vcombine.high %v106_v36, %v114_v37  ;;  %v99_v47 = vld [vmem:[%s1668_s1 + $0x268] sm:$0xff]  ;;  %v1180_v48 = vcombine.low %v106_v36, %v114_v37  ;;  %v1182_v49 = vcombine.low %v107_v38, %v115_v39  ;;  %v116_v23 = vld [vmem:[%s1668_s1 + $0x2f0] sm:$0xff] }
  0x15   :  { %v83_v55 = vld [vmem:[%s1668_s1 + $0x1e8] sm:$0xff]  ;;  %v1185_v28 = vcombine.high %v108_v22, %v116_v23  ;;  %v92_v30 = vld [vmem:[%s1668_s1 + $0x230] sm:$0xff] }
  0x16   :  { %621 = vmatpush1.bf16.msra.mxu0 %v1108_v43  ;;  %662 = vmatpush1.bf16.msra.mxu1 %v1110_v44  ;;  %v1183_v43 = vcombine.high %v107_v38, %v115_v39  ;;  %v90_v44 = vld [vmem:[%s1668_s1 + $0x220] sm:$0xff]  ;;  %v67_v0 = vld [vmem:[%s1668_s1 + $0x168] sm:$0xff]  ;;  %v100_v31 = vld [vmem:[%s1668_s1 + $0x270] sm:$0xff] }
  0x17   :  { %622 = vmatprep.subr.bf16.mxu0 %v1093_v45  ;;  %663 = vmatprep.subr.bf16.mxu1 %v1095_v46  ;;  %v98_v45 = vld [vmem:[%s1668_s1 + $0x260] sm:$0xff]  ;;  %v91_v46 = vld [vmem:[%s1668_s1 + $0x228] sm:$0xff]  ;;  %v1169_v36 = vcombine.high %v92_v30, %v100_v31  ;;  %v76_v38 = vld [vmem:[%s1668_s1 + $0x1b0] sm:$0xff] }
  0x18   :  { %v1165_v50 = vcombine.high %v90_v44, %v98_v45  ;;  %v1164_v56 = vcombine.low %v90_v44, %v98_v45  ;;  %v1166_v57 = vcombine.low %v91_v46, %v99_v47  ;;  %v51_v9 = vld [vmem:[%s1668_s1 + $0xe8] sm:$0xff]  ;;  %v84_v39 = vld [vmem:[%s1668_s1 + $0x1f0] sm:$0xff] }
  0x19   :  { %v35_v17 = vld [vmem:[%s1668_s1 + $0x68] sm:$0xff]  ;;  %v1153_v44 = vcombine.high %v76_v38, %v84_v39 }
  0x1a   :  { %623 = vmatpush1.bf16.msra.mxu0 %v1092_v51  ;;  %664 = vmatpush1.bf16.msra.mxu1 %v1094_v52  ;;  %v1167_v51 = vcombine.high %v91_v46, %v99_v47  ;;  %v74_v52 = vld [vmem:[%s1668_s1 + $0x1a0] sm:$0xff]  ;;  %v60_v46 = vld [vmem:[%s1668_s1 + $0x130] sm:$0xff] }
  0x1b   :  { %694 = vmatprep.subr.bf16.mxu0 %v1177_v53  ;;  %735 = vmatprep.subr.bf16.mxu1 %v1179_v54  ;;  %v82_v53 = vld [vmem:[%s1668_s1 + $0x1e0] sm:$0xff]  ;;  %v75_v54 = vld [vmem:[%s1668_s1 + $0x1a8] sm:$0xff]  ;;  %v68_v47 = vld [vmem:[%s1668_s1 + $0x170] sm:$0xff] }
  0x1c   :  { %v1149_v58 = vcombine.high %v74_v52, %v82_v53  ;;  %v1148_v1 = vcombine.low %v74_v52, %v82_v53  ;;  %v1150_v2 = vcombine.low %v75_v54, %v83_v55  ;;  %v1137_v52 = vcombine.high %v60_v46, %v68_v47 }
  0x1d   :  { %1188 = vmatmul.mubr.msk.bf16.vlgmr.msra.gmra.mxu0 %vm604_vm0, %v1367_v59  ;;  %1189 = vmatmul.mubr.msk.bf16.vlgmr.msra.gmra.mxu1 %vm604_vm0, %v1367_v59 }
  0x1e   :  { %695 = vmatpush1.bf16.msra.mxu0 %v1176_v60  ;;  %736 = vmatpush1.bf16.msra.mxu1 %v1178_v61  ;;  %v1151_v60 = vcombine.high %v75_v54, %v83_v55  ;;  %v58_v61 = vld [vmem:[%s1668_s1 + $0x120] sm:$0xff]  ;;  %v44_v54 = vld [vmem:[%s1668_s1 + $0xb0] sm:$0xff] }
  0x1f   :  { %696 = vmatprep.subr.bf16.mxu0 %v1161_v62  ;;  %737 = vmatprep.subr.bf16.mxu1 %v1163_v63  ;;  %v66_v62 = vld [vmem:[%s1668_s1 + $0x160] sm:$0xff]  ;;  %v59_v63 = vld [vmem:[%s1668_s1 + $0x128] sm:$0xff]  ;;  %v52_v55 = vld [vmem:[%s1668_s1 + $0xf0] sm:$0xff] }
  0x20   :  { %722 = vmatprep.mubr.bf16.mxu0 %v1232_v3  ;;  %763 = vmatprep.mubr.bf16.mxu1 %v1232_v3  ;;  %v1133_v4 = vcombine.high %v58_v61, %v66_v62  ;;  %v1132_v10 = vcombine.low %v58_v61, %v66_v62  ;;  %v1134_v11 = vcombine.low %v59_v63, %v67_v0  ;;  %v28_v62 = vld [vmem:[%s1668_s1 + $0x30] sm:$0xff] }
  0x22   :  { %697 = vmatpush1.bf16.msra.mxu0 %v1160_v5  ;;  %738 = vmatpush1.bf16.msra.mxu1 %v1162_v6  ;;  %v1135_v5 = vcombine.high %v59_v63, %v67_v0  ;;  %v42_v6 = vld [vmem:[%s1668_s1 + $0xa0] sm:$0xff]  ;;  %v36_v63 = vld [vmem:[%s1668_s1 + $0x70] sm:$0xff]  ;;  %v29_v0 = vld [vmem:[%s1668_s1 + $0x38] sm:$0xff] }
  0x23   :  { %698 = vmatprep.subr.bf16.mxu0 %v1145_v7  ;;  %739 = vmatprep.subr.bf16.mxu1 %v1147_v8  ;;  %v50_v7 = vld [vmem:[%s1668_s1 + $0xe0] sm:$0xff]  ;;  %v43_v8 = vld [vmem:[%s1668_s1 + $0xa8] sm:$0xff] }
  0x24   :  { %v1117_v12 = vcombine.high %v42_v6, %v50_v7  ;;  %v1119_v13 = vcombine.high %v43_v8, %v51_v9  ;;  %v1116_v18 = vcombine.low %v42_v6, %v50_v7  ;;  %v1104_v7 = vcombine.low %v28_v62, %v36_v63 }
  0x26   :  { %699 = vmatpush1.bf16.msra.mxu0 %v1144_v14  ;;  %740 = vmatpush1.bf16.msra.mxu1 %v1146_v15  ;;  %v26_v14 = vld [vmem:[%s1668_s1 + $0x20] sm:$0xff] }
  0x27   :  { %700 = vmatprep.subr.bf16.mxu0 %v1129_v16  ;;  %741 = vmatprep.subr.bf16.mxu1 %v1131_v19  ;;  %v34_v15 = vld [vmem:[%s1668_s1 + $0x60] sm:$0xff]  ;;  %v27_v16 = vld [vmem:[%s1668_s1 + $0x28] sm:$0xff]  ;;  %v1118_v19 = vcombine.low %v43_v8, %v51_v9 }
  0x28   :  { %v1101_v20 = vcombine.high %v26_v14, %v34_v15  ;;  %v1103_v21 = vcombine.high %v27_v16, %v35_v17 }
  0x2a   :  { %701 = vmatpush1.bf16.msra.mxu0 %v1128_v24  ;;  %742 = vmatpush1.bf16.msra.mxu1 %v1130_v25  ;;  %v109_v24 = vld [vmem:[%s1668_s1 + $0x2b8] sm:$0xff] }
  0x2b   :  { %702 = vmatprep.subr.bf16.mxu0 %v1113_v26  ;;  %743 = vmatprep.subr.bf16.mxu1 %v1115_v27  ;;  %v117_v25 = vld [vmem:[%s1668_s1 + $0x2f8] sm:$0xff]  ;;  %v1100_v26 = vcombine.low %v26_v14, %v34_v15  ;;  %v1102_v27 = vcombine.low %v27_v16, %v35_v17 }
  0x2c   :  { %v1187_v29 = vcombine.high %v109_v24, %v117_v25 }
  0x2e   :  { %703 = vmatpush1.bf16.msra.mxu0 %v1112_v32  ;;  %744 = vmatpush1.bf16.msra.mxu1 %v1114_v33  ;;  %v93_v32 = vld [vmem:[%s1668_s1 + $0x238] sm:$0xff] }
  0x2f   :  { %704 = vmatprep.subr.bf16.mxu0 %v1097_v34  ;;  %745 = vmatprep.subr.bf16.mxu1 %v1099_v35  ;;  %v101_v33 = vld [vmem:[%s1668_s1 + $0x278] sm:$0xff]  ;;  %v1184_v34 = vcombine.low %v108_v22, %v116_v23  ;;  %v1186_v35 = vcombine.low %v109_v24, %v117_v25 }
  0x30   :  { %v1171_v37 = vcombine.high %v93_v32, %v101_v33 }
  0x32   :  { %705 = vmatpush1.bf16.msra.mxu0 %v1096_v40  ;;  %746 = vmatpush1.bf16.msra.mxu1 %v1098_v41  ;;  %v77_v40 = vld [vmem:[%s1668_s1 + $0x1b8] sm:$0xff] }
  0x33   :  { %776 = vmatprep.subr.bf16.mxu0 %v1181_v42  ;;  %817 = vmatprep.subr.bf16.mxu1 %v1183_v43  ;;  %v85_v41 = vld [vmem:[%s1668_s1 + $0x1f8] sm:$0xff]  ;;  %v1168_v42 = vcombine.low %v92_v30, %v100_v31  ;;  %v1170_v43 = vcombine.low %v93_v32, %v101_v33  ;;  %v1233_v31 = vmov 1983009808   ;;  %v1017_v33 = vlaneseq }
  0x34   :  { %v1155_v45 = vcombine.high %v77_v40, %v85_v41  ;;  %v1015_v32 = vunpack.c.l.s4 %v1233_v31 }
  0x35   :  { %1190 = vmatmul.mubr.msk.bf16.vlgmr.msra.gmra.mxu0 %vm604_vm0, %v1367_v59  ;;  %1191 = vmatmul.mubr.msk.bf16.vlgmr.msra.gmra.mxu1 %vm604_vm0, %v1367_v59 }
  0x36   :  { %777 = vmatpush1.bf16.msra.mxu0 %v1180_v48  ;;  %818 = vmatpush1.bf16.msra.mxu1 %v1182_v49  ;;  %v61_v48 = vld [vmem:[%s1668_s1 + $0x138] sm:$0xff] }
  0x37   :  { %778 = vmatprep.subr.bf16.mxu0 %v1165_v50  ;;  %819 = vmatprep.subr.bf16.mxu1 %v1167_v51  ;;  %v69_v49 = vld [vmem:[%s1668_s1 + $0x178] sm:$0xff]  ;;  %v1152_v50 = vcombine.low %v76_v38, %v84_v39  ;;  %v1154_v51 = vcombine.low %v77_v40, %v85_v41 }
  0x38   :  { %804 = vmatprep.mubr.bf16.mxu0 %v1232_v3  ;;  %845 = vmatprep.mubr.bf16.mxu1 %v1232_v3  ;;  %v1139_v53 = vcombine.high %v61_v48, %v69_v49 }
  0x3a   :  { %779 = vmatpush1.bf16.msra.mxu0 %v1164_v56  ;;  %820 = vmatpush1.bf16.msra.mxu1 %v1166_v57  ;;  %v53_v56 = vld [vmem:[%s1668_s1 + $0xf8] sm:$0xff]  ;;  %v1136_v57 = vcombine.low %v60_v46, %v68_v47 }
  0x3b   :  { %780 = vmatprep.subr.bf16.mxu0 %v1149_v58  ;;  %821 = vmatprep.subr.bf16.mxu1 %v1151_v60  ;;  %v1138_v58 = vcombine.low %v61_v48, %v69_v49  ;;  %v1121_v60 = vcombine.high %v44_v54, %v52_v55 }
  0x3e   :  { %781 = vmatpush1.bf16.msra.mxu0 %v1148_v1  ;;  %822 = vmatpush1.bf16.msra.mxu1 %v1150_v2  ;;  %v37_v1 = vld [vmem:[%s1668_s1 + $0x78] sm:$0xff]  ;;  %v1120_v2 = vcombine.low %v44_v54, %v52_v55 }
  0x3f   :  { %782 = vmatprep.subr.bf16.mxu0 %v1133_v4  ;;  %823 = vmatprep.subr.bf16.mxu1 %v1135_v5  ;;  %v1105_v5 = vcombine.high %v28_v62, %v36_v63  ;;  %v1107_v6 = vcombine.high %v29_v0, %v37_v1  ;;  %v1106_v8 = vcombine.low %v29_v0, %v37_v1 }
  0x42   :  { %783 = vmatpush1.bf16.msra.mxu0 %v1132_v10  ;;  %824 = vmatpush1.bf16.msra.mxu1 %v1134_v11 }
  0x43   :  { %784 = vmatprep.subr.bf16.mxu0 %v1117_v12  ;;  %825 = vmatprep.subr.bf16.mxu1 %v1119_v13 }
  0x46   :  { %785 = vmatpush1.bf16.msra.mxu0 %v1116_v18  ;;  %826 = vmatpush1.bf16.msra.mxu1 %v1118_v19 }
  0x47   :  { %786 = vmatprep.subr.bf16.mxu0 %v1101_v20  ;;  %827 = vmatprep.subr.bf16.mxu1 %v1103_v21 }
  0x4a   :  { %787 = vmatpush1.bf16.msra.mxu0 %v1100_v26  ;;  %828 = vmatpush1.bf16.msra.mxu1 %v1102_v27 }
  0x4b   :  { %858 = vmatprep.subr.bf16.mxu0 %v1185_v28  ;;  %899 = vmatprep.subr.bf16.mxu1 %v1187_v29 }
  0x4d   :  { %1192 = vmatmul.mubr.msk.bf16.vlgmr.msra.gmra.mxu0 %vm604_vm0, %v1367_v59  ;;  %1193 = vmatmul.mubr.msk.bf16.vlgmr.msra.gmra.mxu1 %vm604_vm0, %v1367_v59 }
  0x4e   :  { %859 = vmatpush1.bf16.msra.mxu0 %v1184_v34  ;;  %900 = vmatpush1.bf16.msra.mxu1 %v1186_v35  ;;  %v1016_v34 = vunpack.c.0.s8 %v1015_v32  ;;  %v1018_v35 = vshrl.u32 %v1017_v33, 7 }
  0x4f   :  { %860 = vmatprep.subr.bf16.mxu0 %v1169_v36  ;;  %901 = vmatprep.subr.bf16.mxu1 %v1171_v37 }
  0x50   :  { %886 = vmatprep.mubr.bf16.mxu0 %v1232_v3  ;;  %927 = vmatprep.mubr.bf16.mxu1 %v1232_v3  ;;  %v45_v3 = vld [vmem:[%s1668_s1 + $0xb8] sm:$0xff]  ;;  %v1610_v38 = vsub.s32 %v1016_v34, %v1018_v35 }
  0x51   :  { %v1123_v61 = vcombine.high %v45_v3, %v53_v56  ;;  %v1122_v4 = vcombine.low %v45_v3, %v53_v56 }
  0x52   :  { %861 = vmatpush1.bf16.msra.mxu0 %v1168_v42  ;;  %902 = vmatpush1.bf16.msra.mxu1 %v1170_v43 }
  0x53   :  { %862 = vmatprep.subr.bf16.mxu0 %v1153_v44  ;;  %903 = vmatprep.subr.bf16.mxu1 %v1155_v45 }
  0x56   :  { %863 = vmatpush1.bf16.msra.mxu0 %v1152_v50  ;;  %904 = vmatpush1.bf16.msra.mxu1 %v1154_v51 }
  0x57   :  { %864 = vmatprep.subr.bf16.mxu0 %v1137_v52  ;;  %905 = vmatprep.subr.bf16.mxu1 %v1139_v53 }
  0x5a   :  { %865 = vmatpush1.bf16.msra.mxu0 %v1136_v57  ;;  %906 = vmatpush1.bf16.msra.mxu1 %v1138_v58 }
  0x5b   :  { %866 = vmatprep.subr.bf16.mxu0 %v1121_v60  ;;  %907 = vmatprep.subr.bf16.mxu1 %v1123_v61 }
  0x5e   :  { %867 = vmatpush1.bf16.msra.mxu0 %v1120_v2  ;;  %908 = vmatpush1.bf16.msra.mxu1 %v1122_v4 }
  0x5f   :  { %868 = vmatprep.subr.bf16.mxu0 %v1105_v5  ;;  %909 = vmatprep.subr.bf16.mxu1 %v1107_v6 }
  0x62   :  { %869 = vmatpush1.bf16.msra.mxu0 %v1104_v7  ;;  %910 = vmatpush1.bf16.msra.mxu1 %v1106_v8 }
  0x65   :  { %1194 = vmatmul.mubr.msk.bf16.vlgmr.msra.gmra.mxu0 %vm604_vm0, %v1367_v59  ;;  %1195 = vmatmul.mubr.msk.bf16.vlgmr.msra.gmra.mxu1 %vm604_vm0, %v1367_v59 }
  0x8b   :  { %v1592_v9 = vpop.permute.xlu0 %121 }
  0x8c   :  { %v1598_v16 = vpop.permute.xlu1 %961 }
  0x8f   :  { %v1594_v11 = vpop.permute.xlu0 %939 }
  0xdd   :  { %v642_v10 = vpop.f32.mrf.mxu0  ;;  %v683_v13 = vpop.f32.mrf.mxu1 }
  0xde   :  { %v643_v12 = vadd.f32 %v642_v10, %v1592_v9  ;;  %v684_v14 = vadd.f32 %v683_v13, %v1592_v9 }
  0xdf   :  { %v644_v15 = vpop.f32.mrf.mxu0  ;;  %v685_v18 = vpop.f32.mrf.mxu1 }
  0xe0   :  { %v645_v17 = vadd.f32 %v644_v15, %v1592_v9  ;;  %v942_v19 = vmul.f32 %v1594_v11, %v643_v12  ;;  %v686_v59 = vadd.f32 %v685_v18, %v1592_v9  ;;  %v944_v21 = vmul.f32 %v1594_v11, %v684_v14 }
  0xe1   :  { %v646_v20 = vpop.f32.mrf.mxu0  ;;  %v687_v22 = vpop.f32.mrf.mxu1 }
  0xe2   :  { %v943_v23 = vmul.f32 %v1594_v11, %v645_v17  ;;  %v964_v24 = vadd.f32 %v1598_v16, %v942_v19  ;;  %v945_v26 = vmul.f32 %v1594_v11, %v686_v59  ;;  %v966_v27 = vadd.f32 %v1598_v16, %v944_v21 }
  0xe3   :  { %v647_v25 = vpop.f32.mrf.mxu0  ;;  %v688_v28 = vpop.f32.mrf.mxu1 }
  0xe4   :  { %v965_v29 = vadd.f32 %v1598_v16, %v943_v23  ;;  %1200 = vtanh.f32 %v964_v24  ;;  %v967_v30 = vadd.f32 %v1598_v16, %v945_v26 }
  0xe5   :  { %1202 = vtanh.f32 %v966_v27 }
  0xe6   :  { %1204 = vtanh.f32 %v965_v29 }
  0xe7   :  { %1206 = vtanh.f32 %v967_v30 }
  0xf1   :  { %v1201_v36 = vpop.eup %1200 }
  0xf2   :  { %v1203_v37 = vpop.eup %1202 }
  0xf3   :  { %v1205_v39 = vpop.eup %1204 }
  0xf4   :  { %v1207_v40 = vpop.eup %1206  ;;  %v1012_v41 = vcombine.low %v1201_v36, %v1205_v39 }
  0xf5   :  { %v724_v42 = vpop.f32.mrf.mxu0  ;;  %v1013_v43 = vcombine.low %v1203_v37, %v1207_v40  ;;  %v765_v45 = vpop.f32.mrf.mxu1 }
  0xf6   :  { %v725_v44 = vadd.f32 %v724_v42, %v1592_v9  ;;  %v1020_v46 = vrot.slane %v1012_v41, %v1610_v38  ;;  %v766_v47 = vadd.f32 %v765_v45, %v1592_v9 }
  0xf7   :  { %v726_v48 = vpop.f32.mrf.mxu0  ;;  %v1027_v49 = vrot.slane %v1013_v43, %v1610_v38  ;;  %v767_v52 = vpop.f32.mrf.mxu1 }
  0xf8   :  { %v946_v50 = vmul.f32 %v1594_v11, %v725_v44  ;;  %v727_v51 = vadd.f32 %v726_v48, %v1592_v9  ;;  %v948_v53 = vmul.f32 %v1594_v11, %v766_v47  ;;  %v768_v54 = vadd.f32 %v767_v52, %v1592_v9 }
  0xf9   :  { %v1028_v55 = vcombine.low %v1020_v46, %v1027_v49  ;;  %v728_v3 = vpop.f32.mrf.mxu0  ;;  %v769_v58 = vpop.f32.mrf.mxu1 }
  0xfa   :  { %v968_v56 = vadd.f32 %v1598_v16, %v946_v50  ;;  %v947_v57 = vmul.f32 %v1594_v11, %v727_v51  ;;  %v970_v60 = vadd.f32 %v1598_v16, %v948_v53  ;;  %v949_v61 = vmul.f32 %v1594_v11, %v768_v54 }
  0xfb   :  { %1084 = vst [vmem:[%s1673_s5] sm:$0xff] %v1028_v55  ;;  %v729_v62 = vpop.f32.mrf.mxu0  ;;  %v770_v0 = vpop.f32.mrf.mxu1 }
  0xfc   :  { %1208 = vtanh.f32 %v968_v56  ;;  %v969_v63 = vadd.f32 %v1598_v16, %v947_v57  ;;  %v971_v1 = vadd.f32 %v1598_v16, %v949_v61 }
  0xfd   :  { %1210 = vtanh.f32 %v970_v60 }
  0xfe   :  { %1212 = vtanh.f32 %v969_v63 }
  0xff   :  { %1214 = vtanh.f32 %v971_v1 }
 0x109   :  { %v1209_v2 = vpop.eup %1208 }
 0x10a   :  { %v1211_v4 = vpop.eup %1210 }
 0x10b   :  { %v1213_v5 = vpop.eup %1212 }
 0x10c   :  { %v1215_v6 = vpop.eup %1214  ;;  %v1029_v7 = vcombine.low %v1209_v2, %v1213_v5 }
 0x10d   :  { %v1030_v8 = vcombine.low %v1211_v4, %v1215_v6  ;;  %v806_v10 = vpop.f32.mrf.mxu0  ;;  %v847_v14 = vpop.f32.mrf.mxu1 }
 0x10e   :  { %v1037_v12 = vrot.slane %v1029_v7, %v1610_v38  ;;  %v807_v13 = vadd.f32 %v806_v10, %v1592_v9  ;;  %v848_v17 = vadd.f32 %v847_v14, %v1592_v9 }
 0x10f   :  { %v1044_v15 = vrot.slane %v1030_v8, %v1610_v38  ;;  %v808_v18 = vpop.f32.mrf.mxu0  ;;  %v849_v20 = vpop.f32.mrf.mxu1 }
 0x110   :  { %v950_v19 = vmul.f32 %v1594_v11, %v807_v13  ;;  %v809_v59 = vadd.f32 %v808_v18, %v1592_v9  ;;  %v952_v22 = vmul.f32 %v1594_v11, %v848_v17  ;;  %v850_v23 = vadd.f32 %v849_v20, %v1592_v9 }
 0x111   :  { %v1045_v21 = vcombine.low %v1037_v12, %v1044_v15  ;;  %v810_v24 = vpop.f32.mrf.mxu0  ;;  %v851_v27 = vpop.f32.mrf.mxu1 }
 0x112   :  { %v972_v25 = vadd.f32 %v1598_v16, %v950_v19  ;;  %v951_v26 = vmul.f32 %v1594_v11, %v809_v59  ;;  %v974_v28 = vadd.f32 %v1598_v16, %v952_v22  ;;  %v953_v29 = vmul.f32 %v1594_v11, %v850_v23 }
 0x113   :  { %1085 = vst [vmem:[%s1673_s5 + $0x8] sm:$0xff] %v1045_v21  ;;  %v811_v30 = vpop.f32.mrf.mxu0  ;;  %v852_v32 = vpop.f32.mrf.mxu1 }
 0x114   :  { %1216 = vtanh.f32 %v972_v25  ;;  %v973_v31 = vadd.f32 %v1598_v16, %v951_v26  ;;  %v975_v33 = vadd.f32 %v1598_v16, %v953_v29 }
 0x115   :  { %1218 = vtanh.f32 %v974_v28 }
 0x116   :  { %1220 = vtanh.f32 %v973_v31 }
 0x117   :  { %1222 = vtanh.f32 %v975_v33 }
 0x121   :  { %v1217_v34 = vpop.eup %1216 }
 0x122   :  { %v1219_v35 = vpop.eup %1218 }
 0x123   :  { %v1221_v36 = vpop.eup %1220 }
 0x124   :  { %v1223_v37 = vpop.eup %1222  ;;  %v1046_v39 = vcombine.low %v1217_v34, %v1221_v36 }
 0x125   :  { %v1047_v40 = vcombine.low %v1219_v35, %v1223_v37  ;;  %v888_v41 = vpop.f32.mrf.mxu0  ;;  %v929_v44 = vpop.f32.mrf.mxu1 }
 0x126   :  { %v1054_v42 = vrot.slane %v1046_v39, %v1610_v38  ;;  %v889_v43 = vadd.f32 %v888_v41, %v1592_v9  ;;  %v930_v46 = vadd.f32 %v929_v44, %v1592_v9 }
 0x127   :  { %v1061_v45 = vrot.slane %v1047_v40, %v1610_v38  ;;  %v890_v47 = vpop.f32.mrf.mxu0  ;;  %v931_v50 = vpop.f32.mrf.mxu1 }
 0x128   :  { %v954_v48 = vmul.f32 %v1594_v11, %v889_v43  ;;  %v891_v49 = vadd.f32 %v890_v47, %v1592_v9  ;;  %v956_v52 = vmul.f32 %v1594_v11, %v930_v46  ;;  %v932_v53 = vadd.f32 %v931_v50, %v1592_v9 }
 0x129   :  { %v1062_v51 = vcombine.low %v1054_v42, %v1061_v45  ;;  %v892_v54 = vpop.f32.mrf.mxu0  ;;  %v933_v56 = vpop.f32.mrf.mxu1 }
 0x12a   :  { %v976_v55 = vadd.f32 %v1598_v16, %v954_v48  ;;  %v955_v3 = vmul.f32 %v1594_v11, %v891_v49  ;;  %v978_v57 = vadd.f32 %v1598_v16, %v956_v52  ;;  %v957_v58 = vmul.f32 %v1594_v11, %v932_v53 }
 0x12b   :  { %1086 = vst [vmem:[%s1673_s5 + $0x10] sm:$0xff] %v1062_v51  ;;  %v893_v60 = vpop.f32.mrf.mxu0  ;;  %v934_v62 = vpop.f32.mrf.mxu1 }
 0x12c   :  { %1224 = vtanh.f32 %v976_v55  ;;  %v977_v61 = vadd.f32 %v1598_v16, %v955_v3  ;;  %v979_v9 = vadd.f32 %v1598_v16, %v957_v58 }
 0x12d   :  { %1226 = vtanh.f32 %v978_v57 }
 0x12e   :  { %1228 = vtanh.f32 %v977_v61 }
 0x12f   :  { %1230 = vtanh.f32 %v979_v9 }
 0x139   :  { %v1225_v63 = vpop.eup %1224 }
 0x13a   :  { %v1227_v0 = vpop.eup %1226 }
 0x13b   :  { %v1229_v1 = vpop.eup %1228 }
 0x13c   :  { %v1231_v2 = vpop.eup %1230  ;;  %v1063_v4 = vcombine.low %v1225_v63, %v1229_v1 }
 0x13d   :  { %v1064_v5 = vcombine.low %v1227_v0, %v1231_v2 }
 0x13e   :  { %v1071_v6 = vrot.slane %v1063_v4, %v1610_v38 }
 0x13f   :  { %v1078_v11 = vrot.slane %v1064_v5, %v1610_v38 }
 0x141   :  { %v1079_v7 = vcombine.low %v1071_v6, %v1078_v11 }
 0x143   :  { %1087 = vst [vmem:[%s1673_s5 + $0x18] sm:$0xff] %v1079_v7 }

// kernel: custom-call.1
= control target key start
LH: loop header
LB: loop body
LE: loop exit
PB: predicated region body
PF: predicated region fallthrough
CT: control target
= control target key end

     0   :  { %s1662_s0 = inlined_call_operand.vmem [shape: f32[2,257,8], index: 0, kind: input, shape index: {}]   ;;  %s1663_s2 = inlined_call_operand.vmem [shape: c64[2,257,8], index: 2, kind: output, shape index: {}]   ;;  %s1664_s1 = inlined_call_operand.vmem [shape: f32[2,257,8], index: 1, kind: input, shape index: {}]  }
   0x1   :  { %v5_v0 = vld [vmem:[%s1662_s0] sm:$0xff]  ;;  %v594_v1 = vld [vmem:[%s1662_s0 + $0x8] sm:$0xff]  ;;  %v596_v2 = vld [vmem:[%s1662_s0 + $0x10] sm:$0xff] }
   0x2   :  { %6 = vst [vmem:[%s1663_s2] sm:$0xff] %v5_v0  ;;  %595 = vst [vmem:[%s1663_s2 + $0x8] sm:$0xff] %v594_v1  ;;  %v598_v3 = vld [vmem:[%s1662_s0 + $0x18] sm:$0xff]  ;;  %v600_v4 = vld [vmem:[%s1662_s0 + $0x20] sm:$0xff] }
   0x3   :  { %597 = vst [vmem:[%s1663_s2 + $0x10] sm:$0xff] %v596_v2  ;;  %v602_v5 = vld [vmem:[%s1662_s0 + $0x28] sm:$0xff]  ;;  %599 = vst [vmem:[%s1663_s2 + $0x18] sm:$0xff] %v598_v3  ;;  %v604_v6 = vld [vmem:[%s1662_s0 + $0x30] sm:$0xff] }
   0x4   :  { %601 = vst [vmem:[%s1663_s2 + $0x20] sm:$0xff] %v600_v4  ;;  %603 = vst [vmem:[%s1663_s2 + $0x28] sm:$0xff] %v602_v5  ;;  %v606_v7 = vld [vmem:[%s1662_s0 + $0x38] sm:$0xff]  ;;  %v608_v8 = vld [vmem:[%s1662_s0 + $0x40] sm:$0xff] }
   0x5   :  { %605 = vst [vmem:[%s1663_s2 + $0x30] sm:$0xff] %v604_v6  ;;  %607 = vst [vmem:[%s1663_s2 + $0x38] sm:$0xff] %v606_v7  ;;  %v610_v9 = vld [vmem:[%s1662_s0 + $0x48] sm:$0xff]  ;;  %v612_v10 = vld [vmem:[%s1662_s0 + $0x50] sm:$0xff] }
   0x6   :  { %609 = vst [vmem:[%s1663_s2 + $0x40] sm:$0xff] %v608_v8  ;;  %v614_v11 = vld [vmem:[%s1662_s0 + $0x58] sm:$0xff]  ;;  %611 = vst [vmem:[%s1663_s2 + $0x48] sm:$0xff] %v610_v9  ;;  %v616_v12 = vld [vmem:[%s1662_s0 + $0x60] sm:$0xff] }
   0x7   :  { %613 = vst [vmem:[%s1663_s2 + $0x50] sm:$0xff] %v612_v10  ;;  %615 = vst [vmem:[%s1663_s2 + $0x58] sm:$0xff] %v614_v11  ;;  %v618_v13 = vld [vmem:[%s1662_s0 + $0x68] sm:$0xff]  ;;  %v620_v14 = vld [vmem:[%s1662_s0 + $0x70] sm:$0xff] }
   0x8   :  { %617 = vst [vmem:[%s1663_s2 + $0x60] sm:$0xff] %v616_v12  ;;  %619 = vst [vmem:[%s1663_s2 + $0x68] sm:$0xff] %v618_v13  ;;  %v622_v15 = vld [vmem:[%s1662_s0 + $0x78] sm:$0xff]  ;;  %v624_v16 = vld [vmem:[%s1662_s0 + $0x80] sm:$0xff] }
   0x9   :  { %621 = vst [vmem:[%s1663_s2 + $0x70] sm:$0xff] %v620_v14  ;;  %v626_v17 = vld [vmem:[%s1662_s0 + $0x88] sm:$0xff]  ;;  %623 = vst [vmem:[%s1663_s2 + $0x78] sm:$0xff] %v622_v15  ;;  %v628_v18 = vld [vmem:[%s1662_s0 + $0x90] sm:$0xff] }
   0xa   :  { %625 = vst [vmem:[%s1663_s2 + $0x80] sm:$0xff] %v624_v16  ;;  %627 = vst [vmem:[%s1663_s2 + $0x88] sm:$0xff] %v626_v17  ;;  %v630_v19 = vld [vmem:[%s1662_s0 + $0x98] sm:$0xff]  ;;  %v632_v20 = vld [vmem:[%s1662_s0 + $0xa0] sm:$0xff] }
   0xb   :  { %629 = vst [vmem:[%s1663_s2 + $0x90] sm:$0xff] %v628_v18  ;;  %631 = vst [vmem:[%s1663_s2 + $0x98] sm:$0xff] %v630_v19  ;;  %v634_v21 = vld [vmem:[%s1662_s0 + $0xa8] sm:$0xff]  ;;  %v636_v22 = vld [vmem:[%s1662_s0 + $0xb0] sm:$0xff] }
   0xc   :  { %633 = vst [vmem:[%s1663_s2 + $0xa0] sm:$0xff] %v632_v20  ;;  %v638_v23 = vld [vmem:[%s1662_s0 + $0xb8] sm:$0xff]  ;;  %635 = vst [vmem:[%s1663_s2 + $0xa8] sm:$0xff] %v634_v21  ;;  %v640_v24 = vld [vmem:[%s1662_s0 + $0xc0] sm:$0xff] }
   0xd   :  { %637 = vst [vmem:[%s1663_s2 + $0xb0] sm:$0xff] %v636_v22  ;;  %639 = vst [vmem:[%s1663_s2 + $0xb8] sm:$0xff] %v638_v23  ;;  %v642_v25 = vld [vmem:[%s1662_s0 + $0xc8] sm:$0xff]  ;;  %v644_v26 = vld [vmem:[%s1662_s0 + $0xd0] sm:$0xff] }
   0xe   :  { %641 = vst [vmem:[%s1663_s2 + $0xc0] sm:$0xff] %v640_v24  ;;  %643 = vst [vmem:[%s1663_s2 + $0xc8] sm:$0xff] %v642_v25  ;;  %v646_v27 = vld [vmem:[%s1662_s0 + $0xd8] sm:$0xff]  ;;  %v648_v28 = vld [vmem:[%s1662_s0 + $0xe0] sm:$0xff] }
   0xf   :  { %645 = vst [vmem:[%s1663_s2 + $0xd0] sm:$0xff] %v644_v26  ;;  %v650_v29 = vld [vmem:[%s1662_s0 + $0xe8] sm:$0xff]  ;;  %647 = vst [vmem:[%s1663_s2 + $0xd8] sm:$0xff] %v646_v27  ;;  %v652_v30 = vld [vmem:[%s1662_s0 + $0xf0] sm:$0xff] }
  0x10   :  { %649 = vst [vmem:[%s1663_s2 + $0xe0] sm:$0xff] %v648_v28  ;;  %651 = vst [vmem:[%s1663_s2 + $0xe8] sm:$0xff] %v650_v29  ;;  %v654_v31 = vld [vmem:[%s1662_s0 + $0xf8] sm:$0xff]  ;;  %v656_v32 = vld [vmem:[%s1662_s0 + $0x100] sm:$0xff] }
  0x11   :  { %653 = vst [vmem:[%s1663_s2 + $0xf0] sm:$0xff] %v652_v30  ;;  %655 = vst [vmem:[%s1663_s2 + $0xf8] sm:$0xff] %v654_v31  ;;  %v658_v33 = vld [vmem:[%s1662_s0 + $0x108] sm:$0xff]  ;;  %v660_v34 = vld [vmem:[%s1662_s0 + $0x110] sm:$0xff] }
  0x12   :  { %657 = vst [vmem:[%s1663_s2 + $0x100] sm:$0xff] %v656_v32  ;;  %v662_v35 = vld [vmem:[%s1662_s0 + $0x118] sm:$0xff]  ;;  %659 = vst [vmem:[%s1663_s2 + $0x108] sm:$0xff] %v658_v33  ;;  %v664_v36 = vld [vmem:[%s1662_s0 + $0x120] sm:$0xff] }
  0x13   :  { %661 = vst [vmem:[%s1663_s2 + $0x110] sm:$0xff] %v660_v34  ;;  %663 = vst [vmem:[%s1663_s2 + $0x118] sm:$0xff] %v662_v35  ;;  %v666_v37 = vld [vmem:[%s1662_s0 + $0x128] sm:$0xff]  ;;  %v668_v38 = vld [vmem:[%s1662_s0 + $0x130] sm:$0xff] }
  0x14   :  { %665 = vst [vmem:[%s1663_s2 + $0x120] sm:$0xff] %v664_v36  ;;  %667 = vst [vmem:[%s1663_s2 + $0x128] sm:$0xff] %v666_v37  ;;  %v670_v39 = vld [vmem:[%s1662_s0 + $0x138] sm:$0xff]  ;;  %v672_v40 = vld [vmem:[%s1662_s0 + $0x140] sm:$0xff] }
  0x15   :  { %669 = vst [vmem:[%s1663_s2 + $0x130] sm:$0xff] %v668_v38  ;;  %v674_v41 = vld [vmem:[%s1662_s0 + $0x148] sm:$0xff]  ;;  %671 = vst [vmem:[%s1663_s2 + $0x138] sm:$0xff] %v670_v39  ;;  %v676_v42 = vld [vmem:[%s1662_s0 + $0x150] sm:$0xff] }
  0x16   :  { %673 = vst [vmem:[%s1663_s2 + $0x140] sm:$0xff] %v672_v40  ;;  %675 = vst [vmem:[%s1663_s2 + $0x148] sm:$0xff] %v674_v41  ;;  %v678_v43 = vld [vmem:[%s1662_s0 + $0x158] sm:$0xff]  ;;  %v680_v44 = vld [vmem:[%s1662_s0 + $0x160] sm:$0xff] }
  0x17   :  { %677 = vst [vmem:[%s1663_s2 + $0x150] sm:$0xff] %v676_v42  ;;  %679 = vst [vmem:[%s1663_s2 + $0x158] sm:$0xff] %v678_v43  ;;  %v682_v45 = vld [vmem:[%s1662_s0 + $0x168] sm:$0xff]  ;;  %v684_v46 = vld [vmem:[%s1662_s0 + $0x170] sm:$0xff] }
  0x18   :  { %681 = vst [vmem:[%s1663_s2 + $0x160] sm:$0xff] %v680_v44  ;;  %v686_v47 = vld [vmem:[%s1662_s0 + $0x178] sm:$0xff]  ;;  %683 = vst [vmem:[%s1663_s2 + $0x168] sm:$0xff] %v682_v45  ;;  %v688_v48 = vld [vmem:[%s1662_s0 + $0x180] sm:$0xff] }
  0x19   :  { %685 = vst [vmem:[%s1663_s2 + $0x170] sm:$0xff] %v684_v46  ;;  %687 = vst [vmem:[%s1663_s2 + $0x178] sm:$0xff] %v686_v47  ;;  %v690_v49 = vld [vmem:[%s1662_s0 + $0x188] sm:$0xff]  ;;  %v692_v50 = vld [vmem:[%s1662_s0 + $0x190] sm:$0xff] }
  0x1a   :  { %689 = vst [vmem:[%s1663_s2 + $0x180] sm:$0xff] %v688_v48  ;;  %691 = vst [vmem:[%s1663_s2 + $0x188] sm:$0xff] %v690_v49  ;;  %v694_v51 = vld [vmem:[%s1662_s0 + $0x198] sm:$0xff]  ;;  %v696_v52 = vld [vmem:[%s1662_s0 + $0x1a0] sm:$0xff] }
  0x1b   :  { %693 = vst [vmem:[%s1663_s2 + $0x190] sm:$0xff] %v692_v50  ;;  %v698_v53 = vld [vmem:[%s1662_s0 + $0x1a8] sm:$0xff]  ;;  %695 = vst [vmem:[%s1663_s2 + $0x198] sm:$0xff] %v694_v51  ;;  %v700_v54 = vld [vmem:[%s1662_s0 + $0x1b0] sm:$0xff] }
  0x1c   :  { %697 = vst [vmem:[%s1663_s2 + $0x1a0] sm:$0xff] %v696_v52  ;;  %699 = vst [vmem:[%s1663_s2 + $0x1a8] sm:$0xff] %v698_v53  ;;  %v702_v55 = vld [vmem:[%s1662_s0 + $0x1b8] sm:$0xff]  ;;  %v704_v56 = vld [vmem:[%s1662_s0 + $0x1c0] sm:$0xff] }
  0x1d   :  { %701 = vst [vmem:[%s1663_s2 + $0x1b0] sm:$0xff] %v700_v54  ;;  %703 = vst [vmem:[%s1663_s2 + $0x1b8] sm:$0xff] %v702_v55  ;;  %v706_v57 = vld [vmem:[%s1662_s0 + $0x1c8] sm:$0xff]  ;;  %v708_v58 = vld [vmem:[%s1662_s0 + $0x1d0] sm:$0xff] }
  0x1e   :  { %705 = vst [vmem:[%s1663_s2 + $0x1c0] sm:$0xff] %v704_v56  ;;  %v710_v59 = vld [vmem:[%s1662_s0 + $0x1d8] sm:$0xff]  ;;  %707 = vst [vmem:[%s1663_s2 + $0x1c8] sm:$0xff] %v706_v57  ;;  %v712_v60 = vld [vmem:[%s1662_s0 + $0x1e0] sm:$0xff] }
  0x1f   :  { %709 = vst [vmem:[%s1663_s2 + $0x1d0] sm:$0xff] %v708_v58  ;;  %711 = vst [vmem:[%s1663_s2 + $0x1d8] sm:$0xff] %v710_v59  ;;  %v714_v61 = vld [vmem:[%s1662_s0 + $0x1e8] sm:$0xff]  ;;  %v716_v62 = vld [vmem:[%s1662_s0 + $0x1f0] sm:$0xff] }
  0x20   :  { %713 = vst [vmem:[%s1663_s2 + $0x1e0] sm:$0xff] %v712_v60  ;;  %715 = vst [vmem:[%s1663_s2 + $0x1e8] sm:$0xff] %v714_v61  ;;  %v718_v63 = vld [vmem:[%s1662_s0 + $0x1f8] sm:$0xff]  ;;  %v720_v0 = vld [vmem:[%s1662_s0 + $0x200] sm:$0xff] }
  0x21   :  { %717 = vst [vmem:[%s1663_s2 + $0x1f0] sm:$0xff] %v716_v62  ;;  %v722_v1 = vld [vmem:[%s1662_s0 + $0x208] sm:$0xff]  ;;  %719 = vst [vmem:[%s1663_s2 + $0x1f8] sm:$0xff] %v718_v63  ;;  %v267_v2 = vld [vmem:[%s1664_s1] sm:$0xff] }
  0x22   :  { %721 = vst [vmem:[%s1663_s2 + $0x200] sm:$0xff] %v720_v0  ;;  %723 = vst [vmem:[%s1663_s2 + $0x208] sm:$0xff] %v722_v1  ;;  %v725_v3 = vld [vmem:[%s1664_s1 + $0x8] sm:$0xff]  ;;  %v727_v4 = vld [vmem:[%s1664_s1 + $0x10] sm:$0xff] }
  0x23   :  { %724 = vst [vmem:[%s1663_s2 + $0x210] sm:$0xff] %v267_v2  ;;  %726 = vst [vmem:[%s1663_s2 + $0x218] sm:$0xff] %v725_v3  ;;  %v729_v5 = vld [vmem:[%s1664_s1 + $0x18] sm:$0xff]  ;;  %v731_v6 = vld [vmem:[%s1664_s1 + $0x20] sm:$0xff] }
  0x24   :  { %728 = vst [vmem:[%s1663_s2 + $0x220] sm:$0xff] %v727_v4  ;;  %v733_v7 = vld [vmem:[%s1664_s1 + $0x28] sm:$0xff]  ;;  %730 = vst [vmem:[%s1663_s2 + $0x228] sm:$0xff] %v729_v5  ;;  %v735_v8 = vld [vmem:[%s1664_s1 + $0x30] sm:$0xff] }
  0x25   :  { %732 = vst [vmem:[%s1663_s2 + $0x230] sm:$0xff] %v731_v6  ;;  %734 = vst [vmem:[%s1663_s2 + $0x238] sm:$0xff] %v733_v7  ;;  %v737_v9 = vld [vmem:[%s1664_s1 + $0x38] sm:$0xff]  ;;  %v739_v10 = vld [vmem:[%s1664_s1 + $0x40] sm:$0xff] }
  0x26   :  { %736 = vst [vmem:[%s1663_s2 + $0x240] sm:$0xff] %v735_v8  ;;  %738 = vst [vmem:[%s1663_s2 + $0x248] sm:$0xff] %v737_v9  ;;  %v741_v11 = vld [vmem:[%s1664_s1 + $0x48] sm:$0xff]  ;;  %v743_v12 = vld [vmem:[%s1664_s1 + $0x50] sm:$0xff] }
  0x27   :  { %740 = vst [vmem:[%s1663_s2 + $0x250] sm:$0xff] %v739_v10  ;;  %v745_v13 = vld [vmem:[%s1664_s1 + $0x58] sm:$0xff]  ;;  %742 = vst [vmem:[%s1663_s2 + $0x258] sm:$0xff] %v741_v11  ;;  %v747_v14 = vld [vmem:[%s1664_s1 + $0x60] sm:$0xff] }
  0x28   :  { %744 = vst [vmem:[%s1663_s2 + $0x260] sm:$0xff] %v743_v12  ;;  %746 = vst [vmem:[%s1663_s2 + $0x268] sm:$0xff] %v745_v13  ;;  %v749_v15 = vld [vmem:[%s1664_s1 + $0x68] sm:$0xff]  ;;  %v751_v16 = vld [vmem:[%s1664_s1 + $0x70] sm:$0xff] }
  0x29   :  { %748 = vst [vmem:[%s1663_s2 + $0x270] sm:$0xff] %v747_v14  ;;  %750 = vst [vmem:[%s1663_s2 + $0x278] sm:$0xff] %v749_v15  ;;  %v753_v17 = vld [vmem:[%s1664_s1 + $0x78] sm:$0xff]  ;;  %v755_v18 = vld [vmem:[%s1664_s1 + $0x80] sm:$0xff] }
  0x2a   :  { %752 = vst [vmem:[%s1663_s2 + $0x280] sm:$0xff] %v751_v16  ;;  %v757_v19 = vld [vmem:[%s1664_s1 + $0x88] sm:$0xff]  ;;  %754 = vst [vmem:[%s1663_s2 + $0x288] sm:$0xff] %v753_v17  ;;  %v759_v20 = vld [vmem:[%s1664_s1 + $0x90] sm:$0xff] }
  0x2b   :  { %756 = vst [vmem:[%s1663_s2 + $0x290] sm:$0xff] %v755_v18  ;;  %758 = vst [vmem:[%s1663_s2 + $0x298] sm:$0xff] %v757_v19  ;;  %v761_v21 = vld [vmem:[%s1664_s1 + $0x98] sm:$0xff]  ;;  %v763_v22 = vld [vmem:[%s1664_s1 + $0xa0] sm:$0xff] }
  0x2c   :  { %760 = vst [vmem:[%s1663_s2 + $0x2a0] sm:$0xff] %v759_v20  ;;  %762 = vst [vmem:[%s1663_s2 + $0x2a8] sm:$0xff] %v761_v21  ;;  %v765_v23 = vld [vmem:[%s1664_s1 + $0xa8] sm:$0xff]  ;;  %v767_v24 = vld [vmem:[%s1664_s1 + $0xb0] sm:$0xff] }
  0x2d   :  { %764 = vst [vmem:[%s1663_s2 + $0x2b0] sm:$0xff] %v763_v22  ;;  %v769_v25 = vld [vmem:[%s1664_s1 + $0xb8] sm:$0xff]  ;;  %766 = vst [vmem:[%s1663_s2 + $0x2b8] sm:$0xff] %v765_v23  ;;  %v771_v26 = vld [vmem:[%s1664_s1 + $0xc0] sm:$0xff] }
  0x2e   :  { %768 = vst [vmem:[%s1663_s2 + $0x2c0] sm:$0xff] %v767_v24  ;;  %770 = vst [vmem:[%s1663_s2 + $0x2c8] sm:$0xff] %v769_v25  ;;  %v773_v27 = vld [vmem:[%s1664_s1 + $0xc8] sm:$0xff]  ;;  %v775_v28 = vld [vmem:[%s1664_s1 + $0xd0] sm:$0xff] }
  0x2f   :  { %772 = vst [vmem:[%s1663_s2 + $0x2d0] sm:$0xff] %v771_v26  ;;  %774 = vst [vmem:[%s1663_s2 + $0x2d8] sm:$0xff] %v773_v27  ;;  %v777_v29 = vld [vmem:[%s1664_s1 + $0xd8] sm:$0xff]  ;;  %v779_v30 = vld [vmem:[%s1664_s1 + $0xe0] sm:$0xff] }
  0x30   :  { %776 = vst [vmem:[%s1663_s2 + $0x2e0] sm:$0xff] %v775_v28  ;;  %v781_v31 = vld [vmem:[%s1664_s1 + $0xe8] sm:$0xff]  ;;  %778 = vst [vmem:[%s1663_s2 + $0x2e8] sm:$0xff] %v777_v29  ;;  %v783_v32 = vld [vmem:[%s1664_s1 + $0xf0] sm:$0xff] }
  0x31   :  { %780 = vst [vmem:[%s1663_s2 + $0x2f0] sm:$0xff] %v779_v30  ;;  %782 = vst [vmem:[%s1663_s2 + $0x2f8] sm:$0xff] %v781_v31  ;;  %v785_v33 = vld [vmem:[%s1664_s1 + $0xf8] sm:$0xff]  ;;  %v787_v34 = vld [vmem:[%s1664_s1 + $0x100] sm:$0xff] }
  0x32   :  { %784 = vst [vmem:[%s1663_s2 + $0x300] sm:$0xff] %v783_v32  ;;  %786 = vst [vmem:[%s1663_s2 + $0x308] sm:$0xff] %v785_v33  ;;  %v789_v35 = vld [vmem:[%s1664_s1 + $0x108] sm:$0xff]  ;;  %v791_v36 = vld [vmem:[%s1664_s1 + $0x110] sm:$0xff] }
  0x33   :  { %788 = vst [vmem:[%s1663_s2 + $0x310] sm:$0xff] %v787_v34  ;;  %v793_v37 = vld [vmem:[%s1664_s1 + $0x118] sm:$0xff]  ;;  %790 = vst [vmem:[%s1663_s2 + $0x318] sm:$0xff] %v789_v35  ;;  %v795_v38 = vld [vmem:[%s1664_s1 + $0x120] sm:$0xff] }
  0x34   :  { %792 = vst [vmem:[%s1663_s2 + $0x320] sm:$0xff] %v791_v36  ;;  %794 = vst [vmem:[%s1663_s2 + $0x328] sm:$0xff] %v793_v37  ;;  %v797_v39 = vld [vmem:[%s1664_s1 + $0x128] sm:$0xff]  ;;  %v799_v40 = vld [vmem:[%s1664_s1 + $0x130] sm:$0xff] }
  0x35   :  { %796 = vst [vmem:[%s1663_s2 + $0x330] sm:$0xff] %v795_v38  ;;  %798 = vst [vmem:[%s1663_s2 + $0x338] sm:$0xff] %v797_v39  ;;  %v801_v41 = vld [vmem:[%s1664_s1 + $0x138] sm:$0xff]  ;;  %v803_v42 = vld [vmem:[%s1664_s1 + $0x140] sm:$0xff] }
  0x36   :  { %800 = vst [vmem:[%s1663_s2 + $0x340] sm:$0xff] %v799_v40  ;;  %v805_v43 = vld [vmem:[%s1664_s1 + $0x148] sm:$0xff]  ;;  %802 = vst [vmem:[%s1663_s2 + $0x348] sm:$0xff] %v801_v41  ;;  %v807_v44 = vld [vmem:[%s1664_s1 + $0x150] sm:$0xff] }
  0x37   :  { %804 = vst [vmem:[%s1663_s2 + $0x350] sm:$0xff] %v803_v42  ;;  %806 = vst [vmem:[%s1663_s2 + $0x358] sm:$0xff] %v805_v43  ;;  %v809_v45 = vld [vmem:[%s1664_s1 + $0x158] sm:$0xff]  ;;  %v811_v46 = vld [vmem:[%s1664_s1 + $0x160] sm:$0xff] }
  0x38   :  { %808 = vst [vmem:[%s1663_s2 + $0x360] sm:$0xff] %v807_v44  ;;  %810 = vst [vmem:[%s1663_s2 + $0x368] sm:$0xff] %v809_v45  ;;  %v813_v47 = vld [vmem:[%s1664_s1 + $0x168] sm:$0xff]  ;;  %v815_v48 = vld [vmem:[%s1664_s1 + $0x170] sm:$0xff] }
  0x39   :  { %812 = vst [vmem:[%s1663_s2 + $0x370] sm:$0xff] %v811_v46  ;;  %v817_v49 = vld [vmem:[%s1664_s1 + $0x178] sm:$0xff]  ;;  %814 = vst [vmem:[%s1663_s2 + $0x378] sm:$0xff] %v813_v47  ;;  %v819_v50 = vld [vmem:[%s1664_s1 + $0x180] sm:$0xff] }
  0x3a   :  { %816 = vst [vmem:[%s1663_s2 + $0x380] sm:$0xff] %v815_v48  ;;  %818 = vst [vmem:[%s1663_s2 + $0x388] sm:$0xff] %v817_v49  ;;  %v821_v51 = vld [vmem:[%s1664_s1 + $0x188] sm:$0xff]  ;;  %v823_v52 = vld [vmem:[%s1664_s1 + $0x190] sm:$0xff] }
  0x3b   :  { %820 = vst [vmem:[%s1663_s2 + $0x390] sm:$0xff] %v819_v50  ;;  %822 = vst [vmem:[%s1663_s2 + $0x398] sm:$0xff] %v821_v51  ;;  %v825_v53 = vld [vmem:[%s1664_s1 + $0x198] sm:$0xff]  ;;  %v827_v54 = vld [vmem:[%s1664_s1 + $0x1a0] sm:$0xff] }
  0x3c   :  { %824 = vst [vmem:[%s1663_s2 + $0x3a0] sm:$0xff] %v823_v52  ;;  %v829_v55 = vld [vmem:[%s1664_s1 + $0x1a8] sm:$0xff]  ;;  %826 = vst [vmem:[%s1663_s2 + $0x3a8] sm:$0xff] %v825_v53  ;;  %v831_v56 = vld [vmem:[%s1664_s1 + $0x1b0] sm:$0xff] }
  0x3d   :  { %828 = vst [vmem:[%s1663_s2 + $0x3b0] sm:$0xff] %v827_v54  ;;  %830 = vst [vmem:[%s1663_s2 + $0x3b8] sm:$0xff] %v829_v55  ;;  %v833_v57 = vld [vmem:[%s1664_s1 + $0x1b8] sm:$0xff]  ;;  %v835_v58 = vld [vmem:[%s1664_s1 + $0x1c0] sm:$0xff] }
  0x3e   :  { %832 = vst [vmem:[%s1663_s2 + $0x3c0] sm:$0xff] %v831_v56  ;;  %834 = vst [vmem:[%s1663_s2 + $0x3c8] sm:$0xff] %v833_v57  ;;  %v837_v59 = vld [vmem:[%s1664_s1 + $0x1c8] sm:$0xff]  ;;  %v839_v60 = vld [vmem:[%s1664_s1 + $0x1d0] sm:$0xff] }
  0x3f   :  { %836 = vst [vmem:[%s1663_s2 + $0x3d0] sm:$0xff] %v835_v58  ;;  %v841_v61 = vld [vmem:[%s1664_s1 + $0x1d8] sm:$0xff]  ;;  %838 = vst [vmem:[%s1663_s2 + $0x3d8] sm:$0xff] %v837_v59  ;;  %v843_v62 = vld [vmem:[%s1664_s1 + $0x1e0] sm:$0xff] }
  0x40   :  { %840 = vst [vmem:[%s1663_s2 + $0x3e0] sm:$0xff] %v839_v60  ;;  %842 = vst [vmem:[%s1663_s2 + $0x3e8] sm:$0xff] %v841_v61  ;;  %v845_v63 = vld [vmem:[%s1664_s1 + $0x1e8] sm:$0xff]  ;;  %v847_v0 = vld [vmem:[%s1664_s1 + $0x1f0] sm:$0xff] }
  0x41   :  { %844 = vst [vmem:[%s1663_s2 + $0x3f0] sm:$0xff] %v843_v62  ;;  %846 = vst [vmem:[%s1663_s2 + $0x3f8] sm:$0xff] %v845_v63  ;;  %v849_v1 = vld [vmem:[%s1664_s1 + $0x1f8] sm:$0xff]  ;;  %v851_v2 = vld [vmem:[%s1664_s1 + $0x200] sm:$0xff] }
  0x42   :  { %848 = vst [vmem:[%s1663_s2 + $0x400] sm:$0xff] %v847_v0  ;;  %v853_v3 = vld [vmem:[%s1664_s1 + $0x208] sm:$0xff]  ;;  %850 = vst [vmem:[%s1663_s2 + $0x408] sm:$0xff] %v849_v1 }
  0x43   :  { %852 = vst [vmem:[%s1663_s2 + $0x410] sm:$0xff] %v851_v2  ;;  %854 = vst [vmem:[%s1663_s2 + $0x418] sm:$0xff] %v853_v3 }

// kernel: enhancement_forward.37
= control target key start
LH: loop header
LB: loop body
LE: loop exit
PB: predicated region body
PF: predicated region fallthrough
CT: control target
= control target key end

     0   :  { %s1169_s12 = smov 0   ;;  %s1171_s13 = smov 0   ;;  %s1499_s0 = inlined_call_operand.vmem [shape: f32[16,768], index: 0, kind: input, shape index: {}]   ;;  %s1500_s1 = inlined_call_operand.vmem [shape: f32[16,768], index: 1, kind: input, shape index: {}]   ;;  %s1501_s2 = inlined_call_operand.vmem [shape: f32[768,512], index: 2, kind: input, shape index: {}]   ;;  %s1502_s3 = inlined_call_operand.vmem [shape: f32[16,512], index: 3, kind: output, shape index: {}]  }
   0x1   :  { %s1173_s14 = smov 0   ;;  %s1175_s15 = smov 0  }
   0x2   :  { %s1177_s16 = smov 0  }
   0x3 LB: > { %s25_s17 = sadd.s32 1, %s1141_s15  ;;  %p48_p1 = scmp.ne.s32.totalorder %s1133_s13, %s1129_s12  ;;  %s1145_s16 = sphi %s1177_s16, %s13_s16   ;;  %s1141_s15 = sphi %s1175_s15, %s1507_s15   ;;  %s1137_s14 = sphi %s1173_s14, %s1506_s14   ;;  %s1133_s13 = sphi %s1171_s13, %s1505_s13   ;;  %s1129_s12 = sphi %s1169_s12, %s1504_s12  }
   0x4   : > { %p26_p0 = scmp.ge.s32.totalorder %s25_s17, 2  ;;  %p49_p2 = scmp.eq.s32.totalorder %s1145_s16, 0 }
   0x5   : > { %s41_s20 = sadd.s32 1, %s1133_s13  ;;  %p1047_p5 = scmp.ge.s32.totalorder %s1145_s16, 2 }
   0x6   : > { %s1509_s17 = smov (%p26_p0, %s25_s17), 0  ;;  %p1200_p3 = por %p49_p2, %p48_p1 }
   0x7   : > { %s37_s19 = ssub.s32 %s1141_s15, %s1509_s17  ;;  %158 = sbr.rel (%p1047_p5) target bundleno = 28 (0x1c), region = 16 }
   0x8   : > { %p39_p4 = scmp.eq.s32.totalorder %s37_s19, 0 }
   0xa   : > { %s1208_s21 = scalar_select %p39_p4, %s1133_s13, %s41_s20  }
   0xc   : > { %161 = sbr.rel (!%p1200_p3) target bundleno = 20 (0x14), region = 20  ;;  %s163_s22 = sand.u32 (%p1200_p3), 1, %s1133_s13  }
   0xd   : > { %s1059_s23 = smul.u32 (%p1200_p3), 24, %s1141_s15 }
   0xe   : > { %s1062_s24 = smul.u32 (%p1200_p3), 48, %s163_s22 }
   0xf   : > { %s171_s27 = scalar_lea.vmem (%p1200_p3), %s1499_s0, %s1059_s23 }
  0x10   : > { %v184_v0 = vld [vmem:[%s171_s27] sm:$0xff] (%p1200_p3)  ;;  %v186_v1 = vld [vmem:[%s171_s27 + $0x8] sm:$0xff] (%p1200_p3)  ;;  %v188_v2 = vld [vmem:[%s171_s27 + $0x10] sm:$0xff] (%p1200_p3)  ;;  %s165_s28 = scalar_lea.vmem (%p1200_p3), [#allocation3], %s1062_s24 }
  0x11   : > { %185 = vst [vmem:[%s165_s28] sm:$0xff] %v184_v0  ;;  %187 = vst [vmem:[%s165_s28 + $0x8] sm:$0xff] %v186_v1  ;;  %v190_v3 = vld [vmem:[%s171_s27 + $0x30] sm:$0xff]  ;;  %v192_v4 = vld [vmem:[%s171_s27 + $0x38] sm:$0xff] }
  0x12   : > { %189 = vst [vmem:[%s165_s28 + $0x10] sm:$0xff] %v188_v2  ;;  %v194_v5 = vld [vmem:[%s171_s27 + $0x40] sm:$0xff]  ;;  %191 = vst [vmem:[%s165_s28 + $0x18] sm:$0xff] %v190_v3 }
  0x13   : > { %193 = vst [vmem:[%s165_s28 + $0x20] sm:$0xff] %v192_v4  ;;  %195 = vst [vmem:[%s165_s28 + $0x28] sm:$0xff] %v194_v5 }
  0x14 PF: > { %201 = sbr.rel (!%p1200_p3) target bundleno = 28 (0x1c), region = 43  ;;  %s203_s29 = sand.u32 (%p1200_p3), 1, %s1133_s13  }
  0x15   : > { %s1060_s30 = smul.u32 (%p1200_p3), 24, %s1141_s15 }
  0x16   : > { %s1063_s4 = smul.u32 (%p1200_p3), 48, %s203_s29 }
  0x17   : > { %s211_s7 = scalar_lea.vmem (%p1200_p3), %s1500_s1, %s1060_s30 }
  0x18   : > { %v224_v6 = vld [vmem:[%s211_s7] sm:$0xff] (%p1200_p3)  ;;  %v226_v7 = vld [vmem:[%s211_s7 + $0x8] sm:$0xff] (%p1200_p3)  ;;  %v228_v8 = vld [vmem:[%s211_s7 + $0x10] sm:$0xff] (%p1200_p3)  ;;  %s205_s8 = scalar_lea.vmem (%p1200_p3), [#allocation4], %s1063_s4 }
  0x19   : > { %225 = vst [vmem:[%s205_s8] sm:$0xff] %v224_v6  ;;  %227 = vst [vmem:[%s205_s8 + $0x8] sm:$0xff] %v226_v7  ;;  %v230_v9 = vld [vmem:[%s211_s7 + $0x30] sm:$0xff]  ;;  %v232_v10 = vld [vmem:[%s211_s7 + $0x38] sm:$0xff] }
  0x1a   : > { %229 = vst [vmem:[%s205_s8 + $0x10] sm:$0xff] %v228_v8  ;;  %v234_v11 = vld [vmem:[%s211_s7 + $0x40] sm:$0xff]  ;;  %231 = vst [vmem:[%s205_s8 + $0x18] sm:$0xff] %v230_v9 }
  0x1b   : > { %233 = vst [vmem:[%s205_s8 + $0x20] sm:$0xff] %v232_v10  ;;  %235 = vst [vmem:[%s205_s8 + $0x28] sm:$0xff] %v234_v11 }
  0x1c PF: > { %p1050_p6 = scmp.ge.s32.totalorder %s1145_s16, 1  ;;  %p255_p7 = scmp.lt.s32.totalorder %s1145_s16, 3 }
  0x1e   : > { %p256_p8 = pnand %p1050_p6, %p255_p7 }
  0x1f   : > { %s262_s9 = sand.u32 (!%p256_p8), 1, %s1129_s12   ;;  %s315_s10 = smul.u32 (!%p256_p8), 48, %s1137_s14 }
  0x20   : > { %259 = sbr.rel (%p256_p8) target bundleno = 362 (0x16a), region = 70  ;;  %p1053_p10 = scmp.ne.s32.totalorder (!%p256_p8), %s1137_s14, 0 }
  0x21   : > { %s1064_s11 = smul.u32 (!%p256_p8), 48, %s262_s9  ;;  %p317_p9 = scmp.lt.s32.totalorder (!%p256_p8), %s315_s10, 95 }
  0x23   : > { %s1234_s23 = scalar_lea.vmem (!%p256_p8), [#allocation3], %s1064_s11  ;;  %s1236_s24 = scalar_lea.vmem (!%p256_p8), [#allocation4], %s1064_s11 }
  0x25   : > { %s1511_s10 = smov (!%p317_p9, %s315_s10), 95  ;;  %342 = sbr.rel (%p1053_p10) target bundleno = 47 (0x2f), region = 82 }
  0x26   : > { %s1061_s18 = sshll.u32 %s1511_s10, 5 }
  0x27   : > { %s1232_s22 = scalar_lea.vmem %s1501_s2, %s1061_s18 }
  0x2a   : > { %v1147_v12 = vmov 0.0  }
  0x2b   : > { %343 = vst [vmem:[#allocation2 + $0x30] sm:$0xff] %v1147_v12  ;;  %344 = vst [vmem:[#allocation2] sm:$0xff] %v1147_v12 }
  0x2c   : > { %345 = vst [vmem:[#allocation2 + $0x18] sm:$0xff] %v1147_v12  ;;  %346 = vst [vmem:[#allocation2 + $0x10] sm:$0xff] %v1147_v12 }
  0x2d   : > { %347 = vst [vmem:[#allocation2 + $0x8] sm:$0xff] %v1147_v12  ;;  %348 = vst [vmem:[#allocation2 + $0x20] sm:$0xff] %v1147_v12 }
  0x2e   : > { %349 = vst [vmem:[#allocation2 + $0x28] sm:$0xff] %v1147_v12  ;;  %350 = vst [vmem:[#allocation2 + $0x38] sm:$0xff] %v1147_v12 }
  0x2f PF: > { %v438_v13 = vld [vmem:[%s1232_s22 + $0x1e8] sm:$0xff]  ;;  %v437_v15 = vld [vmem:[%s1232_s22 + $0x1e0] sm:$0xff]  ;;  %p1054_p11 = scmp.ne.s32.totalorder %s1137_s14, 1 }
  0x30   : > { %v566_v14 = vld [vmem:[%s1232_s22 + $0x5e8] sm:$0xff]  ;;  %569 = vmatprep.subr.mxu0 %v438_v13  ;;  %v565_v16 = vld [vmem:[%s1232_s22 + $0x5e0] sm:$0xff] }
  0x31   : > { %646 = vmatprep.subr.mxu1 %v566_v14  ;;  %v434_v17 = vld [vmem:[%s1232_s22 + $0x1c8] sm:$0xff]  ;;  %570 = vmatpush1.msra.mxu0 %v437_v15  ;;  %v433_v19 = vld [vmem:[%s1232_s22 + $0x1c0] sm:$0xff] }
  0x32   : > { %v562_v18 = vld [vmem:[%s1232_s22 + $0x5c8] sm:$0xff]  ;;  %647 = vmatpush1.msra.mxu1 %v565_v16  ;;  %v561_v20 = vld [vmem:[%s1232_s22 + $0x5c0] sm:$0xff]  ;;  %571 = vmatprep.subr.mxu0 %v434_v17  ;;  %v440_v17 = vld [vmem:[%s1232_s22 + $0x1f8] sm:$0xff] }
  0x33   : > { %v430_v21 = vld [vmem:[%s1232_s22 + $0x1a8] sm:$0xff]  ;;  %648 = vmatprep.subr.mxu1 %v562_v18  ;;  %v429_v23 = vld [vmem:[%s1232_s22 + $0x1a0] sm:$0xff]  ;;  %572 = vmatpush1.msra.mxu0 %v433_v19  ;;  %v439_v19 = vld [vmem:[%s1232_s22 + $0x1f0] sm:$0xff] }
  0x34   : > { %v558_v22 = vld [vmem:[%s1232_s22 + $0x5a8] sm:$0xff]  ;;  %v557_v24 = vld [vmem:[%s1232_s22 + $0x5a0] sm:$0xff]  ;;  %649 = vmatpush1.msra.mxu1 %v561_v20  ;;  %573 = vmatprep.subr.mxu0 %v430_v21  ;;  %v1148_v20 = vmov 0.0  }
  0x35   : > { %v426_v25 = vld [vmem:[%s1232_s22 + $0x188] sm:$0xff]  ;;  %650 = vmatprep.subr.mxu1 %v558_v22  ;;  %v425_v27 = vld [vmem:[%s1232_s22 + $0x180] sm:$0xff]  ;;  %574 = vmatpush1.msra.mxu0 %v429_v23  ;;  %v436_v22 = vld [vmem:[%s1232_s22 + $0x1d8] sm:$0xff] }
  0x36   : > { %v554_v26 = vld [vmem:[%s1232_s22 + $0x588] sm:$0xff]  ;;  %v553_v28 = vld [vmem:[%s1232_s22 + $0x580] sm:$0xff]  ;;  %651 = vmatpush1.msra.mxu1 %v557_v24  ;;  %575 = vmatprep.subr.mxu0 %v426_v25  ;;  %v435_v24 = vld [vmem:[%s1232_s22 + $0x1d0] sm:$0xff] }
  0x37   : > { %v422_v29 = vld [vmem:[%s1232_s22 + $0x168] sm:$0xff]  ;;  %652 = vmatprep.subr.mxu1 %v554_v26  ;;  %v421_v31 = vld [vmem:[%s1232_s22 + $0x160] sm:$0xff]  ;;  %576 = vmatpush1.msra.mxu0 %v425_v27  ;;  %v432_v26 = vld [vmem:[%s1232_s22 + $0x1b8] sm:$0xff] }
  0x38   : > { %v550_v30 = vld [vmem:[%s1232_s22 + $0x568] sm:$0xff]  ;;  %v549_v32 = vld [vmem:[%s1232_s22 + $0x560] sm:$0xff]  ;;  %653 = vmatpush1.msra.mxu1 %v553_v28  ;;  %577 = vmatprep.subr.mxu0 %v422_v29  ;;  %v431_v28 = vld [vmem:[%s1232_s22 + $0x1b0] sm:$0xff] }
  0x39   : > { %v418_v33 = vld [vmem:[%s1232_s22 + $0x148] sm:$0xff]  ;;  %654 = vmatprep.subr.mxu1 %v550_v30  ;;  %v417_v35 = vld [vmem:[%s1232_s22 + $0x140] sm:$0xff]  ;;  %578 = vmatpush1.msra.mxu0 %v421_v31  ;;  %v428_v30 = vld [vmem:[%s1232_s22 + $0x198] sm:$0xff] }
  0x3a   : > { %v546_v34 = vld [vmem:[%s1232_s22 + $0x548] sm:$0xff]  ;;  %v545_v36 = vld [vmem:[%s1232_s22 + $0x540] sm:$0xff]  ;;  %655 = vmatpush1.msra.mxu1 %v549_v32  ;;  %579 = vmatprep.subr.mxu0 %v418_v33  ;;  %v427_v32 = vld [vmem:[%s1232_s22 + $0x190] sm:$0xff] }
  0x3b   : > { %v414_v37 = vld [vmem:[%s1232_s22 + $0x128] sm:$0xff]  ;;  %656 = vmatprep.subr.mxu1 %v546_v34  ;;  %v413_v39 = vld [vmem:[%s1232_s22 + $0x120] sm:$0xff]  ;;  %580 = vmatpush1.msra.mxu0 %v417_v35  ;;  %v424_v34 = vld [vmem:[%s1232_s22 + $0x178] sm:$0xff] }
  0x3c   : > { %v542_v38 = vld [vmem:[%s1232_s22 + $0x528] sm:$0xff]  ;;  %v541_v40 = vld [vmem:[%s1232_s22 + $0x520] sm:$0xff]  ;;  %657 = vmatpush1.msra.mxu1 %v545_v36  ;;  %581 = vmatprep.subr.mxu0 %v414_v37  ;;  %v423_v36 = vld [vmem:[%s1232_s22 + $0x170] sm:$0xff] }
  0x3d   : > { %v410_v41 = vld [vmem:[%s1232_s22 + $0x108] sm:$0xff]  ;;  %658 = vmatprep.subr.mxu1 %v542_v38  ;;  %v409_v43 = vld [vmem:[%s1232_s22 + $0x100] sm:$0xff]  ;;  %582 = vmatpush1.msra.mxu0 %v413_v39  ;;  %v420_v38 = vld [vmem:[%s1232_s22 + $0x158] sm:$0xff] }
  0x3e   : > { %v538_v42 = vld [vmem:[%s1232_s22 + $0x508] sm:$0xff]  ;;  %v537_v44 = vld [vmem:[%s1232_s22 + $0x500] sm:$0xff]  ;;  %659 = vmatpush1.msra.mxu1 %v541_v40  ;;  %583 = vmatprep.subr.mxu0 %v410_v41  ;;  %v419_v40 = vld [vmem:[%s1232_s22 + $0x150] sm:$0xff] }
  0x3f   : > { %v406_v45 = vld [vmem:[%s1232_s22 + $0xe8] sm:$0xff]  ;;  %660 = vmatprep.subr.mxu1 %v538_v42  ;;  %v405_v47 = vld [vmem:[%s1232_s22 + $0xe0] sm:$0xff]  ;;  %584 = vmatpush1.msra.mxu0 %v409_v43  ;;  %v416_v42 = vld [vmem:[%s1232_s22 + $0x138] sm:$0xff] }
  0x40   : > { %v534_v46 = vld [vmem:[%s1232_s22 + $0x4e8] sm:$0xff]  ;;  %v533_v48 = vld [vmem:[%s1232_s22 + $0x4e0] sm:$0xff]  ;;  %661 = vmatpush1.msra.mxu1 %v537_v44  ;;  %585 = vmatprep.subr.mxu0 %v406_v45  ;;  %v415_v44 = vld [vmem:[%s1232_s22 + $0x130] sm:$0xff] }
  0x41   : > { %v402_v49 = vld [vmem:[%s1232_s22 + $0xc8] sm:$0xff]  ;;  %662 = vmatprep.subr.mxu1 %v534_v46  ;;  %v401_v51 = vld [vmem:[%s1232_s22 + $0xc0] sm:$0xff]  ;;  %586 = vmatpush1.msra.mxu0 %v405_v47  ;;  %v412_v46 = vld [vmem:[%s1232_s22 + $0x118] sm:$0xff] }
  0x42   : > { %v530_v50 = vld [vmem:[%s1232_s22 + $0x4c8] sm:$0xff]  ;;  %v529_v52 = vld [vmem:[%s1232_s22 + $0x4c0] sm:$0xff]  ;;  %663 = vmatpush1.msra.mxu1 %v533_v48  ;;  %587 = vmatprep.subr.mxu0 %v402_v49  ;;  %v411_v48 = vld [vmem:[%s1232_s22 + $0x110] sm:$0xff] }
  0x43   : > { %v398_v53 = vld [vmem:[%s1232_s22 + $0xa8] sm:$0xff]  ;;  %664 = vmatprep.subr.mxu1 %v530_v50  ;;  %v397_v55 = vld [vmem:[%s1232_s22 + $0xa0] sm:$0xff]  ;;  %588 = vmatpush1.msra.mxu0 %v401_v51  ;;  %v408_v50 = vld [vmem:[%s1232_s22 + $0xf8] sm:$0xff] }
  0x44   : > { %v526_v54 = vld [vmem:[%s1232_s22 + $0x4a8] sm:$0xff]  ;;  %v525_v56 = vld [vmem:[%s1232_s22 + $0x4a0] sm:$0xff]  ;;  %665 = vmatpush1.msra.mxu1 %v529_v52  ;;  %589 = vmatprep.subr.mxu0 %v398_v53  ;;  %v407_v52 = vld [vmem:[%s1232_s22 + $0xf0] sm:$0xff] }
  0x45   : > { %v394_v57 = vld [vmem:[%s1232_s22 + $0x88] sm:$0xff]  ;;  %666 = vmatprep.subr.mxu1 %v526_v54  ;;  %v393_v59 = vld [vmem:[%s1232_s22 + $0x80] sm:$0xff]  ;;  %590 = vmatpush1.msra.mxu0 %v397_v55  ;;  %v404_v54 = vld [vmem:[%s1232_s22 + $0xd8] sm:$0xff] }
  0x46   : > { %v522_v58 = vld [vmem:[%s1232_s22 + $0x488] sm:$0xff]  ;;  %v521_v60 = vld [vmem:[%s1232_s22 + $0x480] sm:$0xff]  ;;  %667 = vmatpush1.msra.mxu1 %v525_v56  ;;  %591 = vmatprep.subr.mxu0 %v394_v57  ;;  %v403_v56 = vld [vmem:[%s1232_s22 + $0xd0] sm:$0xff] }
  0x47   : > { %v390_v61 = vld [vmem:[%s1232_s22 + $0x68] sm:$0xff]  ;;  %668 = vmatprep.subr.mxu1 %v522_v58  ;;  %v389_v63 = vld [vmem:[%s1232_s22 + $0x60] sm:$0xff]  ;;  %592 = vmatpush1.msra.mxu0 %v393_v59  ;;  %v400_v58 = vld [vmem:[%s1232_s22 + $0xb8] sm:$0xff] }
  0x48   : > { %v518_v62 = vld [vmem:[%s1232_s22 + $0x468] sm:$0xff]  ;;  %v517_v0 = vld [vmem:[%s1232_s22 + $0x460] sm:$0xff]  ;;  %669 = vmatpush1.msra.mxu1 %v521_v60  ;;  %593 = vmatprep.subr.mxu0 %v390_v61  ;;  %v399_v60 = vld [vmem:[%s1232_s22 + $0xb0] sm:$0xff] }
  0x49   : > { %v386_v1 = vld [vmem:[%s1232_s22 + $0x48] sm:$0xff]  ;;  %670 = vmatprep.subr.mxu1 %v518_v62  ;;  %v385_v3 = vld [vmem:[%s1232_s22 + $0x40] sm:$0xff]  ;;  %594 = vmatpush1.msra.mxu0 %v389_v63  ;;  %v396_v62 = vld [vmem:[%s1232_s22 + $0x98] sm:$0xff] }
  0x4a   : > { %v514_v2 = vld [vmem:[%s1232_s22 + $0x448] sm:$0xff]  ;;  %v513_v4 = vld [vmem:[%s1232_s22 + $0x440] sm:$0xff]  ;;  %671 = vmatpush1.msra.mxu1 %v517_v0  ;;  %595 = vmatprep.subr.mxu0 %v386_v1  ;;  %v395_v0 = vld [vmem:[%s1232_s22 + $0x90] sm:$0xff] }
  0x4b   : > { %v382_v5 = vld [vmem:[%s1232_s22 + $0x28] sm:$0xff]  ;;  %v381_v7 = vld [vmem:[%s1232_s22 + $0x20] sm:$0xff]  ;;  %672 = vmatprep.subr.mxu1 %v514_v2  ;;  %596 = vmatpush1.msra.mxu0 %v385_v3  ;;  %v392_v2 = vld [vmem:[%s1232_s22 + $0x78] sm:$0xff] }
  0x4c   : > { %v510_v6 = vld [vmem:[%s1232_s22 + $0x428] sm:$0xff]  ;;  %v509_v8 = vld [vmem:[%s1232_s22 + $0x420] sm:$0xff]  ;;  %673 = vmatpush1.msra.mxu1 %v513_v4  ;;  %597 = vmatprep.subr.mxu0 %v382_v5  ;;  %v391_v4 = vld [vmem:[%s1232_s22 + $0x70] sm:$0xff] }
  0x4d   : > { %v353_v9 = vld [vmem:[%s1234_s23 + $0x10] sm:$0xff]  ;;  %v378_v11 = vld [vmem:[%s1232_s22 + $0x8] sm:$0xff]  ;;  %674 = vmatprep.subr.mxu1 %v510_v6  ;;  %598 = vmatpush1.msra.mxu0 %v381_v7  ;;  %v388_v6 = vld [vmem:[%s1232_s22 + $0x58] sm:$0xff] }
  0x4e   : > { %v359_v10 = vld [vmem:[%s1236_s24 + $0x10] sm:$0xff]  ;;  %v506_v12 = vld [vmem:[%s1232_s22 + $0x408] sm:$0xff]  ;;  %675 = vmatpush1.msra.mxu1 %v509_v8  ;;  %599 = vmatprep.subr.mxu0 %v378_v11 }
  0x4f   : > { %v377_v13 = vld [vmem:[%s1232_s22] sm:$0xff]  ;;  %v502_v15 = vld [vmem:[%s1232_s22 + $0x3e8] sm:$0xff]  ;;  %v1306_v16 = vmul.f32 %v359_v10, %v353_v9  ;;  %676 = vmatprep.subr.mxu1 %v506_v12  ;;  %710 = vmatprep.mubr.f32.mxu1 %v1148_v20  ;;  %v387_v8 = vld [vmem:[%s1232_s22 + $0x50] sm:$0xff] }
  0x50   : > { %v505_v14 = vld [vmem:[%s1232_s22 + $0x400] sm:$0xff]  ;;  %600 = vmatpush1.msra.mxu0 %v377_v13  ;;  %v498_v21 = vld [vmem:[%s1232_s22 + $0x3c8] sm:$0xff]  ;;  %v384_v12 = vld [vmem:[%s1232_s22 + $0x38] sm:$0xff] }
  0x51   : > { %677 = vmatpush1.msra.mxu1 %v505_v14  ;;  %v501_v18 = vld [vmem:[%s1232_s22 + $0x3e0] sm:$0xff]  ;;  %601 = vmatprep.subr.mxu0 %v502_v15  ;;  %v494_v25 = vld [vmem:[%s1232_s22 + $0x3a8] sm:$0xff] }
  0x52   : > { %711 = vmatmul.mubr.f32.vlgmr.msra.gmra.mxu1 %v1306_v16  ;;  %723 = vmatprep.subr.mxu1 %v440_v17  ;;  %v497_v23 = vld [vmem:[%s1232_s22 + $0x3c0] sm:$0xff]  ;;  %v490_v29 = vld [vmem:[%s1232_s22 + $0x388] sm:$0xff]  ;;  %v383_v17 = vld [vmem:[%s1232_s22 + $0x30] sm:$0xff] }
  0x53   : > { %602 = vmatpush2.msra.mxu0 %v501_v18  ;;  %724 = vmatpush1.msra.mxu1 %v439_v19  ;;  %v493_v27 = vld [vmem:[%s1232_s22 + $0x3a0] sm:$0xff]  ;;  %v486_v33 = vld [vmem:[%s1232_s22 + $0x368] sm:$0xff]  ;;  %v380_v19 = vld [vmem:[%s1232_s22 + $0x18] sm:$0xff] }
  0x54   : > { %603 = vmatprep.subr.mxu0 %v498_v21  ;;  %725 = vmatprep.subr.mxu1 %v436_v22  ;;  %v489_v31 = vld [vmem:[%s1232_s22 + $0x380] sm:$0xff]  ;;  %v482_v37 = vld [vmem:[%s1232_s22 + $0x348] sm:$0xff] }
  0x55   : > { %604 = vmatpush2.msra.mxu0 %v497_v23  ;;  %726 = vmatpush1.msra.mxu1 %v435_v24  ;;  %v485_v35 = vld [vmem:[%s1232_s22 + $0x360] sm:$0xff]  ;;  %v478_v41 = vld [vmem:[%s1232_s22 + $0x328] sm:$0xff]  ;;  %v379_v24 = vld [vmem:[%s1232_s22 + $0x10] sm:$0xff] }
  0x56   : > { %605 = vmatprep.subr.mxu0 %v494_v25  ;;  %727 = vmatprep.subr.mxu1 %v432_v26  ;;  %v481_v39 = vld [vmem:[%s1232_s22 + $0x340] sm:$0xff]  ;;  %v474_v45 = vld [vmem:[%s1232_s22 + $0x308] sm:$0xff]  ;;  %v504_v25 = vld [vmem:[%s1232_s22 + $0x3f8] sm:$0xff] }
  0x57   : > { %606 = vmatpush2.msra.mxu0 %v493_v27  ;;  %728 = vmatpush1.msra.mxu1 %v431_v28  ;;  %v477_v43 = vld [vmem:[%s1232_s22 + $0x320] sm:$0xff]  ;;  %v470_v49 = vld [vmem:[%s1232_s22 + $0x2e8] sm:$0xff]  ;;  %v568_v26 = vld [vmem:[%s1232_s22 + $0x5f8] sm:$0xff] }
  0x58   : > { %607 = vmatprep.subr.mxu0 %v490_v29  ;;  %729 = vmatprep.subr.mxu1 %v428_v30  ;;  %v473_v47 = vld [vmem:[%s1232_s22 + $0x300] sm:$0xff]  ;;  %v466_v53 = vld [vmem:[%s1232_s22 + $0x2c8] sm:$0xff]  ;;  %v503_v27 = vld [vmem:[%s1232_s22 + $0x3f0] sm:$0xff] }
  0x59   : > { %608 = vmatpush2.msra.mxu0 %v489_v31  ;;  %730 = vmatpush1.msra.mxu1 %v427_v32  ;;  %v469_v51 = vld [vmem:[%s1232_s22 + $0x2e0] sm:$0xff]  ;;  %v462_v57 = vld [vmem:[%s1232_s22 + $0x2a8] sm:$0xff]  ;;  %v567_v28 = vld [vmem:[%s1232_s22 + $0x5f0] sm:$0xff] }
  0x5a   : > { %609 = vmatprep.subr.mxu0 %v486_v33  ;;  %731 = vmatprep.subr.mxu1 %v424_v34  ;;  %v465_v55 = vld [vmem:[%s1232_s22 + $0x2c0] sm:$0xff]  ;;  %v458_v61 = vld [vmem:[%s1232_s22 + $0x288] sm:$0xff]  ;;  %v500_v29 = vld [vmem:[%s1232_s22 + $0x3d8] sm:$0xff] }
  0x5b   : > { %610 = vmatpush2.msra.mxu0 %v485_v35  ;;  %732 = vmatpush1.msra.mxu1 %v423_v36  ;;  %v461_v59 = vld [vmem:[%s1232_s22 + $0x2a0] sm:$0xff]  ;;  %v454_v1 = vld [vmem:[%s1232_s22 + $0x268] sm:$0xff]  ;;  %v564_v30 = vld [vmem:[%s1232_s22 + $0x5d8] sm:$0xff] }
  0x5c   : > { %611 = vmatprep.subr.mxu0 %v482_v37  ;;  %733 = vmatprep.subr.mxu1 %v420_v38  ;;  %v457_v63 = vld [vmem:[%s1232_s22 + $0x280] sm:$0xff]  ;;  %v450_v5 = vld [vmem:[%s1232_s22 + $0x248] sm:$0xff]  ;;  %v499_v31 = vld [vmem:[%s1232_s22 + $0x3d0] sm:$0xff] }
  0x5d   : > { %612 = vmatpush2.msra.mxu0 %v481_v39  ;;  %734 = vmatpush1.msra.mxu1 %v419_v40  ;;  %v453_v3 = vld [vmem:[%s1232_s22 + $0x260] sm:$0xff]  ;;  %v446_v9 = vld [vmem:[%s1232_s22 + $0x228] sm:$0xff]  ;;  %v563_v32 = vld [vmem:[%s1232_s22 + $0x5d0] sm:$0xff] }
  0x5e   : > { %613 = vmatprep.subr.mxu0 %v478_v41  ;;  %735 = vmatprep.subr.mxu1 %v416_v42  ;;  %v449_v7 = vld [vmem:[%s1232_s22 + $0x240] sm:$0xff]  ;;  %v352_v10 = vld [vmem:[%s1234_s23 + $0x8] sm:$0xff]  ;;  %v495_v35 = vld [vmem:[%s1232_s22 + $0x3b0] sm:$0xff] }
  0x5f   : > { %614 = vmatpush2.msra.mxu0 %v477_v43  ;;  %736 = vmatpush1.msra.mxu1 %v415_v44  ;;  %v358_v11 = vld [vmem:[%s1236_s24 + $0x8] sm:$0xff]  ;;  %v351_v13 = vld [vmem:[%s1234_s23] sm:$0xff] }
  0x60   : > { %615 = vmatprep.subr.mxu0 %v474_v45  ;;  %737 = vmatprep.subr.mxu1 %v412_v46  ;;  %v357_v14 = vld [vmem:[%s1236_s24] sm:$0xff]  ;;  %v442_v18 = vld [vmem:[%s1232_s22 + $0x208] sm:$0xff]  ;;  %v1375_v21 = vmul.f32 %v358_v11, %v352_v10  ;;  %v496_v33 = vld [vmem:[%s1232_s22 + $0x3b8] sm:$0xff] }
  0x61   : > { %616 = vmatpush2.msra.mxu0 %v473_v47  ;;  %738 = vmatpush1.msra.mxu1 %v411_v48  ;;  %v445_v15 = vld [vmem:[%s1232_s22 + $0x220] sm:$0xff]  ;;  %v1378_v23 = vmul.f32 %v357_v14, %v351_v13  ;;  %v560_v34 = vld [vmem:[%s1232_s22 + $0x5b8] sm:$0xff]  ;;  %v559_v36 = vld [vmem:[%s1232_s22 + $0x5b0] sm:$0xff] }
  0x62   : > { %617 = vmatprep.subr.mxu0 %v470_v49  ;;  %739 = vmatprep.subr.mxu1 %v408_v50  ;;  %v441_v22 = vld [vmem:[%s1232_s22 + $0x200] sm:$0xff]  ;;  %v492_v37 = vld [vmem:[%s1232_s22 + $0x398] sm:$0xff]  ;;  %v491_v39 = vld [vmem:[%s1232_s22 + $0x390] sm:$0xff] }
  0x63   : > { %618 = vmatpush2.msra.mxu0 %v469_v51  ;;  %740 = vmatpush1.msra.mxu1 %v407_v52  ;;  %v556_v38 = vld [vmem:[%s1232_s22 + $0x598] sm:$0xff]  ;;  %v555_v40 = vld [vmem:[%s1232_s22 + $0x590] sm:$0xff] }
  0x64   : > { %619 = vmatprep.subr.mxu0 %v466_v53  ;;  %741 = vmatprep.subr.mxu1 %v404_v54  ;;  %v488_v41 = vld [vmem:[%s1232_s22 + $0x378] sm:$0xff]  ;;  %v487_v43 = vld [vmem:[%s1232_s22 + $0x370] sm:$0xff] }
  0x65   : > { %620 = vmatpush2.msra.mxu0 %v465_v55  ;;  %742 = vmatpush1.msra.mxu1 %v403_v56  ;;  %v552_v42 = vld [vmem:[%s1232_s22 + $0x578] sm:$0xff]  ;;  %v551_v44 = vld [vmem:[%s1232_s22 + $0x570] sm:$0xff] }
  0x66   : > { %621 = vmatprep.subr.mxu0 %v462_v57  ;;  %743 = vmatprep.subr.mxu1 %v400_v58  ;;  %v484_v45 = vld [vmem:[%s1232_s22 + $0x358] sm:$0xff]  ;;  %v483_v47 = vld [vmem:[%s1232_s22 + $0x350] sm:$0xff] }
  0x67   : > { %622 = vmatpush2.msra.mxu0 %v461_v59  ;;  %744 = vmatpush1.msra.mxu1 %v399_v60  ;;  %v548_v46 = vld [vmem:[%s1232_s22 + $0x558] sm:$0xff]  ;;  %v547_v48 = vld [vmem:[%s1232_s22 + $0x550] sm:$0xff] }
  0x68   : > { %623 = vmatprep.subr.mxu0 %v458_v61  ;;  %745 = vmatprep.subr.mxu1 %v396_v62  ;;  %v480_v49 = vld [vmem:[%s1232_s22 + $0x338] sm:$0xff]  ;;  %v479_v51 = vld [vmem:[%s1232_s22 + $0x330] sm:$0xff] }
  0x69   : > { %624 = vmatpush2.msra.mxu0 %v457_v63  ;;  %746 = vmatpush1.msra.mxu1 %v395_v0  ;;  %v544_v50 = vld [vmem:[%s1232_s22 + $0x538] sm:$0xff]  ;;  %v543_v52 = vld [vmem:[%s1232_s22 + $0x530] sm:$0xff] }
  0x6a   : > { %625 = vmatprep.subr.mxu0 %v454_v1  ;;  %747 = vmatprep.subr.mxu1 %v392_v2  ;;  %v476_v53 = vld [vmem:[%s1232_s22 + $0x318] sm:$0xff]  ;;  %v475_v55 = vld [vmem:[%s1232_s22 + $0x310] sm:$0xff] }
  0x6b   : > { %626 = vmatpush2.msra.mxu0 %v453_v3  ;;  %748 = vmatpush1.msra.mxu1 %v391_v4  ;;  %v540_v54 = vld [vmem:[%s1232_s22 + $0x518] sm:$0xff]  ;;  %v539_v56 = vld [vmem:[%s1232_s22 + $0x510] sm:$0xff] }
  0x6c   : > { %627 = vmatprep.subr.mxu0 %v450_v5  ;;  %749 = vmatprep.subr.mxu1 %v388_v6  ;;  %v472_v57 = vld [vmem:[%s1232_s22 + $0x2f8] sm:$0xff]  ;;  %v471_v59 = vld [vmem:[%s1232_s22 + $0x2f0] sm:$0xff] }
  0x6d   : > { %628 = vmatpush2.msra.mxu0 %v449_v7  ;;  %750 = vmatpush1.msra.mxu1 %v387_v8  ;;  %v536_v58 = vld [vmem:[%s1232_s22 + $0x4f8] sm:$0xff]  ;;  %v535_v60 = vld [vmem:[%s1232_s22 + $0x4f0] sm:$0xff] }
  0x6e   : > { %629 = vmatprep.subr.mxu0 %v446_v9  ;;  %751 = vmatprep.subr.mxu1 %v384_v12  ;;  %v468_v61 = vld [vmem:[%s1232_s22 + $0x2d8] sm:$0xff]  ;;  %v467_v63 = vld [vmem:[%s1232_s22 + $0x2d0] sm:$0xff] }
  0x6f   : > { %630 = vmatpush2.msra.mxu0 %v445_v15  ;;  %752 = vmatpush1.msra.mxu1 %v383_v17  ;;  %v532_v62 = vld [vmem:[%s1232_s22 + $0x4d8] sm:$0xff]  ;;  %v531_v0 = vld [vmem:[%s1232_s22 + $0x4d0] sm:$0xff] }
  0x70   : > { %631 = vmatprep.subr.mxu0 %v442_v18  ;;  %753 = vmatprep.subr.mxu1 %v380_v19  ;;  %v464_v1 = vld [vmem:[%s1232_s22 + $0x2b8] sm:$0xff]  ;;  %v463_v3 = vld [vmem:[%s1232_s22 + $0x2b0] sm:$0xff] }
  0x71   : > { %632 = vmatpush2.msra.mxu0 %v441_v22  ;;  %633 = vmatprep.mubr.f32.mxu0 %v1375_v21  ;;  %v528_v2 = vld [vmem:[%s1232_s22 + $0x4b8] sm:$0xff]  ;;  %v527_v4 = vld [vmem:[%s1232_s22 + $0x4b0] sm:$0xff] }
  0x72   : > { %754 = vmatpush1.msra.mxu1 %v379_v24  ;;  %634 = vmatmul.mubr.f32.vlgmr.msra.gmra.mxu0 %v1378_v23  ;;  %v460_v5 = vld [vmem:[%s1232_s22 + $0x298] sm:$0xff]  ;;  %v355_v7 = vld [vmem:[%s1234_s23 + $0x20] sm:$0xff] }
  0x73   : > { %755 = vmatprep.subr.mxu1 %v504_v25  ;;  %800 = vmatprep.subr.mxu0 %v568_v26  ;;  %v524_v6 = vld [vmem:[%s1232_s22 + $0x498] sm:$0xff]  ;;  %v361_v8 = vld [vmem:[%s1236_s24 + $0x20] sm:$0xff] }
  0x74   : > { %756 = vmatpush2.msra.mxu1 %v503_v27  ;;  %801 = vmatpush1.msra.mxu0 %v567_v28  ;;  %v459_v9 = vld [vmem:[%s1232_s22 + $0x290] sm:$0xff]  ;;  %v354_v11 = vld [vmem:[%s1234_s23 + $0x18] sm:$0xff]  ;;  %v356_v13 = vld [vmem:[%s1234_s23 + $0x28] sm:$0xff]  ;;  %v367_v18 = vmul.f32 %v361_v8, %v355_v7 }
  0x75   : > { %757 = vmatprep.subr.mxu1 %v500_v29  ;;  %802 = vmatprep.subr.mxu0 %v564_v30  ;;  %v523_v10 = vld [vmem:[%s1232_s22 + $0x490] sm:$0xff]  ;;  %v360_v12 = vld [vmem:[%s1236_s24 + $0x18] sm:$0xff]  ;;  %v362_v14 = vld [vmem:[%s1236_s24 + $0x28] sm:$0xff] }
  0x76   : > { %758 = vmatpush2.msra.mxu1 %v499_v31  ;;  %803 = vmatpush1.msra.mxu0 %v563_v32  ;;  %v456_v15 = vld [vmem:[%s1232_s22 + $0x278] sm:$0xff]  ;;  %v455_v19 = vld [vmem:[%s1232_s22 + $0x270] sm:$0xff]  ;;  %v366_v24 = vmul.f32 %v360_v12, %v354_v11  ;;  %v368_v25 = vmul.f32 %v362_v14, %v356_v13 }
  0x77   : > { %759 = vmatprep.subr.mxu1 %v496_v33  ;;  %804 = vmatprep.subr.mxu0 %v560_v34  ;;  %v520_v17 = vld [vmem:[%s1232_s22 + $0x478] sm:$0xff]  ;;  %v519_v22 = vld [vmem:[%s1232_s22 + $0x470] sm:$0xff] }
  0x78   : > { %760 = vmatpush2.msra.mxu1 %v495_v35  ;;  %805 = vmatpush1.msra.mxu0 %v559_v36  ;;  %v452_v26 = vld [vmem:[%s1232_s22 + $0x258] sm:$0xff]  ;;  %v451_v28 = vld [vmem:[%s1232_s22 + $0x250] sm:$0xff] }
  0x79   : > { %761 = vmatprep.subr.mxu1 %v492_v37  ;;  %806 = vmatprep.subr.mxu0 %v556_v38  ;;  %v516_v27 = vld [vmem:[%s1232_s22 + $0x458] sm:$0xff]  ;;  %v515_v29 = vld [vmem:[%s1232_s22 + $0x450] sm:$0xff] }
  0x7a   : > { %762 = vmatpush2.msra.mxu1 %v491_v39  ;;  %807 = vmatpush1.msra.mxu0 %v555_v40  ;;  %v448_v30 = vld [vmem:[%s1232_s22 + $0x238] sm:$0xff]  ;;  %v447_v32 = vld [vmem:[%s1232_s22 + $0x230] sm:$0xff] }
  0x7b   : > { %763 = vmatprep.subr.mxu1 %v488_v41  ;;  %808 = vmatprep.subr.mxu0 %v552_v42  ;;  %v512_v31 = vld [vmem:[%s1232_s22 + $0x438] sm:$0xff]  ;;  %v511_v33 = vld [vmem:[%s1232_s22 + $0x430] sm:$0xff] }
  0x7c   : > { %764 = vmatpush2.msra.mxu1 %v487_v43  ;;  %809 = vmatpush1.msra.mxu0 %v551_v44  ;;  %v444_v34 = vld [vmem:[%s1232_s22 + $0x218] sm:$0xff]  ;;  %v443_v36 = vld [vmem:[%s1232_s22 + $0x210] sm:$0xff]  ;;  %v370_v43 = vld [vmem:[#allocation2] sm:$0xff] }
  0x7d   : > { %765 = vmatprep.subr.mxu1 %v484_v45  ;;  %810 = vmatprep.subr.mxu0 %v548_v46  ;;  %v508_v35 = vld [vmem:[%s1232_s22 + $0x418] sm:$0xff]  ;;  %v507_v37 = vld [vmem:[%s1232_s22 + $0x410] sm:$0xff] }
  0x7e   : > { %766 = vmatpush2.msra.mxu1 %v483_v47  ;;  %811 = vmatpush1.msra.mxu0 %v547_v48  ;;  %v369_v39 = vld [vmem:[#allocation2 + $0x30] sm:$0xff]  ;;  %v373_v47 = vld [vmem:[#allocation2 + $0x8] sm:$0xff] }
  0x7f   : > { %767 = vmatprep.subr.mxu1 %v480_v49  ;;  %812 = vmatprep.subr.mxu0 %v544_v50 }
  0x80   : > { %768 = vmatpush2.msra.mxu1 %v479_v51  ;;  %813 = vmatpush1.msra.mxu0 %v543_v52 }
  0x81   : > { %769 = vmatprep.subr.mxu1 %v476_v53  ;;  %814 = vmatprep.subr.mxu0 %v540_v54 }
  0x82   : > { %770 = vmatpush2.msra.mxu1 %v475_v55  ;;  %815 = vmatpush1.msra.mxu0 %v539_v56  ;;  %v371_v55 = vld [vmem:[#allocation2 + $0x18] sm:$0xff] }
  0x83   : > { %771 = vmatprep.subr.mxu1 %v472_v57  ;;  %816 = vmatprep.subr.mxu0 %v536_v58 }
  0x84   : > { %772 = vmatpush2.msra.mxu1 %v471_v59  ;;  %817 = vmatpush1.msra.mxu0 %v535_v60  ;;  %v372_v59 = vld [vmem:[#allocation2 + $0x10] sm:$0xff] }
  0x85   : > { %773 = vmatprep.subr.mxu1 %v468_v61  ;;  %818 = vmatprep.subr.mxu0 %v532_v62 }
  0x86   : > { %774 = vmatpush2.msra.mxu1 %v467_v63  ;;  %819 = vmatpush1.msra.mxu0 %v531_v0  ;;  %v375_v0 = vld [vmem:[#allocation2 + $0x28] sm:$0xff] }
  0x87   : > { %775 = vmatprep.subr.mxu1 %v464_v1  ;;  %820 = vmatprep.subr.mxu0 %v528_v2 }
  0x88   : > { %776 = vmatpush2.msra.mxu1 %v463_v3  ;;  %821 = vmatpush1.msra.mxu0 %v527_v4 }
  0x89   : > { %777 = vmatprep.subr.mxu1 %v460_v5  ;;  %822 = vmatprep.subr.mxu0 %v524_v6  ;;  %v376_v5 = vld [vmem:[#allocation2 + $0x38] sm:$0xff] }
  0x8a   : > { %778 = vmatpush2.msra.mxu1 %v459_v9  ;;  %823 = vmatpush1.msra.mxu0 %v523_v10 }
  0x8b   : > { %779 = vmatprep.subr.mxu1 %v456_v15  ;;  %824 = vmatprep.subr.mxu0 %v520_v17 }
  0x8c   : > { %639 = vmatprep.mubr.f32.mxu0 %v367_v18  ;;  %716 = vmatprep.mubr.f32.mxu1 %v1148_v20 }
  0x8d   : > { %780 = vmatpush2.msra.mxu1 %v455_v19  ;;  %825 = vmatpush1.msra.mxu0 %v519_v22 }
  0x8e   : > { %640 = vmatmul.mubr.f32.gmra.mxu0 %v366_v24  ;;  %717 = vmatmul.mubr.f32.gmra.mxu1 %v368_v25 }
  0x8f   : > { %781 = vmatprep.subr.mxu1 %v452_v26  ;;  %826 = vmatprep.subr.mxu0 %v516_v27 }
  0x90   : > { %782 = vmatpush2.msra.mxu1 %v451_v28  ;;  %827 = vmatpush1.msra.mxu0 %v515_v29 }
  0x91   : > { %783 = vmatprep.subr.mxu1 %v448_v30  ;;  %828 = vmatprep.subr.mxu0 %v512_v31 }
  0x92   : > { %784 = vmatpush2.msra.mxu1 %v447_v32  ;;  %829 = vmatpush1.msra.mxu0 %v511_v33 }
  0x93   : > { %785 = vmatprep.subr.mxu1 %v444_v34  ;;  %830 = vmatprep.subr.mxu0 %v508_v35 }
  0x94   : > { %786 = vmatpush2.msra.mxu1 %v443_v36  ;;  %787 = vmatprep.mubr.f32.mxu1 %v1375_v21 }
  0x95   : > { %831 = vmatpush1.msra.mxu0 %v507_v37  ;;  %864 = vmatprep.mubr.f32.mxu0 %v1148_v20 }
  0x96   : > { %788 = vmatmul.mubr.f32.vlgmr.msra.gmra.mxu1 %v1378_v23  ;;  %865 = vmatmul.mubr.f32.vlgmr.msra.gmra.mxu0 %v1306_v16 }
  0x97   : > { %793 = vmatprep.mubr.f32.mxu1 %v367_v18  ;;  %870 = vmatprep.mubr.f32.mxu0 %v1148_v20  ;;  %v374_v20 = vld [vmem:[#allocation2 + $0x20] sm:$0xff] }
  0x9a   : > { %794 = vmatmul.mubr.f32.gmra.mxu1 %v366_v24  ;;  %871 = vmatmul.mubr.f32.gmra.mxu0 %v368_v25 }
 0x112   : > { %v712_v38 = vpop.f32.mrf.mxu1 }
 0x114   : > { %v714_v42 = vpop.f32.mrf.mxu1 }
 0x132   : > { %v635_v40 = vpop.f32.mrf.mxu0 }
 0x133   : > { %v713_v41 = vadd.f32 %v712_v38, %v635_v40 }
 0x134   : > { %v637_v44 = vpop.f32.mrf.mxu0 }
 0x135   : > { %v877_v21 = vadd.f32 %v713_v41, %v369_v39  ;;  %v715_v45 = vadd.f32 %v714_v42, %v637_v44 }
 0x137   : > { %885 = vst [vmem:[#allocation2 + $0x30] sm:$0xff] %v877_v21  ;;  %v878_v46 = vadd.f32 %v715_v45, %v370_v43 }
 0x139   : > { %886 = vst [vmem:[#allocation2] sm:$0xff] %v878_v46 }
 0x14e   : > { %v641_v23 = vpop.f32.mrf.mxu0  ;;  %v718_v16 = vpop.f32.mrf.mxu1 }
 0x14f   : > { %v719_v48 = vadd.f32 %v718_v16, %v641_v23 }
 0x150   : > { %v643_v49 = vpop.f32.mrf.mxu0  ;;  %v720_v50 = vpop.f32.mrf.mxu1 }
 0x151   : > { %v881_v51 = vadd.f32 %v719_v48, %v373_v47  ;;  %v721_v52 = vadd.f32 %v720_v50, %v643_v49 }
 0x153   : > { %889 = vst [vmem:[#allocation2 + $0x8] sm:$0xff] %v881_v51  ;;  %v882_v53 = vadd.f32 %v721_v52, %v374_v20 }
 0x155   : > { %890 = vst [vmem:[#allocation2 + $0x20] sm:$0xff] %v882_v53 }
 0x156   : > { %v789_v54 = vpop.f32.mrf.mxu1  ;;  %v866_v56 = vpop.f32.mrf.mxu0 }
 0x157   : > { %v867_v57 = vadd.f32 %v866_v56, %v789_v54 }
 0x158   : > { %v791_v58 = vpop.f32.mrf.mxu1  ;;  %v868_v60 = vpop.f32.mrf.mxu0 }
 0x159   : > { %v879_v61 = vadd.f32 %v867_v57, %v371_v55  ;;  %v869_v62 = vadd.f32 %v868_v60, %v791_v58 }
 0x15a   : > { %v795_v63 = vpop.f32.mrf.mxu1  ;;  %v872_v1 = vpop.f32.mrf.mxu0 }
 0x15b   : > { %887 = vst [vmem:[#allocation2 + $0x18] sm:$0xff] %v879_v61  ;;  %v880_v2 = vadd.f32 %v869_v62, %v372_v59  ;;  %v873_v3 = vadd.f32 %v872_v1, %v795_v63 }
 0x15c   : > { %v797_v4 = vpop.f32.mrf.mxu1  ;;  %v874_v6 = vpop.f32.mrf.mxu0 }
 0x15d   : > { %888 = vst [vmem:[#allocation2 + $0x10] sm:$0xff] %v880_v2  ;;  %v883_v7 = vadd.f32 %v873_v3, %v375_v0  ;;  %v875_v8 = vadd.f32 %v874_v6, %v797_v4  ;;  %896 = sbr.rel (%p1054_p11) target bundleno = 362 (0x16a), region = 86 }
 0x15f   : > { %891 = vst [vmem:[#allocation2 + $0x28] sm:$0xff] %v883_v7  ;;  %v884_v9 = vadd.f32 %v875_v8, %v376_v5 }
 0x161   : > { %892 = vst [vmem:[#allocation2 + $0x38] sm:$0xff] %v884_v9 }
 0x162   : > { %v897_v10 = vld [vmem:[#allocation2 + $0x30] sm:$0xff]  ;;  %v898_v11 = vld [vmem:[#allocation2] sm:$0xff]  ;;  %v899_v12 = vld [vmem:[#allocation2 + $0x18] sm:$0xff] }
 0x163   : > { %905 = vst [vmem:[%s1502_s3] sm:$0xff] %v897_v10  ;;  %906 = vst [vmem:[%s1502_s3 + $0x8] sm:$0xff] %v898_v11  ;;  %v901_v14 = vld [vmem:[#allocation2 + $0x8] sm:$0xff]  ;;  %v902_v15 = vld [vmem:[#allocation2 + $0x20] sm:$0xff] }
 0x164   : > { %907 = vst [vmem:[%s1502_s3 + $0x10] sm:$0xff] %v899_v12  ;;  %v900_v13 = vld [vmem:[#allocation2 + $0x10] sm:$0xff]  ;;  %909 = vst [vmem:[%s1502_s3 + $0x20] sm:$0xff] %v901_v14 }
 0x165   : > { %908 = vst [vmem:[%s1502_s3 + $0x18] sm:$0xff] %v900_v13  ;;  %910 = vst [vmem:[%s1502_s3 + $0x28] sm:$0xff] %v902_v15 }
 0x166   : > { %v903_v17 = vld [vmem:[#allocation2 + $0x28] sm:$0xff] }
 0x167   : > { %911 = vst [vmem:[%s1502_s3 + $0x30] sm:$0xff] %v903_v17 }
 0x168   : > { %v904_v18 = vld [vmem:[#allocation2 + $0x38] sm:$0xff] }
 0x169   : > { %912 = vst [vmem:[%s1502_s3 + $0x38] sm:$0xff] %v904_v18 }
 0x16a PF: > { %s13_s16 = sadd.s32 1, %s1145_s16   ;;  %s1504_s12 = smov %s1133_s13 }
 0x16b   : > { %p10_p12 = scmp.ge.s32.totalorder %s13_s16, 4   ;;  %s1505_s13 = smov %s1208_s21 }
 0x16c   : > { %s1506_s14 = smov %s1141_s15  ;;  %s1507_s15 = smov %s1509_s17 }
 0x16d   :  { %12 = sbr.rel (!%p10_p12) target bundleno = 3 (0x3), region = 132 }

</bundles_post_ra>
